<compile_context>
chip_gen: v6e
topology: v6e:2x2x1
jax: 0.10.0
libtpu: 0.0.40
codegen_flags: <defaults>
</compile_context>

<pallas_src>
import functools
import numpy as np
import jax
import jax.numpy as jnp
from jax.experimental import pallas as pl
from jax.experimental.pallas import tpu as pltpu

ACT_DTYPE = jnp.bfloat16      # activation dtype in HBM
PARAM_DTYPE = jnp.bfloat16    # parameter dtype in HBM


def _round_up(x, m):
    return ((x + m - 1) // m) * m


def _tpu_budgets():
    """Generation-dependent row tile / scoped-VMEM budget.
    v5e/v6e (128 MiB physical VMEM): 1024-row tiles, 96 MiB scoped limit.
    v7x (64 MiB) or unknown chip:     512-row tiles, 40 MiB scoped limit."""
    tile_m, vmem = 512, 40 * 1024 * 1024
    try:
        info = pltpu.get_tpu_info()
        cap = getattr(info, "vmem_capacity_bytes", None)
        if cap is not None and cap >= 100 * 1024 * 1024:
            tile_m, vmem = 1024, 96 * 1024 * 1024
    except Exception:
        pass
    return tile_m, vmem


TILE_M, VMEM_LIMIT = _tpu_budgets()


def _pick_tile(M, cap):
    """Return (row_tile, padded_rows).  Prefers a tile that divides M so the
    wrapper never has to jnp.pad / slice the activation in HBM."""
    if M <= cap:
        tm = _round_up(max(M, 8), 8)
        return tm, tm
    if M % 8 == 0:
        t = cap - cap % 8
        while t >= 128:
            if M % t == 0:
                return t, M
            t -= 8
    tm = cap - cap % 8
    return tm, _round_up(M, tm)


# ----------------------------------------------------------------------------
# Fused (optional LN) + Linear (+ activation) (+ residual) kernel
# ----------------------------------------------------------------------------

def _make_ln_linear_kernel(has_ln, has_res, activation):
    def kern(*refs):
        i = 0
        x_ref = refs[i]; i += 1
        if has_ln:
            g_ref, be_ref = refs[i], refs[i + 1]; i += 2
        w_ref, b_ref = refs[i], refs[i + 1]; i += 2
        if has_res:
            r_ref = refs[i]; i += 1
        o_ref = refs[i]

        x = x_ref[...].astype(jnp.float32)
        if has_ln:
            mu = jnp.mean(x, axis=-1, keepdims=True)
            var = jnp.mean(jnp.square(x - mu), axis=-1, keepdims=True)
            x = (x - mu) * jax.lax.rsqrt(var + 1e-5)
            x = x * g_ref[...].astype(jnp.float32) + be_ref[...].astype(jnp.float32)
        y = jnp.dot(x.astype(w_ref.dtype), w_ref[...],
                    preferred_element_type=jnp.float32)
        y = y + b_ref[...].astype(jnp.float32)
        if activation == "relu":
            y = jnp.maximum(y, 0.0)
        elif activation == "sigmoid":
            y = jax.nn.sigmoid(y)
        if has_res:
            y = y + r_ref[...].astype(jnp.float32)
        o_ref[...] = y.astype(o_ref.dtype)
    return kern


def linear_fused(x, w, b, *, ln=None, residual=None, activation=None,
                 out_dtype=None):
    """y = act(LN(x) @ w + b) (+ residual).  x: (..., K), w: (K, N)."""
    K, N = w.shape
    lead = x.shape[:-1]
    out_dtype = out_dtype or ACT_DTYPE
    x2 = x.reshape(-1, K)
    M = x2.shape[0]
    tm, Mp = _pick_tile(M, TILE_M)
    if Mp != M:
        x2 = jnp.pad(x2, ((0, Mp - M), (0, 0)))

    args = [x2]
    in_specs = [pl.BlockSpec((tm, K), lambda i: (i, 0))]
    if ln is not None:
        args += [ln["g"].reshape(1, K), ln["b"].reshape(1, K)]
        in_specs += [pl.BlockSpec((1, K), lambda i: (0, 0)),
                     pl.BlockSpec((1, K), lambda i: (0, 0))]
    args += [w, b.reshape(1, N)]
    in_specs += [pl.BlockSpec((K, N), lambda i: (0, 0)),
                 pl.BlockSpec((1, N), lambda i: (0, 0))]
    if residual is not None:
        r2 = residual.reshape(-1, N)
        if Mp != M:
            r2 = jnp.pad(r2, ((0, Mp - M), (0, 0)))
        args.append(r2)
        in_specs.append(pl.BlockSpec((tm, N), lambda i: (i, 0)))

    out = pl.pallas_call(
        _make_ln_linear_kernel(ln is not None, residual is not None, activation),
        out_shape=jax.ShapeDtypeStruct((Mp, N), out_dtype),
        grid=(Mp // tm,),
        in_specs=in_specs,
        out_specs=pl.BlockSpec((tm, N), lambda i: (i, 0)),
        compiler_params=pltpu.CompilerParams(
            dimension_semantics=("parallel",), vmem_limit_bytes=VMEM_LIMIT),
    )(*args)
    if Mp != M:
        out = out[:M]
    return out.reshape(*lead, N)


# ----------------------------------------------------------------------------
# Fused LN + FeedForward (W1, ReLU, W2) + residual kernel
# ----------------------------------------------------------------------------

def _ff_kernel(x_ref, g_ref, be_ref, w1_ref, b1_ref, w2_ref, b2_ref, o_ref):
    x = x_ref[...].astype(jnp.float32)
    mu = jnp.mean(x, axis=-1, keepdims=True)
    var = jnp.mean(jnp.square(x - mu), axis=-1, keepdims=True)
    xn = (x - mu) * jax.lax.rsqrt(var + 1e-5)
    xn = xn * g_ref[...].astype(jnp.float32) + be_ref[...].astype(jnp.float32)
    h = jnp.dot(xn.astype(w1_ref.dtype), w1_ref[...],
                preferred_element_type=jnp.float32)
    h = jnp.maximum(h + b1_ref[...].astype(jnp.float32), 0.0)
    y = jnp.dot(h.astype(w2_ref.dtype), w2_ref[...],
                preferred_element_type=jnp.float32)
    y = y + b2_ref[...].astype(jnp.float32) + x          # residual (pre-LN input)
    o_ref[...] = y.astype(o_ref.dtype)


def ff_block(x, ln, p):
    """x + W2(ReLU(W1(LN(x)))) fused.  x: (..., D)."""
    D = x.shape[-1]
    H = p["w1"]["w"].shape[-1]
    lead = x.shape[:-1]
    x2 = x.reshape(-1, D)
    M = x2.shape[0]
    tm, Mp = _pick_tile(M, TILE_M)
    if Mp != M:
        x2 = jnp.pad(x2, ((0, Mp - M), (0, 0)))
    out = pl.pallas_call(
        _ff_kernel,
        out_shape=jax.ShapeDtypeStruct((Mp, D), ACT_DTYPE),
        grid=(Mp // tm,),
        in_specs=[
            pl.BlockSpec((tm, D), lambda i: (i, 0)),
            pl.BlockSpec((1, D), lambda i: (0, 0)),
            pl.BlockSpec((1, D), lambda i: (0, 0)),
            pl.BlockSpec((D, H), lambda i: (0, 0)),
            pl.BlockSpec((1, H), lambda i: (0, 0)),
            pl.BlockSpec((H, D), lambda i: (0, 0)),
            pl.BlockSpec((1, D), lambda i: (0, 0)),
        ],
        out_specs=pl.BlockSpec((tm, D), lambda i: (i, 0)),
        compiler_params=pltpu.CompilerParams(
            dimension_semantics=("parallel",), vmem_limit_bytes=VMEM_LIMIT),
    )(x2, ln["g"].reshape(1, D), ln["b"].reshape(1, D),
      p["w1"]["w"], p["w1"]["b"].reshape(1, H),
      p["w2"]["w"], p["w2"]["b"].reshape(1, D))
    if Mp != M:
        out = out[:M]
    return out.reshape(*lead, D)


# ----------------------------------------------------------------------------
# Fused LN + multi-head attention + output projection + residual kernel
# (q-tiled; scale folded into the q projection; per-head output projection is
#  accumulated instead of concatenating head outputs)
# ----------------------------------------------------------------------------

def _make_attn_block_kernel(n_head, dh, s_real):
    d = n_head * dh

    def kern(xf_ref, xq_ref, g_ref, be_ref, wq_ref, bq_ref, wkv_ref, bkv_ref,
             wo_ref, bo_ref, o_ref):
        g = g_ref[...].astype(jnp.float32)
        be = be_ref[...].astype(jnp.float32)

        def ln(t):
            mu = jnp.mean(t, axis=-1, keepdims=True)
            var = jnp.mean(jnp.square(t - mu), axis=-1, keepdims=True)
            return (t - mu) * jax.lax.rsqrt(var + 1e-5) * g + be

        xq = xq_ref[0].astype(jnp.float32)                      # (tq, d) raw
        xfn = ln(xf_ref[0].astype(jnp.float32)).astype(wkv_ref.dtype)  # (S, d)
        xqn = ln(xq).astype(wq_ref.dtype)                       # (tq, d)

        q = jnp.dot(xqn, wq_ref[...], preferred_element_type=jnp.float32)
        q = (q + bq_ref[...].astype(jnp.float32)).astype(wq_ref.dtype)   # (tq, d)
        kv = jnp.dot(xfn, wkv_ref[...], preferred_element_type=jnp.float32)
        kv = (kv + bkv_ref[...].astype(jnp.float32)).astype(wkv_ref.dtype)
        k, v = kv[:, :d], kv[:, d:]                             # (S, d) each
        s_total = k.shape[0]
        if s_total != s_real:   # padded key rows -> mask them out of the softmax
            key_mask = jax.lax.broadcasted_iota(jnp.int32, (1, s_total), 1) < s_real

        y = xq + bo_ref[...].astype(jnp.float32)                # (tq, d) f32 acc
        for h in range(n_head):                                 # static unroll
            qh = q[:, h * dh:(h + 1) * dh]
            kh = k[:, h * dh:(h + 1) * dh]
            vh = v[:, h * dh:(h + 1) * dh]
            s = jax.lax.dot_general(qh, kh, (((1,), (1,)), ((), ())),
                                    preferred_element_type=jnp.float32)  # (tq, S)
            if s_total != s_real:
                s = jnp.where(key_mask, s, -1e30)
            s = s - jnp.max(s, axis=-1, keepdims=True)
            p = jnp.exp(s)
            p = p * pl.reciprocal(jnp.sum(p, axis=-1, keepdims=True), approx=True)
            pv = jnp.dot(p.astype(vh.dtype), vh,
                         preferred_element_type=jnp.float32)    # (tq, dh)
            # accumulate this head's slice of the output projection directly;
            # no (tq, d) concat / scratch slab is ever materialized.
            y = y + jnp.dot(pv.astype(wo_ref.dtype), wo_ref[h * dh:(h + 1) * dh, :],
                            preferred_element_type=jnp.float32)
        o_ref[0] = y.astype(o_ref.dtype)
    return kern


def attn_block(x, ln, p, n_head):
    """x + MHA(LN(x)) over axis -2, q-tiled.  x: (..., S, d)."""
    *lead, S, d = x.shape
    G = int(np.prod(lead)) if lead else 1
    x3 = x.reshape(G, S, d)
    dh = d // n_head
    scale = 1.0 / float(np.sqrt(dh))

    # fold the softmax scale into the q projection (zero in-kernel cost)
    w = p["wqkv"]["w"]
    b = p["wqkv"]["b"]
    wq, bq = w[:, :d] * scale, b[:d] * scale
    wkv, bkv = w[:, d:], b[d:]

    if S <= 512:
        tq, S_pad = S, S
    else:
        tq = 256
        S_pad = _round_up(S, tq)
    x_in = x3 if S_pad == S else jnp.pad(x3, ((0, 0), (0, S_pad - S), (0, 0)))
    n_q = S_pad // tq

    out = pl.pallas_call(
        _make_attn_block_kernel(n_head, dh, S),
        out_shape=jax.ShapeDtypeStruct((G, S_pad, d), ACT_DTYPE),
        grid=(G, n_q),
        in_specs=[
            pl.BlockSpec((1, S_pad, d), lambda g, q: (g, 0, 0)),   # full rows (K/V)
            pl.BlockSpec((1, tq, d), lambda g, q: (g, q, 0)),      # query rows
            pl.BlockSpec((1, d), lambda g, q: (0, 0)),
            pl.BlockSpec((1, d), lambda g, q: (0, 0)),
            pl.BlockSpec((d, d), lambda g, q: (0, 0)),
            pl.BlockSpec((1, d), lambda g, q: (0, 0)),
            pl.BlockSpec((d, 2 * d), lambda g, q: (0, 0)),
            pl.BlockSpec((1, 2 * d), lambda g, q: (0, 0)),
            pl.BlockSpec((d, d), lambda g, q: (0, 0)),
            pl.BlockSpec((1, d), lambda g, q: (0, 0)),
        ],
        out_specs=pl.BlockSpec((1, tq, d), lambda g, q: (g, q, 0)),
        compiler_params=pltpu.CompilerParams(
            dimension_semantics=("parallel", "parallel"),
            vmem_limit_bytes=VMEM_LIMIT),
    )(x_in, x_in, ln["g"].reshape(1, d), ln["b"].reshape(1, d),
      wq, bq.reshape(1, d), wkv, bkv.reshape(1, 2 * d),
      p["wo"]["w"], p["wo"]["b"].reshape(1, d))
    if S_pad != S:
        out = out[:, :S, :]
    return out.reshape(*lead, S, d)


# ----------------------------------------------------------------------------
# Coevolution gram kernel: (1/N) * xd^T @ xd per batch, contraction over the
# leading MSA axis (trans-A), so the XLA (0,2,3,1) transpose and the separate
# 1/N scaling pass disappear.  Output stays f32 (precision).
# ----------------------------------------------------------------------------

def _gram_kernel(inv_n, a_ref, b_ref, o_ref, acc_ref):
    @pl.when(pl.program_id(3) == 0)
    def _():
        acc_ref[...] = jnp.zeros_like(acc_ref)
    acc_ref[...] += jax.lax.dot_general(
        a_ref[0], b_ref[0], (((0,), (0,)), ((), ())),
        preferred_element_type=jnp.float32)
    @pl.when(pl.program_id(3) == pl.num_programs(3) - 1)
    def _():
        o_ref[0] = (acc_ref[...] * inv_n).astype(o_ref.dtype)


def coevol_gram(xd2, n_seq):
    """xd2: (B, K, M) -> (B, M, M) f32 with out[b] = (1/n_seq) * xd2[b]^T @ xd2[b]."""
    B, K, M = xd2.shape
    inv_n = 1.0 / float(n_seq)
    tm = M if M <= 512 else 256
    tn = tm
    if K <= 512:
        tk, Kp = K, K
    else:
        tk = 256
        Kp = _round_up(K, tk)
    if Kp != K:  # zero-pad the contraction so partial blocks never pollute the acc
        xd2 = jnp.pad(xd2, ((0, 0), (0, Kp - K), (0, 0)))
    grid = (B, pl.cdiv(M, tm), pl.cdiv(M, tn), Kp // tk)
    return pl.pallas_call(
        functools.partial(_gram_kernel, inv_n),
        out_shape=jax.ShapeDtypeStruct((B, M, M), jnp.float32),
        grid=grid,
        in_specs=[
            pl.BlockSpec((1, tk, tm), lambda b, i, j, kk: (b, kk, i)),
            pl.BlockSpec((1, tk, tn), lambda b, i, j, kk: (b, kk, j)),
        ],
        out_specs=pl.BlockSpec((1, tm, tn), lambda b, i, j, kk: (b, i, j)),
        scratch_shapes=[pltpu.VMEM((tm, tn), jnp.float32)],
        compiler_params=pltpu.CompilerParams(
            dimension_semantics=("parallel", "parallel", "parallel", "arbitrary"),
            vmem_limit_bytes=VMEM_LIMIT),
    )(xd2, xd2)


# ----------------------------------------------------------------------------
# Positional encodings / sequence-separation features (plain-JAX glue)
# ----------------------------------------------------------------------------

def sinusoid_pe(idx, d_model):
    pos = idx.astype(jnp.float32)[..., None]
    div = jnp.exp(jnp.arange(0, d_model, 2, dtype=jnp.float32)
                  * (-np.log(10000.0) / d_model))
    ang = pos * div
    pe = jnp.zeros(idx.shape + (d_model,), jnp.float32)
    pe = pe.at[..., 0::2].set(jnp.sin(ang))
    pe = pe.at[..., 1::2].set(jnp.cos(ang))
    return pe


def sinusoid_pe2d(idx, d_model):
    half = d_model // 2
    div = jnp.exp(jnp.arange(0, half, 2, dtype=jnp.float32)
                  * (-np.log(10000.0) / half))
    ang = idx.astype(jnp.float32)[..., None] * div
    emb = jnp.concatenate([jnp.sin(ang), jnp.cos(ang)], axis=-1)   # (B, L, half)
    B, L = idx.shape
    pe_row = jnp.broadcast_to(emb[:, :, None, :], (B, L, L, half))
    pe_col = jnp.broadcast_to(emb[:, None, :, :], (B, L, L, half))
    return jnp.concatenate([pe_row, pe_col], axis=-1)


def get_seqsep(idx):
    idx_f = idx.astype(jnp.float32)
    sep = idx_f[:, None, :] - idx_f[:, :, None]
    sign = jnp.sign(sep)
    s = jnp.clip(jnp.log(jnp.abs(sep) + 1.0), 0.0, 5.5)
    return (sign * s)[..., None]


# ----------------------------------------------------------------------------
# RoseTTAFold sub-modules
# ----------------------------------------------------------------------------

def msa_emb(p, msa_tok, idx):
    B, N, L = msa_tok.shape
    d = p["emb"].shape[-1]
    out = p["emb"][msa_tok].astype(jnp.float32)
    out = out + sinusoid_pe(idx, d)[:, None, :, :]
    q_idx = jnp.where(jnp.arange(N) == 0, 0, 1)
    out = out + p["pe_q"][q_idx].astype(jnp.float32)[None, :, None, :]
    return out.astype(ACT_DTYPE)


def pair_emb_wo_templ(p, seq_tok, idx):
    """left/right/seqsep projection decomposed so the (B,L,L,2*half+1) concat
    is never materialized; the positional encoding is folded into the single
    broadcast-add pass that writes pair."""
    B, L = seq_tok.shape
    d_pair = p["proj"]["w"].shape[-1]
    half = p["emb"].shape[-1]
    s = p["emb"][seq_tok].astype(ACT_DTYPE)                      # (B, L, half)
    w = p["proj"]["w"]
    w_left, w_right, w_sep = w[:half], w[half:2 * half], w[2 * half:]
    left = linear_fused(s, w_left, p["proj"]["b"])               # (B, L, d_pair)
    right = linear_fused(s, w_right, jnp.zeros((d_pair,), PARAM_DTYPE))
    pair = (left[:, :, None, :].astype(jnp.float32)
            + right[:, None, :, :].astype(jnp.float32)
            + get_seqsep(idx) * w_sep.astype(jnp.float32)
            + sinusoid_pe2d(idx, d_pair))                        # one fused XLA pass
    return pair.astype(ACT_DTYPE)


def feat_extractor(p, msa, pair, seq1hot, idx, *, n_head_msa, n_head_pair):
    B, N, L, d_msa = msa.shape
    dp = p["coevol_down"]["w"].shape[-1]

    # --- CoevolExtractor analogue: LN + down-proj (fused) -> gram kernel ---
    xd = linear_fused(msa, p["coevol_down"]["w"], p["coevol_down"]["b"],
                      ln=p["coevol_norm"])                       # (B, N, L, dp)
    xd2 = xd.reshape(B, N, L * dp)                               # free reshape
    op = coevol_gram(xd2, N)                                     # (B, L*dp, L*dp) f32
    # TODO(synk): the (L*dp)x(L*dp) -> (L,L,dp*dp) re-layout is still an XLA
    # transpose; fusing it into the gram kernel needs an in-register 4-D permute.
    op = op.reshape(B, L, dp, L, dp).transpose(0, 1, 3, 2, 4).reshape(B, L, L, dp * dp)
    # LN + projection + residual add onto pair, one fused kernel
    pair = linear_fused(op, p["coevol_proj"]["w"], p["coevol_proj"]["b"],
                        ln=p["coevol_norm2d"], residual=pair)

    # --- iterative MSA / pair attention blocks (fully fused sub-blocks) ---
    for blk in p["blocks"]:
        msa = attn_block(msa, blk["msa_ln"], blk["msa_attn"], n_head_msa)
        msa = ff_block(msa, blk["msa_ff_ln"], blk["msa_ff"])

        pair = attn_block(pair, blk["pair_row_ln"], blk["pair_row_attn"], n_head_pair)
        # TODO(synk): column attention still uses XLA-materialized transposes; a
        # BlockSpec-side transpose would need a (1, L, 1, d) block, which
        # violates the (8,128) tiling rule.
        pair_t = jnp.transpose(pair, (0, 2, 1, 3))
        pair_t = attn_block(pair_t, blk["pair_col_ln"], blk["pair_col_attn"],
                            n_head_pair)
        pair = jnp.transpose(pair_t, (0, 2, 1, 3))
        pair = ff_block(pair, blk["pair_ff_ln"], blk["pair_ff"])

    # TODO(synk): InitStr_Network / Str2Str use an SE3-transformer over a DGL graph,
    # which has no Pallas equivalent; replaced with linear regression heads on the
    # query-sequence MSA features (xyz: N,CA,C backbone coords; lddt: per-residue).
    query = msa[:, 0]                                            # (B, L, d_msa)
    feat = jnp.concatenate([query, seq1hot.astype(query.dtype)], axis=-1)
    fw = feat.shape[-1]
    dm = query.shape[-1]
    # fuse the xyz(9) + lddt(1) heads into one 128-lane padded projection
    w_ld = jnp.pad(p["lddt"]["w"], ((0, fw - dm), (0, 0)))       # lddt sees query only
    w_head = jnp.concatenate([p["str_xyz"]["w"], w_ld], axis=-1)  # (fw, 10)
    b_head = jnp.concatenate([p["str_xyz"]["b"], p["lddt"]["b"]])
    n_pad = 128 - w_head.shape[-1]
    w_head = jnp.pad(w_head, ((0, 0), (0, n_pad)))
    b_head = jnp.pad(b_head, ((0, n_pad),))
    head = linear_fused(feat, w_head, b_head, out_dtype=jnp.float32)  # (B, L, 128)
    xyz = head[..., :9].reshape(B, L, 3, 3)
    lddt = jax.nn.sigmoid(head[..., 9:10]).reshape(B, L, 1)
    return msa, pair, xyz, lddt


def distance_network(p, pair):
    """Fused sym(74)+asym(56) projection padded to 256 lanes (lane-dense stores);
    symmetrization and the NCHW permute happen in plain JAX."""
    B, L, _, C = pair.shape
    w, b = p["proj"]["w"], p["proj"]["b"]
    n_out = w.shape[-1]                              # 130
    n_pad = _round_up(n_out, 128) - n_out            # pad to 256
    w_p = jnp.pad(w, ((0, 0), (0, n_pad)))
    b_p = jnp.pad(b, ((0, n_pad),))
    y = linear_fused(pair, w_p, b_p, out_dtype=jnp.float32)[..., :n_out]
    sym, asym = y[..., :74], y[..., 74:]
    sym = sym + jnp.transpose(sym, (0, 2, 1, 3))
    logits_dist = jnp.transpose(sym[..., :37], (0, 3, 1, 2))
    logits_omega = jnp.transpose(sym[..., 37:], (0, 3, 1, 2))
    logits_theta = jnp.transpose(asym[..., :37], (0, 3, 1, 2))
    logits_phi = jnp.transpose(asym[..., 37:], (0, 3, 1, 2))
    return (logits_dist, logits_omega, logits_theta, logits_phi)


# ----------------------------------------------------------------------------
# Top-level RoseTTAFoldModule forward
# ----------------------------------------------------------------------------

def rosettafold_forward(params, msa_tok, seq_tok, idx, *, n_head_msa, n_head_pair):
    B, N, L = msa_tok.shape
    msa = msa_emb(params["msa_emb"], msa_tok, idx)
    pair = pair_emb_wo_templ(params["pair_emb"], seq_tok, idx)   # use_templ=False
    seq1hot = jax.nn.one_hot(seq_tok, 21, dtype=ACT_DTYPE)
    msa, pair, xyz, lddt = feat_extractor(params["feat"], msa, pair, seq1hot, idx,
                                          n_head_msa=n_head_msa,
                                          n_head_pair=n_head_pair)
    logits = distance_network(params["c6d"], pair)
    return logits, xyz, lddt.reshape(B, L)


# ----------------------------------------------------------------------------
# Deterministic parameter initialization (bf16 in HBM)
# ----------------------------------------------------------------------------

def init_params(key, *, d_msa, d_pair, n_module, r_ff, d_coevol=8):
    keys = jax.random.split(key, 512)
    ctr = [0]

    def nxt():
        k = keys[ctr[0]]
        ctr[0] += 1
        return k

    def dense(din, dout):
        w = (jax.random.normal(nxt(), (din, dout), jnp.float32)
             / np.sqrt(din)).astype(PARAM_DTYPE)
        return {"w": w, "b": jnp.zeros((dout,), PARAM_DTYPE)}

    def ln(d):
        return {"g": jnp.ones((d,), PARAM_DTYPE), "b": jnp.zeros((d,), PARAM_DTYPE)}

    def attn(d):
        return {"wqkv": dense(d, 3 * d), "wo": dense(d, d)}

    def ff(d, r):
        return {"w1": dense(d, d * r), "w2": dense(d * r, d)}

    blocks = []
    for _ in range(n_module):
        blocks.append({
            "msa_ln": ln(d_msa), "msa_attn": attn(d_msa),
            "msa_ff_ln": ln(d_msa), "msa_ff": ff(d_msa, r_ff),
            "pair_row_ln": ln(d_pair), "pair_row_attn": attn(d_pair),
            "pair_col_ln": ln(d_pair), "pair_col_attn": attn(d_pair),
            "pair_ff_ln": ln(d_pair), "pair_ff": ff(d_pair, r_ff),
        })

    return {
        "msa_emb": {
            "emb": (0.02 * jax.random.normal(nxt(), (21, d_msa), jnp.float32)
                    ).astype(PARAM_DTYPE),
            "pe_q": (0.02 * jax.random.normal(nxt(), (2, d_msa), jnp.float32)
                     ).astype(PARAM_DTYPE),
        },
        "pair_emb": {
            "emb": (0.02 * jax.random.normal(nxt(), (21, d_pair // 2), jnp.float32)
                    ).astype(PARAM_DTYPE),
            "proj": dense(d_pair + 1, d_pair),
        },
        "feat": {
            "coevol_norm": ln(d_msa),
            "coevol_down": dense(d_msa, d_coevol),
            "coevol_norm2d": ln(d_coevol * d_coevol),
            "coevol_proj": dense(d_coevol * d_coevol, d_pair),
            "blocks": blocks,
            "str_xyz": dense(d_msa + 21, 9),
            "lddt": dense(d_msa, 1),
        },
        # fused sym(74) + asym(37+19) projection -> 130 output channels
        "c6d": {"proj": dense(d_pair, 74 + 37 + 19)},
    }


# ----------------------------------------------------------------------------
# Main
# ----------------------------------------------------------------------------

if __name__ == "__main__":
    B, N, L = 1, 4, 16
    d_msa, d_pair = 64, 128            # module defaults
    n_head_msa, n_head_pair = 4, 8     # module defaults
    n_module, r_ff = 2, 2              # reduced depth for the smoke test

    key = jax.random.PRNGKey(0)
    kp, kd = jax.random.split(key)
    params = init_params(kp, d_msa=d_msa, d_pair=d_pair,
                         n_module=n_module, r_ff=r_ff)

    msa_tok = jax.random.randint(kd, (B, N, L), 0, 21, dtype=jnp.int32)
    seq_tok = msa_tok[:, 0, :]                       # query sequence
    idx = jnp.broadcast_to(jnp.arange(L, dtype=jnp.int32), (B, L))

    fwd = jax.jit(functools.partial(rosettafold_forward,
                                    n_head_msa=n_head_msa,
                                    n_head_pair=n_head_pair))
    logits, xyz, lddt = fwd(params, msa_tok, seq_tok, idx)
    jax.block_until_ready((logits, xyz, lddt))

    assert logits[0].shape == (B, 37, L, L)
    assert logits[1].shape == (B, 37, L, L)
    assert logits[2].shape == (B, 37, L, L)
    assert logits[3].shape == (B, 19, L, L)
    assert xyz.shape == (B, L, 3, 3)
    assert lddt.shape == (B, L)
    print("KERNEL_OK")
</pallas_src>

<mosaic_0001>
module attributes {stable_mosaic.version = 11 : i64} {
  func.func @kern(%arg0: i32, %arg1: memref<64x64xbf16, #tpu.memory_space<vmem>>, %arg2: memref<1x64xbf16, #tpu.memory_space<vmem>>, %arg3: memref<1x64xbf16, #tpu.memory_space<vmem>>, %arg4: memref<64x8xbf16, #tpu.memory_space<vmem>>, %arg5: memref<1x8xbf16, #tpu.memory_space<vmem>>, %arg6: memref<64x8xbf16, #tpu.memory_space<vmem>>) attributes {dimension_semantics = [#tpu.dimension_semantics<parallel>], iteration_bounds = array<i64: 1>, scalar_prefetch = 0 : i64, scratch_operands = 0 : i64, tpu.core_type = #tpu.core_type<tc>, window_params = [{transform_indices = @transform_0, window_bounds = array<i64: 64, 64>}, {pipeline_mode = #tpu.pipeline_mode<synchronous>, transform_indices = @transform_1, window_bounds = array<i64: 1, 64>}, {pipeline_mode = #tpu.pipeline_mode<synchronous>, transform_indices = @transform_2, window_bounds = array<i64: 1, 64>}, {pipeline_mode = #tpu.pipeline_mode<synchronous>, transform_indices = @transform_3, window_bounds = array<i64: 64, 8>}, {pipeline_mode = #tpu.pipeline_mode<synchronous>, transform_indices = @transform_4, window_bounds = array<i64: 1, 8>}, {transform_indices = @transform_5, window_bounds = array<i64: 64, 8>}]} {
    %c0 = arith.constant 0 : index
    %c0_0 = arith.constant 0 : index
    %0 = vector.load %arg1[%c0, %c0_0] : memref<64x64xbf16, #tpu.memory_space<vmem>>, vector<64x64xbf16>
    %1 = arith.extf %0 : vector<64x64xbf16> to vector<64x64xf32>
    %cst = arith.constant dense<0.000000e+00> : vector<64xf32>
    %2 = vector.multi_reduction <add>, %1, %cst [1] : vector<64x64xf32> to vector<64xf32>
    %3 = vector.shape_cast %2 : vector<64xf32> to vector<64x1xf32>
    %cst_1 = arith.constant 6.400000e+01 : f32
    %4 = vector.broadcast %cst_1 : f32 to vector<64x1xf32>
    %5 = arith.divf %3, %4 : vector<64x1xf32>
    %6 = vector.broadcast %5 : vector<64x1xf32> to vector<64x64xf32>
    %7 = arith.subf %1, %6 : vector<64x64xf32>
    %8 = arith.mulf %7, %7 : vector<64x64xf32>
    %cst_2 = arith.constant dense<0.000000e+00> : vector<64xf32>
    %9 = vector.multi_reduction <add>, %8, %cst_2 [1] : vector<64x64xf32> to vector<64xf32>
    %10 = vector.shape_cast %9 : vector<64xf32> to vector<64x1xf32>
    %cst_3 = arith.constant 6.400000e+01 : f32
    %11 = vector.broadcast %cst_3 : f32 to vector<64x1xf32>
    %12 = arith.divf %10, %11 : vector<64x1xf32>
    %13 = vector.broadcast %5 : vector<64x1xf32> to vector<64x64xf32>
    %14 = arith.subf %1, %13 : vector<64x64xf32>
    %cst_4 = arith.constant 9.99999974E-6 : f32
    %15 = vector.broadcast %cst_4 : f32 to vector<64x1xf32>
    %16 = arith.addf %12, %15 : vector<64x1xf32>
    %17 = math.rsqrt %16 : vector<64x1xf32>
    %18 = vector.broadcast %17 : vector<64x1xf32> to vector<64x64xf32>
    %19 = arith.mulf %14, %18 : vector<64x64xf32>
    %c0_5 = arith.constant 0 : index
    %c0_6 = arith.constant 0 : index
    %20 = vector.load %arg2[%c0_5, %c0_6] : memref<1x64xbf16, #tpu.memory_space<vmem>>, vector<1x64xbf16>
    %21 = arith.extf %20 : vector<1x64xbf16> to vector<1x64xf32>
    %22 = vector.broadcast %21 : vector<1x64xf32> to vector<64x64xf32>
    %23 = arith.mulf %19, %22 : vector<64x64xf32>
    %c0_7 = arith.constant 0 : index
    %c0_8 = arith.constant 0 : index
    %24 = vector.load %arg3[%c0_7, %c0_8] : memref<1x64xbf16, #tpu.memory_space<vmem>>, vector<1x64xbf16>
    %25 = arith.extf %24 : vector<1x64xbf16> to vector<1x64xf32>
    %26 = vector.broadcast %25 : vector<1x64xf32> to vector<64x64xf32>
    %27 = arith.addf %23, %26 : vector<64x64xf32>
    %28 = arith.truncf %27 : vector<64x64xf32> to vector<64x64xbf16>
    %c0_9 = arith.constant 0 : index
    %c0_10 = arith.constant 0 : index
    %29 = vector.load %arg4[%c0_9, %c0_10] : memref<64x8xbf16, #tpu.memory_space<vmem>>, vector<64x8xbf16>
    %cst_11 = arith.constant dense<0.000000e+00> : vector<64x8xf32>
    %30 = tpu.matmul %28, %29, %cst_11 {dimension_numbers = #tpu.dot_dimension_numbers<[1], [0], [0], [1], [0, 0, 1, 1], [], []>} : vector<64x64xbf16>, vector<64x8xbf16>, vector<64x8xf32> -> vector<64x8xf32>
    %c0_12 = arith.constant 0 : index
    %c0_13 = arith.constant 0 : index
    %31 = vector.load %arg5[%c0_12, %c0_13] : memref<1x8xbf16, #tpu.memory_space<vmem>>, vector<1x8xbf16>
    %32 = arith.extf %31 : vector<1x8xbf16> to vector<1x8xf32>
    %33 = vector.broadcast %32 : vector<1x8xf32> to vector<64x8xf32>
    %34 = arith.addf %30, %33 : vector<64x8xf32>
    %35 = arith.truncf %34 : vector<64x8xf32> to vector<64x8xbf16>
    %c0_14 = arith.constant 0 : index
    %c0_15 = arith.constant 0 : index
    %36 = vector.load %arg6[%c0_14, %c0_15] : memref<64x8xbf16, #tpu.memory_space<vmem>>, vector<64x8xbf16>
    tpu.vector_store %arg6[%c0_14, %c0_15], %35 {strides = array<i32>} : memref<64x8xbf16, #tpu.memory_space<vmem>>, vector<64x8xbf16>,
    return
  }
  func.func @transform_0(%arg0: i32) -> (i32, i32) {
    %c0_i32 = arith.constant 0 : i32
    %c0_i32_0 = arith.constant 0 : i32
    return %arg0, %c0_i32 : i32, i32
  }
  func.func @transform_1(%arg0: i32) -> (i32, i32) {
    %c0_i32 = arith.constant 0 : i32
    %c0_i32_0 = arith.constant 0 : i32
    %c0_i32_1 = arith.constant 0 : i32
    return %c0_i32, %c0_i32_0 : i32, i32
  }
  func.func @transform_2(%arg0: i32) -> (i32, i32) {
    %c0_i32 = arith.constant 0 : i32
    %c0_i32_0 = arith.constant 0 : i32
    %c0_i32_1 = arith.constant 0 : i32
    return %c0_i32, %c0_i32_0 : i32, i32
  }
  func.func @transform_3(%arg0: i32) -> (i32, i32) {
    %c0_i32 = arith.constant 0 : i32
    %c0_i32_0 = arith.constant 0 : i32
    %c0_i32_1 = arith.constant 0 : i32
    return %c0_i32, %c0_i32_0 : i32, i32
  }
  func.func @transform_4(%arg0: i32) -> (i32, i32) {
    %c0_i32 = arith.constant 0 : i32
    %c0_i32_0 = arith.constant 0 : i32
    %c0_i32_1 = arith.constant 0 : i32
    return %c0_i32, %c0_i32_0 : i32, i32
  }
  func.func @transform_5(%arg0: i32) -> (i32, i32) {
    %c0_i32 = arith.constant 0 : i32
    %c0_i32_0 = arith.constant 0 : i32
    return %arg0, %c0_i32 : i32, i32
  }
}

module attributes {stable_mosaic.version = 11 : i64} {
  func.func @_gram_kernel(%arg0: i32, %arg1: i32, %arg2: i32, %arg3: i32, %arg4: memref<1x4x128xbf16, #tpu.memory_space<vmem>>, %arg5: memref<1x4x128xbf16, #tpu.memory_space<vmem>>, %arg6: memref<1x128x128xf32, #tpu.memory_space<vmem>>, %arg7: memref<128x128xf32, #tpu.memory_space<vmem>>) attributes {dimension_semantics = [#tpu.dimension_semantics<parallel>, #tpu.dimension_semantics<parallel>, #tpu.dimension_semantics<parallel>, #tpu.dimension_semantics<arbitrary>], iteration_bounds = array<i64: 1, 1, 1, 1>, scalar_prefetch = 0 : i64, scratch_operands = 1 : i64, tpu.core_type = #tpu.core_type<tc>, window_params = [{transform_indices = @transform_0, window_bounds = array<i64: 1, 4, 128>}, {transform_indices = @transform_1, window_bounds = array<i64: 1, 4, 128>}, {transform_indices = @transform_2, window_bounds = array<i64: 1, 128, 128>}]} {
    %c0_i32 = arith.constant 0 : i32
    %0 = arith.cmpi eq, %arg3, %c0_i32 : i32
    %1 = arith.extui %0 : i1 to i32
    %c0_i32_0 = arith.constant 0 : i32
    %2 = arith.cmpi ne, %1, %c0_i32_0 : i32
    scf.if %2 {
      %cst_12 = arith.constant 0.000000e+00 : f32
      %14 = vector.broadcast %cst_12 : f32 to vector<128x128xf32>
      %c0_13 = arith.constant 0 : index
      %c0_14 = arith.constant 0 : index
      %15 = vector.load %arg7[%c0_13, %c0_14] : memref<128x128xf32, #tpu.memory_space<vmem>>, vector<128x128xf32>
      tpu.vector_store %arg7[%c0_13, %c0_14], %14 {strides = array<i32>} : memref<128x128xf32, #tpu.memory_space<vmem>>, vector<128x128xf32>,
    } else {
    }
    %c0 = arith.constant 0 : index
    %c0_1 = arith.constant 0 : index
    %3 = vector.load %arg7[%c0, %c0_1] : memref<128x128xf32, #tpu.memory_space<vmem>>, vector<128x128xf32>
    %c0_2 = arith.constant 0 : index
    %c0_3 = arith.constant 0 : index
    %c0_4 = arith.constant 0 : index
    %4 = vector.load %arg4[%c0_2, %c0_3, %c0_4] : memref<1x4x128xbf16, #tpu.memory_space<vmem>>, vector<1x4x128xbf16>
    %5 = vector.shape_cast %4 : vector<1x4x128xbf16> to vector<4x128xbf16>
    %c0_5 = arith.constant 0 : index
    %c0_6 = arith.constant 0 : index
    %c0_7 = arith.constant 0 : index
    %6 = vector.load %arg5[%c0_5, %c0_6, %c0_7] : memref<1x4x128xbf16, #tpu.memory_space<vmem>>, vector<1x4x128xbf16>
    %7 = vector.shape_cast %6 : vector<1x4x128xbf16> to vector<4x128xbf16>
    %cst = arith.constant dense<0.000000e+00> : vector<128x128xf32>
    %8 = tpu.matmul %5, %7, %cst {dimension_numbers = #tpu.dot_dimension_numbers<[0], [0], [1], [1], [0, 1, 1, 1], [], []>} : vector<4x128xbf16>, vector<4x128xbf16>, vector<128x128xf32> -> vector<128x128xf32>
    %9 = arith.addf %3, %8 : vector<128x128xf32>
    %c0_8 = arith.constant 0 : index
    %c0_9 = arith.constant 0 : index
    %10 = vector.load %arg7[%c0_8, %c0_9] : memref<128x128xf32, #tpu.memory_space<vmem>>, vector<128x128xf32>
    tpu.vector_store %arg7[%c0_8, %c0_9], %9 {strides = array<i32>} : memref<128x128xf32, #tpu.memory_space<vmem>>, vector<128x128xf32>,
    %c0_i32_10 = arith.constant 0 : i32
    %11 = arith.cmpi eq, %arg3, %c0_i32_10 : i32
    %12 = arith.extui %11 : i1 to i32
    %c0_i32_11 = arith.constant 0 : i32
    %13 = arith.cmpi ne, %12, %c0_i32_11 : i32
    scf.if %13 {
      %c0_12 = arith.constant 0 : index
      %c0_13 = arith.constant 0 : index
      %14 = vector.load %arg7[%c0_12, %c0_13] : memref<128x128xf32, #tpu.memory_space<vmem>>, vector<128x128xf32>
      %cst_14 = arith.constant 2.500000e-01 : f32
      %15 = vector.broadcast %cst_14 : f32 to vector<128x128xf32>
      %16 = arith.mulf %14, %15 : vector<128x128xf32>
      %c0_15 = arith.constant 0 : index
      %c0_16 = arith.constant 0 : index
      %c0_17 = arith.constant 0 : index
      %17 = vector.load %arg6[%c0_15, %c0_16, %c0_17] : memref<1x128x128xf32, #tpu.memory_space<vmem>>, vector<1x128x128xf32>
      %18 = vector.shape_cast %17 : vector<1x128x128xf32> to vector<128x128xf32>
      %19 = vector.shape_cast %16 : vector<128x128xf32> to vector<1x128x128xf32>
      tpu.vector_store %arg6[%c0_15, %c0_16, %c0_17], %19 {strides = array<i32>} : memref<1x128x128xf32, #tpu.memory_space<vmem>>, vector<1x128x128xf32>,
    } else {
    }
    return
  }
  func.func @transform_0(%arg0: i32, %arg1: i32, %arg2: i32, %arg3: i32) -> (i32, i32, i32) {
    %c0_i32 = arith.constant 0 : i32
    return %arg0, %arg3, %arg1 : i32, i32, i32
  }
  func.func @transform_1(%arg0: i32, %arg1: i32, %arg2: i32, %arg3: i32) -> (i32, i32, i32) {
    %c0_i32 = arith.constant 0 : i32
    return %arg0, %arg3, %arg2 : i32, i32, i32
  }
  func.func @transform_2(%arg0: i32, %arg1: i32, %arg2: i32, %arg3: i32) -> (i32, i32, i32) {
    %c0_i32 = arith.constant 0 : i32
    return %arg0, %arg1, %arg2 : i32, i32, i32
  }
}

module attributes {stable_mosaic.version = 11 : i64} {
  func.func @kern(%arg0: i32, %arg1: memref<16x64xbf16, #tpu.memory_space<vmem>>, %arg2: memref<64x128xbf16, #tpu.memory_space<vmem>>, %arg3: memref<1x128xbf16, #tpu.memory_space<vmem>>, %arg4: memref<16x128xbf16, #tpu.memory_space<vmem>>) attributes {dimension_semantics = [#tpu.dimension_semantics<parallel>], iteration_bounds = array<i64: 1>, scalar_prefetch = 0 : i64, scratch_operands = 0 : i64, tpu.core_type = #tpu.core_type<tc>, window_params = [{transform_indices = @transform_0, window_bounds = array<i64: 16, 64>}, {pipeline_mode = #tpu.pipeline_mode<synchronous>, transform_indices = @transform_1, window_bounds = array<i64: 64, 128>}, {pipeline_mode = #tpu.pipeline_mode<synchronous>, transform_indices = @transform_2, window_bounds = array<i64: 1, 128>}, {transform_indices = @transform_3, window_bounds = array<i64: 16, 128>}]} {
    %c0 = arith.constant 0 : index
    %c0_0 = arith.constant 0 : index
    %0 = vector.load %arg1[%c0, %c0_0] : memref<16x64xbf16, #tpu.memory_space<vmem>>, vector<16x64xbf16>
    %1 = arith.extf %0 : vector<16x64xbf16> to vector<16x64xf32>
    %2 = arith.truncf %1 : vector<16x64xf32> to vector<16x64xbf16>
    %c0_1 = arith.constant 0 : index
    %c0_2 = arith.constant 0 : index
    %3 = vector.load %arg2[%c0_1, %c0_2] : memref<64x128xbf16, #tpu.memory_space<vmem>>, vector<64x128xbf16>
    %cst = arith.constant dense<0.000000e+00> : vector<16x128xf32>
    %4 = tpu.matmul %2, %3, %cst {dimension_numbers = #tpu.dot_dimension_numbers<[1], [0], [0], [1], [0, 0, 1, 1], [], []>} : vector<16x64xbf16>, vector<64x128xbf16>, vector<16x128xf32> -> vector<16x128xf32>
    %c0_3 = arith.constant 0 : index
    %c0_4 = arith.constant 0 : index
    %5 = vector.load %arg3[%c0_3, %c0_4] : memref<1x128xbf16, #tpu.memory_space<vmem>>, vector<1x128xbf16>
    %6 = arith.extf %5 : vector<1x128xbf16> to vector<1x128xf32>
    %7 = vector.broadcast %6 : vector<1x128xf32> to vector<16x128xf32>
    %8 = arith.addf %4, %7 : vector<16x128xf32>
    %9 = arith.truncf %8 : vector<16x128xf32> to vector<16x128xbf16>
    %c0_5 = arith.constant 0 : index
    %c0_6 = arith.constant 0 : index
    %10 = vector.load %arg4[%c0_5, %c0_6] : memref<16x128xbf16, #tpu.memory_space<vmem>>, vector<16x128xbf16>
    tpu.vector_store %arg4[%c0_5, %c0_6], %9 {strides = array<i32>} : memref<16x128xbf16, #tpu.memory_space<vmem>>, vector<16x128xbf16>,
    return
  }
  func.func @transform_0(%arg0: i32) -> (i32, i32) {
    %c0_i32 = arith.constant 0 : i32
    %c0_i32_0 = arith.constant 0 : i32
    return %arg0, %c0_i32 : i32, i32
  }
  func.func @transform_1(%arg0: i32) -> (i32, i32) {
    %c0_i32 = arith.constant 0 : i32
    %c0_i32_0 = arith.constant 0 : i32
    %c0_i32_1 = arith.constant 0 : i32
    return %c0_i32, %c0_i32_0 : i32, i32
  }
  func.func @transform_2(%arg0: i32) -> (i32, i32) {
    %c0_i32 = arith.constant 0 : i32
    %c0_i32_0 = arith.constant 0 : i32
    %c0_i32_1 = arith.constant 0 : i32
    return %c0_i32, %c0_i32_0 : i32, i32
  }
  func.func @transform_3(%arg0: i32) -> (i32, i32) {
    %c0_i32 = arith.constant 0 : i32
    %c0_i32_0 = arith.constant 0 : i32
    return %arg0, %c0_i32 : i32, i32
  }
}

module attributes {stable_mosaic.version = 11 : i64} {
  func.func @kern(%arg0: i32, %arg1: memref<256x64xf32, #tpu.memory_space<vmem>>, %arg2: memref<1x64xbf16, #tpu.memory_space<vmem>>, %arg3: memref<1x64xbf16, #tpu.memory_space<vmem>>, %arg4: memref<64x128xbf16, #tpu.memory_space<vmem>>, %arg5: memref<1x128xbf16, #tpu.memory_space<vmem>>, %arg6: memref<256x128xbf16, #tpu.memory_space<vmem>>, %arg7: memref<256x128xbf16, #tpu.memory_space<vmem>>) attributes {dimension_semantics = [#tpu.dimension_semantics<parallel>], iteration_bounds = array<i64: 1>, scalar_prefetch = 0 : i64, scratch_operands = 0 : i64, tpu.core_type = #tpu.core_type<tc>, window_params = [{transform_indices = @transform_0, window_bounds = array<i64: 256, 64>}, {pipeline_mode = #tpu.pipeline_mode<synchronous>, transform_indices = @transform_1, window_bounds = array<i64: 1, 64>}, {pipeline_mode = #tpu.pipeline_mode<synchronous>, transform_indices = @transform_2, window_bounds = array<i64: 1, 64>}, {pipeline_mode = #tpu.pipeline_mode<synchronous>, transform_indices = @transform_3, window_bounds = array<i64: 64, 128>}, {pipeline_mode = #tpu.pipeline_mode<synchronous>, transform_indices = @transform_4, window_bounds = array<i64: 1, 128>}, {transform_indices = @transform_5, window_bounds = array<i64: 256, 128>}, {transform_indices = @transform_6, window_bounds = array<i64: 256, 128>}]} {
    %c0 = arith.constant 0 : index
    %c0_0 = arith.constant 0 : index
    %0 = vector.load %arg1[%c0, %c0_0] : memref<256x64xf32, #tpu.memory_space<vmem>>, vector<256x64xf32>
    %cst = arith.constant dense<0.000000e+00> : vector<256xf32>
    %1 = vector.multi_reduction <add>, %0, %cst [1] : vector<256x64xf32> to vector<256xf32>
    %2 = vector.shape_cast %1 : vector<256xf32> to vector<256x1xf32>
    %cst_1 = arith.constant 6.400000e+01 : f32
    %3 = vector.broadcast %cst_1 : f32 to vector<256x1xf32>
    %4 = arith.divf %2, %3 : vector<256x1xf32>
    %5 = vector.broadcast %4 : vector<256x1xf32> to vector<256x64xf32>
    %6 = arith.subf %0, %5 : vector<256x64xf32>
    %7 = arith.mulf %6, %6 : vector<256x64xf32>
    %cst_2 = arith.constant dense<0.000000e+00> : vector<256xf32>
    %8 = vector.multi_reduction <add>, %7, %cst_2 [1] : vector<256x64xf32> to vector<256xf32>
    %9 = vector.shape_cast %8 : vector<256xf32> to vector<256x1xf32>
    %cst_3 = arith.constant 6.400000e+01 : f32
    %10 = vector.broadcast %cst_3 : f32 to vector<256x1xf32>
    %11 = arith.divf %9, %10 : vector<256x1xf32>
    %12 = vector.broadcast %4 : vector<256x1xf32> to vector<256x64xf32>
    %13 = arith.subf %0, %12 : vector<256x64xf32>
    %cst_4 = arith.constant 9.99999974E-6 : f32
    %14 = vector.broadcast %cst_4 : f32 to vector<256x1xf32>
    %15 = arith.addf %11, %14 : vector<256x1xf32>
    %16 = math.rsqrt %15 : vector<256x1xf32>
    %17 = vector.broadcast %16 : vector<256x1xf32> to vector<256x64xf32>
    %18 = arith.mulf %13, %17 : vector<256x64xf32>
    %c0_5 = arith.constant 0 : index
    %c0_6 = arith.constant 0 : index
    %19 = vector.load %arg2[%c0_5, %c0_6] : memref<1x64xbf16, #tpu.memory_space<vmem>>, vector<1x64xbf16>
    %20 = arith.extf %19 : vector<1x64xbf16> to vector<1x64xf32>
    %21 = vector.broadcast %20 : vector<1x64xf32> to vector<256x64xf32>
    %22 = arith.mulf %18, %21 : vector<256x64xf32>
    %c0_7 = arith.constant 0 : index
    %c0_8 = arith.constant 0 : index
    %23 = vector.load %arg3[%c0_7, %c0_8] : memref<1x64xbf16, #tpu.memory_space<vmem>>, vector<1x64xbf16>
    %24 = arith.extf %23 : vector<1x64xbf16> to vector<1x64xf32>
    %25 = vector.broadcast %24 : vector<1x64xf32> to vector<256x64xf32>
    %26 = arith.addf %22, %25 : vector<256x64xf32>
    %27 = arith.truncf %26 : vector<256x64xf32> to vector<256x64xbf16>
    %c0_9 = arith.constant 0 : index
    %c0_10 = arith.constant 0 : index
    %28 = vector.load %arg4[%c0_9, %c0_10] : memref<64x128xbf16, #tpu.memory_space<vmem>>, vector<64x128xbf16>
    %cst_11 = arith.constant dense<0.000000e+00> : vector<256x128xf32>
    %29 = tpu.matmul %27, %28, %cst_11 {dimension_numbers = #tpu.dot_dimension_numbers<[1], [0], [0], [1], [0, 0, 1, 1], [], []>} : vector<256x64xbf16>, vector<64x128xbf16>, vector<256x128xf32> -> vector<256x128xf32>
    %c0_12 = arith.constant 0 : index
    %c0_13 = arith.constant 0 : index
    %30 = vector.load %arg5[%c0_12, %c0_13] : memref<1x128xbf16, #tpu.memory_space<vmem>>, vector<1x128xbf16>
    %31 = arith.extf %30 : vector<1x128xbf16> to vector<1x128xf32>
    %32 = vector.broadcast %31 : vector<1x128xf32> to vector<256x128xf32>
    %33 = arith.addf %29, %32 : vector<256x128xf32>
    %c0_14 = arith.constant 0 : index
    %c0_15 = arith.constant 0 : index
    %34 = vector.load %arg6[%c0_14, %c0_15] : memref<256x128xbf16, #tpu.memory_space<vmem>>, vector<256x128xbf16>
    %35 = arith.extf %34 : vector<256x128xbf16> to vector<256x128xf32>
    %36 = arith.addf %33, %35 : vector<256x128xf32>
    %37 = arith.truncf %36 : vector<256x128xf32> to vector<256x128xbf16>
    %c0_16 = arith.constant 0 : index
    %c0_17 = arith.constant 0 : index
    %38 = vector.load %arg7[%c0_16, %c0_17] : memref<256x128xbf16, #tpu.memory_space<vmem>>, vector<256x128xbf16>
    tpu.vector_store %arg7[%c0_16, %c0_17], %37 {strides = array<i32>} : memref<256x128xbf16, #tpu.memory_space<vmem>>, vector<256x128xbf16>,
    return
  }
  func.func @transform_0(%arg0: i32) -> (i32, i32) {
    %c0_i32 = arith.constant 0 : i32
    %c0_i32_0 = arith.constant 0 : i32
    return %arg0, %c0_i32 : i32, i32
  }
  func.func @transform_1(%arg0: i32) -> (i32, i32) {
    %c0_i32 = arith.constant 0 : i32
    %c0_i32_0 = arith.constant 0 : i32
    %c0_i32_1 = arith.constant 0 : i32
    return %c0_i32, %c0_i32_0 : i32, i32
  }
  func.func @transform_2(%arg0: i32) -> (i32, i32) {
    %c0_i32 = arith.constant 0 : i32
    %c0_i32_0 = arith.constant 0 : i32
    %c0_i32_1 = arith.constant 0 : i32
    return %c0_i32, %c0_i32_0 : i32, i32
  }
  func.func @transform_3(%arg0: i32) -> (i32, i32) {
    %c0_i32 = arith.constant 0 : i32
    %c0_i32_0 = arith.constant 0 : i32
    %c0_i32_1 = arith.constant 0 : i32
    return %c0_i32, %c0_i32_0 : i32, i32
  }
  func.func @transform_4(%arg0: i32) -> (i32, i32) {
    %c0_i32 = arith.constant 0 : i32
    %c0_i32_0 = arith.constant 0 : i32
    %c0_i32_1 = arith.constant 0 : i32
    return %c0_i32, %c0_i32_0 : i32, i32
  }
  func.func @transform_5(%arg0: i32) -> (i32, i32) {
    %c0_i32 = arith.constant 0 : i32
    %c0_i32_0 = arith.constant 0 : i32
    return %arg0, %c0_i32 : i32, i32
  }
  func.func @transform_6(%arg0: i32) -> (i32, i32) {
    %c0_i32 = arith.constant 0 : i32
    %c0_i32_0 = arith.constant 0 : i32
    return %arg0, %c0_i32 : i32, i32
  }
}

module attributes {stable_mosaic.version = 11 : i64} {
  func.func @kern(%arg0: i32, %arg1: i32, %arg2: memref<1x16x128xbf16, #tpu.memory_space<vmem>>, %arg3: memref<1x16x128xbf16, #tpu.memory_space<vmem>>, %arg4: memref<1x128xbf16, #tpu.memory_space<vmem>>, %arg5: memref<1x128xbf16, #tpu.memory_space<vmem>>, %arg6: memref<128x128xbf16, #tpu.memory_space<vmem>>, %arg7: memref<1x128xbf16, #tpu.memory_space<vmem>>, %arg8: memref<128x256xbf16, #tpu.memory_space<vmem>>, %arg9: memref<1x256xbf16, #tpu.memory_space<vmem>>, %arg10: memref<128x128xbf16, #tpu.memory_space<vmem>>, %arg11: memref<1x128xbf16, #tpu.memory_space<vmem>>, %arg12: memref<1x16x128xbf16, #tpu.memory_space<vmem>>) attributes {dimension_semantics = [#tpu.dimension_semantics<parallel>, #tpu.dimension_semantics<parallel>], iteration_bounds = array<i64: 16, 1>, scalar_prefetch = 0 : i64, scratch_operands = 0 : i64, tpu.core_type = #tpu.core_type<tc>, window_params = [{transform_indices = @transform_0, window_bounds = array<i64: 1, 16, 128>}, {transform_indices = @transform_1, window_bounds = array<i64: 1, 16, 128>}, {pipeline_mode = #tpu.pipeline_mode<synchronous>, transform_indices = @transform_2, window_bounds = array<i64: 1, 128>}, {pipeline_mode = #tpu.pipeline_mode<synchronous>, transform_indices = @transform_3, window_bounds = array<i64: 1, 128>}, {pipeline_mode = #tpu.pipeline_mode<synchronous>, transform_indices = @transform_4, window_bounds = array<i64: 128, 128>}, {pipeline_mode = #tpu.pipeline_mode<synchronous>, transform_indices = @transform_5, window_bounds = array<i64: 1, 128>}, {pipeline_mode = #tpu.pipeline_mode<synchronous>, transform_indices = @transform_6, window_bounds = array<i64: 128, 256>}, {pipeline_mode = #tpu.pipeline_mode<synchronous>, transform_indices = @transform_7, window_bounds = array<i64: 1, 256>}, {pipeline_mode = #tpu.pipeline_mode<synchronous>, transform_indices = @transform_8, window_bounds = array<i64: 128, 128>}, {pipeline_mode = #tpu.pipeline_mode<synchronous>, transform_indices = @transform_9, window_bounds = array<i64: 1, 128>}, {transform_indices = @transform_10, window_bounds = array<i64: 1, 16, 128>}]} {
    %c0 = arith.constant 0 : index
    %c0_0 = arith.constant 0 : index
    %0 = vector.load %arg4[%c0, %c0_0] : memref<1x128xbf16, #tpu.memory_space<vmem>>, vector<1x128xbf16>
    %1 = arith.extf %0 : vector<1x128xbf16> to vector<1x128xf32>
    %c0_1 = arith.constant 0 : index
    %c0_2 = arith.constant 0 : index
    %2 = vector.load %arg5[%c0_1, %c0_2] : memref<1x128xbf16, #tpu.memory_space<vmem>>, vector<1x128xbf16>
    %3 = arith.extf %2 : vector<1x128xbf16> to vector<1x128xf32>
    %c0_3 = arith.constant 0 : index
    %c0_4 = arith.constant 0 : index
    %c0_5 = arith.constant 0 : index
    %4 = vector.load %arg3[%c0_3, %c0_4, %c0_5] : memref<1x16x128xbf16, #tpu.memory_space<vmem>>, vector<1x16x128xbf16>
    %5 = vector.shape_cast %4 : vector<1x16x128xbf16> to vector<16x128xbf16>
    %6 = arith.extf %5 : vector<16x128xbf16> to vector<16x128xf32>
    %c0_6 = arith.constant 0 : index
    %c0_7 = arith.constant 0 : index
    %c0_8 = arith.constant 0 : index
    %7 = vector.load %arg2[%c0_6, %c0_7, %c0_8] : memref<1x16x128xbf16, #tpu.memory_space<vmem>>, vector<1x16x128xbf16>
    %8 = vector.shape_cast %7 : vector<1x16x128xbf16> to vector<16x128xbf16>
    %9 = arith.extf %8 : vector<16x128xbf16> to vector<16x128xf32>
    %cst = arith.constant dense<0.000000e+00> : vector<16xf32>
    %10 = vector.multi_reduction <add>, %9, %cst [1] : vector<16x128xf32> to vector<16xf32>
    %11 = vector.shape_cast %10 : vector<16xf32> to vector<16x1xf32>
    %cst_9 = arith.constant 1.280000e+02 : f32
    %12 = vector.broadcast %cst_9 : f32 to vector<16x1xf32>
    %13 = arith.divf %11, %12 : vector<16x1xf32>
    %14 = vector.broadcast %13 : vector<16x1xf32> to vector<16x128xf32>
    %15 = arith.subf %9, %14 : vector<16x128xf32>
    %16 = arith.mulf %15, %15 : vector<16x128xf32>
    %cst_10 = arith.constant dense<0.000000e+00> : vector<16xf32>
    %17 = vector.multi_reduction <add>, %16, %cst_10 [1] : vector<16x128xf32> to vector<16xf32>
    %18 = vector.shape_cast %17 : vector<16xf32> to vector<16x1xf32>
    %cst_11 = arith.constant 1.280000e+02 : f32
    %19 = vector.broadcast %cst_11 : f32 to vector<16x1xf32>
    %20 = arith.divf %18, %19 : vector<16x1xf32>
    %21 = vector.broadcast %13 : vector<16x1xf32> to vector<16x128xf32>
    %22 = arith.subf %9, %21 : vector<16x128xf32>
    %cst_12 = arith.constant 9.99999974E-6 : f32
    %23 = vector.broadcast %cst_12 : f32 to vector<16x1xf32>
    %24 = arith.addf %20, %23 : vector<16x1xf32>
    %25 = math.rsqrt %24 : vector<16x1xf32>
    %26 = vector.broadcast %25 : vector<16x1xf32> to vector<16x128xf32>
    %27 = arith.mulf %22, %26 : vector<16x128xf32>
    %28 = vector.broadcast %1 : vector<1x128xf32> to vector<16x128xf32>
    %29 = arith.mulf %27, %28 : vector<16x128xf32>
    %30 = vector.broadcast %3 : vector<1x128xf32> to vector<16x128xf32>
    %31 = arith.addf %29, %30 : vector<16x128xf32>
    %32 = arith.truncf %31 : vector<16x128xf32> to vector<16x128xbf16>
    %cst_13 = arith.constant dense<0.000000e+00> : vector<16xf32>
    %33 = vector.multi_reduction <add>, %6, %cst_13 [1] : vector<16x128xf32> to vector<16xf32>
    %34 = vector.shape_cast %33 : vector<16xf32> to vector<16x1xf32>
    %cst_14 = arith.constant 1.280000e+02 : f32
    %35 = vector.broadcast %cst_14 : f32 to vector<16x1xf32>
    %36 = arith.divf %34, %35 : vector<16x1xf32>
    %37 = vector.broadcast %36 : vector<16x1xf32> to vector<16x128xf32>
    %38 = arith.subf %6, %37 : vector<16x128xf32>
    %39 = arith.mulf %38, %38 : vector<16x128xf32>
    %cst_15 = arith.constant dense<0.000000e+00> : vector<16xf32>
    %40 = vector.multi_reduction <add>, %39, %cst_15 [1] : vector<16x128xf32> to vector<16xf32>
    %41 = vector.shape_cast %40 : vector<16xf32> to vector<16x1xf32>
    %cst_16 = arith.constant 1.280000e+02 : f32
    %42 = vector.broadcast %cst_16 : f32 to vector<16x1xf32>
    %43 = arith.divf %41, %42 : vector<16x1xf32>
    %44 = vector.broadcast %36 : vector<16x1xf32> to vector<16x128xf32>
    %45 = arith.subf %6, %44 : vector<16x128xf32>
    %cst_17 = arith.constant 9.99999974E-6 : f32
    %46 = vector.broadcast %cst_17 : f32 to vector<16x1xf32>
    %47 = arith.addf %43, %46 : vector<16x1xf32>
    %48 = math.rsqrt %47 : vector<16x1xf32>
    %49 = vector.broadcast %48 : vector<16x1xf32> to vector<16x128xf32>
    %50 = arith.mulf %45, %49 : vector<16x128xf32>
    %51 = vector.broadcast %1 : vector<1x128xf32> to vector<16x128xf32>
    %52 = arith.mulf %50, %51 : vector<16x128xf32>
    %53 = vector.broadcast %3 : vector<1x128xf32> to vector<16x128xf32>
    %54 = arith.addf %52, %53 : vector<16x128xf32>
    %55 = arith.truncf %54 : vector<16x128xf32> to vector<16x128xbf16>
    %c0_18 = arith.constant 0 : index
    %c0_19 = arith.constant 0 : index
    %56 = vector.load %arg6[%c0_18, %c0_19] : memref<128x128xbf16, #tpu.memory_space<vmem>>, vector<128x128xbf16>
    %cst_20 = arith.constant dense<0.000000e+00> : vector<16x128xf32>
    %57 = tpu.matmul %55, %56, %cst_20 {dimension_numbers = #tpu.dot_dimension_numbers<[1], [0], [0], [1], [0, 0, 1, 1], [], []>} : vector<16x128xbf16>, vector<128x128xbf16>, vector<16x128xf32> -> vector<16x128xf32>
    %c0_21 = arith.constant 0 : index
    %c0_22 = arith.constant 0 : index
    %58 = vector.load %arg7[%c0_21, %c0_22] : memref<1x128xbf16, #tpu.memory_space<vmem>>, vector<1x128xbf16>
    %59 = arith.extf %58 : vector<1x128xbf16> to vector<1x128xf32>
    %60 = vector.broadcast %59 : vector<1x128xf32> to vector<16x128xf32>
    %61 = arith.addf %57, %60 : vector<16x128xf32>
    %62 = arith.truncf %61 : vector<16x128xf32> to vector<16x128xbf16>
    %c0_23 = arith.constant 0 : index
    %c0_24 = arith.constant 0 : index
    %63 = vector.load %arg8[%c0_23, %c0_24] : memref<128x256xbf16, #tpu.memory_space<vmem>>, vector<128x256xbf16>
    %cst_25 = arith.constant dense<0.000000e+00> : vector<16x256xf32>
    %64 = tpu.matmul %32, %63, %cst_25 {dimension_numbers = #tpu.dot_dimension_numbers<[1], [0], [0], [1], [0, 0, 1, 1], [], []>} : vector<16x128xbf16>, vector<128x256xbf16>, vector<16x256xf32> -> vector<16x256xf32>
    %c0_26 = arith.constant 0 : index
    %c0_27 = arith.constant 0 : index
    %65 = vector.load %arg9[%c0_26, %c0_27] : memref<1x256xbf16, #tpu.memory_space<vmem>>, vector<1x256xbf16>
    %66 = arith.extf %65 : vector<1x256xbf16> to vector<1x256xf32>
    %67 = vector.broadcast %66 : vector<1x256xf32> to vector<16x256xf32>
    %68 = arith.addf %64, %67 : vector<16x256xf32>
    %69 = arith.truncf %68 : vector<16x256xf32> to vector<16x256xbf16>
    %70 = vector.extract_strided_slice %69 {offsets = [0, 0], sizes = [16, 128], strides = [1, 1]} : vector<16x256xbf16> to vector<16x128xbf16>
    %71 = vector.extract_strided_slice %69 {offsets = [0, 128], sizes = [16, 128], strides = [1, 1]} : vector<16x256xbf16> to vector<16x128xbf16>
    %c0_28 = arith.constant 0 : index
    %c0_29 = arith.constant 0 : index
    %72 = vector.load %arg11[%c0_28, %c0_29] : memref<1x128xbf16, #tpu.memory_space<vmem>>, vector<1x128xbf16>
    %73 = arith.extf %72 : vector<1x128xbf16> to vector<1x128xf32>
    %74 = vector.broadcast %73 : vector<1x128xf32> to vector<16x128xf32>
    %75 = arith.addf %6, %74 : vector<16x128xf32>
    %76 = vector.extract_strided_slice %62 {offsets = [0, 0], sizes = [16, 16], strides = [1, 1]} : vector<16x128xbf16> to vector<16x16xbf16>
    %77 = vector.extract_strided_slice %70 {offsets = [0, 0], sizes = [16, 16], strides = [1, 1]} : vector<16x128xbf16> to vector<16x16xbf16>
    %78 = vector.extract_strided_slice %71 {offsets = [0, 0], sizes = [16, 16], strides = [1, 1]} : vector<16x128xbf16> to vector<16x16xbf16>
    %cst_30 = arith.constant dense<0.000000e+00> : vector<16x16xf32>
    %79 = tpu.matmul %76, %77, %cst_30 {dimension_numbers = #tpu.dot_dimension_numbers<[1], [1], [0], [0], [0, 0, 1, 0], [], []>} : vector<16x16xbf16>, vector<16x16xbf16>, vector<16x16xf32> -> vector<16x16xf32>
    %cst_31 = arith.constant dense<0xFF800000> : vector<16xf32>
    %80 = vector.multi_reduction <maximumf>, %79, %cst_31 [1] : vector<16x16xf32> to vector<16xf32>
    %81 = vector.shape_cast %80 : vector<16xf32> to vector<16x1xf32>
    %82 = vector.broadcast %81 : vector<16x1xf32> to vector<16x16xf32>
    %83 = arith.subf %79, %82 : vector<16x16xf32>
    %84 = math.exp %83 : vector<16x16xf32>
    %cst_32 = arith.constant dense<0.000000e+00> : vector<16xf32>
    %85 = vector.multi_reduction <add>, %84, %cst_32 [1] : vector<16x16xf32> to vector<16xf32>
    %86 = vector.shape_cast %85 : vector<16xf32> to vector<16x1xf32>
    %87 = tpu.reciprocal %86 {approx = true} : vector<16x1xf32> -> vector<16x1xf32>
    %88 = vector.broadcast %87 : vector<16x1xf32> to vector<16x16xf32>
    %89 = arith.mulf %84, %88 : vector<16x16xf32>
    %90 = arith.truncf %89 : vector<16x16xf32> to vector<16x16xbf16>
    %cst_33 = arith.constant dense<0.000000e+00> : vector<16x16xf32>
    %91 = tpu.matmul %90, %78, %cst_33 {dimension_numbers = #tpu.dot_dimension_numbers<[1], [0], [0], [1], [0, 0, 1, 1], [], []>} : vector<16x16xbf16>, vector<16x16xbf16>, vector<16x16xf32> -> vector<16x16xf32>
    %92 = arith.truncf %91 : vector<16x16xf32> to vector<16x16xbf16>
    %c0_34 = arith.constant 0 : index
    %c0_35 = arith.constant 0 : index
    %93 = vector.load %arg10[%c0_34, %c0_35] : memref<128x128xbf16, #tpu.memory_space<vmem>>, vector<16x128xbf16>
    %cst_36 = arith.constant dense<0.000000e+00> : vector<16x128xf32>
    %94 = tpu.matmul %92, %93, %cst_36 {dimension_numbers = #tpu.dot_dimension_numbers<[1], [0], [0], [1], [0, 0, 1, 1], [], []>} : vector<16x16xbf16>, vector<16x128xbf16>, vector<16x128xf32> -> vector<16x128xf32>
    %95 = arith.addf %75, %94 : vector<16x128xf32>
    %96 = vector.extract_strided_slice %62 {offsets = [0, 16], sizes = [16, 16], strides = [1, 1]} : vector<16x128xbf16> to vector<16x16xbf16>
    %97 = vector.extract_strided_slice %70 {offsets = [0, 16], sizes = [16, 16], strides = [1, 1]} : vector<16x128xbf16> to vector<16x16xbf16>
    %98 = vector.extract_strided_slice %71 {offsets = [0, 16], sizes = [16, 16], strides = [1, 1]} : vector<16x128xbf16> to vector<16x16xbf16>
    %cst_37 = arith.constant dense<0.000000e+00> : vector<16x16xf32>
    %99 = tpu.matmul %96, %97, %cst_37 {dimension_numbers = #tpu.dot_dimension_numbers<[1], [1], [0], [0], [0, 0, 1, 0], [], []>} : vector<16x16xbf16>, vector<16x16xbf16>, vector<16x16xf32> -> vector<16x16xf32>
    %cst_38 = arith.constant dense<0xFF800000> : vector<16xf32>
    %100 = vector.multi_reduction <maximumf>, %99, %cst_38 [1] : vector<16x16xf32> to vector<16xf32>
    %101 = vector.shape_cast %100 : vector<16xf32> to vector<16x1xf32>
    %102 = vector.broadcast %101 : vector<16x1xf32> to vector<16x16xf32>
    %103 = arith.subf %99, %102 : vector<16x16xf32>
    %104 = math.exp %103 : vector<16x16xf32>
    %cst_39 = arith.constant dense<0.000000e+00> : vector<16xf32>
    %105 = vector.multi_reduction <add>, %104, %cst_39 [1] : vector<16x16xf32> to vector<16xf32>
    %106 = vector.shape_cast %105 : vector<16xf32> to vector<16x1xf32>
    %107 = tpu.reciprocal %106 {approx = true} : vector<16x1xf32> -> vector<16x1xf32>
    %108 = vector.broadcast %107 : vector<16x1xf32> to vector<16x16xf32>
    %109 = arith.mulf %104, %108 : vector<16x16xf32>
    %110 = arith.truncf %109 : vector<16x16xf32> to vector<16x16xbf16>
    %cst_40 = arith.constant dense<0.000000e+00> : vector<16x16xf32>
    %111 = tpu.matmul %110, %98, %cst_40 {dimension_numbers = #tpu.dot_dimension_numbers<[1], [0], [0], [1], [0, 0, 1, 1], [], []>} : vector<16x16xbf16>, vector<16x16xbf16>, vector<16x16xf32> -> vector<16x16xf32>
    %112 = arith.truncf %111 : vector<16x16xf32> to vector<16x16xbf16>
    %c16 = arith.constant 16 : index
    %c0_41 = arith.constant 0 : index
    %113 = vector.load %arg10[%c16, %c0_41] : memref<128x128xbf16, #tpu.memory_space<vmem>>, vector<16x128xbf16>
    %cst_42 = arith.constant dense<0.000000e+00> : vector<16x128xf32>
    %114 = tpu.matmul %112, %113, %cst_42 {dimension_numbers = #tpu.dot_dimension_numbers<[1], [0], [0], [1], [0, 0, 1, 1], [], []>} : vector<16x16xbf16>, vector<16x128xbf16>, vector<16x128xf32> -> vector<16x128xf32>
    %115 = arith.addf %95, %114 : vector<16x128xf32>
    %116 = vector.extract_strided_slice %62 {offsets = [0, 32], sizes = [16, 16], strides = [1, 1]} : vector<16x128xbf16> to vector<16x16xbf16>
    %117 = vector.extract_strided_slice %70 {offsets = [0, 32], sizes = [16, 16], strides = [1, 1]} : vector<16x128xbf16> to vector<16x16xbf16>
    %118 = vector.extract_strided_slice %71 {offsets = [0, 32], sizes = [16, 16], strides = [1, 1]} : vector<16x128xbf16> to vector<16x16xbf16>
    %cst_43 = arith.constant dense<0.000000e+00> : vector<16x16xf32>
    %119 = tpu.matmul %116, %117, %cst_43 {dimension_numbers = #tpu.dot_dimension_numbers<[1], [1], [0], [0], [0, 0, 1, 0], [], []>} : vector<16x16xbf16>, vector<16x16xbf16>, vector<16x16xf32> -> vector<16x16xf32>
    %cst_44 = arith.constant dense<0xFF800000> : vector<16xf32>
    %120 = vector.multi_reduction <maximumf>, %119, %cst_44 [1] : vector<16x16xf32> to vector<16xf32>
    %121 = vector.shape_cast %120 : vector<16xf32> to vector<16x1xf32>
    %122 = vector.broadcast %121 : vector<16x1xf32> to vector<16x16xf32>
    %123 = arith.subf %119, %122 : vector<16x16xf32>
    %124 = math.exp %123 : vector<16x16xf32>
    %cst_45 = arith.constant dense<0.000000e+00> : vector<16xf32>
    %125 = vector.multi_reduction <add>, %124, %cst_45 [1] : vector<16x16xf32> to vector<16xf32>
    %126 = vector.shape_cast %125 : vector<16xf32> to vector<16x1xf32>
    %127 = tpu.reciprocal %126 {approx = true} : vector<16x1xf32> -> vector<16x1xf32>
    %128 = vector.broadcast %127 : vector<16x1xf32> to vector<16x16xf32>
    %129 = arith.mulf %124, %128 : vector<16x16xf32>
    %130 = arith.truncf %129 : vector<16x16xf32> to vector<16x16xbf16>
    %cst_46 = arith.constant dense<0.000000e+00> : vector<16x16xf32>
    %131 = tpu.matmul %130, %118, %cst_46 {dimension_numbers = #tpu.dot_dimension_numbers<[1], [0], [0], [1], [0, 0, 1, 1], [], []>} : vector<16x16xbf16>, vector<16x16xbf16>, vector<16x16xf32> -> vector<16x16xf32>
    %132 = arith.truncf %131 : vector<16x16xf32> to vector<16x16xbf16>
    %c32 = arith.constant 32 : index
    %c0_47 = arith.constant 0 : index
    %133 = vector.load %arg10[%c32, %c0_47] : memref<128x128xbf16, #tpu.memory_space<vmem>>, vector<16x128xbf16>
    %cst_48 = arith.constant dense<0.000000e+00> : vector<16x128xf32>
    %134 = tpu.matmul %132, %133, %cst_48 {dimension_numbers = #tpu.dot_dimension_numbers<[1], [0], [0], [1], [0, 0, 1, 1], [], []>} : vector<16x16xbf16>, vector<16x128xbf16>, vector<16x128xf32> -> vector<16x128xf32>
    %135 = arith.addf %115, %134 : vector<16x128xf32>
    %136 = vector.extract_strided_slice %62 {offsets = [0, 48], sizes = [16, 16], strides = [1, 1]} : vector<16x128xbf16> to vector<16x16xbf16>
    %137 = vector.extract_strided_slice %70 {offsets = [0, 48], sizes = [16, 16], strides = [1, 1]} : vector<16x128xbf16> to vector<16x16xbf16>
    %138 = vector.extract_strided_slice %71 {offsets = [0, 48], sizes = [16, 16], strides = [1, 1]} : vector<16x128xbf16> to vector<16x16xbf16>
    %cst_49 = arith.constant dense<0.000000e+00> : vector<16x16xf32>
    %139 = tpu.matmul %136, %137, %cst_49 {dimension_numbers = #tpu.dot_dimension_numbers<[1], [1], [0], [0], [0, 0, 1, 0], [], []>} : vector<16x16xbf16>, vector<16x16xbf16>, vector<16x16xf32> -> vector<16x16xf32>
    %cst_50 = arith.constant dense<0xFF800000> : vector<16xf32>
    %140 = vector.multi_reduction <maximumf>, %139, %cst_50 [1] : vector<16x16xf32> to vector<16xf32>
    %141 = vector.shape_cast %140 : vector<16xf32> to vector<16x1xf32>
    %142 = vector.broadcast %141 : vector<16x1xf32> to vector<16x16xf32>
    %143 = arith.subf %139, %142 : vector<16x16xf32>
    %144 = math.exp %143 : vector<16x16xf32>
    %cst_51 = arith.constant dense<0.000000e+00> : vector<16xf32>
    %145 = vector.multi_reduction <add>, %144, %cst_51 [1] : vector<16x16xf32> to vector<16xf32>
    %146 = vector.shape_cast %145 : vector<16xf32> to vector<16x1xf32>
    %147 = tpu.reciprocal %146 {approx = true} : vector<16x1xf32> -> vector<16x1xf32>
    %148 = vector.broadcast %147 : vector<16x1xf32> to vector<16x16xf32>
    %149 = arith.mulf %144, %148 : vector<16x16xf32>
    %150 = arith.truncf %149 : vector<16x16xf32> to vector<16x16xbf16>
    %cst_52 = arith.constant dense<0.000000e+00> : vector<16x16xf32>
    %151 = tpu.matmul %150, %138, %cst_52 {dimension_numbers = #tpu.dot_dimension_numbers<[1], [0], [0], [1], [0, 0, 1, 1], [], []>} : vector<16x16xbf16>, vector<16x16xbf16>, vector<16x16xf32> -> vector<16x16xf32>
    %152 = arith.truncf %151 : vector<16x16xf32> to vector<16x16xbf16>
    %c48 = arith.constant 48 : index
    %c0_53 = arith.constant 0 : index
    %153 = vector.load %arg10[%c48, %c0_53] : memref<128x128xbf16, #tpu.memory_space<vmem>>, vector<16x128xbf16>
    %cst_54 = arith.constant dense<0.000000e+00> : vector<16x128xf32>
    %154 = tpu.matmul %152, %153, %cst_54 {dimension_numbers = #tpu.dot_dimension_numbers<[1], [0], [0], [1], [0, 0, 1, 1], [], []>} : vector<16x16xbf16>, vector<16x128xbf16>, vector<16x128xf32> -> vector<16x128xf32>
    %155 = arith.addf %135, %154 : vector<16x128xf32>
    %156 = vector.extract_strided_slice %62 {offsets = [0, 64], sizes = [16, 16], strides = [1, 1]} : vector<16x128xbf16> to vector<16x16xbf16>
    %157 = vector.extract_strided_slice %70 {offsets = [0, 64], sizes = [16, 16], strides = [1, 1]} : vector<16x128xbf16> to vector<16x16xbf16>
    %158 = vector.extract_strided_slice %71 {offsets = [0, 64], sizes = [16, 16], strides = [1, 1]} : vector<16x128xbf16> to vector<16x16xbf16>
    %cst_55 = arith.constant dense<0.000000e+00> : vector<16x16xf32>
    %159 = tpu.matmul %156, %157, %cst_55 {dimension_numbers = #tpu.dot_dimension_numbers<[1], [1], [0], [0], [0, 0, 1, 0], [], []>} : vector<16x16xbf16>, vector<16x16xbf16>, vector<16x16xf32> -> vector<16x16xf32>
    %cst_56 = arith.constant dense<0xFF800000> : vector<16xf32>
    %160 = vector.multi_reduction <maximumf>, %159, %cst_56 [1] : vector<16x16xf32> to vector<16xf32>
    %161 = vector.shape_cast %160 : vector<16xf32> to vector<16x1xf32>
    %162 = vector.broadcast %161 : vector<16x1xf32> to vector<16x16xf32>
    %163 = arith.subf %159, %162 : vector<16x16xf32>
    %164 = math.exp %163 : vector<16x16xf32>
    %cst_57 = arith.constant dense<0.000000e+00> : vector<16xf32>
    %165 = vector.multi_reduction <add>, %164, %cst_57 [1] : vector<16x16xf32> to vector<16xf32>
    %166 = vector.shape_cast %165 : vector<16xf32> to vector<16x1xf32>
    %167 = tpu.reciprocal %166 {approx = true} : vector<16x1xf32> -> vector<16x1xf32>
    %168 = vector.broadcast %167 : vector<16x1xf32> to vector<16x16xf32>
    %169 = arith.mulf %164, %168 : vector<16x16xf32>
    %170 = arith.truncf %169 : vector<16x16xf32> to vector<16x16xbf16>
    %cst_58 = arith.constant dense<0.000000e+00> : vector<16x16xf32>
    %171 = tpu.matmul %170, %158, %cst_58 {dimension_numbers = #tpu.dot_dimension_numbers<[1], [0], [0], [1], [0, 0, 1, 1], [], []>} : vector<16x16xbf16>, vector<16x16xbf16>, vector<16x16xf32> -> vector<16x16xf32>
    %172 = arith.truncf %171 : vector<16x16xf32> to vector<16x16xbf16>
    %c64 = arith.constant 64 : index
    %c0_59 = arith.constant 0 : index
    %173 = vector.load %arg10[%c64, %c0_59] : memref<128x128xbf16, #tpu.memory_space<vmem>>, vector<16x128xbf16>
    %cst_60 = arith.constant dense<0.000000e+00> : vector<16x128xf32>
    %174 = tpu.matmul %172, %173, %cst_60 {dimension_numbers = #tpu.dot_dimension_numbers<[1], [0], [0], [1], [0, 0, 1, 1], [], []>} : vector<16x16xbf16>, vector<16x128xbf16>, vector<16x128xf32> -> vector<16x128xf32>
    %175 = arith.addf %155, %174 : vector<16x128xf32>
    %176 = vector.extract_strided_slice %62 {offsets = [0, 80], sizes = [16, 16], strides = [1, 1]} : vector<16x128xbf16> to vector<16x16xbf16>
    %177 = vector.extract_strided_slice %70 {offsets = [0, 80], sizes = [16, 16], strides = [1, 1]} : vector<16x128xbf16> to vector<16x16xbf16>
    %178 = vector.extract_strided_slice %71 {offsets = [0, 80], sizes = [16, 16], strides = [1, 1]} : vector<16x128xbf16> to vector<16x16xbf16>
    %cst_61 = arith.constant dense<0.000000e+00> : vector<16x16xf32>
    %179 = tpu.matmul %176, %177, %cst_61 {dimension_numbers = #tpu.dot_dimension_numbers<[1], [1], [0], [0], [0, 0, 1, 0], [], []>} : vector<16x16xbf16>, vector<16x16xbf16>, vector<16x16xf32> -> vector<16x16xf32>
    %cst_62 = arith.constant dense<0xFF800000> : vector<16xf32>
    %180 = vector.multi_reduction <maximumf>, %179, %cst_62 [1] : vector<16x16xf32> to vector<16xf32>
    %181 = vector.shape_cast %180 : vector<16xf32> to vector<16x1xf32>
    %182 = vector.broadcast %181 : vector<16x1xf32> to vector<16x16xf32>
    %183 = arith.subf %179, %182 : vector<16x16xf32>
    %184 = math.exp %183 : vector<16x16xf32>
    %cst_63 = arith.constant dense<0.000000e+00> : vector<16xf32>
    %185 = vector.multi_reduction <add>, %184, %cst_63 [1] : vector<16x16xf32> to vector<16xf32>
    %186 = vector.shape_cast %185 : vector<16xf32> to vector<16x1xf32>
    %187 = tpu.reciprocal %186 {approx = true} : vector<16x1xf32> -> vector<16x1xf32>
    %188 = vector.broadcast %187 : vector<16x1xf32> to vector<16x16xf32>
    %189 = arith.mulf %184, %188 : vector<16x16xf32>
    %190 = arith.truncf %189 : vector<16x16xf32> to vector<16x16xbf16>
    %cst_64 = arith.constant dense<0.000000e+00> : vector<16x16xf32>
    %191 = tpu.matmul %190, %178, %cst_64 {dimension_numbers = #tpu.dot_dimension_numbers<[1], [0], [0], [1], [0, 0, 1, 1], [], []>} : vector<16x16xbf16>, vector<16x16xbf16>, vector<16x16xf32> -> vector<16x16xf32>
    %192 = arith.truncf %191 : vector<16x16xf32> to vector<16x16xbf16>
    %c80 = arith.constant 80 : index
    %c0_65 = arith.constant 0 : index
    %193 = vector.load %arg10[%c80, %c0_65] : memref<128x128xbf16, #tpu.memory_space<vmem>>, vector<16x128xbf16>
    %cst_66 = arith.constant dense<0.000000e+00> : vector<16x128xf32>
    %194 = tpu.matmul %192, %193, %cst_66 {dimension_numbers = #tpu.dot_dimension_numbers<[1], [0], [0], [1], [0, 0, 1, 1], [], []>} : vector<16x16xbf16>, vector<16x128xbf16>, vector<16x128xf32> -> vector<16x128xf32>
    %195 = arith.addf %175, %194 : vector<16x128xf32>
    %196 = vector.extract_strided_slice %62 {offsets = [0, 96], sizes = [16, 16], strides = [1, 1]} : vector<16x128xbf16> to vector<16x16xbf16>
    %197 = vector.extract_strided_slice %70 {offsets = [0, 96], sizes = [16, 16], strides = [1, 1]} : vector<16x128xbf16> to vector<16x16xbf16>
    %198 = vector.extract_strided_slice %71 {offsets = [0, 96], sizes = [16, 16], strides = [1, 1]} : vector<16x128xbf16> to vector<16x16xbf16>
    %cst_67 = arith.constant dense<0.000000e+00> : vector<16x16xf32>
    %199 = tpu.matmul %196, %197, %cst_67 {dimension_numbers = #tpu.dot_dimension_numbers<[1], [1], [0], [0], [0, 0, 1, 0], [], []>} : vector<16x16xbf16>, vector<16x16xbf16>, vector<16x16xf32> -> vector<16x16xf32>
    %cst_68 = arith.constant dense<0xFF800000> : vector<16xf32>
    %200 = vector.multi_reduction <maximumf>, %199, %cst_68 [1] : vector<16x16xf32> to vector<16xf32>
    %201 = vector.shape_cast %200 : vector<16xf32> to vector<16x1xf32>
    %202 = vector.broadcast %201 : vector<16x1xf32> to vector<16x16xf32>
    %203 = arith.subf %199, %202 : vector<16x16xf32>
    %204 = math.exp %203 : vector<16x16xf32>
    %cst_69 = arith.constant dense<0.000000e+00> : vector<16xf32>
    %205 = vector.multi_reduction <add>, %204, %cst_69 [1] : vector<16x16xf32> to vector<16xf32>
    %206 = vector.shape_cast %205 : vector<16xf32> to vector<16x1xf32>
    %207 = tpu.reciprocal %206 {approx = true} : vector<16x1xf32> -> vector<16x1xf32>
    %208 = vector.broadcast %207 : vector<16x1xf32> to vector<16x16xf32>
    %209 = arith.mulf %204, %208 : vector<16x16xf32>
    %210 = arith.truncf %209 : vector<16x16xf32> to vector<16x16xbf16>
    %cst_70 = arith.constant dense<0.000000e+00> : vector<16x16xf32>
    %211 = tpu.matmul %210, %198, %cst_70 {dimension_numbers = #tpu.dot_dimension_numbers<[1], [0], [0], [1], [0, 0, 1, 1], [], []>} : vector<16x16xbf16>, vector<16x16xbf16>, vector<16x16xf32> -> vector<16x16xf32>
    %212 = arith.truncf %211 : vector<16x16xf32> to vector<16x16xbf16>
    %c96 = arith.constant 96 : index
    %c0_71 = arith.constant 0 : index
    %213 = vector.load %arg10[%c96, %c0_71] : memref<128x128xbf16, #tpu.memory_space<vmem>>, vector<16x128xbf16>
    %cst_72 = arith.constant dense<0.000000e+00> : vector<16x128xf32>
    %214 = tpu.matmul %212, %213, %cst_72 {dimension_numbers = #tpu.dot_dimension_numbers<[1], [0], [0], [1], [0, 0, 1, 1], [], []>} : vector<16x16xbf16>, vector<16x128xbf16>, vector<16x128xf32> -> vector<16x128xf32>
    %215 = arith.addf %195, %214 : vector<16x128xf32>
    %216 = vector.extract_strided_slice %62 {offsets = [0, 112], sizes = [16, 16], strides = [1, 1]} : vector<16x128xbf16> to vector<16x16xbf16>
    %217 = vector.extract_strided_slice %70 {offsets = [0, 112], sizes = [16, 16], strides = [1, 1]} : vector<16x128xbf16> to vector<16x16xbf16>
    %218 = vector.extract_strided_slice %71 {offsets = [0, 112], sizes = [16, 16], strides = [1, 1]} : vector<16x128xbf16> to vector<16x16xbf16>
    %cst_73 = arith.constant dense<0.000000e+00> : vector<16x16xf32>
    %219 = tpu.matmul %216, %217, %cst_73 {dimension_numbers = #tpu.dot_dimension_numbers<[1], [1], [0], [0], [0, 0, 1, 0], [], []>} : vector<16x16xbf16>, vector<16x16xbf16>, vector<16x16xf32> -> vector<16x16xf32>
    %cst_74 = arith.constant dense<0xFF800000> : vector<16xf32>
    %220 = vector.multi_reduction <maximumf>, %219, %cst_74 [1] : vector<16x16xf32> to vector<16xf32>
    %221 = vector.shape_cast %220 : vector<16xf32> to vector<16x1xf32>
    %222 = vector.broadcast %221 : vector<16x1xf32> to vector<16x16xf32>
    %223 = arith.subf %219, %222 : vector<16x16xf32>
    %224 = math.exp %223 : vector<16x16xf32>
    %cst_75 = arith.constant dense<0.000000e+00> : vector<16xf32>
    %225 = vector.multi_reduction <add>, %224, %cst_75 [1] : vector<16x16xf32> to vector<16xf32>
    %226 = vector.shape_cast %225 : vector<16xf32> to vector<16x1xf32>
    %227 = tpu.reciprocal %226 {approx = true} : vector<16x1xf32> -> vector<16x1xf32>
    %228 = vector.broadcast %227 : vector<16x1xf32> to vector<16x16xf32>
    %229 = arith.mulf %224, %228 : vector<16x16xf32>
    %230 = arith.truncf %229 : vector<16x16xf32> to vector<16x16xbf16>
    %cst_76 = arith.constant dense<0.000000e+00> : vector<16x16xf32>
    %231 = tpu.matmul %230, %218, %cst_76 {dimension_numbers = #tpu.dot_dimension_numbers<[1], [0], [0], [1], [0, 0, 1, 1], [], []>} : vector<16x16xbf16>, vector<16x16xbf16>, vector<16x16xf32> -> vector<16x16xf32>
    %232 = arith.truncf %231 : vector<16x16xf32> to vector<16x16xbf16>
    %c112 = arith.constant 112 : index
    %c0_77 = arith.constant 0 : index
    %233 = vector.load %arg10[%c112, %c0_77] : memref<128x128xbf16, #tpu.memory_space<vmem>>, vector<16x128xbf16>
    %cst_78 = arith.constant dense<0.000000e+00> : vector<16x128xf32>
    %234 = tpu.matmul %232, %233, %cst_78 {dimension_numbers = #tpu.dot_dimension_numbers<[1], [0], [0], [1], [0, 0, 1, 1], [], []>} : vector<16x16xbf16>, vector<16x128xbf16>, vector<16x128xf32> -> vector<16x128xf32>
    %235 = arith.addf %215, %234 : vector<16x128xf32>
    %236 = arith.truncf %235 : vector<16x128xf32> to vector<16x128xbf16>
    %c0_79 = arith.constant 0 : index
    %c0_80 = arith.constant 0 : index
    %c0_81 = arith.constant 0 : index
    %237 = vector.load %arg12[%c0_79, %c0_80, %c0_81] : memref<1x16x128xbf16, #tpu.memory_space<vmem>>, vector<1x16x128xbf16>
    %238 = vector.shape_cast %237 : vector<1x16x128xbf16> to vector<16x128xbf16>
    %239 = vector.shape_cast %236 : vector<16x128xbf16> to vector<1x16x128xbf16>
    tpu.vector_store %arg12[%c0_79, %c0_80, %c0_81], %239 {strides = array<i32>} : memref<1x16x128xbf16, #tpu.memory_space<vmem>>, vector<1x16x128xbf16>,
    return
  }
  func.func @transform_0(%arg0: i32, %arg1: i32) -> (i32, i32, i32) {
    %c0_i32 = arith.constant 0 : i32
    %c0_i32_0 = arith.constant 0 : i32
    %c0_i32_1 = arith.constant 0 : i32
    return %arg0, %c0_i32, %c0_i32_0 : i32, i32, i32
  }
  func.func @transform_1(%arg0: i32, %arg1: i32) -> (i32, i32, i32) {
    %c0_i32 = arith.constant 0 : i32
    %c0_i32_0 = arith.constant 0 : i32
    return %arg0, %arg1, %c0_i32 : i32, i32, i32
  }
  func.func @transform_2(%arg0: i32, %arg1: i32) -> (i32, i32) {
    %c0_i32 = arith.constant 0 : i32
    %c0_i32_0 = arith.constant 0 : i32
    %c0_i32_1 = arith.constant 0 : i32
    return %c0_i32, %c0_i32_0 : i32, i32
  }
  func.func @transform_3(%arg0: i32, %arg1: i32) -> (i32, i32) {
    %c0_i32 = arith.constant 0 : i32
    %c0_i32_0 = arith.constant 0 : i32
    %c0_i32_1 = arith.constant 0 : i32
    return %c0_i32, %c0_i32_0 : i32, i32
  }
  func.func @transform_4(%arg0: i32, %arg1: i32) -> (i32, i32) {
    %c0_i32 = arith.constant 0 : i32
    %c0_i32_0 = arith.constant 0 : i32
    %c0_i32_1 = arith.constant 0 : i32
    return %c0_i32, %c0_i32_0 : i32, i32
  }
  func.func @transform_5(%arg0: i32, %arg1: i32) -> (i32, i32) {
    %c0_i32 = arith.constant 0 : i32
    %c0_i32_0 = arith.constant 0 : i32
    %c0_i32_1 = arith.constant 0 : i32
    return %c0_i32, %c0_i32_0 : i32, i32
  }
  func.func @transform_6(%arg0: i32, %arg1: i32) -> (i32, i32) {
    %c0_i32 = arith.constant 0 : i32
    %c0_i32_0 = arith.constant 0 : i32
    %c0_i32_1 = arith.constant 0 : i32
    return %c0_i32, %c0_i32_0 : i32, i32
  }
  func.func @transform_7(%arg0: i32, %arg1: i32) -> (i32, i32) {
    %c0_i32 = arith.constant 0 : i32
    %c0_i32_0 = arith.constant 0 : i32
    %c0_i32_1 = arith.constant 0 : i32
    return %c0_i32, %c0_i32_0 : i32, i32
  }
  func.func @transform_8(%arg0: i32, %arg1: i32) -> (i32, i32) {
    %c0_i32 = arith.constant 0 : i32
    %c0_i32_0 = arith.constant 0 : i32
    %c0_i32_1 = arith.constant 0 : i32
    return %c0_i32, %c0_i32_0 : i32, i32
  }
  func.func @transform_9(%arg0: i32, %arg1: i32) -> (i32, i32) {
    %c0_i32 = arith.constant 0 : i32
    %c0_i32_0 = arith.constant 0 : i32
    %c0_i32_1 = arith.constant 0 : i32
    return %c0_i32, %c0_i32_0 : i32, i32
  }
  func.func @transform_10(%arg0: i32, %arg1: i32) -> (i32, i32, i32) {
    %c0_i32 = arith.constant 0 : i32
    %c0_i32_0 = arith.constant 0 : i32
    return %arg0, %arg1, %c0_i32 : i32, i32, i32
  }
}

module attributes {stable_mosaic.version = 11 : i64} {
  func.func @_ff_kernel(%arg0: i32, %arg1: memref<256x128xbf16, #tpu.memory_space<vmem>>, %arg2: memref<1x128xbf16, #tpu.memory_space<vmem>>, %arg3: memref<1x128xbf16, #tpu.memory_space<vmem>>, %arg4: memref<128x256xbf16, #tpu.memory_space<vmem>>, %arg5: memref<1x256xbf16, #tpu.memory_space<vmem>>, %arg6: memref<256x128xbf16, #tpu.memory_space<vmem>>, %arg7: memref<1x128xbf16, #tpu.memory_space<vmem>>, %arg8: memref<256x128xbf16, #tpu.memory_space<vmem>>) attributes {dimension_semantics = [#tpu.dimension_semantics<parallel>], iteration_bounds = array<i64: 1>, scalar_prefetch = 0 : i64, scratch_operands = 0 : i64, tpu.core_type = #tpu.core_type<tc>, window_params = [{transform_indices = @transform_0, window_bounds = array<i64: 256, 128>}, {pipeline_mode = #tpu.pipeline_mode<synchronous>, transform_indices = @transform_1, window_bounds = array<i64: 1, 128>}, {pipeline_mode = #tpu.pipeline_mode<synchronous>, transform_indices = @transform_2, window_bounds = array<i64: 1, 128>}, {pipeline_mode = #tpu.pipeline_mode<synchronous>, transform_indices = @transform_3, window_bounds = array<i64: 128, 256>}, {pipeline_mode = #tpu.pipeline_mode<synchronous>, transform_indices = @transform_4, window_bounds = array<i64: 1, 256>}, {pipeline_mode = #tpu.pipeline_mode<synchronous>, transform_indices = @transform_5, window_bounds = array<i64: 256, 128>}, {pipeline_mode = #tpu.pipeline_mode<synchronous>, transform_indices = @transform_6, window_bounds = array<i64: 1, 128>}, {transform_indices = @transform_7, window_bounds = array<i64: 256, 128>}]} {
    %c0 = arith.constant 0 : index
    %c0_0 = arith.constant 0 : index
    %0 = vector.load %arg1[%c0, %c0_0] : memref<256x128xbf16, #tpu.memory_space<vmem>>, vector<256x128xbf16>
    %1 = arith.extf %0 : vector<256x128xbf16> to vector<256x128xf32>
    %cst = arith.constant dense<0.000000e+00> : vector<256xf32>
    %2 = vector.multi_reduction <add>, %1, %cst [1] : vector<256x128xf32> to vector<256xf32>
    %3 = vector.shape_cast %2 : vector<256xf32> to vector<256x1xf32>
    %cst_1 = arith.constant 1.280000e+02 : f32
    %4 = vector.broadcast %cst_1 : f32 to vector<256x1xf32>
    %5 = arith.divf %3, %4 : vector<256x1xf32>
    %6 = vector.broadcast %5 : vector<256x1xf32> to vector<256x128xf32>
    %7 = arith.subf %1, %6 : vector<256x128xf32>
    %8 = arith.mulf %7, %7 : vector<256x128xf32>
    %cst_2 = arith.constant dense<0.000000e+00> : vector<256xf32>
    %9 = vector.multi_reduction <add>, %8, %cst_2 [1] : vector<256x128xf32> to vector<256xf32>
    %10 = vector.shape_cast %9 : vector<256xf32> to vector<256x1xf32>
    %cst_3 = arith.constant 1.280000e+02 : f32
    %11 = vector.broadcast %cst_3 : f32 to vector<256x1xf32>
    %12 = arith.divf %10, %11 : vector<256x1xf32>
    %13 = vector.broadcast %5 : vector<256x1xf32> to vector<256x128xf32>
    %14 = arith.subf %1, %13 : vector<256x128xf32>
    %cst_4 = arith.constant 9.99999974E-6 : f32
    %15 = vector.broadcast %cst_4 : f32 to vector<256x1xf32>
    %16 = arith.addf %12, %15 : vector<256x1xf32>
    %17 = math.rsqrt %16 : vector<256x1xf32>
    %18 = vector.broadcast %17 : vector<256x1xf32> to vector<256x128xf32>
    %19 = arith.mulf %14, %18 : vector<256x128xf32>
    %c0_5 = arith.constant 0 : index
    %c0_6 = arith.constant 0 : index
    %20 = vector.load %arg2[%c0_5, %c0_6] : memref<1x128xbf16, #tpu.memory_space<vmem>>, vector<1x128xbf16>
    %21 = arith.extf %20 : vector<1x128xbf16> to vector<1x128xf32>
    %22 = vector.broadcast %21 : vector<1x128xf32> to vector<256x128xf32>
    %23 = arith.mulf %19, %22 : vector<256x128xf32>
    %c0_7 = arith.constant 0 : index
    %c0_8 = arith.constant 0 : index
    %24 = vector.load %arg3[%c0_7, %c0_8] : memref<1x128xbf16, #tpu.memory_space<vmem>>, vector<1x128xbf16>
    %25 = arith.extf %24 : vector<1x128xbf16> to vector<1x128xf32>
    %26 = vector.broadcast %25 : vector<1x128xf32> to vector<256x128xf32>
    %27 = arith.addf %23, %26 : vector<256x128xf32>
    %28 = arith.truncf %27 : vector<256x128xf32> to vector<256x128xbf16>
    %c0_9 = arith.constant 0 : index
    %c0_10 = arith.constant 0 : index
    %29 = vector.load %arg4[%c0_9, %c0_10] : memref<128x256xbf16, #tpu.memory_space<vmem>>, vector<128x256xbf16>
    %cst_11 = arith.constant dense<0.000000e+00> : vector<256x256xf32>
    %30 = tpu.matmul %28, %29, %cst_11 {dimension_numbers = #tpu.dot_dimension_numbers<[1], [0], [0], [1], [0, 0, 1, 1], [], []>} : vector<256x128xbf16>, vector<128x256xbf16>, vector<256x256xf32> -> vector<256x256xf32>
    %c0_12 = arith.constant 0 : index
    %c0_13 = arith.constant 0 : index
    %31 = vector.load %arg5[%c0_12, %c0_13] : memref<1x256xbf16, #tpu.memory_space<vmem>>, vector<1x256xbf16>
    %32 = arith.extf %31 : vector<1x256xbf16> to vector<1x256xf32>
    %33 = vector.broadcast %32 : vector<1x256xf32> to vector<256x256xf32>
    %34 = arith.addf %30, %33 : vector<256x256xf32>
    %cst_14 = arith.constant 0.000000e+00 : f32
    %35 = vector.broadcast %cst_14 : f32 to vector<256x256xf32>
    %36 = arith.maximumf %34, %35 : vector<256x256xf32>
    %37 = arith.truncf %36 : vector<256x256xf32> to vector<256x256xbf16>
    %c0_15 = arith.constant 0 : index
    %c0_16 = arith.constant 0 : index
    %38 = vector.load %arg6[%c0_15, %c0_16] : memref<256x128xbf16, #tpu.memory_space<vmem>>, vector<256x128xbf16>
    %cst_17 = arith.constant dense<0.000000e+00> : vector<256x128xf32>
    %39 = tpu.matmul %37, %38, %cst_17 {dimension_numbers = #tpu.dot_dimension_numbers<[1], [0], [0], [1], [0, 0, 1, 1], [], []>} : vector<256x256xbf16>, vector<256x128xbf16>, vector<256x128xf32> -> vector<256x128xf32>
    %c0_18 = arith.constant 0 : index
    %c0_19 = arith.constant 0 : index
    %40 = vector.load %arg7[%c0_18, %c0_19] : memref<1x128xbf16, #tpu.memory_space<vmem>>, vector<1x128xbf16>
    %41 = arith.extf %40 : vector<1x128xbf16> to vector<1x128xf32>
    %42 = vector.broadcast %41 : vector<1x128xf32> to vector<256x128xf32>
    %43 = arith.addf %39, %42 : vector<256x128xf32>
    %44 = arith.addf %43, %1 : vector<256x128xf32>
    %45 = arith.truncf %44 : vector<256x128xf32> to vector<256x128xbf16>
    %c0_20 = arith.constant 0 : index
    %c0_21 = arith.constant 0 : index
    %46 = vector.load %arg8[%c0_20, %c0_21] : memref<256x128xbf16, #tpu.memory_space<vmem>>, vector<256x128xbf16>
    tpu.vector_store %arg8[%c0_20, %c0_21], %45 {strides = array<i32>} : memref<256x128xbf16, #tpu.memory_space<vmem>>, vector<256x128xbf16>,
    return
  }
  func.func @transform_0(%arg0: i32) -> (i32, i32) {
    %c0_i32 = arith.constant 0 : i32
    %c0_i32_0 = arith.constant 0 : i32
    return %arg0, %c0_i32 : i32, i32
  }
  func.func @transform_1(%arg0: i32) -> (i32, i32) {
    %c0_i32 = arith.constant 0 : i32
    %c0_i32_0 = arith.constant 0 : i32
    %c0_i32_1 = arith.constant 0 : i32
    return %c0_i32, %c0_i32_0 : i32, i32
  }
  func.func @transform_2(%arg0: i32) -> (i32, i32) {
    %c0_i32 = arith.constant 0 : i32
    %c0_i32_0 = arith.constant 0 : i32
    %c0_i32_1 = arith.constant 0 : i32
    return %c0_i32, %c0_i32_0 : i32, i32
  }
  func.func @transform_3(%arg0: i32) -> (i32, i32) {
    %c0_i32 = arith.constant 0 : i32
    %c0_i32_0 = arith.constant 0 : i32
    %c0_i32_1 = arith.constant 0 : i32
    return %c0_i32, %c0_i32_0 : i32, i32
  }
  func.func @transform_4(%arg0: i32) -> (i32, i32) {
    %c0_i32 = arith.constant 0 : i32
    %c0_i32_0 = arith.constant 0 : i32
    %c0_i32_1 = arith.constant 0 : i32
    return %c0_i32, %c0_i32_0 : i32, i32
  }
  func.func @transform_5(%arg0: i32) -> (i32, i32) {
    %c0_i32 = arith.constant 0 : i32
    %c0_i32_0 = arith.constant 0 : i32
    %c0_i32_1 = arith.constant 0 : i32
    return %c0_i32, %c0_i32_0 : i32, i32
  }
  func.func @transform_6(%arg0: i32) -> (i32, i32) {
    %c0_i32 = arith.constant 0 : i32
    %c0_i32_0 = arith.constant 0 : i32
    %c0_i32_1 = arith.constant 0 : i32
    return %c0_i32, %c0_i32_0 : i32, i32
  }
  func.func @transform_7(%arg0: i32) -> (i32, i32) {
    %c0_i32 = arith.constant 0 : i32
    %c0_i32_0 = arith.constant 0 : i32
    return %arg0, %c0_i32 : i32, i32
  }
}

module attributes {stable_mosaic.version = 11 : i64} {
  func.func @kern(%arg0: i32, %arg1: memref<256x128xbf16, #tpu.memory_space<vmem>>, %arg2: memref<128x256xbf16, #tpu.memory_space<vmem>>, %arg3: memref<1x256xbf16, #tpu.memory_space<vmem>>, %arg4: memref<256x256xf32, #tpu.memory_space<vmem>>) attributes {dimension_semantics = [#tpu.dimension_semantics<parallel>], iteration_bounds = array<i64: 1>, scalar_prefetch = 0 : i64, scratch_operands = 0 : i64, tpu.core_type = #tpu.core_type<tc>, window_params = [{transform_indices = @transform_0, window_bounds = array<i64: 256, 128>}, {pipeline_mode = #tpu.pipeline_mode<synchronous>, transform_indices = @transform_1, window_bounds = array<i64: 128, 256>}, {pipeline_mode = #tpu.pipeline_mode<synchronous>, transform_indices = @transform_2, window_bounds = array<i64: 1, 256>}, {transform_indices = @transform_3, window_bounds = array<i64: 256, 256>}]} {
    %c0 = arith.constant 0 : index
    %c0_0 = arith.constant 0 : index
    %0 = vector.load %arg1[%c0, %c0_0] : memref<256x128xbf16, #tpu.memory_space<vmem>>, vector<256x128xbf16>
    %1 = arith.extf %0 : vector<256x128xbf16> to vector<256x128xf32>
    %2 = arith.truncf %1 : vector<256x128xf32> to vector<256x128xbf16>
    %c0_1 = arith.constant 0 : index
    %c0_2 = arith.constant 0 : index
    %3 = vector.load %arg2[%c0_1, %c0_2] : memref<128x256xbf16, #tpu.memory_space<vmem>>, vector<128x256xbf16>
    %cst = arith.constant dense<0.000000e+00> : vector<256x256xf32>
    %4 = tpu.matmul %2, %3, %cst {dimension_numbers = #tpu.dot_dimension_numbers<[1], [0], [0], [1], [0, 0, 1, 1], [], []>} : vector<256x128xbf16>, vector<128x256xbf16>, vector<256x256xf32> -> vector<256x256xf32>
    %c0_3 = arith.constant 0 : index
    %c0_4 = arith.constant 0 : index
    %5 = vector.load %arg3[%c0_3, %c0_4] : memref<1x256xbf16, #tpu.memory_space<vmem>>, vector<1x256xbf16>
    %6 = arith.extf %5 : vector<1x256xbf16> to vector<1x256xf32>
    %7 = vector.broadcast %6 : vector<1x256xf32> to vector<256x256xf32>
    %8 = arith.addf %4, %7 : vector<256x256xf32>
    %c0_5 = arith.constant 0 : index
    %c0_6 = arith.constant 0 : index
    %9 = vector.load %arg4[%c0_5, %c0_6] : memref<256x256xf32, #tpu.memory_space<vmem>>, vector<256x256xf32>
    tpu.vector_store %arg4[%c0_5, %c0_6], %8 {strides = array<i32>} : memref<256x256xf32, #tpu.memory_space<vmem>>, vector<256x256xf32>,
    return
  }
  func.func @transform_0(%arg0: i32) -> (i32, i32) {
    %c0_i32 = arith.constant 0 : i32
    %c0_i32_0 = arith.constant 0 : i32
    return %arg0, %c0_i32 : i32, i32
  }
  func.func @transform_1(%arg0: i32) -> (i32, i32) {
    %c0_i32 = arith.constant 0 : i32
    %c0_i32_0 = arith.constant 0 : i32
    %c0_i32_1 = arith.constant 0 : i32
    return %c0_i32, %c0_i32_0 : i32, i32
  }
  func.func @transform_2(%arg0: i32) -> (i32, i32) {
    %c0_i32 = arith.constant 0 : i32
    %c0_i32_0 = arith.constant 0 : i32
    %c0_i32_1 = arith.constant 0 : i32
    return %c0_i32, %c0_i32_0 : i32, i32
  }
  func.func @transform_3(%arg0: i32) -> (i32, i32) {
    %c0_i32 = arith.constant 0 : i32
    %c0_i32_0 = arith.constant 0 : i32
    return %arg0, %c0_i32 : i32, i32
  }
}

module attributes {stable_mosaic.version = 11 : i64} {
  func.func @kern(%arg0: i32, %arg1: i32, %arg2: memref<1x16x64xbf16, #tpu.memory_space<vmem>>, %arg3: memref<1x16x64xbf16, #tpu.memory_space<vmem>>, %arg4: memref<1x64xbf16, #tpu.memory_space<vmem>>, %arg5: memref<1x64xbf16, #tpu.memory_space<vmem>>, %arg6: memref<64x64xbf16, #tpu.memory_space<vmem>>, %arg7: memref<1x64xbf16, #tpu.memory_space<vmem>>, %arg8: memref<64x128xbf16, #tpu.memory_space<vmem>>, %arg9: memref<1x128xbf16, #tpu.memory_space<vmem>>, %arg10: memref<64x64xbf16, #tpu.memory_space<vmem>>, %arg11: memref<1x64xbf16, #tpu.memory_space<vmem>>, %arg12: memref<1x16x64xbf16, #tpu.memory_space<vmem>>) attributes {dimension_semantics = [#tpu.dimension_semantics<parallel>, #tpu.dimension_semantics<parallel>], iteration_bounds = array<i64: 4, 1>, scalar_prefetch = 0 : i64, scratch_operands = 0 : i64, tpu.core_type = #tpu.core_type<tc>, window_params = [{transform_indices = @transform_0, window_bounds = array<i64: 1, 16, 64>}, {transform_indices = @transform_1, window_bounds = array<i64: 1, 16, 64>}, {pipeline_mode = #tpu.pipeline_mode<synchronous>, transform_indices = @transform_2, window_bounds = array<i64: 1, 64>}, {pipeline_mode = #tpu.pipeline_mode<synchronous>, transform_indices = @transform_3, window_bounds = array<i64: 1, 64>}, {pipeline_mode = #tpu.pipeline_mode<synchronous>, transform_indices = @transform_4, window_bounds = array<i64: 64, 64>}, {pipeline_mode = #tpu.pipeline_mode<synchronous>, transform_indices = @transform_5, window_bounds = array<i64: 1, 64>}, {pipeline_mode = #tpu.pipeline_mode<synchronous>, transform_indices = @transform_6, window_bounds = array<i64: 64, 128>}, {pipeline_mode = #tpu.pipeline_mode<synchronous>, transform_indices = @transform_7, window_bounds = array<i64: 1, 128>}, {pipeline_mode = #tpu.pipeline_mode<synchronous>, transform_indices = @transform_8, window_bounds = array<i64: 64, 64>}, {pipeline_mode = #tpu.pipeline_mode<synchronous>, transform_indices = @transform_9, window_bounds = array<i64: 1, 64>}, {transform_indices = @transform_10, window_bounds = array<i64: 1, 16, 64>}]} {
    %c0 = arith.constant 0 : index
    %c0_0 = arith.constant 0 : index
    %0 = vector.load %arg4[%c0, %c0_0] : memref<1x64xbf16, #tpu.memory_space<vmem>>, vector<1x64xbf16>
    %1 = arith.extf %0 : vector<1x64xbf16> to vector<1x64xf32>
    %c0_1 = arith.constant 0 : index
    %c0_2 = arith.constant 0 : index
    %2 = vector.load %arg5[%c0_1, %c0_2] : memref<1x64xbf16, #tpu.memory_space<vmem>>, vector<1x64xbf16>
    %3 = arith.extf %2 : vector<1x64xbf16> to vector<1x64xf32>
    %c0_3 = arith.constant 0 : index
    %c0_4 = arith.constant 0 : index
    %c0_5 = arith.constant 0 : index
    %4 = vector.load %arg3[%c0_3, %c0_4, %c0_5] : memref<1x16x64xbf16, #tpu.memory_space<vmem>>, vector<1x16x64xbf16>
    %5 = vector.shape_cast %4 : vector<1x16x64xbf16> to vector<16x64xbf16>
    %6 = arith.extf %5 : vector<16x64xbf16> to vector<16x64xf32>
    %c0_6 = arith.constant 0 : index
    %c0_7 = arith.constant 0 : index
    %c0_8 = arith.constant 0 : index
    %7 = vector.load %arg2[%c0_6, %c0_7, %c0_8] : memref<1x16x64xbf16, #tpu.memory_space<vmem>>, vector<1x16x64xbf16>
    %8 = vector.shape_cast %7 : vector<1x16x64xbf16> to vector<16x64xbf16>
    %9 = arith.extf %8 : vector<16x64xbf16> to vector<16x64xf32>
    %cst = arith.constant dense<0.000000e+00> : vector<16xf32>
    %10 = vector.multi_reduction <add>, %9, %cst [1] : vector<16x64xf32> to vector<16xf32>
    %11 = vector.shape_cast %10 : vector<16xf32> to vector<16x1xf32>
    %cst_9 = arith.constant 6.400000e+01 : f32
    %12 = vector.broadcast %cst_9 : f32 to vector<16x1xf32>
    %13 = arith.divf %11, %12 : vector<16x1xf32>
    %14 = vector.broadcast %13 : vector<16x1xf32> to vector<16x64xf32>
    %15 = arith.subf %9, %14 : vector<16x64xf32>
    %16 = arith.mulf %15, %15 : vector<16x64xf32>
    %cst_10 = arith.constant dense<0.000000e+00> : vector<16xf32>
    %17 = vector.multi_reduction <add>, %16, %cst_10 [1] : vector<16x64xf32> to vector<16xf32>
    %18 = vector.shape_cast %17 : vector<16xf32> to vector<16x1xf32>
    %cst_11 = arith.constant 6.400000e+01 : f32
    %19 = vector.broadcast %cst_11 : f32 to vector<16x1xf32>
    %20 = arith.divf %18, %19 : vector<16x1xf32>
    %21 = vector.broadcast %13 : vector<16x1xf32> to vector<16x64xf32>
    %22 = arith.subf %9, %21 : vector<16x64xf32>
    %cst_12 = arith.constant 9.99999974E-6 : f32
    %23 = vector.broadcast %cst_12 : f32 to vector<16x1xf32>
    %24 = arith.addf %20, %23 : vector<16x1xf32>
    %25 = math.rsqrt %24 : vector<16x1xf32>
    %26 = vector.broadcast %25 : vector<16x1xf32> to vector<16x64xf32>
    %27 = arith.mulf %22, %26 : vector<16x64xf32>
    %28 = vector.broadcast %1 : vector<1x64xf32> to vector<16x64xf32>
    %29 = arith.mulf %27, %28 : vector<16x64xf32>
    %30 = vector.broadcast %3 : vector<1x64xf32> to vector<16x64xf32>
    %31 = arith.addf %29, %30 : vector<16x64xf32>
    %32 = arith.truncf %31 : vector<16x64xf32> to vector<16x64xbf16>
    %cst_13 = arith.constant dense<0.000000e+00> : vector<16xf32>
    %33 = vector.multi_reduction <add>, %6, %cst_13 [1] : vector<16x64xf32> to vector<16xf32>
    %34 = vector.shape_cast %33 : vector<16xf32> to vector<16x1xf32>
    %cst_14 = arith.constant 6.400000e+01 : f32
    %35 = vector.broadcast %cst_14 : f32 to vector<16x1xf32>
    %36 = arith.divf %34, %35 : vector<16x1xf32>
    %37 = vector.broadcast %36 : vector<16x1xf32> to vector<16x64xf32>
    %38 = arith.subf %6, %37 : vector<16x64xf32>
    %39 = arith.mulf %38, %38 : vector<16x64xf32>
    %cst_15 = arith.constant dense<0.000000e+00> : vector<16xf32>
    %40 = vector.multi_reduction <add>, %39, %cst_15 [1] : vector<16x64xf32> to vector<16xf32>
    %41 = vector.shape_cast %40 : vector<16xf32> to vector<16x1xf32>
    %cst_16 = arith.constant 6.400000e+01 : f32
    %42 = vector.broadcast %cst_16 : f32 to vector<16x1xf32>
    %43 = arith.divf %41, %42 : vector<16x1xf32>
    %44 = vector.broadcast %36 : vector<16x1xf32> to vector<16x64xf32>
    %45 = arith.subf %6, %44 : vector<16x64xf32>
    %cst_17 = arith.constant 9.99999974E-6 : f32
    %46 = vector.broadcast %cst_17 : f32 to vector<16x1xf32>
    %47 = arith.addf %43, %46 : vector<16x1xf32>
    %48 = math.rsqrt %47 : vector<16x1xf32>
    %49 = vector.broadcast %48 : vector<16x1xf32> to vector<16x64xf32>
    %50 = arith.mulf %45, %49 : vector<16x64xf32>
    %51 = vector.broadcast %1 : vector<1x64xf32> to vector<16x64xf32>
    %52 = arith.mulf %50, %51 : vector<16x64xf32>
    %53 = vector.broadcast %3 : vector<1x64xf32> to vector<16x64xf32>
    %54 = arith.addf %52, %53 : vector<16x64xf32>
    %55 = arith.truncf %54 : vector<16x64xf32> to vector<16x64xbf16>
    %c0_18 = arith.constant 0 : index
    %c0_19 = arith.constant 0 : index
    %56 = vector.load %arg6[%c0_18, %c0_19] : memref<64x64xbf16, #tpu.memory_space<vmem>>, vector<64x64xbf16>
    %cst_20 = arith.constant dense<0.000000e+00> : vector<16x64xf32>
    %57 = tpu.matmul %55, %56, %cst_20 {dimension_numbers = #tpu.dot_dimension_numbers<[1], [0], [0], [1], [0, 0, 1, 1], [], []>} : vector<16x64xbf16>, vector<64x64xbf16>, vector<16x64xf32> -> vector<16x64xf32>
    %c0_21 = arith.constant 0 : index
    %c0_22 = arith.constant 0 : index
    %58 = vector.load %arg7[%c0_21, %c0_22] : memref<1x64xbf16, #tpu.memory_space<vmem>>, vector<1x64xbf16>
    %59 = arith.extf %58 : vector<1x64xbf16> to vector<1x64xf32>
    %60 = vector.broadcast %59 : vector<1x64xf32> to vector<16x64xf32>
    %61 = arith.addf %57, %60 : vector<16x64xf32>
    %62 = arith.truncf %61 : vector<16x64xf32> to vector<16x64xbf16>
    %c0_23 = arith.constant 0 : index
    %c0_24 = arith.constant 0 : index
    %63 = vector.load %arg8[%c0_23, %c0_24] : memref<64x128xbf16, #tpu.memory_space<vmem>>, vector<64x128xbf16>
    %cst_25 = arith.constant dense<0.000000e+00> : vector<16x128xf32>
    %64 = tpu.matmul %32, %63, %cst_25 {dimension_numbers = #tpu.dot_dimension_numbers<[1], [0], [0], [1], [0, 0, 1, 1], [], []>} : vector<16x64xbf16>, vector<64x128xbf16>, vector<16x128xf32> -> vector<16x128xf32>
    %c0_26 = arith.constant 0 : index
    %c0_27 = arith.constant 0 : index
    %65 = vector.load %arg9[%c0_26, %c0_27] : memref<1x128xbf16, #tpu.memory_space<vmem>>, vector<1x128xbf16>
    %66 = arith.extf %65 : vector<1x128xbf16> to vector<1x128xf32>
    %67 = vector.broadcast %66 : vector<1x128xf32> to vector<16x128xf32>
    %68 = arith.addf %64, %67 : vector<16x128xf32>
    %69 = arith.truncf %68 : vector<16x128xf32> to vector<16x128xbf16>
    %70 = vector.extract_strided_slice %69 {offsets = [0, 0], sizes = [16, 64], strides = [1, 1]} : vector<16x128xbf16> to vector<16x64xbf16>
    %71 = vector.extract_strided_slice %69 {offsets = [0, 64], sizes = [16, 64], strides = [1, 1]} : vector<16x128xbf16> to vector<16x64xbf16>
    %c0_28 = arith.constant 0 : index
    %c0_29 = arith.constant 0 : index
    %72 = vector.load %arg11[%c0_28, %c0_29] : memref<1x64xbf16, #tpu.memory_space<vmem>>, vector<1x64xbf16>
    %73 = arith.extf %72 : vector<1x64xbf16> to vector<1x64xf32>
    %74 = vector.broadcast %73 : vector<1x64xf32> to vector<16x64xf32>
    %75 = arith.addf %6, %74 : vector<16x64xf32>
    %76 = vector.extract_strided_slice %62 {offsets = [0, 0], sizes = [16, 16], strides = [1, 1]} : vector<16x64xbf16> to vector<16x16xbf16>
    %77 = vector.extract_strided_slice %70 {offsets = [0, 0], sizes = [16, 16], strides = [1, 1]} : vector<16x64xbf16> to vector<16x16xbf16>
    %78 = vector.extract_strided_slice %71 {offsets = [0, 0], sizes = [16, 16], strides = [1, 1]} : vector<16x64xbf16> to vector<16x16xbf16>
    %cst_30 = arith.constant dense<0.000000e+00> : vector<16x16xf32>
    %79 = tpu.matmul %76, %77, %cst_30 {dimension_numbers = #tpu.dot_dimension_numbers<[1], [1], [0], [0], [0, 0, 1, 0], [], []>} : vector<16x16xbf16>, vector<16x16xbf16>, vector<16x16xf32> -> vector<16x16xf32>
    %cst_31 = arith.constant dense<0xFF800000> : vector<16xf32>
    %80 = vector.multi_reduction <maximumf>, %79, %cst_31 [1] : vector<16x16xf32> to vector<16xf32>
    %81 = vector.shape_cast %80 : vector<16xf32> to vector<16x1xf32>
    %82 = vector.broadcast %81 : vector<16x1xf32> to vector<16x16xf32>
    %83 = arith.subf %79, %82 : vector<16x16xf32>
    %84 = math.exp %83 : vector<16x16xf32>
    %cst_32 = arith.constant dense<0.000000e+00> : vector<16xf32>
    %85 = vector.multi_reduction <add>, %84, %cst_32 [1] : vector<16x16xf32> to vector<16xf32>
    %86 = vector.shape_cast %85 : vector<16xf32> to vector<16x1xf32>
    %87 = tpu.reciprocal %86 {approx = true} : vector<16x1xf32> -> vector<16x1xf32>
    %88 = vector.broadcast %87 : vector<16x1xf32> to vector<16x16xf32>
    %89 = arith.mulf %84, %88 : vector<16x16xf32>
    %90 = arith.truncf %89 : vector<16x16xf32> to vector<16x16xbf16>
    %cst_33 = arith.constant dense<0.000000e+00> : vector<16x16xf32>
    %91 = tpu.matmul %90, %78, %cst_33 {dimension_numbers = #tpu.dot_dimension_numbers<[1], [0], [0], [1], [0, 0, 1, 1], [], []>} : vector<16x16xbf16>, vector<16x16xbf16>, vector<16x16xf32> -> vector<16x16xf32>
    %92 = arith.truncf %91 : vector<16x16xf32> to vector<16x16xbf16>
    %c0_34 = arith.constant 0 : index
    %c0_35 = arith.constant 0 : index
    %93 = vector.load %arg10[%c0_34, %c0_35] : memref<64x64xbf16, #tpu.memory_space<vmem>>, vector<16x64xbf16>
    %cst_36 = arith.constant dense<0.000000e+00> : vector<16x64xf32>
    %94 = tpu.matmul %92, %93, %cst_36 {dimension_numbers = #tpu.dot_dimension_numbers<[1], [0], [0], [1], [0, 0, 1, 1], [], []>} : vector<16x16xbf16>, vector<16x64xbf16>, vector<16x64xf32> -> vector<16x64xf32>
    %95 = arith.addf %75, %94 : vector<16x64xf32>
    %96 = vector.extract_strided_slice %62 {offsets = [0, 16], sizes = [16, 16], strides = [1, 1]} : vector<16x64xbf16> to vector<16x16xbf16>
    %97 = vector.extract_strided_slice %70 {offsets = [0, 16], sizes = [16, 16], strides = [1, 1]} : vector<16x64xbf16> to vector<16x16xbf16>
    %98 = vector.extract_strided_slice %71 {offsets = [0, 16], sizes = [16, 16], strides = [1, 1]} : vector<16x64xbf16> to vector<16x16xbf16>
    %cst_37 = arith.constant dense<0.000000e+00> : vector<16x16xf32>
    %99 = tpu.matmul %96, %97, %cst_37 {dimension_numbers = #tpu.dot_dimension_numbers<[1], [1], [0], [0], [0, 0, 1, 0], [], []>} : vector<16x16xbf16>, vector<16x16xbf16>, vector<16x16xf32> -> vector<16x16xf32>
    %cst_38 = arith.constant dense<0xFF800000> : vector<16xf32>
    %100 = vector.multi_reduction <maximumf>, %99, %cst_38 [1] : vector<16x16xf32> to vector<16xf32>
    %101 = vector.shape_cast %100 : vector<16xf32> to vector<16x1xf32>
    %102 = vector.broadcast %101 : vector<16x1xf32> to vector<16x16xf32>
    %103 = arith.subf %99, %102 : vector<16x16xf32>
    %104 = math.exp %103 : vector<16x16xf32>
    %cst_39 = arith.constant dense<0.000000e+00> : vector<16xf32>
    %105 = vector.multi_reduction <add>, %104, %cst_39 [1] : vector<16x16xf32> to vector<16xf32>
    %106 = vector.shape_cast %105 : vector<16xf32> to vector<16x1xf32>
    %107 = tpu.reciprocal %106 {approx = true} : vector<16x1xf32> -> vector<16x1xf32>
    %108 = vector.broadcast %107 : vector<16x1xf32> to vector<16x16xf32>
    %109 = arith.mulf %104, %108 : vector<16x16xf32>
    %110 = arith.truncf %109 : vector<16x16xf32> to vector<16x16xbf16>
    %cst_40 = arith.constant dense<0.000000e+00> : vector<16x16xf32>
    %111 = tpu.matmul %110, %98, %cst_40 {dimension_numbers = #tpu.dot_dimension_numbers<[1], [0], [0], [1], [0, 0, 1, 1], [], []>} : vector<16x16xbf16>, vector<16x16xbf16>, vector<16x16xf32> -> vector<16x16xf32>
    %112 = arith.truncf %111 : vector<16x16xf32> to vector<16x16xbf16>
    %c16 = arith.constant 16 : index
    %c0_41 = arith.constant 0 : index
    %113 = vector.load %arg10[%c16, %c0_41] : memref<64x64xbf16, #tpu.memory_space<vmem>>, vector<16x64xbf16>
    %cst_42 = arith.constant dense<0.000000e+00> : vector<16x64xf32>
    %114 = tpu.matmul %112, %113, %cst_42 {dimension_numbers = #tpu.dot_dimension_numbers<[1], [0], [0], [1], [0, 0, 1, 1], [], []>} : vector<16x16xbf16>, vector<16x64xbf16>, vector<16x64xf32> -> vector<16x64xf32>
    %115 = arith.addf %95, %114 : vector<16x64xf32>
    %116 = vector.extract_strided_slice %62 {offsets = [0, 32], sizes = [16, 16], strides = [1, 1]} : vector<16x64xbf16> to vector<16x16xbf16>
    %117 = vector.extract_strided_slice %70 {offsets = [0, 32], sizes = [16, 16], strides = [1, 1]} : vector<16x64xbf16> to vector<16x16xbf16>
    %118 = vector.extract_strided_slice %71 {offsets = [0, 32], sizes = [16, 16], strides = [1, 1]} : vector<16x64xbf16> to vector<16x16xbf16>
    %cst_43 = arith.constant dense<0.000000e+00> : vector<16x16xf32>
    %119 = tpu.matmul %116, %117, %cst_43 {dimension_numbers = #tpu.dot_dimension_numbers<[1], [1], [0], [0], [0, 0, 1, 0], [], []>} : vector<16x16xbf16>, vector<16x16xbf16>, vector<16x16xf32> -> vector<16x16xf32>
    %cst_44 = arith.constant dense<0xFF800000> : vector<16xf32>
    %120 = vector.multi_reduction <maximumf>, %119, %cst_44 [1] : vector<16x16xf32> to vector<16xf32>
    %121 = vector.shape_cast %120 : vector<16xf32> to vector<16x1xf32>
    %122 = vector.broadcast %121 : vector<16x1xf32> to vector<16x16xf32>
    %123 = arith.subf %119, %122 : vector<16x16xf32>
    %124 = math.exp %123 : vector<16x16xf32>
    %cst_45 = arith.constant dense<0.000000e+00> : vector<16xf32>
    %125 = vector.multi_reduction <add>, %124, %cst_45 [1] : vector<16x16xf32> to vector<16xf32>
    %126 = vector.shape_cast %125 : vector<16xf32> to vector<16x1xf32>
    %127 = tpu.reciprocal %126 {approx = true} : vector<16x1xf32> -> vector<16x1xf32>
    %128 = vector.broadcast %127 : vector<16x1xf32> to vector<16x16xf32>
    %129 = arith.mulf %124, %128 : vector<16x16xf32>
    %130 = arith.truncf %129 : vector<16x16xf32> to vector<16x16xbf16>
    %cst_46 = arith.constant dense<0.000000e+00> : vector<16x16xf32>
    %131 = tpu.matmul %130, %118, %cst_46 {dimension_numbers = #tpu.dot_dimension_numbers<[1], [0], [0], [1], [0, 0, 1, 1], [], []>} : vector<16x16xbf16>, vector<16x16xbf16>, vector<16x16xf32> -> vector<16x16xf32>
    %132 = arith.truncf %131 : vector<16x16xf32> to vector<16x16xbf16>
    %c32 = arith.constant 32 : index
    %c0_47 = arith.constant 0 : index
    %133 = vector.load %arg10[%c32, %c0_47] : memref<64x64xbf16, #tpu.memory_space<vmem>>, vector<16x64xbf16>
    %cst_48 = arith.constant dense<0.000000e+00> : vector<16x64xf32>
    %134 = tpu.matmul %132, %133, %cst_48 {dimension_numbers = #tpu.dot_dimension_numbers<[1], [0], [0], [1], [0, 0, 1, 1], [], []>} : vector<16x16xbf16>, vector<16x64xbf16>, vector<16x64xf32> -> vector<16x64xf32>
    %135 = arith.addf %115, %134 : vector<16x64xf32>
    %136 = vector.extract_strided_slice %62 {offsets = [0, 48], sizes = [16, 16], strides = [1, 1]} : vector<16x64xbf16> to vector<16x16xbf16>
    %137 = vector.extract_strided_slice %70 {offsets = [0, 48], sizes = [16, 16], strides = [1, 1]} : vector<16x64xbf16> to vector<16x16xbf16>
    %138 = vector.extract_strided_slice %71 {offsets = [0, 48], sizes = [16, 16], strides = [1, 1]} : vector<16x64xbf16> to vector<16x16xbf16>
    %cst_49 = arith.constant dense<0.000000e+00> : vector<16x16xf32>
    %139 = tpu.matmul %136, %137, %cst_49 {dimension_numbers = #tpu.dot_dimension_numbers<[1], [1], [0], [0], [0, 0, 1, 0], [], []>} : vector<16x16xbf16>, vector<16x16xbf16>, vector<16x16xf32> -> vector<16x16xf32>
    %cst_50 = arith.constant dense<0xFF800000> : vector<16xf32>
    %140 = vector.multi_reduction <maximumf>, %139, %cst_50 [1] : vector<16x16xf32> to vector<16xf32>
    %141 = vector.shape_cast %140 : vector<16xf32> to vector<16x1xf32>
    %142 = vector.broadcast %141 : vector<16x1xf32> to vector<16x16xf32>
    %143 = arith.subf %139, %142 : vector<16x16xf32>
    %144 = math.exp %143 : vector<16x16xf32>
    %cst_51 = arith.constant dense<0.000000e+00> : vector<16xf32>
    %145 = vector.multi_reduction <add>, %144, %cst_51 [1] : vector<16x16xf32> to vector<16xf32>
    %146 = vector.shape_cast %145 : vector<16xf32> to vector<16x1xf32>
    %147 = tpu.reciprocal %146 {approx = true} : vector<16x1xf32> -> vector<16x1xf32>
    %148 = vector.broadcast %147 : vector<16x1xf32> to vector<16x16xf32>
    %149 = arith.mulf %144, %148 : vector<16x16xf32>
    %150 = arith.truncf %149 : vector<16x16xf32> to vector<16x16xbf16>
    %cst_52 = arith.constant dense<0.000000e+00> : vector<16x16xf32>
    %151 = tpu.matmul %150, %138, %cst_52 {dimension_numbers = #tpu.dot_dimension_numbers<[1], [0], [0], [1], [0, 0, 1, 1], [], []>} : vector<16x16xbf16>, vector<16x16xbf16>, vector<16x16xf32> -> vector<16x16xf32>
    %152 = arith.truncf %151 : vector<16x16xf32> to vector<16x16xbf16>
    %c48 = arith.constant 48 : index
    %c0_53 = arith.constant 0 : index
    %153 = vector.load %arg10[%c48, %c0_53] : memref<64x64xbf16, #tpu.memory_space<vmem>>, vector<16x64xbf16>
    %cst_54 = arith.constant dense<0.000000e+00> : vector<16x64xf32>
    %154 = tpu.matmul %152, %153, %cst_54 {dimension_numbers = #tpu.dot_dimension_numbers<[1], [0], [0], [1], [0, 0, 1, 1], [], []>} : vector<16x16xbf16>, vector<16x64xbf16>, vector<16x64xf32> -> vector<16x64xf32>
    %155 = arith.addf %135, %154 : vector<16x64xf32>
    %156 = arith.truncf %155 : vector<16x64xf32> to vector<16x64xbf16>
    %c0_55 = arith.constant 0 : index
    %c0_56 = arith.constant 0 : index
    %c0_57 = arith.constant 0 : index
    %157 = vector.load %arg12[%c0_55, %c0_56, %c0_57] : memref<1x16x64xbf16, #tpu.memory_space<vmem>>, vector<1x16x64xbf16>
    %158 = vector.shape_cast %157 : vector<1x16x64xbf16> to vector<16x64xbf16>
    %159 = vector.shape_cast %156 : vector<16x64xbf16> to vector<1x16x64xbf16>
    tpu.vector_store %arg12[%c0_55, %c0_56, %c0_57], %159 {strides = array<i32>} : memref<1x16x64xbf16, #tpu.memory_space<vmem>>, vector<1x16x64xbf16>,
    return
  }
  func.func @transform_0(%arg0: i32, %arg1: i32) -> (i32, i32, i32) {
    %c0_i32 = arith.constant 0 : i32
    %c0_i32_0 = arith.constant 0 : i32
    %c0_i32_1 = arith.constant 0 : i32
    return %arg0, %c0_i32, %c0_i32_0 : i32, i32, i32
  }
  func.func @transform_1(%arg0: i32, %arg1: i32) -> (i32, i32, i32) {
    %c0_i32 = arith.constant 0 : i32
    %c0_i32_0 = arith.constant 0 : i32
    return %arg0, %arg1, %c0_i32 : i32, i32, i32
  }
  func.func @transform_2(%arg0: i32, %arg1: i32) -> (i32, i32) {
    %c0_i32 = arith.constant 0 : i32
    %c0_i32_0 = arith.constant 0 : i32
    %c0_i32_1 = arith.constant 0 : i32
    return %c0_i32, %c0_i32_0 : i32, i32
  }
  func.func @transform_3(%arg0: i32, %arg1: i32) -> (i32, i32) {
    %c0_i32 = arith.constant 0 : i32
    %c0_i32_0 = arith.constant 0 : i32
    %c0_i32_1 = arith.constant 0 : i32
    return %c0_i32, %c0_i32_0 : i32, i32
  }
  func.func @transform_4(%arg0: i32, %arg1: i32) -> (i32, i32) {
    %c0_i32 = arith.constant 0 : i32
    %c0_i32_0 = arith.constant 0 : i32
    %c0_i32_1 = arith.constant 0 : i32
    return %c0_i32, %c0_i32_0 : i32, i32
  }
  func.func @transform_5(%arg0: i32, %arg1: i32) -> (i32, i32) {
    %c0_i32 = arith.constant 0 : i32
    %c0_i32_0 = arith.constant 0 : i32
    %c0_i32_1 = arith.constant 0 : i32
    return %c0_i32, %c0_i32_0 : i32, i32
  }
  func.func @transform_6(%arg0: i32, %arg1: i32) -> (i32, i32) {
    %c0_i32 = arith.constant 0 : i32
    %c0_i32_0 = arith.constant 0 : i32
    %c0_i32_1 = arith.constant 0 : i32
    return %c0_i32, %c0_i32_0 : i32, i32
  }
  func.func @transform_7(%arg0: i32, %arg1: i32) -> (i32, i32) {
    %c0_i32 = arith.constant 0 : i32
    %c0_i32_0 = arith.constant 0 : i32
    %c0_i32_1 = arith.constant 0 : i32
    return %c0_i32, %c0_i32_0 : i32, i32
  }
  func.func @transform_8(%arg0: i32, %arg1: i32) -> (i32, i32) {
    %c0_i32 = arith.constant 0 : i32
    %c0_i32_0 = arith.constant 0 : i32
    %c0_i32_1 = arith.constant 0 : i32
    return %c0_i32, %c0_i32_0 : i32, i32
  }
  func.func @transform_9(%arg0: i32, %arg1: i32) -> (i32, i32) {
    %c0_i32 = arith.constant 0 : i32
    %c0_i32_0 = arith.constant 0 : i32
    %c0_i32_1 = arith.constant 0 : i32
    return %c0_i32, %c0_i32_0 : i32, i32
  }
  func.func @transform_10(%arg0: i32, %arg1: i32) -> (i32, i32, i32) {
    %c0_i32 = arith.constant 0 : i32
    %c0_i32_0 = arith.constant 0 : i32
    return %arg0, %arg1, %c0_i32 : i32, i32, i32
  }
}

module attributes {stable_mosaic.version = 11 : i64} {
  func.func @_ff_kernel(%arg0: i32, %arg1: memref<64x64xbf16, #tpu.memory_space<vmem>>, %arg2: memref<1x64xbf16, #tpu.memory_space<vmem>>, %arg3: memref<1x64xbf16, #tpu.memory_space<vmem>>, %arg4: memref<64x128xbf16, #tpu.memory_space<vmem>>, %arg5: memref<1x128xbf16, #tpu.memory_space<vmem>>, %arg6: memref<128x64xbf16, #tpu.memory_space<vmem>>, %arg7: memref<1x64xbf16, #tpu.memory_space<vmem>>, %arg8: memref<64x64xbf16, #tpu.memory_space<vmem>>) attributes {dimension_semantics = [#tpu.dimension_semantics<parallel>], iteration_bounds = array<i64: 1>, scalar_prefetch = 0 : i64, scratch_operands = 0 : i64, tpu.core_type = #tpu.core_type<tc>, window_params = [{transform_indices = @transform_0, window_bounds = array<i64: 64, 64>}, {pipeline_mode = #tpu.pipeline_mode<synchronous>, transform_indices = @transform_1, window_bounds = array<i64: 1, 64>}, {pipeline_mode = #tpu.pipeline_mode<synchronous>, transform_indices = @transform_2, window_bounds = array<i64: 1, 64>}, {pipeline_mode = #tpu.pipeline_mode<synchronous>, transform_indices = @transform_3, window_bounds = array<i64: 64, 128>}, {pipeline_mode = #tpu.pipeline_mode<synchronous>, transform_indices = @transform_4, window_bounds = array<i64: 1, 128>}, {pipeline_mode = #tpu.pipeline_mode<synchronous>, transform_indices = @transform_5, window_bounds = array<i64: 128, 64>}, {pipeline_mode = #tpu.pipeline_mode<synchronous>, transform_indices = @transform_6, window_bounds = array<i64: 1, 64>}, {transform_indices = @transform_7, window_bounds = array<i64: 64, 64>}]} {
    %c0 = arith.constant 0 : index
    %c0_0 = arith.constant 0 : index
    %0 = vector.load %arg1[%c0, %c0_0] : memref<64x64xbf16, #tpu.memory_space<vmem>>, vector<64x64xbf16>
    %1 = arith.extf %0 : vector<64x64xbf16> to vector<64x64xf32>
    %cst = arith.constant dense<0.000000e+00> : vector<64xf32>
    %2 = vector.multi_reduction <add>, %1, %cst [1] : vector<64x64xf32> to vector<64xf32>
    %3 = vector.shape_cast %2 : vector<64xf32> to vector<64x1xf32>
    %cst_1 = arith.constant 6.400000e+01 : f32
    %4 = vector.broadcast %cst_1 : f32 to vector<64x1xf32>
    %5 = arith.divf %3, %4 : vector<64x1xf32>
    %6 = vector.broadcast %5 : vector<64x1xf32> to vector<64x64xf32>
    %7 = arith.subf %1, %6 : vector<64x64xf32>
    %8 = arith.mulf %7, %7 : vector<64x64xf32>
    %cst_2 = arith.constant dense<0.000000e+00> : vector<64xf32>
    %9 = vector.multi_reduction <add>, %8, %cst_2 [1] : vector<64x64xf32> to vector<64xf32>
    %10 = vector.shape_cast %9 : vector<64xf32> to vector<64x1xf32>
    %cst_3 = arith.constant 6.400000e+01 : f32
    %11 = vector.broadcast %cst_3 : f32 to vector<64x1xf32>
    %12 = arith.divf %10, %11 : vector<64x1xf32>
    %13 = vector.broadcast %5 : vector<64x1xf32> to vector<64x64xf32>
    %14 = arith.subf %1, %13 : vector<64x64xf32>
    %cst_4 = arith.constant 9.99999974E-6 : f32
    %15 = vector.broadcast %cst_4 : f32 to vector<64x1xf32>
    %16 = arith.addf %12, %15 : vector<64x1xf32>
    %17 = math.rsqrt %16 : vector<64x1xf32>
    %18 = vector.broadcast %17 : vector<64x1xf32> to vector<64x64xf32>
    %19 = arith.mulf %14, %18 : vector<64x64xf32>
    %c0_5 = arith.constant 0 : index
    %c0_6 = arith.constant 0 : index
    %20 = vector.load %arg2[%c0_5, %c0_6] : memref<1x64xbf16, #tpu.memory_space<vmem>>, vector<1x64xbf16>
    %21 = arith.extf %20 : vector<1x64xbf16> to vector<1x64xf32>
    %22 = vector.broadcast %21 : vector<1x64xf32> to vector<64x64xf32>
    %23 = arith.mulf %19, %22 : vector<64x64xf32>
    %c0_7 = arith.constant 0 : index
    %c0_8 = arith.constant 0 : index
    %24 = vector.load %arg3[%c0_7, %c0_8] : memref<1x64xbf16, #tpu.memory_space<vmem>>, vector<1x64xbf16>
    %25 = arith.extf %24 : vector<1x64xbf16> to vector<1x64xf32>
    %26 = vector.broadcast %25 : vector<1x64xf32> to vector<64x64xf32>
    %27 = arith.addf %23, %26 : vector<64x64xf32>
    %28 = arith.truncf %27 : vector<64x64xf32> to vector<64x64xbf16>
    %c0_9 = arith.constant 0 : index
    %c0_10 = arith.constant 0 : index
    %29 = vector.load %arg4[%c0_9, %c0_10] : memref<64x128xbf16, #tpu.memory_space<vmem>>, vector<64x128xbf16>
    %cst_11 = arith.constant dense<0.000000e+00> : vector<64x128xf32>
    %30 = tpu.matmul %28, %29, %cst_11 {dimension_numbers = #tpu.dot_dimension_numbers<[1], [0], [0], [1], [0, 0, 1, 1], [], []>} : vector<64x64xbf16>, vector<64x128xbf16>, vector<64x128xf32> -> vector<64x128xf32>
    %c0_12 = arith.constant 0 : index
    %c0_13 = arith.constant 0 : index
    %31 = vector.load %arg5[%c0_12, %c0_13] : memref<1x128xbf16, #tpu.memory_space<vmem>>, vector<1x128xbf16>
    %32 = arith.extf %31 : vector<1x128xbf16> to vector<1x128xf32>
    %33 = vector.broadcast %32 : vector<1x128xf32> to vector<64x128xf32>
    %34 = arith.addf %30, %33 : vector<64x128xf32>
    %cst_14 = arith.constant 0.000000e+00 : f32
    %35 = vector.broadcast %cst_14 : f32 to vector<64x128xf32>
    %36 = arith.maximumf %34, %35 : vector<64x128xf32>
    %37 = arith.truncf %36 : vector<64x128xf32> to vector<64x128xbf16>
    %c0_15 = arith.constant 0 : index
    %c0_16 = arith.constant 0 : index
    %38 = vector.load %arg6[%c0_15, %c0_16] : memref<128x64xbf16, #tpu.memory_space<vmem>>, vector<128x64xbf16>
    %cst_17 = arith.constant dense<0.000000e+00> : vector<64x64xf32>
    %39 = tpu.matmul %37, %38, %cst_17 {dimension_numbers = #tpu.dot_dimension_numbers<[1], [0], [0], [1], [0, 0, 1, 1], [], []>} : vector<64x128xbf16>, vector<128x64xbf16>, vector<64x64xf32> -> vector<64x64xf32>
    %c0_18 = arith.constant 0 : index
    %c0_19 = arith.constant 0 : index
    %40 = vector.load %arg7[%c0_18, %c0_19] : memref<1x64xbf16, #tpu.memory_space<vmem>>, vector<1x64xbf16>
    %41 = arith.extf %40 : vector<1x64xbf16> to vector<1x64xf32>
    %42 = vector.broadcast %41 : vector<1x64xf32> to vector<64x64xf32>
    %43 = arith.addf %39, %42 : vector<64x64xf32>
    %44 = arith.addf %43, %1 : vector<64x64xf32>
    %45 = arith.truncf %44 : vector<64x64xf32> to vector<64x64xbf16>
    %c0_20 = arith.constant 0 : index
    %c0_21 = arith.constant 0 : index
    %46 = vector.load %arg8[%c0_20, %c0_21] : memref<64x64xbf16, #tpu.memory_space<vmem>>, vector<64x64xbf16>
    tpu.vector_store %arg8[%c0_20, %c0_21], %45 {strides = array<i32>} : memref<64x64xbf16, #tpu.memory_space<vmem>>, vector<64x64xbf16>,
    return
  }
  func.func @transform_0(%arg0: i32) -> (i32, i32) {
    %c0_i32 = arith.constant 0 : i32
    %c0_i32_0 = arith.constant 0 : i32
    return %arg0, %c0_i32 : i32, i32
  }
  func.func @transform_1(%arg0: i32) -> (i32, i32) {
    %c0_i32 = arith.constant 0 : i32
    %c0_i32_0 = arith.constant 0 : i32
    %c0_i32_1 = arith.constant 0 : i32
    return %c0_i32, %c0_i32_0 : i32, i32
  }
  func.func @transform_2(%arg0: i32) -> (i32, i32) {
    %c0_i32 = arith.constant 0 : i32
    %c0_i32_0 = arith.constant 0 : i32
    %c0_i32_1 = arith.constant 0 : i32
    return %c0_i32, %c0_i32_0 : i32, i32
  }
  func.func @transform_3(%arg0: i32) -> (i32, i32) {
    %c0_i32 = arith.constant 0 : i32
    %c0_i32_0 = arith.constant 0 : i32
    %c0_i32_1 = arith.constant 0 : i32
    return %c0_i32, %c0_i32_0 : i32, i32
  }
  func.func @transform_4(%arg0: i32) -> (i32, i32) {
    %c0_i32 = arith.constant 0 : i32
    %c0_i32_0 = arith.constant 0 : i32
    %c0_i32_1 = arith.constant 0 : i32
    return %c0_i32, %c0_i32_0 : i32, i32
  }
  func.func @transform_5(%arg0: i32) -> (i32, i32) {
    %c0_i32 = arith.constant 0 : i32
    %c0_i32_0 = arith.constant 0 : i32
    %c0_i32_1 = arith.constant 0 : i32
    return %c0_i32, %c0_i32_0 : i32, i32
  }
  func.func @transform_6(%arg0: i32) -> (i32, i32) {
    %c0_i32 = arith.constant 0 : i32
    %c0_i32_0 = arith.constant 0 : i32
    %c0_i32_1 = arith.constant 0 : i32
    return %c0_i32, %c0_i32_0 : i32, i32
  }
  func.func @transform_7(%arg0: i32) -> (i32, i32) {
    %c0_i32 = arith.constant 0 : i32
    %c0_i32_0 = arith.constant 0 : i32
    return %arg0, %c0_i32 : i32, i32
  }
}

module attributes {stable_mosaic.version = 11 : i64} {
  func.func @kern(%arg0: i32, %arg1: memref<16x85xbf16, #tpu.memory_space<vmem>>, %arg2: memref<85x128xbf16, #tpu.memory_space<vmem>>, %arg3: memref<1x128xbf16, #tpu.memory_space<vmem>>, %arg4: memref<16x128xf32, #tpu.memory_space<vmem>>) attributes {dimension_semantics = [#tpu.dimension_semantics<parallel>], iteration_bounds = array<i64: 1>, scalar_prefetch = 0 : i64, scratch_operands = 0 : i64, tpu.core_type = #tpu.core_type<tc>, window_params = [{transform_indices = @transform_0, window_bounds = array<i64: 16, 85>}, {pipeline_mode = #tpu.pipeline_mode<synchronous>, transform_indices = @transform_1, window_bounds = array<i64: 85, 128>}, {pipeline_mode = #tpu.pipeline_mode<synchronous>, transform_indices = @transform_2, window_bounds = array<i64: 1, 128>}, {transform_indices = @transform_3, window_bounds = array<i64: 16, 128>}]} {
    %c0 = arith.constant 0 : index
    %c0_0 = arith.constant 0 : index
    %0 = vector.load %arg1[%c0, %c0_0] : memref<16x85xbf16, #tpu.memory_space<vmem>>, vector<16x85xbf16>
    %1 = arith.extf %0 : vector<16x85xbf16> to vector<16x85xf32>
    %2 = arith.truncf %1 : vector<16x85xf32> to vector<16x85xbf16>
    %c0_1 = arith.constant 0 : index
    %c0_2 = arith.constant 0 : index
    %3 = vector.load %arg2[%c0_1, %c0_2] : memref<85x128xbf16, #tpu.memory_space<vmem>>, vector<85x128xbf16>
    %cst = arith.constant dense<0.000000e+00> : vector<16x128xf32>
    %4 = tpu.matmul %2, %3, %cst {dimension_numbers = #tpu.dot_dimension_numbers<[1], [0], [0], [1], [0, 0, 1, 1], [], []>} : vector<16x85xbf16>, vector<85x128xbf16>, vector<16x128xf32> -> vector<16x128xf32>
    %c0_3 = arith.constant 0 : index
    %c0_4 = arith.constant 0 : index
    %5 = vector.load %arg3[%c0_3, %c0_4] : memref<1x128xbf16, #tpu.memory_space<vmem>>, vector<1x128xbf16>
    %6 = arith.extf %5 : vector<1x128xbf16> to vector<1x128xf32>
    %7 = vector.broadcast %6 : vector<1x128xf32> to vector<16x128xf32>
    %8 = arith.addf %4, %7 : vector<16x128xf32>
    %c0_5 = arith.constant 0 : index
    %c0_6 = arith.constant 0 : index
    %9 = vector.load %arg4[%c0_5, %c0_6] : memref<16x128xf32, #tpu.memory_space<vmem>>, vector<16x128xf32>
    tpu.vector_store %arg4[%c0_5, %c0_6], %8 {strides = array<i32>} : memref<16x128xf32, #tpu.memory_space<vmem>>, vector<16x128xf32>,
    return
  }
  func.func @transform_0(%arg0: i32) -> (i32, i32) {
    %c0_i32 = arith.constant 0 : i32
    %c0_i32_0 = arith.constant 0 : i32
    return %arg0, %c0_i32 : i32, i32
  }
  func.func @transform_1(%arg0: i32) -> (i32, i32) {
    %c0_i32 = arith.constant 0 : i32
    %c0_i32_0 = arith.constant 0 : i32
    %c0_i32_1 = arith.constant 0 : i32
    return %c0_i32, %c0_i32_0 : i32, i32
  }
  func.func @transform_2(%arg0: i32) -> (i32, i32) {
    %c0_i32 = arith.constant 0 : i32
    %c0_i32_0 = arith.constant 0 : i32
    %c0_i32_1 = arith.constant 0 : i32
    return %c0_i32, %c0_i32_0 : i32, i32
  }
  func.func @transform_3(%arg0: i32) -> (i32, i32) {
    %c0_i32 = arith.constant 0 : i32
    %c0_i32_0 = arith.constant 0 : i32
    return %arg0, %c0_i32 : i32, i32
  }
}

</mosaic_0001>

<bundles_post_ra>
// kernel: rosettafold_forward.20
= control target key start
LH: loop header
LB: loop body
LE: loop exit
PB: predicated region body
PF: predicated region fallthrough
CT: control target
= control target key end

     0   :  { %vm91_vm0 = vcmask 1041408   ;;  %vm66_vm1 = vcmask 31744   ;;  %s396_s0 = inlined_call_operand.vmem [shape: bf16[1,4,128], index: 0, kind: input, shape index: {}, may-alias: {0,1}]   ;;  %s397_s1 = inlined_call_operand.vmem [shape: bf16[1,4,128], index: 1, kind: input, shape index: {}, may-alias: {0,1}]   ;;  %s398_s2 = inlined_call_operand.vmem [shape: f32[1,128,128], index: 2, kind: output, shape index: {}]  }
   0x1   :  { %v48_v0 = vld [vmem:[%s396_s0] sm:$0x3] }
   0x2   :  { %v49_v1 = vld [vmem:[%s397_s1] sm:$0x3]  ;;  %50 = vxpose.xlu0.c.b16.start.end [1/1] (short) %v48_v0, 128 }
   0x3   :  { %316 = vmatprep.subr.msk.bf16.mxu0 %vm91_vm0, %v49_v1  ;;  %v93_v2 = vsel %vm91_vm0, %v49_v1, 0  ;;  %317 = vmatprep.subr.msk.bf16.mxu1 %vm91_vm0, %v49_v1 }
   0x4   :  { %297 = vmatpush3.bf16.msra.mxu0 %v93_v2  ;;  %315 = vmatpush3.bf16.msra.mxu1 %v93_v2 }
  0x64   :  { %v58_v3 = vpop.trf.xlu0 }
  0x65   :  { %298 = vmatprep.mubr.msk.bf16.mxu0 %vm66_vm1, %v58_v3 }
  0x68   :  { %v59_v4 = vpop.trf.xlu0 }
  0x69   :  { %299 = vmatmul.mubr.msk.bf16.vlgmr.msra.gmra.mxu0 %vm66_vm1, %v59_v4 }
  0x6c   :  { %v60_v5 = vpop.trf.xlu0 }
  0x6d   :  { %302 = vmatprep.mubr.msk.bf16.mxu0 %vm66_vm1, %v60_v5 }
  0x70   :  { %v61_v6 = vpop.trf.xlu0 }
  0x71   :  { %303 = vmatmul.mubr.msk.bf16.gmra.mxu0 %vm66_vm1, %v61_v6 }
  0x74   :  { %v62_v7 = vpop.trf.xlu0 }
  0x75   :  { %306 = vmatprep.mubr.msk.bf16.mxu1 %vm66_vm1, %v62_v7 }
  0x78   :  { %v63_v8 = vpop.trf.xlu0 }
  0x79   :  { %307 = vmatmul.mubr.msk.bf16.vlgmr.msra.gmra.mxu1 %vm66_vm1, %v63_v8 }
  0x7c   :  { %v64_v9 = vpop.trf.xlu0 }
  0x7d   :  { %310 = vmatprep.mubr.msk.bf16.mxu1 %vm66_vm1, %v64_v9 }
  0x80   :  { %v65_v10 = vpop.trf.xlu0 }
  0x81   :  { %311 = vmatmul.mubr.msk.bf16.gmra.mxu1 %vm66_vm1, %v65_v10 }
 0x129   :  { %v300_v11 = vpop.f32.mrf.mxu0 }
 0x12a   :  { %v245_v12 = vmul.f32 0.25, %v300_v11 }
 0x12b   :  { %v129_v13 = vpop.f32.mrf.mxu0 }
 0x12c   :  { %261 = vst [vmem:[%s398_s2 + $0x10] sm:$0xff] %v245_v12  ;;  %v243_v14 = vmul.f32 0.25, %v129_v13 }
 0x12d   :  { %v301_v15 = vpop.f32.mrf.mxu0 }
 0x12e   :  { %259 = vst [vmem:[%s398_s2] sm:$0xff] %v243_v14  ;;  %v246_v16 = vmul.f32 0.25, %v301_v15 }
 0x12f   :  { %v132_v17 = vpop.f32.mrf.mxu0 }
 0x130   :  { %262 = vst [vmem:[%s398_s2 + $0x18] sm:$0xff] %v246_v16  ;;  %v244_v18 = vmul.f32 0.25, %v132_v17 }
 0x131   :  { %v304_v19 = vpop.f32.mrf.mxu0 }
 0x132   :  { %260 = vst [vmem:[%s398_s2 + $0x8] sm:$0xff] %v244_v18  ;;  %v249_v20 = vmul.f32 0.25, %v304_v19 }
 0x133   :  { %v145_v21 = vpop.f32.mrf.mxu0 }
 0x134   :  { %265 = vst [vmem:[%s398_s2 + $0x30] sm:$0xff] %v249_v20  ;;  %v247_v22 = vmul.f32 0.25, %v145_v21 }
 0x135   :  { %v305_v23 = vpop.f32.mrf.mxu0 }
 0x136   :  { %263 = vst [vmem:[%s398_s2 + $0x20] sm:$0xff] %v247_v22  ;;  %v250_v24 = vmul.f32 0.25, %v305_v23 }
 0x137   :  { %v148_v25 = vpop.f32.mrf.mxu0 }
 0x138   :  { %266 = vst [vmem:[%s398_s2 + $0x38] sm:$0xff] %v250_v24  ;;  %v248_v26 = vmul.f32 0.25, %v148_v25 }
 0x139   :  { %v308_v27 = vpop.f32.mrf.mxu1 }
 0x13a   :  { %264 = vst [vmem:[%s398_s2 + $0x28] sm:$0xff] %v248_v26  ;;  %v253_v28 = vmul.f32 0.25, %v308_v27 }
 0x13b   :  { %v161_v29 = vpop.f32.mrf.mxu1 }
 0x13c   :  { %269 = vst [vmem:[%s398_s2 + $0x50] sm:$0xff] %v253_v28  ;;  %v251_v30 = vmul.f32 0.25, %v161_v29 }
 0x13d   :  { %v309_v31 = vpop.f32.mrf.mxu1 }
 0x13e   :  { %267 = vst [vmem:[%s398_s2 + $0x40] sm:$0xff] %v251_v30  ;;  %v254_v32 = vmul.f32 0.25, %v309_v31 }
 0x13f   :  { %v164_v33 = vpop.f32.mrf.mxu1 }
 0x140   :  { %270 = vst [vmem:[%s398_s2 + $0x58] sm:$0xff] %v254_v32  ;;  %v252_v34 = vmul.f32 0.25, %v164_v33 }
 0x141   :  { %v312_v35 = vpop.f32.mrf.mxu1 }
 0x142   :  { %268 = vst [vmem:[%s398_s2 + $0x48] sm:$0xff] %v252_v34  ;;  %v257_v36 = vmul.f32 0.25, %v312_v35 }
 0x143   :  { %v177_v37 = vpop.f32.mrf.mxu1 }
 0x144   :  { %273 = vst [vmem:[%s398_s2 + $0x70] sm:$0xff] %v257_v36  ;;  %v255_v38 = vmul.f32 0.25, %v177_v37 }
 0x145   :  { %v313_v39 = vpop.f32.mrf.mxu1 }
 0x146   :  { %271 = vst [vmem:[%s398_s2 + $0x60] sm:$0xff] %v255_v38  ;;  %v258_v40 = vmul.f32 0.25, %v313_v39 }
 0x147   :  { %v180_v41 = vpop.f32.mrf.mxu1 }
 0x148   :  { %274 = vst [vmem:[%s398_s2 + $0x78] sm:$0xff] %v258_v40  ;;  %v256_v42 = vmul.f32 0.25, %v180_v41 }
 0x14a   :  { %272 = vst [vmem:[%s398_s2 + $0x68] sm:$0xff] %v256_v42 }

// kernel: rosettafold_forward.19
= control target key start
LH: loop header
LB: loop body
LE: loop exit
PB: predicated region body
PF: predicated region fallthrough
CT: control target
= control target key end

     0   :  { %vm37_vm0 = vcmask 523264   ;;  %vm322_vm1 = vcmask 60416   ;;  %s585_s0 = inlined_call_operand.vmem [shape: bf16[64,64], index: 0, kind: input, shape index: {}]   ;;  %s586_s3 = inlined_call_operand.vmem [shape: bf16[64,8], index: 3, kind: input, shape index: {}]   ;;  %s587_s1 = inlined_call_operand.vmem [shape: bf16[1,64], index: 1, kind: input, shape index: {}]   ;;  %s588_s2 = inlined_call_operand.vmem [shape: bf16[1,64], index: 2, kind: input, shape index: {}]   ;;  %s589_s4 = inlined_call_operand.vmem [shape: bf16[1,8], index: 4, kind: input, shape index: {}]   ;;  %s590_s5 = inlined_call_operand.vmem [shape: bf16[64,8], index: 5, kind: output, shape index: {}]  }
   0x1   :  { %v360_v0 = vld [vmem:[%s585_s0] sm:$0xff]   ;;  %v376_v1 = vld [vmem:[%s585_s0 + $0x10] sm:$0xff]   ;;  %v375_v6 = vld [vmem:[%s585_s0 + $0x8] sm:$0xff]  }
   0x2   :  { %v361_v2 = vunpack.c.l.bf16 %v360_v0  ;;  %v369_v3 = vunpack.c.l.bf16 %v376_v1  ;;  %v362_v4 = vunpack.c.h.bf16 %v360_v0  ;;  %v370_v5 = vunpack.c.h.bf16 %v376_v1  ;;  %v377_v13 = vld [vmem:[%s585_s0 + $0x18] sm:$0xff]   ;;  %v411_v61 = vld [vmem:[%s586_s3 + $0x10] sm:$0xff]   ;;  %v412_v62 = vld [vmem:[%s586_s3 + $0x8] sm:$0xff]  }
   0x3   :  { %v365_v11 = vunpack.c.l.bf16 %v375_v6  ;;  %v366_v12 = vunpack.c.h.bf16 %v375_v6  ;;  %v373_v16 = vunpack.c.l.bf16 %v377_v13  ;;  %v374_v17 = vunpack.c.h.bf16 %v377_v13  ;;  %v410_v60 = vld [vmem:[%s586_s3 + $0x18] sm:$0xff]   ;;  %v413_v63 = vld [vmem:[%s586_s3] sm:$0xff]  }
   0x4   :  { %v38_v7 = vsel %vm37_vm0, %v361_v2, 0.0  ;;  %v50_v8 = vsel %vm37_vm0, %v369_v3, 0.0  ;;  %v41_v9 = vsel %vm37_vm0, %v362_v4, 0.0  ;;  %v53_v10 = vsel %vm37_vm0, %v370_v5, 0.0  ;;  %386 = vmatprep.subr.bf16.mxu0 %v410_v60  ;;  %402 = vmatprep.subr.bf16.mxu1 %v410_v60 }
   0x5   :  { %39 = vadd.xlane.f32.xlu0 %v38_v7  ;;  %51 = vadd.xlane.f32.xlu1 %v50_v8  ;;  %v44_v14 = vsel %vm37_vm0, %v365_v11, 0.0  ;;  %v47_v15 = vsel %vm37_vm0, %v366_v12, 0.0  ;;  %v56_v18 = vsel %vm37_vm0, %v373_v16, 0.0  ;;  %v59_v19 = vsel %vm37_vm0, %v374_v17, 0.0 }
   0x6   :  { %387 = vmatpush3.bf16.msra.mxu0 %v410_v60  ;;  %406 = vmatpush3.bf16.msra.mxu1 %v410_v60 }
   0x7   :  { %388 = vmatprep.subr.bf16.mxu0 %v411_v61  ;;  %403 = vmatprep.subr.bf16.mxu1 %v411_v61 }
   0x9   :  { %42 = vadd.xlane.f32.xlu0 %v41_v9  ;;  %54 = vadd.xlane.f32.xlu1 %v53_v10  ;;  %v145_v9 = vlaneseq }
   0xa   :  { %389 = vmatpush3.bf16.msra.mxu0 %v411_v61  ;;  %407 = vmatpush3.bf16.msra.mxu1 %v411_v61 }
   0xb   :  { %390 = vmatprep.subr.bf16.mxu0 %v412_v62  ;;  %404 = vmatprep.subr.bf16.mxu1 %v412_v62 }
   0xd   :  { %45 = vadd.xlane.f32.xlu0 %v44_v14  ;;  %48 = vadd.xlane.f32.xlu1 %v47_v15 }
   0xe   :  { %391 = vmatpush3.bf16.msra.mxu0 %v412_v62  ;;  %408 = vmatpush3.bf16.msra.mxu1 %v412_v62 }
   0xf   :  { %392 = vmatprep.subr.bf16.mxu0 %v413_v63  ;;  %405 = vmatprep.subr.bf16.mxu1 %v413_v63 }
  0x11   :  { %57 = vadd.xlane.f32.xlu0 %v56_v18  ;;  %60 = vadd.xlane.f32.xlu1 %v59_v19  ;;  %v143_v19 = vld [vmem:[%s587_s1] sm:$0x1] }
  0x12   :  { %393 = vmatpush3.bf16.msra.mxu0 %v413_v63  ;;  %409 = vmatpush3.bf16.msra.mxu1 %v413_v63 }
  0x8e   :  { %v40_v20 = vpop.xlane.xlu0 %39  ;;  %v52_v21 = vpop.xlane.xlu1 %51 }
  0x8f   :  { %v63_v22 = vmul.f32 0.015625, %v40_v20  ;;  %v67_v23 = vmul.f32 0.015625, %v52_v21 }
  0x91   :  { %v480_v24 = vsub.f32 %v361_v2, %v63_v22  ;;  %v482_v25 = vsub.f32 %v369_v3, %v67_v23 }
  0x92   :  { %v43_v26 = vpop.xlane.xlu0 %42  ;;  %v55_v27 = vpop.xlane.xlu1 %54 }
  0x93   :  { %v64_v28 = vmul.f32 0.015625, %v43_v26  ;;  %v68_v29 = vmul.f32 0.015625, %v55_v27  ;;  %v79_v30 = vmul.f32 %v480_v24, %v480_v24  ;;  %v83_v31 = vmul.f32 %v482_v25, %v482_v25 }
  0x94   :  { %v144_v26 = vunpack.c.l.bf16 %v143_v19 }
  0x95   :  { %v488_v32 = vsub.f32 %v362_v4, %v64_v28  ;;  %v490_v33 = vsub.f32 %v370_v5, %v68_v29  ;;  %v87_v34 = vsel %vm37_vm0, %v79_v30, 0.0  ;;  %v99_v37 = vsel %vm37_vm0, %v83_v31, 0.0  ;;  %v157_v29 = vld [vmem:[%s588_s2] sm:$0x1] }
  0x96   :  { %88 = vadd.xlane.f32.xlu0 %v87_v34  ;;  %v46_v35 = vpop.xlane.xlu0 %45  ;;  %v49_v36 = vpop.xlane.xlu1 %48 }
  0x97   :  { %v65_v38 = vmul.f32 0.015625, %v46_v35  ;;  %v66_v39 = vmul.f32 0.015625, %v49_v36  ;;  %v80_v40 = vmul.f32 %v488_v32, %v488_v32  ;;  %v84_v41 = vmul.f32 %v490_v33, %v490_v33 }
  0x99   :  { %v498_v42 = vsub.f32 %v365_v11, %v65_v38  ;;  %v500_v43 = vsub.f32 %v366_v12, %v66_v39  ;;  %v90_v44 = vsel %vm37_vm0, %v80_v40, 0.0  ;;  %v102_v47 = vsel %vm37_vm0, %v84_v41, 0.0 }
  0x9a   :  { %100 = vadd.xlane.f32.xlu0 %v99_v37  ;;  %91 = vadd.xlane.f32.xlu1 %v90_v44  ;;  %v58_v45 = vpop.xlane.xlu0 %57  ;;  %v61_v46 = vpop.xlane.xlu1 %60  ;;  %v158_v37 = vunpack.c.l.bf16 %v157_v29 }
  0x9b   :  { %v69_v48 = vmul.f32 0.015625, %v58_v45  ;;  %v70_v49 = vmul.f32 0.015625, %v61_v46  ;;  %v81_v50 = vmul.f32 %v498_v42, %v498_v42  ;;  %v82_v51 = vmul.f32 %v500_v43, %v500_v43 }
  0x9d   :  { %v508_v52 = vsub.f32 %v373_v16, %v69_v48  ;;  %v510_v53 = vsub.f32 %v374_v17, %v70_v49  ;;  %v93_v54 = vsel %vm37_vm0, %v81_v50, 0.0  ;;  %v96_v55 = vsel %vm37_vm0, %v82_v51, 0.0 }
  0x9e   :  { %103 = vadd.xlane.f32.xlu1 %v102_v47  ;;  %94 = vadd.xlane.f32.xlu0 %v93_v54  ;;  %v146_v16 = vshrl.u32 %v145_v9, 7 }
  0x9f   :  { %v85_v56 = vmul.f32 %v508_v52, %v508_v52  ;;  %v86_v57 = vmul.f32 %v510_v53, %v510_v53 }
  0xa0   :  { %v147_v27 = vsub.s32 0, %v146_v16 }
  0xa1   :  { %v105_v58 = vsel %vm37_vm0, %v85_v56, 0.0  ;;  %v108_v59 = vsel %vm37_vm0, %v86_v57, 0.0 }
  0xa2   :  { %97 = vadd.xlane.f32.xlu1 %v96_v55  ;;  %106 = vadd.xlane.f32.xlu0 %v105_v58  ;;  %v148_v36 = vrot.slane %v144_v26, %v147_v27  ;;  %v162_v44 = vrot.slane %v158_v37, %v147_v27 }
  0xa6   :  { %109 = vadd.xlane.f32.xlu1 %v108_v59 }
 0x11f   :  { %v89_v0 = vpop.xlane.xlu0 %88 }
 0x120   :  { %v111_v1 = vmul.f32 0.015625, %v89_v0 }
 0x122   :  { %v119_v2 = vadd.f32 1e-05, %v111_v1 }
 0x123   :  { %v92_v3 = vpop.xlane.xlu1 %91  ;;  %v101_v4 = vpop.xlane.xlu0 %100 }
 0x124   :  { %414 = vrsqrt.f32 %v119_v2  ;;  %v112_v5 = vmul.f32 0.015625, %v92_v3  ;;  %v115_v6 = vmul.f32 0.015625, %v101_v4 }
 0x126   :  { %v120_v7 = vadd.f32 1e-05, %v112_v5  ;;  %v123_v8 = vadd.f32 1e-05, %v115_v6 }
 0x127   :  { %v104_v10 = vpop.xlane.xlu1 %103  ;;  %v95_v11 = vpop.xlane.xlu0 %94 }
 0x128   :  { %416 = vrsqrt.f32 %v120_v7  ;;  %v116_v12 = vmul.f32 0.015625, %v104_v10  ;;  %v113_v13 = vmul.f32 0.015625, %v95_v11 }
 0x129   :  { %418 = vrsqrt.f32 %v123_v8 }
 0x12a   :  { %v124_v14 = vadd.f32 1e-05, %v116_v12  ;;  %v121_v15 = vadd.f32 1e-05, %v113_v13 }
 0x12b   :  { %v98_v17 = vpop.xlane.xlu1 %97  ;;  %v107_v18 = vpop.xlane.xlu0 %106 }
 0x12c   :  { %420 = vrsqrt.f32 %v124_v14  ;;  %v114_v20 = vmul.f32 0.015625, %v98_v17  ;;  %v117_v21 = vmul.f32 0.015625, %v107_v18 }
 0x12d   :  { %422 = vrsqrt.f32 %v121_v15 }
 0x12e   :  { %v122_v22 = vadd.f32 1e-05, %v114_v20  ;;  %v125_v23 = vadd.f32 1e-05, %v117_v21 }
 0x12f   :  { %v110_v28 = vpop.xlane.xlu1 %109 }
 0x130   :  { %424 = vrsqrt.f32 %v122_v22  ;;  %v118_v30 = vmul.f32 0.015625, %v110_v28 }
 0x131   :  { %v415_v31 = vpop.eup %414  ;;  %426 = vrsqrt.f32 %v125_v23 }
 0x132   :  { %v126_v34 = vadd.f32 1e-05, %v118_v30  ;;  %v135_v35 = vmul.f32 %v415_v31, %v480_v24 }
 0x134   :  { %428 = vrsqrt.f32 %v126_v34  ;;  %v149_v41 = vmul.f32 %v148_v36, %v135_v35 }
 0x135   :  { %v417_v38 = vpop.eup %416 }
 0x136   :  { %v419_v39 = vpop.eup %418  ;;  %v136_v40 = vmul.f32 %v417_v38, %v488_v32  ;;  %v163_v49 = vadd.f32 %v162_v44, %v149_v41 }
 0x137   :  { %v139_v45 = vmul.f32 %v419_v39, %v482_v25 }
 0x138   :  { %v150_v46 = vmul.f32 %v148_v36, %v136_v40 }
 0x139   :  { %v421_v47 = vpop.eup %420  ;;  %v153_v54 = vmul.f32 %v148_v36, %v139_v45 }
 0x13a   :  { %v423_v48 = vpop.eup %422  ;;  %v164_v50 = vadd.f32 %v162_v44, %v150_v46  ;;  %v140_v51 = vmul.f32 %v421_v47, %v490_v33 }
 0x13b   :  { %v137_v24 = vmul.f32 %v423_v48, %v498_v42  ;;  %v167_v32 = vadd.f32 %v162_v44, %v153_v54 }
 0x13c   :  { %v171_v55 = vpack.c.bf16 %v164_v50, %v163_v49  ;;  %v154_v56 = vmul.f32 %v148_v36, %v140_v51 }
 0x13d   :  { %v425_v57 = vpop.eup %424  ;;  %v151_v60 = vmul.f32 %v148_v36, %v137_v24 }
 0x13e   :  { %v427_v58 = vpop.eup %426  ;;  %394 = vmatprep.mubr.msk.bf16.mxu0 %vm37_vm0, %v171_v55  ;;  %v168_v59 = vadd.f32 %v162_v44, %v154_v56  ;;  %v138_v25 = vmul.f32 %v425_v57, %v500_v43 }
 0x13f   :  { %v141_v61 = vmul.f32 %v427_v58, %v508_v52  ;;  %v165_v33 = vadd.f32 %v162_v44, %v151_v60  ;;  %v183_v52 = vld [vmem:[%s589_s4] sm:$0x1] }
 0x140   :  { %v173_v62 = vpack.c.bf16 %v168_v59, %v167_v32  ;;  %v152_v63 = vmul.f32 %v148_v36, %v138_v25  ;;  %v184_v7 = vunpack.c.l.bf16 %v183_v52 }
 0x141   :  { %v429_v0 = vpop.eup %428  ;;  %v155_v2 = vmul.f32 %v148_v36, %v141_v61 }
 0x142   :  { %398 = vmatprep.mubr.msk.bf16.mxu1 %vm37_vm0, %v173_v62  ;;  %v166_v42 = vadd.f32 %v162_v44, %v152_v63  ;;  %v142_v1 = vmul.f32 %v429_v0, %v510_v53  ;;  %v188_v8 = vrot.slane %v184_v7, %v147_v27 }
 0x143   :  { %v169_v5 = vadd.f32 %v162_v44, %v155_v2 }
 0x144   :  { %v172_v3 = vpack.c.bf16 %v166_v42, %v165_v33  ;;  %v156_v4 = vmul.f32 %v148_v36, %v142_v1 }
 0x146   :  { %395 = vmatmul.mubr.msk.bf16.vlgmr.msra.gmra.mxu0 %vm37_vm0, %v172_v3  ;;  %v170_v6 = vadd.f32 %v162_v44, %v156_v4 }
 0x148   :  { %v174_v43 = vpack.c.bf16 %v170_v6, %v169_v5 }
 0x14a   :  { %399 = vmatmul.mubr.msk.bf16.vlgmr.msra.gmra.mxu1 %vm37_vm0, %v174_v43 }
 0x206   :  { %v396_v9 = vpop.f32.mrf.mxu0 }
 0x207   :  { %v268_v10 = vadd.f32 %v396_v9, %v188_v8 }
 0x208   :  { %v259_v53 = vpop.f32.mrf.mxu0 }
 0x209   :  { %v353_v11 = vpack.c.bf16 %v268_v10, %v268_v10  ;;  %v260_v12 = vadd.f32 %v259_v53, %v188_v8 }
 0x20a   :  { %v397_v13 = vpop.f32.mrf.mxu0  ;;  %v400_v14 = vpop.f32.mrf.mxu1 }
 0x20b   :  { %325 = vst.msk [vmem:[%s590_s5 + $0x8] sm:$0xf] %vm322_vm1, %v353_v11  ;;  %v351_v15 = vpack.c.bf16 %v260_v12, %v260_v12  ;;  %v271_v16 = vadd.f32 %v397_v13, %v188_v8  ;;  %v284_v17 = vadd.f32 %v400_v14, %v188_v8 }
 0x20c   :  { %v262_v18 = vpop.f32.mrf.mxu0  ;;  %v275_v19 = vpop.f32.mrf.mxu1 }
 0x20d   :  { %323 = vst.msk [vmem:[%s590_s5] sm:$0xf] %vm322_vm1, %v351_v15  ;;  %v354_v20 = vpack.c.bf16 %v271_v16, %v271_v16  ;;  %v357_v21 = vpack.c.bf16 %v284_v17, %v284_v17  ;;  %v263_v22 = vadd.f32 %v262_v18, %v188_v8  ;;  %v276_v23 = vadd.f32 %v275_v19, %v188_v8 }
 0x20e   :  { %v401_v26 = vpop.f32.mrf.mxu1 }
 0x20f   :  { %326 = vst.msk [vmem:[%s590_s5 + $0xc] sm:$0xf] %vm322_vm1, %v354_v20  ;;  %329 = vst.msk [vmem:[%s590_s5 + $0x18] sm:$0xf] %vm322_vm1, %v357_v21  ;;  %v352_v27 = vpack.c.bf16 %v263_v22, %v263_v22  ;;  %v355_v28 = vpack.c.bf16 %v276_v23, %v276_v23  ;;  %v287_v29 = vadd.f32 %v401_v26, %v188_v8 }
 0x210   :  { %v278_v30 = vpop.f32.mrf.mxu1 }
 0x211   :  { %324 = vst.msk [vmem:[%s590_s5 + $0x4] sm:$0xf] %vm322_vm1, %v352_v27  ;;  %327 = vst.msk [vmem:[%s590_s5 + $0x10] sm:$0xf] %vm322_vm1, %v355_v28  ;;  %v358_v31 = vpack.c.bf16 %v287_v29, %v287_v29  ;;  %v279_v34 = vadd.f32 %v278_v30, %v188_v8 }
 0x213   :  { %330 = vst.msk [vmem:[%s590_s5 + $0x1c] sm:$0xf] %vm322_vm1, %v358_v31  ;;  %v356_v35 = vpack.c.bf16 %v279_v34, %v279_v34 }
 0x215   :  { %328 = vst.msk [vmem:[%s590_s5 + $0x14] sm:$0xf] %vm322_vm1, %v356_v35 }

// kernel: rosettafold_forward.18
= control target key start
LH: loop header
LB: loop body
LE: loop exit
PB: predicated region body
PF: predicated region fallthrough
CT: control target
= control target key end

     0   :  { %v158_v0 = vmov 0.0   ;;  %vm159_vm0 = vmmov 0   ;;  %vm60_vm1 = vcmask 523264   ;;  %v27_v6 = vlaneseq  ;;  %s201_s1 = inlined_call_operand.vmem [shape: bf16[64,128], index: 1, kind: input, shape index: {}]   ;;  %s202_s0 = inlined_call_operand.vmem [shape: bf16[16,64], index: 0, kind: input, shape index: {}]   ;;  %s203_s2 = inlined_call_operand.vmem [shape: bf16[1,128], index: 2, kind: input, shape index: {}]   ;;  %s204_s3 = inlined_call_operand.vmem [shape: bf16[16,128], index: 3, kind: output, shape index: {}]  }
   0x1   :  { %139 = vmatprep.subr.bf16.mxu0 %v158_v0  ;;  %v153_v1 = vld [vmem:[%s201_s1 + $0x18] sm:$0xff]   ;;  %147 = vmatprep.mubr.msk.bf16.mxu0 %vm159_vm0, %v158_v0  ;;  %v154_v2 = vld [vmem:[%s201_s1 + $0x10] sm:$0xff]   ;;  %v155_v3 = vld [vmem:[%s201_s1 + $0x8] sm:$0xff]  }
   0x2   :  { %140 = vmatpush3.bf16.msra.mxu0 %v153_v1  ;;  %v156_v4 = vld [vmem:[%s201_s1] sm:$0xff]   ;;  %v28_v7 = vshrl.u32 %v27_v6, 7 }
   0x3   :  { %141 = vmatprep.subr.bf16.mxu0 %v158_v0  ;;  %v157_v5 = vld [vmem:[%s202_s0] sm:$0xff]  }
   0x4   :  { %v25_v8 = vld [vmem:[%s203_s2] sm:$0x1]  ;;  %v29_v10 = vsub.s32 0, %v28_v7 }
   0x5   :  { %v26_v9 = vunpack.c.l.bf16 %v25_v8 }
   0x6   :  { %142 = vmatpush3.bf16.msra.mxu0 %v154_v2 }
   0x7   :  { %143 = vmatprep.subr.bf16.mxu0 %v158_v0  ;;  %v30_v12 = vrot.slane %v26_v9, %v29_v10 }
   0xa   :  { %144 = vmatpush3.bf16.msra.mxu0 %v155_v3 }
   0xb   :  { %145 = vmatprep.subr.bf16.mxu0 %v158_v0 }
   0xe   :  { %146 = vmatpush3.bf16.msra.mxu0 %v156_v4 }
  0x11   :  { %148 = vmatmul.mubr.msk.bf16.vlgmr.msra.gmra.mxu0 %vm60_vm1, %v157_v5 }
  0xd1   :  { %v98_v11 = vpop.f32.mrf.mxu0 }
  0xd2   :  { %v99_v15 = vadd.f32 %v98_v11, %v30_v12 }
  0xd3   :  { %v149_v13 = vpop.f32.mrf.mxu0 }
  0xd5   :  { %v101_v14 = vpop.f32.mrf.mxu0 }
  0xd6   :  { %v102_v16 = vadd.f32 %v101_v14, %v30_v12 }
  0xd7   :  { %v150_v17 = vpop.f32.mrf.mxu0 }
  0xd8   :  { %v132_v18 = vpack.c.bf16 %v102_v16, %v99_v15 }
  0xda   :  { %133 = vst [vmem:[%s204_s3] sm:$0xff] %v132_v18  }

// kernel: rosettafold_forward.21
= control target key start
LH: loop header
LB: loop body
LE: loop exit
PB: predicated region body
PF: predicated region fallthrough
CT: control target
= control target key end

     0   :  { %vm56_vm0 = vcmask 523264   ;;  %s2190_s0 = inlined_call_operand.vmem [shape: f32[256,64], index: 0, kind: input, shape index: {}]   ;;  %s2191_s3 = inlined_call_operand.vmem [shape: bf16[64,128], index: 3, kind: input, shape index: {}]   ;;  %s2192_s1 = inlined_call_operand.vmem [shape: bf16[1,64], index: 1, kind: input, shape index: {}]   ;;  %s2193_s2 = inlined_call_operand.vmem [shape: bf16[1,64], index: 2, kind: input, shape index: {}]   ;;  %s2194_s4 = inlined_call_operand.vmem [shape: bf16[1,128], index: 4, kind: input, shape index: {}]   ;;  %s2195_s5 = inlined_call_operand.vmem [shape: bf16[256,128], index: 5, kind: input, shape index: {}]   ;;  %s2196_s6 = inlined_call_operand.vmem [shape: bf16[256,128], index: 6, kind: output, shape index: {}]  }
   0x1   :  { %v1505_v0 = vld [vmem:[%s2190_s0] sm:$0xff]  ;;  %v1515_v2 = vld [vmem:[%s2190_s0 + $0x8] sm:$0xff]  ;;  %v1533_v8 = vld [vmem:[%s2190_s0 + $0x10] sm:$0xff] }
   0x2   :  { %v1510_v1 = vld [vmem:[%s2190_s0 + $0x80] sm:$0xff]  ;;  %v57_v3 = vsel %vm56_vm0, %v1505_v0, 0.0  ;;  %v1524_v5 = vld [vmem:[%s2190_s0 + $0x88] sm:$0xff]  ;;  %v60_v6 = vsel %vm56_vm0, %v1515_v2, 0.0  ;;  %v1538_v9 = vld [vmem:[%s2190_s0 + $0x18] sm:$0xff]  ;;  %v63_v10 = vsel %vm56_vm0, %v1533_v8, 0.0 }
   0x3   :  { %v105_v4 = vsel %vm56_vm0, %v1510_v1, 0.0  ;;  %58 = vadd.xlane.f32.xlu0 %v57_v3  ;;  %v108_v7 = vsel %vm56_vm0, %v1524_v5, 0.0  ;;  %v66_v11 = vsel %vm56_vm0, %v1538_v9, 0.0  ;;  %v1547_v12 = vld [vmem:[%s2190_s0 + $0x90] sm:$0xff]  ;;  %v1552_v13 = vld [vmem:[%s2190_s0 + $0x98] sm:$0xff]  ;;  %v1561_v16 = vld [vmem:[%s2190_s0 + $0x20] sm:$0xff] }
   0x4   :  { %106 = vadd.xlane.f32.xlu1 %v105_v4  ;;  %v111_v14 = vsel %vm56_vm0, %v1547_v12, 0.0  ;;  %v114_v15 = vsel %vm56_vm0, %v1552_v13, 0.0  ;;  %v1566_v17 = vld [vmem:[%s2190_s0 + $0x28] sm:$0xff]  ;;  %v69_v18 = vsel %vm56_vm0, %v1561_v16, 0.0  ;;  %v1575_v20 = vld [vmem:[%s2190_s0 + $0xa0] sm:$0xff]  ;;  %v1589_v24 = vld [vmem:[%s2190_s0 + $0x30] sm:$0xff] }
   0x5   :  { %v72_v19 = vsel %vm56_vm0, %v1566_v17, 0.0  ;;  %v1580_v21 = vld [vmem:[%s2190_s0 + $0xa8] sm:$0xff]  ;;  %v117_v22 = vsel %vm56_vm0, %v1575_v20, 0.0  ;;  %v1594_v25 = vld [vmem:[%s2190_s0 + $0x38] sm:$0xff]  ;;  %v75_v26 = vsel %vm56_vm0, %v1589_v24, 0.0  ;;  %v1603_v28 = vld [vmem:[%s2190_s0 + $0xb0] sm:$0xff] }
   0x6   :  { %v120_v23 = vsel %vm56_vm0, %v1580_v21, 0.0  ;;  %v78_v27 = vsel %vm56_vm0, %v1594_v25, 0.0  ;;  %v1608_v29 = vld [vmem:[%s2190_s0 + $0xb8] sm:$0xff]  ;;  %v123_v30 = vsel %vm56_vm0, %v1603_v28, 0.0  ;;  %v1617_v32 = vld [vmem:[%s2190_s0 + $0x40] sm:$0xff]  ;;  %v1622_v33 = vld [vmem:[%s2190_s0 + $0x48] sm:$0xff] }
   0x7   :  { %61 = vadd.xlane.f32.xlu0 %v60_v6  ;;  %v126_v31 = vsel %vm56_vm0, %v1608_v29, 0.0  ;;  %v81_v34 = vsel %vm56_vm0, %v1617_v32, 0.0  ;;  %v84_v35 = vsel %vm56_vm0, %v1622_v33, 0.0  ;;  %v1631_v36 = vld [vmem:[%s2190_s0 + $0xc0] sm:$0xff]  ;;  %v1636_v37 = vld [vmem:[%s2190_s0 + $0xc8] sm:$0xff]  ;;  %v1645_v40 = vld [vmem:[%s2190_s0 + $0x50] sm:$0xff] }
   0x8   :  { %109 = vadd.xlane.f32.xlu1 %v108_v7  ;;  %v129_v38 = vsel %vm56_vm0, %v1631_v36, 0.0  ;;  %v132_v39 = vsel %vm56_vm0, %v1636_v37, 0.0  ;;  %v1650_v41 = vld [vmem:[%s2190_s0 + $0x58] sm:$0xff]  ;;  %v87_v42 = vsel %vm56_vm0, %v1645_v40, 0.0  ;;  %v1659_v44 = vld [vmem:[%s2190_s0 + $0xd0] sm:$0xff]  ;;  %v1673_v48 = vld [vmem:[%s2190_s0 + $0x60] sm:$0xff] }
   0x9   :  { %v90_v43 = vsel %vm56_vm0, %v1650_v41, 0.0  ;;  %v1664_v45 = vld [vmem:[%s2190_s0 + $0xd8] sm:$0xff]  ;;  %v135_v46 = vsel %vm56_vm0, %v1659_v44, 0.0  ;;  %v1678_v49 = vld [vmem:[%s2190_s0 + $0x68] sm:$0xff]  ;;  %v93_v50 = vsel %vm56_vm0, %v1673_v48, 0.0  ;;  %v1687_v52 = vld [vmem:[%s2190_s0 + $0xe0] sm:$0xff] }
   0xa   :  { %v138_v47 = vsel %vm56_vm0, %v1664_v45, 0.0  ;;  %v96_v51 = vsel %vm56_vm0, %v1678_v49, 0.0  ;;  %v1692_v53 = vld [vmem:[%s2190_s0 + $0xe8] sm:$0xff]  ;;  %v141_v54 = vsel %vm56_vm0, %v1687_v52, 0.0  ;;  %v1701_v56 = vld [vmem:[%s2190_s0 + $0x70] sm:$0xff]  ;;  %v1706_v57 = vld [vmem:[%s2190_s0 + $0x78] sm:$0xff] }
   0xb   :  { %64 = vadd.xlane.f32.xlu0 %v63_v10  ;;  %v144_v55 = vsel %vm56_vm0, %v1692_v53, 0.0  ;;  %v99_v58 = vsel %vm56_vm0, %v1701_v56, 0.0  ;;  %v102_v59 = vsel %vm56_vm0, %v1706_v57, 0.0  ;;  %v1715_v60 = vld [vmem:[%s2190_s0 + $0xf0] sm:$0xff]  ;;  %v1720_v61 = vld [vmem:[%s2190_s0 + $0xf8] sm:$0xff] }
   0xc   :  { %67 = vadd.xlane.f32.xlu1 %v66_v11  ;;  %v147_v62 = vsel %vm56_vm0, %v1715_v60, 0.0  ;;  %v150_v63 = vsel %vm56_vm0, %v1720_v61, 0.0 }
   0xf   :  { %112 = vadd.xlane.f32.xlu0 %v111_v14 }
  0x10   :  { %115 = vadd.xlane.f32.xlu1 %v114_v15 }
  0x13   :  { %70 = vadd.xlane.f32.xlu0 %v69_v18 }
  0x14   :  { %73 = vadd.xlane.f32.xlu1 %v72_v19 }
  0x17   :  { %118 = vadd.xlane.f32.xlu0 %v117_v22 }
  0x18   :  { %121 = vadd.xlane.f32.xlu1 %v120_v23 }
  0x1b   :  { %76 = vadd.xlane.f32.xlu0 %v75_v26 }
  0x1c   :  { %79 = vadd.xlane.f32.xlu1 %v78_v27 }
  0x1f   :  { %124 = vadd.xlane.f32.xlu0 %v123_v30 }
  0x20   :  { %127 = vadd.xlane.f32.xlu1 %v126_v31 }
  0x23   :  { %82 = vadd.xlane.f32.xlu0 %v81_v34 }
  0x24   :  { %85 = vadd.xlane.f32.xlu1 %v84_v35 }
  0x27   :  { %130 = vadd.xlane.f32.xlu0 %v129_v38 }
  0x28   :  { %133 = vadd.xlane.f32.xlu1 %v132_v39 }
  0x2b   :  { %88 = vadd.xlane.f32.xlu0 %v87_v42 }
  0x2c   :  { %91 = vadd.xlane.f32.xlu1 %v90_v43 }
  0x2f   :  { %136 = vadd.xlane.f32.xlu0 %v135_v46 }
  0x30   :  { %139 = vadd.xlane.f32.xlu1 %v138_v47 }
  0x33   :  { %94 = vadd.xlane.f32.xlu0 %v93_v50 }
  0x34   :  { %97 = vadd.xlane.f32.xlu1 %v96_v51 }
  0x37   :  { %142 = vadd.xlane.f32.xlu0 %v141_v54 }
  0x38   :  { %145 = vadd.xlane.f32.xlu1 %v144_v55 }
  0x3b   :  { %100 = vadd.xlane.f32.xlu0 %v99_v58 }
  0x3c   :  { %103 = vadd.xlane.f32.xlu1 %v102_v59 }
  0x3f   :  { %148 = vadd.xlane.f32.xlu0 %v147_v62 }
  0x40   :  { %151 = vadd.xlane.f32.xlu1 %v150_v63 }
  0x8c   :  { %v59_v3 = vpop.xlane.xlu0 %58 }
  0x8d   :  { %v107_v4 = vpop.xlane.xlu1 %106  ;;  %v154_v6 = vmul.f32 0.015625, %v59_v3 }
  0x8e   :  { %v170_v7 = vmul.f32 0.015625, %v107_v4 }
  0x8f   :  { %v1727_v10 = vsub.f32 %v1505_v0, %v154_v6 }
  0x90   :  { %v1730_v11 = vsub.f32 %v1510_v1, %v170_v7  ;;  %v62_v14 = vpop.xlane.xlu0 %61 }
  0x91   :  { %v110_v15 = vpop.xlane.xlu1 %109  ;;  %v155_v18 = vmul.f32 0.015625, %v62_v14  ;;  %v218_v22 = vmul.f32 %v1727_v10, %v1727_v10 }
  0x92   :  { %v171_v19 = vmul.f32 0.015625, %v110_v15  ;;  %v234_v23 = vmul.f32 %v1730_v11, %v1730_v11 }
  0x93   :  { %v1737_v26 = vsub.f32 %v1515_v2, %v155_v18  ;;  %v250_v0 = vsel %vm56_vm0, %v218_v22, 0.0 }
  0x94   :  { %v1740_v27 = vsub.f32 %v1524_v5, %v171_v19  ;;  %251 = vadd.xlane.f32.xlu0 %v250_v0  ;;  %v65_v1 = vpop.xlane.xlu0 %64  ;;  %v298_v31 = vsel %vm56_vm0, %v234_v23, 0.0 }
  0x95   :  { %v68_v30 = vpop.xlane.xlu1 %67  ;;  %v156_v34 = vmul.f32 0.015625, %v65_v1  ;;  %v219_v38 = vmul.f32 %v1737_v26, %v1737_v26 }
  0x96   :  { %v157_v35 = vmul.f32 0.015625, %v68_v30  ;;  %v235_v39 = vmul.f32 %v1740_v27, %v1740_v27 }
  0x97   :  { %v1749_v2 = vsub.f32 %v1533_v8, %v156_v34  ;;  %v253_v42 = vsel %vm56_vm0, %v219_v38, 0.0 }
  0x98   :  { %v1752_v5 = vsub.f32 %v1538_v9, %v157_v35  ;;  %299 = vadd.xlane.f32.xlu0 %v298_v31  ;;  %254 = vadd.xlane.f32.xlu1 %v253_v42  ;;  %v113_v43 = vpop.xlane.xlu0 %112  ;;  %v301_v47 = vsel %vm56_vm0, %v235_v39, 0.0 }
  0x99   :  { %v116_v46 = vpop.xlane.xlu1 %115  ;;  %v172_v50 = vmul.f32 0.015625, %v113_v43  ;;  %v220_v54 = vmul.f32 %v1749_v2, %v1749_v2 }
  0x9a   :  { %v173_v51 = vmul.f32 0.015625, %v116_v46  ;;  %v221_v8 = vmul.f32 %v1752_v5, %v1752_v5 }
  0x9b   :  { %v1761_v55 = vsub.f32 %v1547_v12, %v172_v50  ;;  %v256_v58 = vsel %vm56_vm0, %v220_v54, 0.0 }
  0x9c   :  { %v1764_v9 = vsub.f32 %v1552_v13, %v173_v51  ;;  %302 = vadd.xlane.f32.xlu1 %v301_v47  ;;  %257 = vadd.xlane.f32.xlu0 %v256_v58  ;;  %v71_v59 = vpop.xlane.xlu0 %70  ;;  %v259_v63 = vsel %vm56_vm0, %v221_v8, 0.0 }
  0x9d   :  { %v74_v62 = vpop.xlane.xlu1 %73  ;;  %v158_v3 = vmul.f32 0.015625, %v71_v59  ;;  %v236_v6 = vmul.f32 %v1761_v55, %v1761_v55 }
  0x9e   :  { %v159_v4 = vmul.f32 0.015625, %v74_v62  ;;  %v237_v12 = vmul.f32 %v1764_v9, %v1764_v9 }
  0x9f   :  { %v1773_v7 = vsub.f32 %v1561_v16, %v158_v3  ;;  %v304_v14 = vsel %vm56_vm0, %v236_v6, 0.0 }
  0xa0   :  { %v1776_v13 = vsub.f32 %v1566_v17, %v159_v4  ;;  %260 = vadd.xlane.f32.xlu1 %v259_v63  ;;  %305 = vadd.xlane.f32.xlu0 %v304_v14  ;;  %v119_v15 = vpop.xlane.xlu0 %118  ;;  %v307_v19 = vsel %vm56_vm0, %v237_v12, 0.0 }
  0xa1   :  { %v122_v18 = vpop.xlane.xlu1 %121  ;;  %v174_v22 = vmul.f32 0.015625, %v119_v15  ;;  %v222_v0 = vmul.f32 %v1773_v7, %v1773_v7 }
  0xa2   :  { %v175_v23 = vmul.f32 0.015625, %v122_v18  ;;  %v223_v16 = vmul.f32 %v1776_v13, %v1776_v13 }
  0xa3   :  { %v1785_v1 = vsub.f32 %v1575_v20, %v174_v22  ;;  %v262_v30 = vsel %vm56_vm0, %v222_v0, 0.0 }
  0xa4   :  { %v1788_v17 = vsub.f32 %v1580_v21, %v175_v23  ;;  %308 = vadd.xlane.f32.xlu1 %v307_v19  ;;  %263 = vadd.xlane.f32.xlu0 %v262_v30  ;;  %v77_v31 = vpop.xlane.xlu0 %76  ;;  %v265_v35 = vsel %vm56_vm0, %v223_v16, 0.0 }
  0xa5   :  { %v80_v34 = vpop.xlane.xlu1 %79  ;;  %v160_v38 = vmul.f32 0.015625, %v77_v31  ;;  %v238_v42 = vmul.f32 %v1785_v1, %v1785_v1 }
  0xa6   :  { %v161_v39 = vmul.f32 0.015625, %v80_v34  ;;  %v239_v20 = vmul.f32 %v1788_v17, %v1788_v17 }
  0xa7   :  { %v1797_v43 = vsub.f32 %v1589_v24, %v160_v38  ;;  %v310_v46 = vsel %vm56_vm0, %v238_v42, 0.0  ;;  %v1399_v42 = vld [vmem:[%s2191_s3 + $0x18] sm:$0xff]  }
  0xa8   :  { %v1800_v21 = vsub.f32 %v1594_v25, %v161_v39  ;;  %266 = vadd.xlane.f32.xlu1 %v265_v35  ;;  %311 = vadd.xlane.f32.xlu0 %v310_v46  ;;  %v125_v47 = vpop.xlane.xlu0 %124  ;;  %v313_v51 = vsel %vm56_vm0, %v239_v20, 0.0 }
  0xa9   :  { %v128_v50 = vpop.xlane.xlu1 %127  ;;  %v176_v54 = vmul.f32 0.015625, %v125_v47  ;;  %v224_v58 = vmul.f32 %v1797_v43, %v1797_v43  ;;  %1351 = vmatprep.subr.bf16.mxu0 %v1399_v42  ;;  %1391 = vmatprep.subr.bf16.mxu1 %v1399_v42 }
  0xaa   :  { %v177_v8 = vmul.f32 0.015625, %v128_v50  ;;  %v225_v24 = vmul.f32 %v1800_v21, %v1800_v21  ;;  %1352 = vmatpush3.bf16.msra.mxu0 %v1399_v42  ;;  %1395 = vmatpush3.bf16.msra.mxu1 %v1399_v42 }
  0xab   :  { %v1809_v59 = vsub.f32 %v1603_v28, %v176_v54  ;;  %v268_v62 = vsel %vm56_vm0, %v224_v58, 0.0  ;;  %v1400_v54 = vld [vmem:[%s2191_s3 + $0x10] sm:$0xff]  }
  0xac   :  { %v1812_v25 = vsub.f32 %v1608_v29, %v177_v8  ;;  %314 = vadd.xlane.f32.xlu1 %v313_v51  ;;  %269 = vadd.xlane.f32.xlu0 %v268_v62  ;;  %v83_v63 = vpop.xlane.xlu0 %82  ;;  %v271_v4 = vsel %vm56_vm0, %v225_v24, 0.0 }
  0xad   :  { %v86_v3 = vpop.xlane.xlu1 %85  ;;  %v162_v6 = vmul.f32 0.015625, %v83_v63  ;;  %v240_v14 = vmul.f32 %v1809_v59, %v1809_v59  ;;  %1353 = vmatprep.subr.bf16.mxu0 %v1400_v54  ;;  %1392 = vmatprep.subr.bf16.mxu1 %v1400_v54 }
  0xae   :  { %v163_v12 = vmul.f32 0.015625, %v86_v3  ;;  %v241_v28 = vmul.f32 %v1812_v25, %v1812_v25  ;;  %1354 = vmatpush3.bf16.msra.mxu0 %v1400_v54  ;;  %1396 = vmatpush3.bf16.msra.mxu1 %v1400_v54 }
  0xaf   :  { %v1821_v15 = vsub.f32 %v1617_v32, %v162_v6  ;;  %v316_v18 = vsel %vm56_vm0, %v240_v14, 0.0 }
  0xb0   :  { %v1824_v29 = vsub.f32 %v1622_v33, %v163_v12  ;;  %272 = vadd.xlane.f32.xlu1 %v271_v4  ;;  %317 = vadd.xlane.f32.xlu0 %v316_v18  ;;  %v131_v19 = vpop.xlane.xlu0 %130  ;;  %v319_v23 = vsel %vm56_vm0, %v241_v28, 0.0  ;;  %v1401_v12 = vld [vmem:[%s2191_s3 + $0x8] sm:$0xff]  }
  0xb1   :  { %v134_v22 = vpop.xlane.xlu1 %133  ;;  %v178_v0 = vmul.f32 0.015625, %v131_v19  ;;  %v226_v30 = vmul.f32 %v1821_v15, %v1821_v15  ;;  %1355 = vmatprep.subr.bf16.mxu0 %v1401_v12  ;;  %1393 = vmatprep.subr.bf16.mxu1 %v1401_v12 }
  0xb2   :  { %v179_v16 = vmul.f32 0.015625, %v134_v22  ;;  %v227_v32 = vmul.f32 %v1824_v29, %v1824_v29  ;;  %1356 = vmatpush3.bf16.msra.mxu0 %v1401_v12  ;;  %1397 = vmatpush3.bf16.msra.mxu1 %v1401_v12 }
  0xb3   :  { %v1833_v31 = vsub.f32 %v1631_v36, %v178_v0  ;;  %v274_v34 = vsel %vm56_vm0, %v226_v30, 0.0  ;;  %v1402_v30 = vld [vmem:[%s2191_s3] sm:$0xff]  }
  0xb4   :  { %v1836_v33 = vsub.f32 %v1636_v37, %v179_v16  ;;  %320 = vadd.xlane.f32.xlu1 %v319_v23  ;;  %275 = vadd.xlane.f32.xlu0 %v274_v34  ;;  %v89_v35 = vpop.xlane.xlu0 %88  ;;  %v277_v39 = vsel %vm56_vm0, %v227_v32, 0.0 }
  0xb5   :  { %v92_v38 = vpop.xlane.xlu1 %91  ;;  %v164_v20 = vmul.f32 0.015625, %v89_v35  ;;  %v242_v36 = vmul.f32 %v1833_v31, %v1833_v31  ;;  %1357 = vmatprep.subr.bf16.mxu0 %v1402_v30  ;;  %1394 = vmatprep.subr.bf16.mxu1 %v1402_v30 }
  0xb6   :  { %v165_v46 = vmul.f32 0.015625, %v92_v38  ;;  %v243_v37 = vmul.f32 %v1836_v33, %v1836_v33  ;;  %1358 = vmatpush3.bf16.msra.mxu0 %v1402_v30  ;;  %1398 = vmatpush3.bf16.msra.mxu1 %v1402_v30 }
  0xb7   :  { %v1848_v47 = vsub.f32 %v1645_v40, %v164_v20  ;;  %v322_v51 = vsel %vm56_vm0, %v242_v36, 0.0 }
  0xb8   :  { %v1851_v50 = vsub.f32 %v1650_v41, %v165_v46  ;;  %278 = vadd.xlane.f32.xlu1 %v277_v39  ;;  %323 = vadd.xlane.f32.xlu0 %v322_v51  ;;  %v137_v8 = vpop.xlane.xlu0 %136  ;;  %v325_v24 = vsel %vm56_vm0, %v243_v37, 0.0 }
  0xb9   :  { %v140_v58 = vpop.xlane.xlu1 %139  ;;  %v180_v62 = vmul.f32 0.015625, %v137_v8  ;;  %v228_v41 = vmul.f32 %v1848_v47, %v1848_v47 }
  0xba   :  { %v181_v40 = vmul.f32 0.015625, %v140_v58  ;;  %v229_v63 = vmul.f32 %v1851_v50, %v1851_v50 }
  0xbb   :  { %v1863_v3 = vsub.f32 %v1659_v44, %v180_v62  ;;  %v280_v6 = vsel %vm56_vm0, %v228_v41, 0.0 }
  0xbc   :  { %v1866_v4 = vsub.f32 %v1664_v45, %v181_v40  ;;  %326 = vadd.xlane.f32.xlu1 %v325_v24  ;;  %281 = vadd.xlane.f32.xlu0 %v280_v6  ;;  %v95_v14 = vpop.xlane.xlu0 %94  ;;  %v283_v18 = vsel %vm56_vm0, %v229_v63, 0.0 }
  0xbd   :  { %v98_v28 = vpop.xlane.xlu1 %97  ;;  %v166_v19 = vmul.f32 0.015625, %v95_v14  ;;  %v244_v45 = vmul.f32 %v1863_v3, %v1863_v3 }
  0xbe   :  { %v167_v44 = vmul.f32 0.015625, %v98_v28  ;;  %v245_v22 = vmul.f32 %v1866_v4, %v1866_v4 }
  0xbf   :  { %v1878_v23 = vsub.f32 %v1673_v48, %v166_v19  ;;  %v328_v16 = vsel %vm56_vm0, %v244_v45, 0.0 }
  0xc0   :  { %v1881_v0 = vsub.f32 %v1678_v49, %v167_v44  ;;  %284 = vadd.xlane.f32.xlu1 %v283_v18  ;;  %329 = vadd.xlane.f32.xlu0 %v328_v16  ;;  %v143_v32 = vpop.xlane.xlu0 %142  ;;  %v331_v35 = vsel %vm56_vm0, %v245_v22, 0.0 }
  0xc1   :  { %v146_v34 = vpop.xlane.xlu1 %145  ;;  %v182_v38 = vmul.f32 0.015625, %v143_v32  ;;  %v230_v49 = vmul.f32 %v1878_v23, %v1878_v23 }
  0xc2   :  { %v183_v48 = vmul.f32 0.015625, %v146_v34  ;;  %v231_v39 = vmul.f32 %v1881_v0, %v1881_v0 }
  0xc3   :  { %v1893_v42 = vsub.f32 %v1687_v52, %v182_v38  ;;  %v286_v46 = vsel %vm56_vm0, %v230_v49, 0.0 }
  0xc4   :  { %v1896_v20 = vsub.f32 %v1692_v53, %v183_v48  ;;  %332 = vadd.xlane.f32.xlu1 %v331_v35  ;;  %287 = vadd.xlane.f32.xlu0 %v286_v46  ;;  %v101_v36 = vpop.xlane.xlu0 %100  ;;  %v289_v51 = vsel %vm56_vm0, %v231_v39, 0.0  ;;  %v476_v48 = vlaneseq }
  0xc5   :  { %v104_v37 = vpop.xlane.xlu1 %103  ;;  %v168_v54 = vmul.f32 0.015625, %v101_v36  ;;  %v246_v58 = vmul.f32 %v1893_v42, %v1893_v42 }
  0xc6   :  { %v169_v8 = vmul.f32 0.015625, %v104_v37  ;;  %v247_v52 = vmul.f32 %v1896_v20, %v1896_v20 }
  0xc7   :  { %v1905_v53 = vsub.f32 %v1701_v56, %v168_v54  ;;  %v334_v62 = vsel %vm56_vm0, %v246_v58, 0.0  ;;  %v477_v54 = vshrl.u32 %v476_v48, 7 }
  0xc8   :  { %v1908_v24 = vsub.f32 %v1706_v57, %v169_v8  ;;  %290 = vadd.xlane.f32.xlu1 %v289_v51  ;;  %335 = vadd.xlane.f32.xlu0 %v334_v62  ;;  %v149_v40 = vpop.xlane.xlu0 %148  ;;  %v337_v63 = vsel %vm56_vm0, %v247_v52, 0.0  ;;  %v474_v52 = vld [vmem:[%s2192_s1] sm:$0x1] }
  0xc9   :  { %v152_v41 = vpop.xlane.xlu1 %151  ;;  %v184_v6 = vmul.f32 0.015625, %v149_v40  ;;  %v232_v14 = vmul.f32 %v1905_v53, %v1905_v53 }
  0xca   :  { %v185_v12 = vmul.f32 0.015625, %v152_v41  ;;  %v233_v56 = vmul.f32 %v1908_v24, %v1908_v24 }
  0xcb   :  { %v1917_v28 = vsub.f32 %v1715_v60, %v184_v6  ;;  %v292_v18 = vsel %vm56_vm0, %v232_v14, 0.0  ;;  %v475_v6 = vunpack.c.l.bf16 %v474_v52 }
  0xcc   :  { %v1920_v57 = vsub.f32 %v1720_v61, %v185_v12  ;;  %338 = vadd.xlane.f32.xlu1 %v337_v63  ;;  %293 = vadd.xlane.f32.xlu0 %v292_v18  ;;  %v295_v19 = vsel %vm56_vm0, %v233_v56, 0.0  ;;  %v1933_v12 = vsub.s32 0, %v477_v54  ;;  %v512_v18 = vld [vmem:[%s2193_s2] sm:$0x1] }
  0xcd   :  { %v248_v44 = vmul.f32 %v1917_v28, %v1917_v28 }
  0xce   :  { %v249_v45 = vmul.f32 %v1920_v57, %v1920_v57 }
  0xcf   :  { %v340_v22 = vsel %vm56_vm0, %v248_v44, 0.0 }
  0xd0   :  { %296 = vadd.xlane.f32.xlu1 %v295_v19  ;;  %341 = vadd.xlane.f32.xlu0 %v340_v22  ;;  %v343_v60 = vsel %vm56_vm0, %v249_v45, 0.0 }
  0xd4   :  { %344 = vadd.xlane.f32.xlu1 %v343_v60 }
 0x11d   :  { %v252_v61 = vpop.xlane.xlu0 %251 }
 0x11e   :  { %v346_v16 = vmul.f32 0.015625, %v252_v61  ;;  %v1939_v61 = vrot.slane %v475_v6, %v1933_v12 }
 0x120   :  { %v378_v30 = vadd.f32 1e-05, %v346_v16  ;;  %v513_v16 = vunpack.c.l.bf16 %v512_v18 }
 0x121   :  { %v255_v32 = vpop.xlane.xlu1 %254  ;;  %v300_v34 = vpop.xlane.xlu0 %299 }
 0x122   :  { %1403 = vrsqrt.f32 %v378_v30  ;;  %v347_v35 = vmul.f32 0.015625, %v255_v32  ;;  %v362_v38 = vmul.f32 0.015625, %v300_v34 }
 0x124   :  { %v379_v49 = vadd.f32 1e-05, %v347_v35  ;;  %v394_v39 = vadd.f32 1e-05, %v362_v38 }
 0x125   :  { %v303_v46 = vpop.xlane.xlu1 %302  ;;  %v258_v36 = vpop.xlane.xlu0 %257 }
 0x126   :  { %1405 = vrsqrt.f32 %v379_v49  ;;  %v363_v37 = vmul.f32 0.015625, %v303_v46  ;;  %v348_v51 = vmul.f32 0.015625, %v258_v36  ;;  %v1944_v36 = vrot.slane %v513_v16, %v1933_v12 }
 0x127   :  { %1407 = vrsqrt.f32 %v394_v39 }
 0x128   :  { %v395_v8 = vadd.f32 1e-05, %v363_v37  ;;  %v380_v58 = vadd.f32 1e-05, %v348_v51 }
 0x129   :  { %v261_v62 = vpop.xlane.xlu1 %260  ;;  %v306_v40 = vpop.xlane.xlu0 %305 }
 0x12a   :  { %1409 = vrsqrt.f32 %v395_v8  ;;  %v349_v41 = vmul.f32 0.015625, %v261_v62  ;;  %v364_v63 = vmul.f32 0.015625, %v306_v40 }
 0x12b   :  { %1411 = vrsqrt.f32 %v380_v58 }
 0x12c   :  { %v381_v14 = vadd.f32 1e-05, %v349_v41  ;;  %v396_v56 = vadd.f32 1e-05, %v364_v63 }
 0x12d   :  { %v309_v19 = vpop.xlane.xlu1 %308  ;;  %v264_v44 = vpop.xlane.xlu0 %263 }
 0x12e   :  { %1413 = vrsqrt.f32 %v381_v14  ;;  %v365_v45 = vmul.f32 0.015625, %v309_v19  ;;  %v350_v22 = vmul.f32 0.015625, %v264_v44 }
 0x12f   :  { %v1404_v60 = vpop.eup %1403  ;;  %1415 = vrsqrt.f32 %v396_v56 }
 0x130   :  { %v397_v30 = vadd.f32 1e-05, %v365_v45  ;;  %v382_v32 = vadd.f32 1e-05, %v350_v22  ;;  %v442_v34 = vmul.f32 %v1404_v60, %v1727_v10 }
 0x131   :  { %v267_v35 = vpop.xlane.xlu1 %266  ;;  %v312_v38 = vpop.xlane.xlu0 %311 }
 0x132   :  { %1417 = vrsqrt.f32 %v397_v30  ;;  %v351_v48 = vmul.f32 0.015625, %v267_v35  ;;  %v366_v49 = vmul.f32 0.015625, %v312_v38  ;;  %v480_v46 = vmul.f32 %v1939_v61, %v442_v34 }
 0x133   :  { %v1406_v39 = vpop.eup %1405  ;;  %1419 = vrsqrt.f32 %v382_v32 }
 0x134   :  { %v1408_v37 = vpop.eup %1407  ;;  %v383_v51 = vadd.f32 1e-05, %v351_v48  ;;  %v398_v54 = vadd.f32 1e-05, %v366_v49  ;;  %v443_v8 = vmul.f32 %v1406_v39, %v1737_v26  ;;  %v518_v6 = vadd.f32 %v1944_v36, %v480_v46 }
 0x135   :  { %v315_v58 = vpop.xlane.xlu1 %314  ;;  %v270_v52 = vpop.xlane.xlu0 %269  ;;  %v458_v10 = vmul.f32 %v1408_v37, %v1730_v11 }
 0x136   :  { %1421 = vrsqrt.f32 %v383_v51  ;;  %v367_v62 = vmul.f32 0.015625, %v315_v58  ;;  %v352_v40 = vmul.f32 0.015625, %v270_v52  ;;  %v481_v41 = vmul.f32 %v1939_v61, %v443_v8 }
 0x137   :  { %v1410_v63 = vpop.eup %1409  ;;  %1423 = vrsqrt.f32 %v398_v54  ;;  %v496_v11 = vmul.f32 %v1939_v61, %v458_v10 }
 0x138   :  { %v1412_v14 = vpop.eup %1411  ;;  %v399_v56 = vadd.f32 1e-05, %v367_v62  ;;  %v384_v18 = vadd.f32 1e-05, %v352_v40  ;;  %v519_v19 = vadd.f32 %v1944_v36, %v481_v41  ;;  %v459_v26 = vmul.f32 %v1410_v63, %v1740_v27 }
 0x139   :  { %v273_v44 = vpop.xlane.xlu1 %272  ;;  %v318_v45 = vpop.xlane.xlu0 %317  ;;  %v444_v22 = vmul.f32 %v1412_v14, %v1749_v2  ;;  %v534_v2 = vadd.f32 %v1944_v36, %v496_v11 }
 0x13a   :  { %1425 = vrsqrt.f32 %v399_v56  ;;  %v353_v60 = vmul.f32 0.015625, %v273_v44  ;;  %v368_v16 = vmul.f32 0.015625, %v318_v45  ;;  %v550_v30 = vpack.c.bf16 %v519_v19, %v518_v6 }
 0x13b   :  { %v1414_v32 = vpop.eup %1413  ;;  %1427 = vrsqrt.f32 %v384_v18  ;;  %v497_v34 = vmul.f32 %v1939_v61, %v459_v26  ;;  %v482_v35 = vmul.f32 %v1939_v61, %v444_v22 }
 0x13c   :  { %v1416_v38 = vpop.eup %1415  ;;  %v385_v48 = vadd.f32 1e-05, %v353_v60  ;;  %v400_v49 = vadd.f32 1e-05, %v368_v16  ;;  %1359 = vmatprep.mubr.msk.bf16.mxu0 %vm56_vm0, %v550_v30  ;;  %v445_v27 = vmul.f32 %v1414_v32, %v1752_v5 }
 0x13d   :  { %v321_v39 = vpop.xlane.xlu1 %320  ;;  %v276_v46 = vpop.xlane.xlu0 %275  ;;  %v535_v37 = vadd.f32 %v1944_v36, %v497_v34  ;;  %v460_v51 = vmul.f32 %v1416_v38, %v1761_v55  ;;  %v520_v62 = vadd.f32 %v1944_v36, %v482_v35 }
 0x13e   :  { %1429 = vrsqrt.f32 %v385_v48  ;;  %v369_v54 = vmul.f32 0.015625, %v321_v39  ;;  %v354_v8 = vmul.f32 0.015625, %v276_v46  ;;  %v483_v58 = vmul.f32 %v1939_v61, %v445_v27 }
 0x13f   :  { %v1418_v52 = vpop.eup %1417  ;;  %1431 = vrsqrt.f32 %v400_v49  ;;  %v558_v10 = vpack.c.bf16 %v535_v37, %v534_v2  ;;  %v498_v56 = vmul.f32 %v1939_v61, %v460_v51 }
 0x140   :  { %v1420_v40 = vpop.eup %1419  ;;  %v401_v5 = vadd.f32 1e-05, %v369_v54  ;;  %v386_v41 = vadd.f32 1e-05, %v354_v8  ;;  %v521_v63 = vadd.f32 %v1944_v36, %v483_v58  ;;  %v461_v6 = vmul.f32 %v1418_v52, %v1764_v9 }
 0x141   :  { %1375 = vmatprep.mubr.msk.bf16.mxu1 %vm56_vm0, %v558_v10  ;;  %v279_v55 = vpop.xlane.xlu1 %278  ;;  %v324_v14 = vpop.xlane.xlu0 %323  ;;  %v446_v18 = vmul.f32 %v1420_v40, %v1773_v7  ;;  %v536_v7 = vadd.f32 %v1944_v36, %v498_v56 }
 0x142   :  { %1433 = vrsqrt.f32 %v401_v5  ;;  %v355_v19 = vmul.f32 0.015625, %v279_v55  ;;  %v370_v26 = vmul.f32 0.015625, %v324_v14  ;;  %v551_v44 = vpack.c.bf16 %v521_v63, %v520_v62 }
 0x143   :  { %v1422_v45 = vpop.eup %1421  ;;  %1435 = vrsqrt.f32 %v386_v41  ;;  %v499_v11 = vmul.f32 %v1939_v61, %v461_v6  ;;  %v484_v22 = vmul.f32 %v1939_v61, %v446_v18 }
 0x144   :  { %v1424_v60 = vpop.eup %1423  ;;  %v387_v9 = vadd.f32 1e-05, %v355_v19  ;;  %v402_v16 = vadd.f32 1e-05, %v370_v26  ;;  %1360 = vmatmul.mubr.msk.bf16.vlgmr.msra.gmra.mxu0 %vm56_vm0, %v551_v44  ;;  %v447_v30 = vmul.f32 %v1422_v45, %v1776_v13 }
 0x145   :  { %v327_v32 = vpop.xlane.xlu1 %326  ;;  %v282_v34 = vpop.xlane.xlu0 %281  ;;  %v537_v35 = vadd.f32 %v1944_v36, %v499_v11  ;;  %v462_v38 = vmul.f32 %v1424_v60, %v1785_v1  ;;  %v522_v2 = vadd.f32 %v1944_v36, %v484_v22 }
 0x146   :  { %1437 = vrsqrt.f32 %v387_v9  ;;  %v371_v48 = vmul.f32 0.015625, %v327_v32  ;;  %v356_v49 = vmul.f32 0.015625, %v282_v34  ;;  %v485_v27 = vmul.f32 %v1939_v61, %v447_v30 }
 0x147   :  { %v1426_v39 = vpop.eup %1425  ;;  %1439 = vrsqrt.f32 %v402_v16  ;;  %v559_v46 = vpack.c.bf16 %v537_v35, %v536_v7  ;;  %v500_v52 = vmul.f32 %v1939_v61, %v462_v38 }
 0x148   :  { %v1428_v37 = vpop.eup %1427  ;;  %v403_v13 = vadd.f32 1e-05, %v371_v48  ;;  %v388_v51 = vadd.f32 1e-05, %v356_v49  ;;  %v523_v54 = vadd.f32 %v1944_v36, %v485_v27  ;;  %v463_v8 = vmul.f32 %v1426_v39, %v1788_v17 }
 0x149   :  { %1376 = vmatmul.mubr.msk.bf16.vlgmr.msra.gmra.mxu1 %vm56_vm0, %v559_v46  ;;  %v285_v1 = vpop.xlane.xlu1 %284  ;;  %v330_v58 = vpop.xlane.xlu0 %329  ;;  %v448_v10 = vmul.f32 %v1428_v37, %v1797_v43  ;;  %v538_v43 = vadd.f32 %v1944_v36, %v500_v52 }
 0x14a   :  { %1441 = vrsqrt.f32 %v403_v13  ;;  %v357_v62 = vmul.f32 0.015625, %v285_v1  ;;  %v372_v40 = vmul.f32 0.015625, %v330_v58  ;;  %v552_v5 = vpack.c.bf16 %v523_v54, %v522_v2 }
 0x14b   :  { %v1430_v41 = vpop.eup %1429  ;;  %1443 = vrsqrt.f32 %v388_v51  ;;  %v501_v63 = vmul.f32 %v1939_v61, %v463_v8  ;;  %v486_v6 = vmul.f32 %v1939_v61, %v448_v10 }
 0x14c   :  { %v1432_v55 = vpop.eup %1431  ;;  %v389_v17 = vadd.f32 1e-05, %v357_v62  ;;  %v404_v14 = vadd.f32 1e-05, %v372_v40  ;;  %1363 = vmatprep.mubr.msk.bf16.mxu0 %vm56_vm0, %v552_v5  ;;  %v449_v56 = vmul.f32 %v1430_v41, %v1800_v21 }
 0x14d   :  { %v333_v18 = vpop.xlane.xlu1 %332  ;;  %v288_v19 = vpop.xlane.xlu0 %287  ;;  %v539_v26 = vadd.f32 %v1944_v36, %v501_v63  ;;  %v464_v44 = vmul.f32 %v1432_v55, %v1809_v59  ;;  %v524_v16 = vadd.f32 %v1944_v36, %v486_v6 }
 0x14e   :  { %1445 = vrsqrt.f32 %v389_v17  ;;  %v373_v45 = vmul.f32 0.015625, %v333_v18  ;;  %v358_v11 = vmul.f32 0.015625, %v288_v19  ;;  %v487_v22 = vmul.f32 %v1939_v61, %v449_v56 }
 0x14f   :  { %v1434_v60 = vpop.eup %1433  ;;  %1447 = vrsqrt.f32 %v404_v14  ;;  %v560_v9 = vpack.c.bf16 %v539_v26, %v538_v43  ;;  %v502_v38 = vmul.f32 %v1939_v61, %v464_v44 }
 0x150   :  { %v1436_v30 = vpop.eup %1435  ;;  %v405_v21 = vadd.f32 1e-05, %v373_v45  ;;  %v390_v32 = vadd.f32 1e-05, %v358_v11  ;;  %v525_v34 = vadd.f32 %v1944_v36, %v487_v22  ;;  %v465_v7 = vmul.f32 %v1434_v60, %v1812_v25 }
 0x151   :  { %1379 = vmatprep.mubr.msk.bf16.mxu1 %vm56_vm0, %v560_v9  ;;  %v291_v59 = vpop.xlane.xlu1 %290  ;;  %v336_v35 = vpop.xlane.xlu0 %335  ;;  %v450_v48 = vmul.f32 %v1436_v30, %v1821_v15  ;;  %v540_v15 = vadd.f32 %v1944_v36, %v502_v38 }
 0x152   :  { %1449 = vrsqrt.f32 %v405_v21  ;;  %v359_v49 = vmul.f32 0.015625, %v291_v59  ;;  %v374_v27 = vmul.f32 0.015625, %v336_v35  ;;  %v553_v39 = vpack.c.bf16 %v525_v34, %v524_v16 }
 0x153   :  { %v1438_v46 = vpop.eup %1437  ;;  %1451 = vrsqrt.f32 %v390_v32  ;;  %v503_v2 = vmul.f32 %v1939_v61, %v465_v7  ;;  %v488_v37 = vmul.f32 %v1939_v61, %v450_v48 }
 0x154   :  { %v1440_v13 = vpop.eup %1439  ;;  %v391_v25 = vadd.f32 1e-05, %v359_v49  ;;  %v406_v51 = vadd.f32 1e-05, %v374_v27  ;;  %1364 = vmatmul.mubr.msk.bf16.gmra.mxu0 %vm56_vm0, %v553_v39  ;;  %v451_v54 = vmul.f32 %v1438_v46, %v1824_v29 }
 0x155   :  { %v339_v8 = vpop.xlane.xlu1 %338  ;;  %v294_v1 = vpop.xlane.xlu0 %293  ;;  %v541_v58 = vadd.f32 %v1944_v36, %v503_v2  ;;  %v466_v52 = vmul.f32 %v1440_v13, %v1833_v31  ;;  %v526_v63 = vadd.f32 %v1944_v36, %v488_v37 }
 0x156   :  { %1453 = vrsqrt.f32 %v391_v25  ;;  %v375_v10 = vmul.f32 0.015625, %v339_v8  ;;  %v360_v62 = vmul.f32 0.015625, %v294_v1  ;;  %v489_v40 = vmul.f32 %v1939_v61, %v451_v54 }
 0x157   :  { %v1442_v5 = vpop.eup %1441  ;;  %1455 = vrsqrt.f32 %v406_v51  ;;  %v561_v41 = vpack.c.bf16 %v541_v58, %v540_v15  ;;  %v504_v18 = vmul.f32 %v1939_v61, %v466_v52 }
 0x158   :  { %v1444_v6 = vpop.eup %1443  ;;  %v407_v29 = vadd.f32 1e-05, %v375_v10  ;;  %v392_v55 = vadd.f32 1e-05, %v360_v62  ;;  %v527_v17 = vadd.f32 %v1944_v36, %v489_v40  ;;  %v467_v14 = vmul.f32 %v1442_v5, %v1836_v33 }
 0x159   :  { %1380 = vmatmul.mubr.msk.bf16.gmra.mxu1 %vm56_vm0, %v561_v41  ;;  %v297_v31 = vpop.xlane.xlu1 %296  ;;  %v342_v56 = vpop.xlane.xlu0 %341  ;;  %v452_v19 = vmul.f32 %v1444_v6, %v1848_v47  ;;  %v542_v47 = vadd.f32 %v1944_v36, %v504_v18 }
 0x15a   :  { %1457 = vrsqrt.f32 %v407_v29  ;;  %v361_v43 = vmul.f32 0.015625, %v297_v31  ;;  %v376_v26 = vmul.f32 0.015625, %v342_v56  ;;  %v554_v44 = vpack.c.bf16 %v527_v17, %v526_v63 }
 0x15b   :  { %v1446_v45 = vpop.eup %1445  ;;  %1459 = vrsqrt.f32 %v392_v55  ;;  %v505_v11 = vmul.f32 %v1939_v61, %v467_v14  ;;  %v490_v22 = vmul.f32 %v1939_v61, %v452_v19 }
 0x15c   :  { %v1448_v60 = vpop.eup %1447  ;;  %v393_v33 = vadd.f32 1e-05, %v361_v43  ;;  %v408_v9 = vadd.f32 1e-05, %v376_v26  ;;  %1367 = vmatprep.mubr.msk.bf16.mxu0 %vm56_vm0, %v554_v44  ;;  %v453_v16 = vmul.f32 %v1446_v45, %v1851_v50 }
 0x15d   :  { %v345_v30 = vpop.xlane.xlu1 %344  ;;  %v543_v21 = vadd.f32 %v1944_v36, %v505_v11  ;;  %v468_v32 = vmul.f32 %v1448_v60, %v1863_v3  ;;  %v528_v38 = vadd.f32 %v1944_v36, %v490_v22  ;;  %v574_v11 = vld [vmem:[%s2194_s4] sm:$0x1] }
 0x15e   :  { %1461 = vrsqrt.f32 %v393_v33  ;;  %v377_v34 = vmul.f32 0.015625, %v345_v30  ;;  %v491_v7 = vmul.f32 %v1939_v61, %v453_v16  ;;  %v575_v22 = vunpack.c.l.bf16 %v574_v11 }
 0x15f   :  { %v1450_v59 = vpop.eup %1449  ;;  %1463 = vrsqrt.f32 %v408_v9  ;;  %v562_v35 = vpack.c.bf16 %v543_v21, %v542_v47  ;;  %v506_v39 = vmul.f32 %v1939_v61, %v468_v32 }
 0x160   :  { %v1452_v48 = vpop.eup %1451  ;;  %v409_v49 = vadd.f32 1e-05, %v377_v34  ;;  %v529_v50 = vadd.f32 %v1944_v36, %v491_v7  ;;  %v469_v27 = vmul.f32 %v1450_v59, %v1866_v4  ;;  %v1309_v7 = vld [vmem:[%s2195_s5 + $0x48] sm:$0xff]  }
 0x161   :  { %1383 = vmatprep.mubr.msk.bf16.mxu1 %vm56_vm0, %v562_v35  ;;  %v454_v3 = vmul.f32 %v1452_v48, %v1878_v23  ;;  %v544_v25 = vadd.f32 %v1944_v36, %v506_v39 }
 0x162   :  { %1465 = vrsqrt.f32 %v409_v49  ;;  %v555_v46 = vpack.c.bf16 %v529_v50, %v528_v38  ;;  %v507_v2 = vmul.f32 %v1939_v61, %v469_v27  ;;  %v1308_v27 = vld [vmem:[%s2195_s5 + $0x40] sm:$0xff]  }
 0x163   :  { %v1454_v37 = vpop.eup %1453  ;;  %v492_v54 = vmul.f32 %v1939_v61, %v454_v3  ;;  %v1195_v3 = vunpack.c.l.bf16 %v1309_v7 }
 0x164   :  { %v1456_v13 = vpop.eup %1455  ;;  %1368 = vmatmul.mubr.msk.bf16.gmra.mxu0 %vm56_vm0, %v555_v46  ;;  %v545_v51 = vadd.f32 %v1944_v36, %v507_v2  ;;  %v455_v4 = vmul.f32 %v1454_v37, %v1881_v0  ;;  %v1196_v46 = vunpack.c.h.bf16 %v1309_v7 }
 0x165   :  { %v470_v8 = vmul.f32 %v1456_v13, %v1893_v42  ;;  %v530_v52 = vadd.f32 %v1944_v36, %v492_v54 }
 0x166   :  { %v563_v1 = vpack.c.bf16 %v545_v51, %v544_v25  ;;  %v493_v23 = vmul.f32 %v1939_v61, %v455_v4  ;;  %v1191_v4 = vunpack.c.l.bf16 %v1308_v27 }
 0x167   :  { %v1458_v15 = vpop.eup %1457  ;;  %v508_v40 = vmul.f32 %v1939_v61, %v470_v8  ;;  %v1192_v8 = vunpack.c.h.bf16 %v1308_v27  ;;  %v1304_v27 = vld [vmem:[%s2195_s5 + $0x20] sm:$0xff]  }
 0x168   :  { %v1460_v58 = vpop.eup %1459  ;;  %1384 = vmatmul.mubr.msk.bf16.gmra.mxu1 %vm56_vm0, %v563_v1  ;;  %v531_v10 = vadd.f32 %v1944_v36, %v493_v23  ;;  %v471_v62 = vmul.f32 %v1458_v15, %v1896_v20 }
 0x169   :  { %v456_v0 = vmul.f32 %v1460_v58, %v1905_v53  ;;  %v546_v6 = vadd.f32 %v1944_v36, %v508_v40 }
 0x16a   :  { %v556_v5 = vpack.c.bf16 %v531_v10, %v530_v52  ;;  %v509_v42 = vmul.f32 %v1939_v61, %v471_v62 }
 0x16b   :  { %v1462_v41 = vpop.eup %1461  ;;  %v494_v17 = vmul.f32 %v1939_v61, %v456_v0 }
 0x16c   :  { %v1464_v63 = vpop.eup %1463  ;;  %1371 = vmatprep.mubr.msk.bf16.mxu0 %vm56_vm0, %v556_v5  ;;  %v547_v29 = vadd.f32 %v1944_v36, %v509_v42  ;;  %v457_v55 = vmul.f32 %v1462_v41, %v1908_v24  ;;  %v1303_v42 = vld [vmem:[%s2195_s5 + $0x18] sm:$0xff]  }
 0x16d   :  { %v472_v20 = vmul.f32 %v1464_v63, %v1917_v28  ;;  %v532_v56 = vadd.f32 %v1944_v36, %v494_v17  ;;  %v1302_v63 = vld [vmem:[%s2195_s5 + $0x10] sm:$0xff]  }
 0x16e   :  { %v564_v14 = vpack.c.bf16 %v547_v29, %v546_v6  ;;  %v495_v53 = vmul.f32 %v1939_v61, %v457_v55  ;;  %v1171_v29 = vunpack.c.l.bf16 %v1303_v42  ;;  %v1172_v55 = vunpack.c.h.bf16 %v1303_v42 }
 0x16f   :  { %v1466_v31 = vpop.eup %1465  ;;  %v510_v43 = vmul.f32 %v1939_v61, %v472_v20 }
 0x170   :  { %1387 = vmatprep.mubr.msk.bf16.mxu1 %vm56_vm0, %v564_v14  ;;  %v533_v18 = vadd.f32 %v1944_v36, %v495_v53  ;;  %v473_v19 = vmul.f32 %v1466_v31, %v1920_v57  ;;  %v2060_v57 = vrot.slane %v575_v22, %v1933_v12  ;;  %v1167_v14 = vunpack.c.l.bf16 %v1302_v63 }
 0x171   :  { %v548_v28 = vadd.f32 %v1944_v36, %v510_v43 }
 0x172   :  { %v557_v26 = vpack.c.bf16 %v533_v18, %v532_v56  ;;  %v511_v24 = vmul.f32 %v1939_v61, %v473_v19  ;;  %v1301_v61 = vld [vmem:[%s2195_s5 + $0x8] sm:$0xff]   ;;  %v1311_v56 = vld [vmem:[%s2195_s5 + $0x58] sm:$0xff]   ;;  %v1168_v18 = vunpack.c.h.bf16 %v1302_v63 }
 0x173   :  { %v1163_v16 = vunpack.c.l.bf16 %v1301_v61  ;;  %v1164_v30 = vunpack.c.h.bf16 %v1301_v61  ;;  %v1203_v11 = vunpack.c.l.bf16 %v1311_v56  ;;  %v1204_v22 = vunpack.c.h.bf16 %v1311_v56 }
 0x174   :  { %1372 = vmatmul.mubr.msk.bf16.gmra.mxu0 %vm56_vm0, %v557_v26  ;;  %v549_v44 = vadd.f32 %v1944_v36, %v511_v24  ;;  %v1158_v36 = vld [vmem:[%s2195_s5] sm:$0xff]  }
 0x175   :  { %v1159_v32 = vunpack.c.l.bf16 %v1158_v36  ;;  %v1160_v59 = vunpack.c.h.bf16 %v1158_v36 }
 0x176   :  { %v565_v45 = vpack.c.bf16 %v549_v44, %v548_v28  ;;  %v1310_v44 = vld [vmem:[%s2195_s5 + $0x50] sm:$0xff]  }
 0x178   :  { %1388 = vmatmul.mubr.msk.bf16.gmra.mxu1 %vm56_vm0, %v565_v45 }
 0x204   :  { %v1361_v60 = vpop.f32.mrf.mxu0 }
 0x205   :  { %v695_v9 = vadd.f32 %v1361_v60, %v2060_v57 }
 0x206   :  { %v686_v33 = vpop.f32.mrf.mxu0 }
 0x207   :  { %v687_v21 = vadd.f32 %v686_v33, %v2060_v57  ;;  %v879_v38 = vadd.f32 %v1163_v16, %v695_v9  ;;  %v1199_v16 = vunpack.c.l.bf16 %v1310_v44 }
 0x208   :  { %v1362_v47 = vpop.f32.mrf.mxu0 }
 0x209   :  { %v698_v12 = vadd.f32 %v1362_v47, %v2060_v57  ;;  %v1377_v34 = vpop.f32.mrf.mxu1  ;;  %v877_v2 = vadd.f32 %v1159_v32, %v687_v21  ;;  %v1200_v47 = vunpack.c.h.bf16 %v1310_v44  ;;  %v1306_v44 = vld [vmem:[%s2195_s5 + $0x30] sm:$0xff]  }
 0x20a   :  { %v689_v35 = vpop.f32.mrf.mxu0  ;;  %v759_v39 = vadd.f32 %v1377_v34, %v2060_v57 }
 0x20b   :  { %v880_v48 = vadd.f32 %v1164_v30, %v698_v12  ;;  %v690_v49 = vadd.f32 %v689_v35, %v2060_v57  ;;  %v750_v50 = vpop.f32.mrf.mxu1 }
 0x20c   :  { %v751_v51 = vadd.f32 %v750_v50, %v2060_v57  ;;  %v895_v15 = vadd.f32 %v1195_v3, %v759_v39  ;;  %v1305_v50 = vld [vmem:[%s2195_s5 + $0x28] sm:$0xff]  }
 0x20d   :  { %v1229_v37 = vpack.c.bf16 %v880_v48, %v879_v38  ;;  %v878_v13 = vadd.f32 %v1160_v59, %v690_v49  ;;  %v1378_v25 = vpop.f32.mrf.mxu1 }
 0x20e   :  { %v762_v54 = vadd.f32 %v1378_v25, %v2060_v57  ;;  %v893_v10 = vadd.f32 %v1191_v4, %v751_v51  ;;  %v1175_v25 = vunpack.c.l.bf16 %v1304_v27 }
 0x20f   :  { %1316 = vst [vmem:[%s2196_s6 + $0x8] sm:$0xff] %v1229_v37   ;;  %v1224_v1 = vpack.c.bf16 %v878_v13, %v877_v2  ;;  %v753_v23 = vpop.f32.mrf.mxu1  ;;  %v1180_v2 = vunpack.c.h.bf16 %v1305_v50  ;;  %v1313_v37 = vld [vmem:[%s2195_s5 + $0x68] sm:$0xff]  }
 0x210   :  { %v896_v58 = vadd.f32 %v1196_v46, %v762_v54  ;;  %v754_v52 = vadd.f32 %v753_v23, %v2060_v57  ;;  %v1179_v46 = vunpack.c.l.bf16 %v1305_v50  ;;  %v1211_v23 = vunpack.c.l.bf16 %v1313_v37 }
 0x211   :  { %1225 = vst [vmem:[%s2196_s6] sm:$0xff] %v1224_v1   ;;  %v1312_v1 = vld [vmem:[%s2195_s5 + $0x60] sm:$0xff]  }
 0x212   :  { %v1269_v62 = vpack.c.bf16 %v896_v58, %v895_v15  ;;  %v894_v40 = vadd.f32 %v1192_v8, %v754_v52  ;;  %v1176_v8 = vunpack.c.h.bf16 %v1304_v27  ;;  %v1212_v52 = vunpack.c.h.bf16 %v1313_v37 }
 0x213   :  { %v1207_v42 = vunpack.c.l.bf16 %v1312_v1  ;;  %v1208_v63 = vunpack.c.h.bf16 %v1312_v1 }
 0x214   :  { %1324 = vst [vmem:[%s2196_s6 + $0x48] sm:$0xff] %v1269_v62   ;;  %v1264_v0 = vpack.c.bf16 %v894_v40, %v893_v10  ;;  %v1365_v5 = vpop.f32.mrf.mxu0 }
 0x215   :  { %v711_v6 = vadd.f32 %v1365_v5, %v2060_v57 }
 0x216   :  { %1323 = vst [vmem:[%s2196_s6 + $0x40] sm:$0xff] %v1264_v0   ;;  %v702_v41 = vpop.f32.mrf.mxu0 }
 0x217   :  { %v703_v20 = vadd.f32 %v702_v41, %v2060_v57  ;;  %v883_v43 = vadd.f32 %v1171_v29, %v711_v6 }
 0x218   :  { %v1366_v17 = vpop.f32.mrf.mxu0 }
 0x219   :  { %v714_v53 = vadd.f32 %v1366_v17, %v2060_v57  ;;  %v1381_v31 = vpop.f32.mrf.mxu1  ;;  %v881_v60 = vadd.f32 %v1167_v14, %v703_v20 }
 0x21a   :  { %v705_v19 = vpop.f32.mrf.mxu0  ;;  %v775_v45 = vadd.f32 %v1381_v31, %v2060_v57 }
 0x21b   :  { %v884_v26 = vadd.f32 %v1172_v55, %v714_v53  ;;  %v706_v24 = vadd.f32 %v705_v19, %v2060_v57  ;;  %v766_v28 = vpop.f32.mrf.mxu1 }
 0x21c   :  { %v767_v9 = vadd.f32 %v766_v28, %v2060_v57  ;;  %v899_v12 = vadd.f32 %v1203_v11, %v775_v45  ;;  %v1307_v28 = vld [vmem:[%s2195_s5 + $0x38] sm:$0xff]  }
 0x21d   :  { %v1239_v61 = vpack.c.bf16 %v884_v26, %v883_v43  ;;  %v882_v33 = vadd.f32 %v1168_v18, %v706_v24  ;;  %v1382_v36 = vpop.f32.mrf.mxu1 }
 0x21e   :  { %v778_v30 = vadd.f32 %v1382_v36, %v2060_v57  ;;  %v897_v59 = vadd.f32 %v1199_v16, %v767_v9  ;;  %v1183_v36 = vunpack.c.l.bf16 %v1306_v44 }
 0x21f   :  { %1318 = vst [vmem:[%s2196_s6 + $0x18] sm:$0xff] %v1239_v61   ;;  %v1234_v21 = vpack.c.bf16 %v882_v33, %v881_v60  ;;  %v769_v32 = vpop.f32.mrf.mxu1  ;;  %v1188_v60 = vunpack.c.h.bf16 %v1307_v28  ;;  %v1315_v61 = vld [vmem:[%s2195_s5 + $0x78] sm:$0xff]  }
 0x220   :  { %v900_v34 = vadd.f32 %v1204_v22, %v778_v30  ;;  %v770_v7 = vadd.f32 %v769_v32, %v2060_v57  ;;  %v1187_v22 = vunpack.c.l.bf16 %v1307_v28  ;;  %v1219_v32 = vunpack.c.l.bf16 %v1315_v61 }
 0x221   :  { %1317 = vst [vmem:[%s2196_s6 + $0x10] sm:$0xff] %v1234_v21   ;;  %v1314_v21 = vld [vmem:[%s2195_s5 + $0x70] sm:$0xff]  }
 0x222   :  { %v1279_v35 = vpack.c.bf16 %v900_v34, %v899_v12  ;;  %v898_v38 = vadd.f32 %v1200_v47, %v770_v7  ;;  %v1184_v47 = vunpack.c.h.bf16 %v1306_v44  ;;  %v1220_v7 = vunpack.c.h.bf16 %v1315_v61 }
 0x223   :  { %v1215_v50 = vunpack.c.l.bf16 %v1314_v21 }
 0x224   :  { %1326 = vst [vmem:[%s2196_s6 + $0x58] sm:$0xff] %v1279_v35   ;;  %v1274_v48 = vpack.c.bf16 %v898_v38, %v897_v59  ;;  %v1369_v49 = vpop.f32.mrf.mxu0 }
 0x225   :  { %v727_v3 = vadd.f32 %v1369_v49, %v2060_v57 }
 0x226   :  { %1325 = vst [vmem:[%s2196_s6 + $0x50] sm:$0xff] %v1274_v48   ;;  %v718_v39 = vpop.f32.mrf.mxu0 }
 0x227   :  { %v719_v13 = vadd.f32 %v718_v39, %v2060_v57  ;;  %v887_v10 = vadd.f32 %v1179_v46, %v727_v3  ;;  %v1216_v39 = vunpack.c.h.bf16 %v1314_v21 }
 0x228   :  { %v1370_v51 = vpop.f32.mrf.mxu0  ;;  %v1385_v4 = vpop.f32.mrf.mxu1 }
 0x229   :  { %v730_v54 = vadd.f32 %v1370_v51, %v2060_v57  ;;  %v791_v40 = vadd.f32 %v1385_v4, %v2060_v57  ;;  %v885_v5 = vadd.f32 %v1175_v25, %v719_v13 }
 0x22a   :  { %v721_v15 = vpop.f32.mrf.mxu0  ;;  %v782_v58 = vpop.f32.mrf.mxu1 }
 0x22b   :  { %v888_v62 = vadd.f32 %v1180_v2, %v730_v54  ;;  %v722_v0 = vadd.f32 %v721_v15, %v2060_v57  ;;  %v783_v55 = vadd.f32 %v782_v58, %v2060_v57  ;;  %v903_v14 = vadd.f32 %v1211_v23, %v791_v40 }
 0x22c   :  { %v1386_v41 = vpop.f32.mrf.mxu1 }
 0x22d   :  { %v1249_v6 = vpack.c.bf16 %v888_v62, %v887_v10  ;;  %v886_v29 = vadd.f32 %v1176_v8, %v722_v0  ;;  %v794_v17 = vadd.f32 %v1386_v41, %v2060_v57  ;;  %v901_v18 = vadd.f32 %v1207_v42, %v783_v55 }
 0x22e   :  { %v785_v20 = vpop.f32.mrf.mxu1 }
 0x22f   :  { %1320 = vst [vmem:[%s2196_s6 + $0x28] sm:$0xff] %v1249_v6   ;;  %v1244_v53 = vpack.c.bf16 %v886_v29, %v885_v5  ;;  %v904_v31 = vadd.f32 %v1212_v52, %v794_v17  ;;  %v786_v56 = vadd.f32 %v785_v20, %v2060_v57 }
 0x231   :  { %1319 = vst [vmem:[%s2196_s6 + $0x20] sm:$0xff] %v1244_v53   ;;  %v1289_v19 = vpack.c.bf16 %v904_v31, %v903_v14  ;;  %v902_v43 = vadd.f32 %v1208_v63, %v786_v56 }
 0x233   :  { %1328 = vst [vmem:[%s2196_s6 + $0x68] sm:$0xff] %v1289_v19   ;;  %v1284_v26 = vpack.c.bf16 %v902_v43, %v901_v18 }
 0x234   :  { %v1373_v24 = vpop.f32.mrf.mxu0 }
 0x235   :  { %1327 = vst [vmem:[%s2196_s6 + $0x60] sm:$0xff] %v1284_v26   ;;  %v743_v11 = vadd.f32 %v1373_v24, %v2060_v57 }
 0x236   :  { %v734_v45 = vpop.f32.mrf.mxu0 }
 0x237   :  { %v735_v33 = vadd.f32 %v734_v45, %v2060_v57  ;;  %v891_v59 = vadd.f32 %v1187_v22, %v743_v11 }
 0x238   :  { %v1374_v9 = vpop.f32.mrf.mxu0  ;;  %v1389_v16 = vpop.f32.mrf.mxu1 }
 0x239   :  { %v746_v30 = vadd.f32 %v1374_v9, %v2060_v57  ;;  %v807_v38 = vadd.f32 %v1389_v16, %v2060_v57  ;;  %v889_v49 = vadd.f32 %v1183_v36, %v735_v33 }
 0x23a   :  { %v737_v12 = vpop.f32.mrf.mxu0  ;;  %v798_v34 = vpop.f32.mrf.mxu1 }
 0x23b   :  { %v892_v35 = vadd.f32 %v1188_v60, %v746_v30  ;;  %v738_v48 = vadd.f32 %v737_v12, %v2060_v57  ;;  %v799_v2 = vadd.f32 %v798_v34, %v2060_v57  ;;  %v907_v25 = vadd.f32 %v1219_v32, %v807_v38 }
 0x23c   :  { %v1390_v27 = vpop.f32.mrf.mxu1 }
 0x23d   :  { %v1259_v3 = vpack.c.bf16 %v892_v35, %v891_v59  ;;  %v890_v46 = vadd.f32 %v1184_v47, %v738_v48  ;;  %v810_v37 = vadd.f32 %v1390_v27, %v2060_v57  ;;  %v905_v8 = vadd.f32 %v1215_v50, %v799_v2 }
 0x23e   :  { %v801_v13 = vpop.f32.mrf.mxu1 }
 0x23f   :  { %1322 = vst [vmem:[%s2196_s6 + $0x38] sm:$0xff] %v1259_v3   ;;  %v1254_v51 = vpack.c.bf16 %v890_v46, %v889_v49  ;;  %v908_v4 = vadd.f32 %v1220_v7, %v810_v37  ;;  %v802_v54 = vadd.f32 %v801_v13, %v2060_v57 }
 0x241   :  { %1321 = vst [vmem:[%s2196_s6 + $0x30] sm:$0xff] %v1254_v51   ;;  %v1299_v1 = vpack.c.bf16 %v908_v4, %v907_v25  ;;  %v906_v23 = vadd.f32 %v1216_v39, %v802_v54 }
 0x243   :  { %1330 = vst [vmem:[%s2196_s6 + $0x78] sm:$0xff] %v1299_v1   ;;  %v1294_v15 = vpack.c.bf16 %v906_v23, %v905_v8 }
 0x245   :  { %1329 = vst [vmem:[%s2196_s6 + $0x70] sm:$0xff] %v1294_v15  }

// kernel: rosettafold_forward.26
= control target key start
LH: loop header
LB: loop body
LE: loop exit
PB: predicated region body
PF: predicated region fallthrough
CT: control target
= control target key end

     0   :  { %s2683_s0 = inlined_call_operand.vmem [shape: bf16[256,128], index: 0, kind: input, shape index: {}]   ;;  %s2684_s3 = inlined_call_operand.vmem [shape: bf16[128,256], index: 3, kind: input, shape index: {}]   ;;  %s2685_s1 = inlined_call_operand.vmem [shape: bf16[1,128], index: 1, kind: input, shape index: {}]   ;;  %s2686_s2 = inlined_call_operand.vmem [shape: bf16[1,128], index: 2, kind: input, shape index: {}]   ;;  %s2687_s5 = inlined_call_operand.vmem [shape: bf16[256,128], index: 5, kind: input, shape index: {}]   ;;  %s2688_s4 = inlined_call_operand.vmem [shape: bf16[1,256], index: 4, kind: input, shape index: {}]   ;;  %s2689_s6 = inlined_call_operand.vmem [shape: bf16[1,128], index: 6, kind: input, shape index: {}]   ;;  %s2690_s7 = inlined_call_operand.vmem [shape: bf16[256,128], index: 7, kind: output, shape index: {}]  }
   0x1   :  { %v1530_v0 = vld [vmem:[%s2683_s0] sm:$0xff]   ;;  %v1673_v1 = vld [vmem:[%s2683_s0 + $0x8] sm:$0xff]   ;;  %v1674_v6 = vld [vmem:[%s2683_s0 + $0x10] sm:$0xff]  }
   0x2   :  { %v1967_v2 = vunpack.c.l.bf16 %v1530_v0  ;;  %v1969_v3 = vunpack.c.l.bf16 %v1673_v1  ;;  %v1972_v4 = vunpack.c.h.bf16 %v1530_v0  ;;  %v1975_v5 = vunpack.c.h.bf16 %v1673_v1  ;;  %v1675_v9 = vld [vmem:[%s2683_s0 + $0x18] sm:$0xff]   ;;  %v1676_v12 = vld [vmem:[%s2683_s0 + $0x20] sm:$0xff]   ;;  %v1677_v15 = vld [vmem:[%s2683_s0 + $0x28] sm:$0xff]  }
   0x3   :  { %v1982_v7 = vunpack.c.l.bf16 %v1674_v6  ;;  %v1984_v8 = vunpack.c.h.bf16 %v1674_v6  ;;  %v1991_v10 = vunpack.c.l.bf16 %v1675_v9  ;;  %v1993_v11 = vunpack.c.h.bf16 %v1675_v9  ;;  %v1678_v18 = vld [vmem:[%s2683_s0 + $0x30] sm:$0xff]   ;;  %v1679_v21 = vld [vmem:[%s2683_s0 + $0x38] sm:$0xff]   ;;  %v1680_v24 = vld [vmem:[%s2683_s0 + $0x40] sm:$0xff]  }
   0x4   :  { %91 = vadd.xlane.f32.xlu0 %v1967_v2  ;;  %95 = vadd.xlane.f32.xlu1 %v1969_v3  ;;  %v2000_v13 = vunpack.c.l.bf16 %v1676_v12  ;;  %v2002_v14 = vunpack.c.h.bf16 %v1676_v12  ;;  %v2009_v16 = vunpack.c.l.bf16 %v1677_v15  ;;  %v2011_v17 = vunpack.c.h.bf16 %v1677_v15  ;;  %v1681_v27 = vld [vmem:[%s2683_s0 + $0x48] sm:$0xff]   ;;  %v1816_v30 = vld [vmem:[%s2684_s3 + $0x74] ss:$8 sps:$4 sm:$0xff]   ;;  %v1818_v31 = vld [vmem:[%s2684_s3 + $0x70] ss:$8 sps:$4 sm:$0xff]  }
   0x5   :  { %v2018_v19 = vunpack.c.l.bf16 %v1678_v18  ;;  %v2020_v20 = vunpack.c.h.bf16 %v1678_v18  ;;  %v2027_v22 = vunpack.c.l.bf16 %v1679_v21  ;;  %v2029_v23 = vunpack.c.h.bf16 %v1679_v21  ;;  %653 = vmatprep.subr.bf16.mxu0 %v1816_v30  ;;  %v1682_v38 = vld [vmem:[%s2683_s0 + $0x50] sm:$0xff]   ;;  %v1683_v52 = vld [vmem:[%s2683_s0 + $0x58] sm:$0xff]   ;;  %v1819_v59 = vld [vmem:[%s2684_s3 + $0x64] ss:$8 sps:$4 sm:$0xff]  }
   0x6   :  { %v2036_v25 = vunpack.c.l.bf16 %v1680_v24  ;;  %v2038_v26 = vunpack.c.h.bf16 %v1680_v24  ;;  %v2045_v28 = vunpack.c.l.bf16 %v1681_v27  ;;  %v2047_v29 = vunpack.c.h.bf16 %v1681_v27  ;;  %654 = vmatpush1.bf16.msra.mxu0 %v1818_v31  ;;  %v1821_v60 = vld [vmem:[%s2684_s3 + $0x60] ss:$8 sps:$4 sm:$0xff]   ;;  %v1822_v9 = vld [vmem:[%s2684_s3 + $0x54] ss:$8 sps:$4 sm:$0xff]   ;;  %v1824_v12 = vld [vmem:[%s2684_s3 + $0x50] ss:$8 sps:$4 sm:$0xff]  }
   0x7   :  { %2707 = vst [vmem:[#allocation2_spill] sm:$0xff] %v2018_v19  ;;  %2708 = vst [vmem:[#allocation3_spill] sm:$0xff] %v2020_v20  ;;  %v2071_v44 = vunpack.c.l.bf16 %v1682_v38  ;;  %v2081_v50 = vunpack.c.h.bf16 %v1682_v38  ;;  %v2090_v55 = vunpack.c.l.bf16 %v1683_v52  ;;  %v2104_v62 = vunpack.c.h.bf16 %v1683_v52  ;;  %v1684_v1 = vld [vmem:[%s2683_s0 + $0x60] sm:$0xff]   ;;  %655 = vmatprep.subr.bf16.mxu0 %v1819_v59 }
   0x8   :  { %93 = vadd.xlane.f32.xlu0 %v1972_v4  ;;  %97 = vadd.xlane.f32.xlu1 %v1975_v5  ;;  %2709 = vst [vmem:[#allocation4_spill] sm:$0xff] %v2027_v22  ;;  %2710 = vst [vmem:[#allocation5_spill] sm:$0xff] %v2029_v23  ;;  %v2123_v21 = vunpack.c.l.bf16 %v1684_v1  ;;  %v1825_v30 = vld [vmem:[%s2684_s3 + $0x44] ss:$8 sps:$4 sm:$0xff]   ;;  %v1827_v31 = vld [vmem:[%s2684_s3 + $0x40] ss:$8 sps:$4 sm:$0xff]  }
   0x9   :  { %2711 = vst [vmem:[#allocation6_spill] sm:$0xff] %v2036_v25  ;;  %2712 = vst [vmem:[#allocation7_spill] sm:$0xff] %v2038_v26 }
   0xa   :  { %2713 = vst [vmem:[#allocation8_spill] sm:$0xff] %v2045_v28  ;;  %2714 = vst [vmem:[#allocation9_spill] sm:$0xff] %v2047_v29  ;;  %656 = vmatpush1.bf16.msra.mxu0 %v1821_v60 }
   0xb   :  { %2715 = vst [vmem:[#allocation10_spill] sm:$0xff] %v2071_v44  ;;  %2716 = vst [vmem:[#allocation11_spill] sm:$0xff] %v2081_v50  ;;  %657 = vmatprep.subr.bf16.mxu0 %v1822_v9 }
   0xc   :  { %99 = vadd.xlane.f32.xlu0 %v1982_v7  ;;  %101 = vadd.xlane.f32.xlu1 %v1984_v8  ;;  %2717 = vst [vmem:[#allocation12_spill] sm:$0xff] %v2090_v55  ;;  %2718 = vst [vmem:[#allocation13_spill] sm:$0xff] %v2104_v62 }
   0xd   :  { %2719 = vst [vmem:[#allocation14_spill] sm:$0xff] %v2123_v21 }
   0xe   :  { %658 = vmatpush1.bf16.msra.mxu0 %v1824_v12 }
   0xf   :  { %659 = vmatprep.subr.bf16.mxu0 %v1825_v30  ;;  %v1837_v30 = vld [vmem:[%s2684_s3 + $0x4] ss:$8 sps:$4 sm:$0xff]  }
  0x10   :  { %103 = vadd.xlane.f32.xlu0 %v1991_v10  ;;  %105 = vadd.xlane.f32.xlu1 %v1993_v11 }
  0x12   :  { %660 = vmatpush1.bf16.msra.mxu0 %v1827_v31  ;;  %v1839_v31 = vld [vmem:[%s2684_s3] ss:$8 sps:$4 sm:$0xff]  }
  0x14   :  { %107 = vadd.xlane.f32.xlu0 %v2000_v13  ;;  %109 = vadd.xlane.f32.xlu1 %v2002_v14 }
  0x18   :  { %111 = vadd.xlane.f32.xlu0 %v2009_v16  ;;  %113 = vadd.xlane.f32.xlu1 %v2011_v17 }
  0x1c   :  { %115 = vadd.xlane.f32.xlu0 %v2018_v19  ;;  %117 = vadd.xlane.f32.xlu1 %v2020_v20 }
  0x20   :  { %119 = vadd.xlane.f32.xlu0 %v2027_v22  ;;  %121 = vadd.xlane.f32.xlu1 %v2029_v23 }
  0x24   :  { %123 = vadd.xlane.f32.xlu0 %v2036_v25  ;;  %125 = vadd.xlane.f32.xlu1 %v2038_v26 }
  0x28   :  { %127 = vadd.xlane.f32.xlu0 %v2045_v28  ;;  %129 = vadd.xlane.f32.xlu1 %v2047_v29 }
  0x8d   :  { %v92_v32 = vpop.xlane.xlu0 %91  ;;  %v96_v33 = vpop.xlane.xlu1 %95 }
  0x8e   :  { %v156_v34 = vmul.f32 0.0078125, %v92_v32  ;;  %v158_v36 = vmul.f32 0.0078125, %v96_v33  ;;  %v2135_v33 = vunpack.c.h.bf16 %v1684_v1 }
  0x90   :  { %v2058_v35 = vsub.f32 %v1967_v2, %v156_v34  ;;  %v2069_v43 = vsub.f32 %v1969_v3, %v158_v36 }
  0x91   :  { %v94_v37 = vpop.xlane.xlu0 %93  ;;  %v98_v39 = vpop.xlane.xlu1 %97 }
  0x92   :  { %v157_v40 = vmul.f32 0.0078125, %v94_v37  ;;  %v220_v41 = vmul.f32 %v2058_v35, %v2058_v35  ;;  %v159_v45 = vmul.f32 0.0078125, %v98_v39  ;;  %v222_v49 = vmul.f32 %v2069_v43, %v2069_v43  ;;  %v1685_v37 = vld [vmem:[%s2683_s0 + $0x68] sm:$0xff]   ;;  %v1828_v39 = vld [vmem:[%s2684_s3 + $0x34] ss:$8 sps:$4 sm:$0xff]  }
  0x93   :  { %661 = vmatprep.subr.bf16.mxu0 %v1828_v39  ;;  %v1687_v39 = vld [vmem:[%s2683_s0 + $0x78] sm:$0xff]  }
  0x94   :  { %v2066_v42 = vsub.f32 %v1972_v4, %v157_v40  ;;  %252 = vadd.xlane.f32.xlu0 %v220_v41  ;;  %v2077_v48 = vsub.f32 %v1975_v5, %v159_v45  ;;  %v1830_v41 = vld [vmem:[%s2684_s3 + $0x30] ss:$8 sps:$4 sm:$0xff]  }
  0x95   :  { %v100_v46 = vpop.xlane.xlu0 %99  ;;  %v102_v53 = vpop.xlane.xlu1 %101  ;;  %662 = vmatpush1.bf16.msra.mxu0 %v1830_v41 }
  0x96   :  { %v221_v47 = vmul.f32 %v2066_v42, %v2066_v42  ;;  %v160_v51 = vmul.f32 0.0078125, %v100_v46  ;;  %v223_v56 = vmul.f32 %v2077_v48, %v2077_v48  ;;  %v161_v57 = vmul.f32 0.0078125, %v102_v53 }
  0x98   :  { %131 = vadd.xlane.f32.xlu0 %v2071_v44  ;;  %254 = vadd.xlane.f32.xlu1 %v221_v47  ;;  %v2088_v54 = vsub.f32 %v1982_v7, %v160_v51  ;;  %v2102_v61 = vsub.f32 %v1984_v8, %v161_v57  ;;  %v2154_v47 = vunpack.c.l.bf16 %v1685_v37  ;;  %v1831_v51 = vld [vmem:[%s2684_s3 + $0x24] ss:$8 sps:$4 sm:$0xff]  }
  0x99   :  { %v104_v58 = vpop.xlane.xlu0 %103  ;;  %v106_v6 = vpop.xlane.xlu1 %105  ;;  %663 = vmatprep.subr.bf16.mxu0 %v1831_v51 }
  0x9a   :  { %v224_v63 = vmul.f32 %v2088_v54, %v2088_v54  ;;  %v162_v0 = vmul.f32 0.0078125, %v104_v58  ;;  %v225_v18 = vmul.f32 %v2102_v61, %v2102_v61  ;;  %v163_v24 = vmul.f32 0.0078125, %v106_v6  ;;  %2720 = vst [vmem:[#allocation15_spill] sm:$0xff] %v2154_v47  ;;  %v1836_v6 = vld [vmem:[%s2684_s3 + $0x10] ss:$8 sps:$4 sm:$0xff]  }
  0x9b   :  { %v2166_v58 = vunpack.c.h.bf16 %v1685_v37 }
  0x9c   :  { %256 = vadd.xlane.f32.xlu0 %v222_v49  ;;  %133 = vadd.xlane.f32.xlu1 %v2081_v50  ;;  %v2119_v15 = vsub.f32 %v1991_v10, %v162_v0  ;;  %v2133_v32 = vsub.f32 %v1993_v11, %v163_v24  ;;  %v1834_v0 = vld [vmem:[%s2684_s3 + $0x14] ss:$8 sps:$4 sm:$0xff]  }
  0x9d   :  { %v108_v27 = vpop.xlane.xlu0 %107  ;;  %v110_v38 = vpop.xlane.xlu1 %109 }
  0x9e   :  { %v226_v34 = vmul.f32 %v2119_v15, %v2119_v15  ;;  %v164_v36 = vmul.f32 0.0078125, %v108_v27  ;;  %v227_v46 = vmul.f32 %v2133_v32, %v2133_v32  ;;  %v165_v49 = vmul.f32 0.0078125, %v110_v38 }
  0xa0   :  { %135 = vadd.xlane.f32.xlu0 %v2090_v55  ;;  %258 = vadd.xlane.f32.xlu1 %v223_v56  ;;  %v2150_v45 = vsub.f32 %v2000_v13, %v164_v36  ;;  %v1833_v56 = vld [vmem:[%s2684_s3 + $0x20] ss:$8 sps:$4 sm:$0xff]   ;;  %v2164_v57 = vsub.f32 %v2002_v14, %v165_v49  ;;  %v2691_v49 = vmov 0  }
  0xa1   :  { %v112_v40 = vpop.xlane.xlu0 %111  ;;  %v114_v52 = vpop.xlane.xlu1 %113  ;;  %664 = vmatpush1.bf16.msra.mxu0 %v1833_v56  ;;  %685 = vmatprep.mubr.bf16.mxu0 %v2691_v49 }
  0xa2   :  { %v228_v59 = vmul.f32 %v2150_v45, %v2150_v45  ;;  %v166_v60 = vmul.f32 0.0078125, %v112_v40  ;;  %v229_v12 = vmul.f32 %v2164_v57, %v2164_v57  ;;  %v167_v24 = vmul.f32 0.0078125, %v114_v52  ;;  %665 = vmatprep.subr.bf16.mxu0 %v1834_v0 }
  0xa4   :  { %137 = vadd.xlane.f32.xlu1 %v2104_v62  ;;  %260 = vadd.xlane.f32.xlu0 %v224_v63  ;;  %v1686_v63 = vld [vmem:[%s2683_s0 + $0x70] sm:$0xff]   ;;  %v2181_v9 = vsub.f32 %v2009_v16, %v166_v60 }
  0xa5   :  { %v116_v53 = vpop.xlane.xlu0 %115  ;;  %v118_v1 = vpop.xlane.xlu1 %117  ;;  %666 = vmatpush1.bf16.msra.mxu0 %v1836_v6  ;;  %v2197_v36 = vunpack.c.h.bf16 %v1686_v63 }
  0xa6   :  { %v230_v37 = vmul.f32 %v2181_v9, %v2181_v9  ;;  %v168_v38 = vmul.f32 0.0078125, %v116_v53  ;;  %667 = vmatprep.subr.bf16.mxu0 %v1837_v30  ;;  %v169_v41 = vmul.f32 0.0078125, %v118_v1  ;;  %v2211_v53 = vunpack.c.l.bf16 %v1687_v39 }
  0xa7   :  { %v2220_v1 = vunpack.c.h.bf16 %v1687_v39 }
  0xa8   :  { %262 = vadd.xlane.f32.xlu1 %v225_v18  ;;  %139 = vadd.xlane.f32.xlu0 %v2123_v21  ;;  %v2185_v18 = vunpack.c.l.bf16 %v1686_v63  ;;  %v2207_v51 = vsub.f32 %v2018_v19, %v168_v38 }
  0xa9   :  { %v120_v27 = vpop.xlane.xlu0 %119  ;;  %v122_v40 = vpop.xlane.xlu1 %121  ;;  %668 = vmatpush1.bf16.msra.mxu0 %v1839_v31 }
  0xaa   :  { %v170_v56 = vmul.f32 0.0078125, %v120_v27  ;;  %v171_v60 = vmul.f32 0.0078125, %v122_v40  ;;  %v232_v6 = vmul.f32 %v2207_v51, %v2207_v51 }
  0xac   :  { %141 = vadd.xlane.f32.xlu1 %v2135_v33  ;;  %264 = vadd.xlane.f32.xlu0 %v226_v34  ;;  %v2195_v34 = vsub.f32 %v2011_v17, %v167_v24  ;;  %v2218_v0 = vsub.f32 %v2027_v22, %v170_v56  ;;  %v2225_v27 = vsub.f32 %v2029_v23, %v171_v60 }
  0xad   :  { %v126_v63 = vpop.xlane.xlu1 %125 }
  0xae   :  { %v231_v52 = vmul.f32 %v2195_v34, %v2195_v34  ;;  %v173_v38 = vmul.f32 0.0078125, %v126_v63 }
  0xb0   :  { %266 = vadd.xlane.f32.xlu1 %v227_v46  ;;  %143 = vadd.xlane.f32.xlu0 %v2154_v47  ;;  %v124_v46 = vpop.xlane.xlu0 %123 }
  0xb1   :  { %v130_v40 = vpop.xlane.xlu1 %129 }
  0xb2   :  { %v175_v60 = vmul.f32 0.0078125, %v130_v40 }
  0xb4   :  { %145 = vadd.xlane.f32.xlu1 %v2166_v58  ;;  %268 = vadd.xlane.f32.xlu0 %v228_v59  ;;  %v2214_v59 = vsub.f32 %v2020_v20, %v169_v41  ;;  %v128_v24 = vpop.xlane.xlu0 %127  ;;  %v235_v41 = vmul.f32 %v2225_v27, %v2225_v27  ;;  %v2246_v63 = vsub.f32 %v2047_v29, %v175_v60 }
  0xb5   :  { %v174_v39 = vmul.f32 0.0078125, %v128_v24 }
  0xb6   :  { %v233_v30 = vmul.f32 %v2214_v59, %v2214_v59  ;;  %v239_v24 = vmul.f32 %v2246_v63, %v2246_v63 }
  0xb8   :  { %270 = vadd.xlane.f32.xlu1 %v229_v12  ;;  %147 = vadd.xlane.f32.xlu0 %v2185_v18  ;;  %v172_v12 = vmul.f32 0.0078125, %v124_v46  ;;  %v2238_v46 = vsub.f32 %v2038_v26, %v173_v38 }
  0xba   :  { %v2231_v31 = vsub.f32 %v2036_v25, %v172_v12 }
  0xbc   :  { %149 = vadd.xlane.f32.xlu1 %v2197_v36  ;;  %272 = vadd.xlane.f32.xlu0 %v230_v37  ;;  %v234_v37 = vmul.f32 %v2218_v0, %v2218_v0  ;;  %v236_v56 = vmul.f32 %v2231_v31, %v2231_v31 }
  0xc0   :  { %274 = vadd.xlane.f32.xlu1 %v231_v52  ;;  %151 = vadd.xlane.f32.xlu0 %v2211_v53  ;;  %v2241_v52 = vsub.f32 %v2045_v28, %v174_v39 }
  0xc2   :  { %v238_v12 = vmul.f32 %v2241_v52, %v2241_v52 }
  0xc4   :  { %153 = vadd.xlane.f32.xlu1 %v2220_v1  ;;  %276 = vadd.xlane.f32.xlu0 %v232_v6  ;;  %v237_v6 = vmul.f32 %v2238_v46, %v2238_v46 }
  0xc8   :  { %278 = vadd.xlane.f32.xlu1 %v233_v30  ;;  %280 = vadd.xlane.f32.xlu0 %v234_v37 }
  0xcc   :  { %282 = vadd.xlane.f32.xlu1 %v235_v41  ;;  %284 = vadd.xlane.f32.xlu0 %v236_v56 }
  0xd0   :  { %286 = vadd.xlane.f32.xlu1 %v237_v6  ;;  %288 = vadd.xlane.f32.xlu0 %v238_v12  ;;  %v446_v6 = vlaneseq }
  0xd4   :  { %290 = vadd.xlane.f32.xlu1 %v239_v24 }
 0x11d   :  { %v253_v30 = vpop.xlane.xlu0 %252 }
 0x11e   :  { %v316_v37 = vmul.f32 0.0078125, %v253_v30 }
 0x120   :  { %v348_v38 = vadd.f32 1e-05, %v316_v37 }
 0x121   :  { %v255_v39 = vpop.xlane.xlu1 %254  ;;  %v132_v40 = vpop.xlane.xlu0 %131 }
 0x122   :  { %1856 = vrsqrt.f32 %v348_v38  ;;  %v317_v41 = vmul.f32 0.0078125, %v255_v39  ;;  %v176_v56 = vmul.f32 0.0078125, %v132_v40  ;;  %v2262_v40 = vshrl.u32 %v446_v6, 7 }
 0x124   :  { %v349_v60 = vadd.f32 1e-05, %v317_v41  ;;  %v2255_v49 = vsub.f32 %v2071_v44, %v176_v56  ;;  %v2273_v6 = vsub.s32 0, %v2262_v40 }
 0x125   :  { %v134_v29 = vpop.xlane.xlu1 %133  ;;  %v257_v28 = vpop.xlane.xlu0 %256 }
 0x126   :  { %1858 = vrsqrt.f32 %v349_v60  ;;  %v177_v12 = vmul.f32 0.0078125, %v134_v29  ;;  %v318_v26 = vmul.f32 0.0078125, %v257_v28  ;;  %v240_v24 = vmul.f32 %v2255_v49, %v2255_v49  ;;  %v444_v28 = vld [vmem:[%s2685_s1] sm:$0x1] }
 0x128   :  { %v2260_v30 = vsub.f32 %v2081_v50, %v177_v12  ;;  %v350_v37 = vadd.f32 1e-05, %v318_v26  ;;  %292 = vadd.xlane.f32.xlu0 %v240_v24  ;;  %v445_v50 = vunpack.c.l.bf16 %v444_v28 }
 0x129   :  { %v259_v38 = vpop.xlane.xlu1 %258  ;;  %v136_v39 = vpop.xlane.xlu0 %135 }
 0x12a   :  { %1860 = vrsqrt.f32 %v350_v37  ;;  %v319_v41 = vmul.f32 0.0078125, %v259_v38  ;;  %v178_v56 = vmul.f32 0.0078125, %v136_v39  ;;  %v241_v60 = vmul.f32 %v2260_v30, %v2260_v30 }
 0x12c   :  { %v351_v29 = vadd.f32 1e-05, %v319_v41  ;;  %v2270_v12 = vsub.f32 %v2090_v55, %v178_v56  ;;  %294 = vadd.xlane.f32.xlu1 %v241_v60  ;;  %v482_v41 = vld [vmem:[%s2686_s2] sm:$0x1] }
 0x12d   :  { %v138_v26 = vpop.xlane.xlu1 %137  ;;  %v261_v24 = vpop.xlane.xlu0 %260 }
 0x12e   :  { %1862 = vrsqrt.f32 %v351_v29  ;;  %v179_v37 = vmul.f32 0.0078125, %v138_v26  ;;  %v320_v38 = vmul.f32 0.0078125, %v261_v24  ;;  %v242_v39 = vmul.f32 %v2270_v12, %v2270_v12 }
 0x12f   :  { %v1857_v44 = vpop.eup %1856  ;;  %v2285_v29 = vrot.slane %v445_v50, %v2273_v6  ;;  %v483_v26 = vunpack.c.l.bf16 %v482_v41 }
 0x130   :  { %v2281_v56 = vsub.f32 %v2104_v62, %v179_v37  ;;  %v352_v60 = vadd.f32 1e-05, %v320_v38  ;;  %296 = vadd.xlane.f32.xlu0 %v242_v39  ;;  %v412_v25 = vmul.f32 %v1857_v44, %v2058_v35 }
 0x131   :  { %v263_v28 = vpop.xlane.xlu1 %262  ;;  %v140_v55 = vpop.xlane.xlu0 %139  ;;  %v2295_v50 = vrot.slane %v483_v26, %v2273_v6 }
 0x132   :  { %1864 = vrsqrt.f32 %v352_v60  ;;  %v321_v24 = vmul.f32 0.0078125, %v263_v28  ;;  %v180_v23 = vmul.f32 0.0078125, %v140_v55  ;;  %v243_v22 = vmul.f32 %v2281_v56, %v2281_v56 }
 0x133   :  { %v1859_v20 = vpop.eup %1858  ;;  %v450_v44 = vmul.f32 %v2285_v29, %v412_v25 }
 0x134   :  { %v353_v19 = vadd.f32 1e-05, %v321_v24  ;;  %v2290_v37 = vsub.f32 %v2123_v21, %v180_v23  ;;  %298 = vadd.xlane.f32.xlu1 %v243_v22  ;;  %v413_v38 = vmul.f32 %v1859_v20, %v2066_v42 }
 0x135   :  { %v142_v39 = vpop.xlane.xlu1 %141  ;;  %v265_v35 = vpop.xlane.xlu0 %264  ;;  %v488_v25 = vadd.f32 %v2295_v50, %v450_v44 }
 0x136   :  { %1866 = vrsqrt.f32 %v353_v19  ;;  %v181_v55 = vmul.f32 0.0078125, %v142_v39  ;;  %v322_v41 = vmul.f32 0.0078125, %v265_v35  ;;  %v244_v60 = vmul.f32 %v2290_v37, %v2290_v37 }
 0x137   :  { %v1861_v28 = vpop.eup %1860  ;;  %v451_v23 = vmul.f32 %v2285_v29, %v413_v38 }
 0x138   :  { %v2301_v22 = vsub.f32 %v2135_v33, %v181_v55  ;;  %v354_v20 = vadd.f32 1e-05, %v322_v41  ;;  %300 = vadd.xlane.f32.xlu0 %v244_v60  ;;  %v414_v19 = vmul.f32 %v1861_v28, %v2069_v43 }
 0x139   :  { %v267_v42 = vpop.xlane.xlu1 %266  ;;  %v144_v24 = vpop.xlane.xlu0 %143  ;;  %v489_v26 = vadd.f32 %v2295_v50, %v451_v23 }
 0x13a   :  { %1868 = vrsqrt.f32 %v354_v20  ;;  %v323_v39 = vmul.f32 0.0078125, %v267_v42  ;;  %v182_v35 = vmul.f32 0.0078125, %v144_v24  ;;  %v245_v21 = vmul.f32 %v2301_v22, %v2301_v22 }
 0x13b   :  { %v1863_v38 = vpop.eup %1862  ;;  %v520_v62 = vpack.c.bf16 %v489_v26, %v488_v25  ;;  %v452_v43 = vmul.f32 %v2285_v29, %v414_v19  ;;  %v2721_v24 = vmov 0  }
 0x13c   :  { %v355_v55 = vadd.f32 1e-05, %v323_v39  ;;  %v2309_v41 = vsub.f32 %v2154_v47, %v182_v35  ;;  %302 = vadd.xlane.f32.xlu1 %v245_v21  ;;  %v415_v60 = vmul.f32 %v1863_v38, %v2077_v48 }
 0x13d   :  { %686 = vmatmul.mubr.bf16.vlgmr.msra.gmra.mxu0 %v520_v62  ;;  %v146_v44 = vpop.xlane.xlu1 %145  ;;  %v269_v23 = vpop.xlane.xlu0 %268  ;;  %v490_v19 = vadd.f32 %v2295_v50, %v452_v43 }
 0x13e   :  { %1870 = vrsqrt.f32 %v355_v55  ;;  %v183_v28 = vmul.f32 0.0078125, %v146_v44  ;;  %v324_v20 = vmul.f32 0.0078125, %v269_v23  ;;  %v246_v42 = vmul.f32 %v2309_v41, %v2309_v41  ;;  %695 = vmatprep.mubr.bf16.mxu0 %v2721_v24 }
 0x13f   :  { %v1865_v25 = vpop.eup %1864  ;;  %v453_v26 = vmul.f32 %v2285_v29, %v415_v60 }
 0x140   :  { %v2318_v21 = vsub.f32 %v2166_v58, %v183_v28  ;;  %v356_v48 = vadd.f32 1e-05, %v324_v20  ;;  %304 = vadd.xlane.f32.xlu0 %v246_v42  ;;  %v416_v38 = vmul.f32 %v1865_v25, %v2088_v54 }
 0x141   :  { %v271_v62 = vpop.xlane.xlu1 %270  ;;  %v148_v39 = vpop.xlane.xlu0 %147  ;;  %v491_v35 = vadd.f32 %v2295_v50, %v453_v26 }
 0x142   :  { %1872 = vrsqrt.f32 %v356_v48  ;;  %v325_v55 = vmul.f32 0.0078125, %v271_v62  ;;  %v184_v44 = vmul.f32 0.0078125, %v148_v39  ;;  %v247_v23 = vmul.f32 %v2318_v21, %v2318_v21 }
 0x143   :  { %v1867_v60 = vpop.eup %1866  ;;  %v521_v47 = vpack.c.bf16 %v491_v35, %v490_v19  ;;  %v454_v54 = vmul.f32 %v2285_v29, %v416_v38 }
 0x144   :  { %v357_v28 = vadd.f32 1e-05, %v325_v55  ;;  %v2326_v20 = vsub.f32 %v2185_v18, %v184_v44  ;;  %306 = vadd.xlane.f32.xlu1 %v247_v23  ;;  %v417_v42 = vmul.f32 %v1867_v60, %v2102_v61 }
 0x145   :  { %696 = vmatmul.mubr.bf16.gmra.mxu0 %v521_v47  ;;  %v150_v43 = vpop.xlane.xlu1 %149  ;;  %v273_v26 = vpop.xlane.xlu0 %272  ;;  %v492_v38 = vadd.f32 %v2295_v50, %v454_v54 }
 0x146   :  { %1874 = vrsqrt.f32 %v357_v28  ;;  %v185_v25 = vmul.f32 0.0078125, %v150_v43  ;;  %v326_v48 = vmul.f32 0.0078125, %v273_v26  ;;  %v248_v62 = vmul.f32 %v2326_v20, %v2326_v20  ;;  %705 = vmatprep.mubr.bf16.mxu0 %v2721_v24 }
 0x147   :  { %v1869_v39 = vpop.eup %1868  ;;  %v455_v19 = vmul.f32 %v2285_v29, %v417_v42 }
 0x148   :  { %v2335_v35 = vsub.f32 %v2197_v36, %v185_v25  ;;  %v358_v61 = vadd.f32 1e-05, %v326_v48  ;;  %308 = vadd.xlane.f32.xlu0 %v248_v62  ;;  %v418_v23 = vmul.f32 %v1869_v39, %v2119_v15 }
 0x149   :  { %v275_v47 = vpop.xlane.xlu1 %274  ;;  %v152_v55 = vpop.xlane.xlu0 %151  ;;  %v493_v44 = vadd.f32 %v2295_v50, %v455_v19 }
 0x14a   :  { %1876 = vrsqrt.f32 %v358_v61  ;;  %v327_v60 = vmul.f32 0.0078125, %v275_v47  ;;  %v186_v28 = vmul.f32 0.0078125, %v152_v55  ;;  %v249_v43 = vmul.f32 %v2335_v35, %v2335_v35 }
 0x14b   :  { %v1871_v42 = vpop.eup %1870  ;;  %v522_v26 = vpack.c.bf16 %v493_v44, %v492_v38  ;;  %v456_v15 = vmul.f32 %v2285_v29, %v418_v23 }
 0x14c   :  { %v359_v25 = vadd.f32 1e-05, %v327_v60  ;;  %v2343_v48 = vsub.f32 %v2211_v53, %v186_v28  ;;  %310 = vadd.xlane.f32.xlu1 %v249_v43  ;;  %v419_v62 = vmul.f32 %v1871_v42, %v2133_v32 }
 0x14d   :  { %706 = vmatmul.mubr.bf16.gmra.mxu0 %v522_v26  ;;  %v154_v54 = vpop.xlane.xlu1 %153  ;;  %v277_v19 = vpop.xlane.xlu0 %276  ;;  %v494_v43 = vadd.f32 %v2295_v50, %v456_v15 }
 0x14e   :  { %1878 = vrsqrt.f32 %v359_v25  ;;  %v187_v39 = vmul.f32 0.0078125, %v154_v54  ;;  %v328_v61 = vmul.f32 0.0078125, %v277_v19  ;;  %v250_v47 = vmul.f32 %v2343_v48, %v2343_v48  ;;  %715 = vmatprep.mubr.bf16.mxu0 %v2721_v24 }
 0x14f   :  { %v1873_v55 = vpop.eup %1872  ;;  %v457_v38 = vmul.f32 %v2285_v29, %v419_v62 }
 0x150   :  { %v2352_v44 = vsub.f32 %v2220_v1, %v187_v39  ;;  %v360_v32 = vadd.f32 1e-05, %v328_v61  ;;  %312 = vadd.xlane.f32.xlu0 %v250_v47  ;;  %v420_v60 = vmul.f32 %v1873_v55, %v2150_v45 }
 0x151   :  { %v279_v28 = vpop.xlane.xlu1 %278  ;;  %v281_v23 = vpop.xlane.xlu0 %280  ;;  %v495_v42 = vadd.f32 %v2295_v50, %v457_v38 }
 0x152   :  { %1880 = vrsqrt.f32 %v360_v32  ;;  %v329_v26 = vmul.f32 0.0078125, %v279_v28  ;;  %v330_v25 = vmul.f32 0.0078125, %v281_v23  ;;  %v251_v54 = vmul.f32 %v2352_v44, %v2352_v44 }
 0x153   :  { %v1875_v62 = vpop.eup %1874  ;;  %v523_v19 = vpack.c.bf16 %v495_v42, %v494_v43  ;;  %v458_v45 = vmul.f32 %v2285_v29, %v420_v60 }
 0x154   :  { %v361_v39 = vadd.f32 1e-05, %v329_v26  ;;  %314 = vadd.xlane.f32.xlu1 %v251_v54  ;;  %v421_v61 = vmul.f32 %v1875_v62, %v2164_v57  ;;  %v362_v47 = vadd.f32 1e-05, %v330_v25 }
 0x155   :  { %716 = vmatmul.mubr.bf16.gmra.mxu0 %v523_v19  ;;  %v283_v55 = vpop.xlane.xlu1 %282  ;;  %v285_v38 = vpop.xlane.xlu0 %284  ;;  %v496_v43 = vadd.f32 %v2295_v50, %v458_v45 }
 0x156   :  { %1882 = vrsqrt.f32 %v361_v39  ;;  %v331_v15 = vmul.f32 0.0078125, %v283_v55  ;;  %725 = vmatprep.mubr.bf16.mxu0 %v2721_v24  ;;  %v459_v32 = vmul.f32 %v2285_v29, %v421_v61  ;;  %v332_v60 = vmul.f32 0.0078125, %v285_v38 }
 0x157   :  { %v1877_v28 = vpop.eup %1876  ;;  %1884 = vrsqrt.f32 %v362_v47 }
 0x158   :  { %v363_v23 = vadd.f32 1e-05, %v331_v15  ;;  %v497_v42 = vadd.f32 %v2295_v50, %v459_v32  ;;  %v422_v57 = vmul.f32 %v1877_v28, %v2181_v9  ;;  %v364_v55 = vadd.f32 1e-05, %v332_v60 }
 0x159   :  { %v287_v26 = vpop.xlane.xlu1 %286  ;;  %v289_v45 = vpop.xlane.xlu0 %288 }
 0x15a   :  { %1886 = vrsqrt.f32 %v363_v23  ;;  %v333_v25 = vmul.f32 0.0078125, %v287_v26  ;;  %v524_v54 = vpack.c.bf16 %v497_v42, %v496_v43  ;;  %v460_v61 = vmul.f32 %v2285_v29, %v422_v57 }
 0x15b   :  { %v1879_v62 = vpop.eup %1878 }
 0x15c   :  { %v365_v19 = vadd.f32 1e-05, %v333_v25  ;;  %v423_v39 = vmul.f32 %v1879_v62, %v2195_v34  ;;  %v498_v32 = vadd.f32 %v2295_v50, %v460_v61  ;;  %v334_v34 = vmul.f32 0.0078125, %v289_v45  ;;  %v1841_v45 = vld [vmem:[%s2687_s5 + $0x38] sm:$0xff]  }
 0x15d   :  { %726 = vmatmul.mubr.bf16.gmra.mxu0 %v524_v54  ;;  %v291_v15 = vpop.xlane.xlu1 %290 }
 0x15e   :  { %735 = vmatprep.mubr.bf16.mxu0 %v2721_v24  ;;  %v461_v9 = vmul.f32 %v2285_v29, %v423_v39  ;;  %1888 = vrsqrt.f32 %v365_v19  ;;  %v335_v38 = vmul.f32 0.0078125, %v291_v15  ;;  %v366_v25 = vadd.f32 1e-05, %v334_v34  ;;  %v1844_v34 = vld [vmem:[%s2687_s5 + $0x68] sm:$0xff]  }
 0x15f   :  { %v1881_v47 = vpop.eup %1880  ;;  %1890 = vrsqrt.f32 %v364_v55  ;;  %v1840_v55 = vld [vmem:[%s2687_s5 + $0x78] sm:$0xff]  }
 0x160   :  { %v499_v28 = vadd.f32 %v2295_v50, %v461_v9  ;;  %v424_v23 = vmul.f32 %v1881_v47, %v2207_v51  ;;  %v367_v57 = vadd.f32 1e-05, %v335_v38  ;;  %1703 = vmatprep.subr.bf16.mxu1 %v1840_v55  ;;  %v1842_v47 = vld [vmem:[%s2687_s5 + $0x70] sm:$0xff]  }
 0x161   :  { %1704 = vmatpush3.bf16.msra.mxu1 %v1841_v45 }
 0x162   :  { %v525_v43 = vpack.c.bf16 %v499_v28, %v498_v32  ;;  %v462_v26 = vmul.f32 %v2285_v29, %v424_v23  ;;  %1892 = vrsqrt.f32 %v367_v57  ;;  %1705 = vmatprep.subr.bf16.mxu1 %v1842_v47  ;;  %v1851_v47 = vld [vmem:[%s2687_s5 + $0x10] sm:$0xff]  }
 0x163   :  { %v1883_v42 = vpop.eup %1882  ;;  %1894 = vrsqrt.f32 %v366_v25 }
 0x164   :  { %v425_v60 = vmul.f32 %v1883_v42, %v2214_v59  ;;  %v1885_v54 = vpop.eup %1884  ;;  %v500_v51 = vadd.f32 %v2295_v50, %v462_v26 }
 0x165   :  { %736 = vmatmul.mubr.bf16.gmra.mxu0 %v525_v43  ;;  %v426_v59 = vmul.f32 %v1885_v54, %v2218_v0  ;;  %v1843_v0 = vld [vmem:[%s2687_s5 + $0x30] sm:$0xff]   ;;  %v1845_v43 = vld [vmem:[%s2687_s5 + $0x28] sm:$0xff]  }
 0x166   :  { %745 = vmatprep.mubr.bf16.mxu0 %v2721_v24  ;;  %v463_v62 = vmul.f32 %v2285_v29, %v425_v60  ;;  %1706 = vmatpush3.bf16.msra.mxu1 %v1843_v0  ;;  %v1846_v60 = vld [vmem:[%s2687_s5 + $0x60] sm:$0xff]   ;;  %v1852_v0 = vld [vmem:[%s2687_s5 + $0x48] sm:$0xff]  }
 0x167   :  { %v1887_v19 = vpop.eup %1886  ;;  %v464_v38 = vmul.f32 %v2285_v29, %v426_v59  ;;  %1707 = vmatprep.subr.bf16.mxu1 %v1844_v34 }
 0x168   :  { %v501_v39 = vadd.f32 %v2295_v50, %v463_v62  ;;  %v427_v61 = vmul.f32 %v1887_v19, %v2225_v27 }
 0x169   :  { %v502_v42 = vadd.f32 %v2295_v50, %v464_v38  ;;  %v1853_v38 = vld [vmem:[%s2687_s5 + $0x8] sm:$0xff]  }
 0x16a   :  { %v526_v15 = vpack.c.bf16 %v501_v39, %v500_v51  ;;  %v465_v9 = vmul.f32 %v2285_v29, %v427_v61  ;;  %1708 = vmatpush3.bf16.msra.mxu1 %v1845_v43  ;;  %v1848_v39 = vld [vmem:[%s2687_s5 + $0x58] sm:$0xff]  }
 0x16b   :  { %v1889_v27 = vpop.eup %1888  ;;  %1709 = vmatprep.subr.bf16.mxu1 %v1846_v60  ;;  %v1849_v61 = vld [vmem:[%s2687_s5 + $0x18] sm:$0xff]  }
 0x16c   :  { %v1891_v32 = vpop.eup %1890  ;;  %v503_v28 = vadd.f32 %v2295_v50, %v465_v9  ;;  %v429_v23 = vmul.f32 %v1889_v27, %v2238_v46  ;;  %v1847_v46 = vld [vmem:[%s2687_s5 + $0x20] sm:$0xff]   ;;  %v1850_v9 = vld [vmem:[%s2687_s5 + $0x50] sm:$0xff]  }
 0x16d   :  { %746 = vmatmul.mubr.bf16.gmra.mxu0 %v526_v15  ;;  %v428_v57 = vmul.f32 %v1891_v32, %v2231_v31 }
 0x16e   :  { %755 = vmatprep.mubr.bf16.mxu0 %v2721_v24  ;;  %v527_v26 = vpack.c.bf16 %v503_v28, %v502_v42  ;;  %v467_v25 = vmul.f32 %v2285_v29, %v429_v23  ;;  %1710 = vmatpush3.bf16.msra.mxu1 %v1847_v46  ;;  %v1854_v28 = vld [vmem:[%s2687_s5 + $0x40] sm:$0xff]  }
 0x16f   :  { %v1893_v54 = vpop.eup %1892  ;;  %v466_v62 = vmul.f32 %v2285_v29, %v428_v57  ;;  %1711 = vmatprep.subr.bf16.mxu1 %v1848_v39  ;;  %v1855_v23 = vld [vmem:[%s2687_s5] sm:$0xff]  }
 0x170   :  { %v1895_v19 = vpop.eup %1894  ;;  %v505_v31 = vadd.f32 %v2295_v50, %v467_v25  ;;  %v431_v51 = vmul.f32 %v1893_v54, %v2246_v63 }
 0x171   :  { %v504_v59 = vadd.f32 %v2295_v50, %v466_v62  ;;  %v430_v55 = vmul.f32 %v1895_v19, %v2241_v52 }
 0x172   :  { %v469_v45 = vmul.f32 %v2285_v29, %v431_v51  ;;  %1712 = vmatpush3.bf16.msra.mxu1 %v1849_v61 }
 0x173   :  { %v528_v15 = vpack.c.bf16 %v505_v31, %v504_v59  ;;  %v468_v63 = vmul.f32 %v2285_v29, %v430_v55  ;;  %1713 = vmatprep.subr.bf16.mxu1 %v1850_v9 }
 0x174   :  { %v507_v52 = vadd.f32 %v2295_v50, %v469_v45 }
 0x175   :  { %756 = vmatmul.mubr.bf16.gmra.mxu0 %v527_v26  ;;  %v506_v27 = vadd.f32 %v2295_v50, %v468_v63 }
 0x176   :  { %765 = vmatprep.mubr.bf16.mxu0 %v2721_v24  ;;  %1714 = vmatpush3.bf16.msra.mxu1 %v1851_v47 }
 0x177   :  { %v529_v32 = vpack.c.bf16 %v507_v52, %v506_v27  ;;  %1715 = vmatprep.subr.bf16.mxu1 %v1852_v0 }
 0x17a   :  { %1716 = vmatpush3.bf16.msra.mxu1 %v1853_v38 }
 0x17b   :  { %1717 = vmatprep.subr.bf16.mxu1 %v1854_v28 }
 0x17d   :  { %766 = vmatmul.mubr.bf16.gmra.mxu0 %v528_v15 }
 0x17e   :  { %775 = vmatprep.mubr.bf16.mxu0 %v2721_v24  ;;  %1718 = vmatpush3.bf16.msra.mxu1 %v1855_v23 }
 0x185   :  { %776 = vmatmul.mubr.bf16.gmra.mxu0 %v529_v32 }
 0x186   :  { %785 = vmatprep.mubr.bf16.mxu0 %v2721_v24 }
 0x1b1   :  { %v293_v34 = vpop.xlane.xlu0 %292 }
 0x1b2   :  { %v336_v43 = vmul.f32 0.0078125, %v293_v34 }
 0x1b4   :  { %v368_v42 = vadd.f32 1e-05, %v336_v43 }
 0x1b5   :  { %v295_v57 = vpop.xlane.xlu1 %294 }
 0x1b6   :  { %1896 = vrsqrt.f32 %v368_v42  ;;  %v337_v60 = vmul.f32 0.0078125, %v295_v57 }
 0x1b8   :  { %v369_v46 = vadd.f32 1e-05, %v337_v60 }
 0x1b9   :  { %v297_v26 = vpop.xlane.xlu0 %296 }
 0x1ba   :  { %1898 = vrsqrt.f32 %v369_v46  ;;  %v338_v25 = vmul.f32 0.0078125, %v297_v26 }
 0x1bc   :  { %v370_v54 = vadd.f32 1e-05, %v338_v25 }
 0x1bd   :  { %v299_v62 = vpop.xlane.xlu1 %298 }
 0x1be   :  { %1900 = vrsqrt.f32 %v370_v54  ;;  %v339_v19 = vmul.f32 0.0078125, %v299_v62 }
 0x1c0   :  { %v371_v31 = vadd.f32 1e-05, %v339_v19 }
 0x1c1   :  { %v301_v51 = vpop.xlane.xlu0 %300 }
 0x1c2   :  { %1902 = vrsqrt.f32 %v371_v31  ;;  %v340_v39 = vmul.f32 0.0078125, %v301_v51 }
 0x1c3   :  { %v1897_v61 = vpop.eup %1896 }
 0x1c4   :  { %v372_v59 = vadd.f32 1e-05, %v340_v39  ;;  %v432_v55 = vmul.f32 %v1897_v61, %v2255_v49 }
 0x1c5   :  { %v303_v15 = vpop.xlane.xlu1 %302 }
 0x1c6   :  { %1904 = vrsqrt.f32 %v372_v59  ;;  %v341_v45 = vmul.f32 0.0078125, %v303_v15  ;;  %v470_v52 = vmul.f32 %v2285_v29, %v432_v55 }
 0x1c7   :  { %v1899_v63 = vpop.eup %1898 }
 0x1c8   :  { %v373_v9 = vadd.f32 1e-05, %v341_v45  ;;  %v433_v47 = vmul.f32 %v1899_v63, %v2260_v30  ;;  %v508_v23 = vadd.f32 %v2295_v50, %v470_v52 }
 0x1c9   :  { %v305_v27 = vpop.xlane.xlu0 %304 }
 0x1ca   :  { %1906 = vrsqrt.f32 %v373_v9  ;;  %v342_v0 = vmul.f32 0.0078125, %v305_v27  ;;  %v471_v38 = vmul.f32 %v2285_v29, %v433_v47 }
 0x1cb   :  { %v1901_v32 = vpop.eup %1900 }
 0x1cc   :  { %v374_v28 = vadd.f32 1e-05, %v342_v0  ;;  %v509_v49 = vadd.f32 %v2295_v50, %v471_v38  ;;  %v434_v34 = vmul.f32 %v1901_v32, %v2270_v12 }
 0x1cd   :  { %v307_v43 = vpop.xlane.xlu1 %306 }
 0x1ce   :  { %1908 = vrsqrt.f32 %v374_v28  ;;  %v343_v42 = vmul.f32 0.0078125, %v307_v43  ;;  %v530_v57 = vpack.c.bf16 %v509_v49, %v508_v23  ;;  %v472_v26 = vmul.f32 %v2285_v29, %v434_v34 }
 0x1cf   :  { %v1903_v30 = vpop.eup %1902 }
 0x1d0   :  { %v375_v60 = vadd.f32 1e-05, %v343_v42  ;;  %786 = vmatmul.mubr.bf16.gmra.mxu0 %v530_v57  ;;  %v435_v46 = vmul.f32 %v1903_v30, %v2281_v56  ;;  %v510_v31 = vadd.f32 %v2295_v50, %v472_v26 }
 0x1d1   :  { %v309_v25 = vpop.xlane.xlu0 %308  ;;  %795 = vmatprep.mubr.bf16.mxu0 %v2721_v24 }
 0x1d2   :  { %1910 = vrsqrt.f32 %v375_v60  ;;  %v344_v54 = vmul.f32 0.0078125, %v309_v25  ;;  %v473_v62 = vmul.f32 %v2285_v29, %v435_v46 }
 0x1d3   :  { %v1905_v19 = vpop.eup %1904 }
 0x1d4   :  { %v376_v12 = vadd.f32 1e-05, %v344_v54  ;;  %v511_v51 = vadd.f32 %v2295_v50, %v473_v62  ;;  %v436_v39 = vmul.f32 %v1905_v19, %v2290_v37 }
 0x1d5   :  { %v311_v61 = vpop.xlane.xlu1 %310 }
 0x1d6   :  { %1912 = vrsqrt.f32 %v376_v12  ;;  %v345_v56 = vmul.f32 0.0078125, %v311_v61  ;;  %v531_v59 = vpack.c.bf16 %v511_v51, %v510_v31  ;;  %v474_v63 = vmul.f32 %v2285_v29, %v436_v39 }
 0x1d7   :  { %v1907_v55 = vpop.eup %1906 }
 0x1d8   :  { %v377_v15 = vadd.f32 1e-05, %v345_v56  ;;  %796 = vmatmul.mubr.bf16.gmra.mxu0 %v531_v59  ;;  %v437_v45 = vmul.f32 %v1907_v55, %v2301_v22  ;;  %v512_v0 = vadd.f32 %v2295_v50, %v474_v63 }
 0x1d9   :  { %v313_v9 = vpop.xlane.xlu0 %312  ;;  %805 = vmatprep.mubr.bf16.mxu0 %v2721_v24 }
 0x1da   :  { %1914 = vrsqrt.f32 %v377_v15  ;;  %v346_v47 = vmul.f32 0.0078125, %v313_v9  ;;  %v475_v52 = vmul.f32 %v2285_v29, %v437_v45  ;;  %v552_v15 = vld [vmem:[%s2688_s4] sm:$0x3]  ;;  %v561_v45 = vsub.s32 2, %v2262_v40 }
 0x1db   :  { %v1909_v27 = vpop.eup %1908  ;;  %v553_v63 = vunpack.c.l.bf16 %v552_v15 }
 0x1dc   :  { %v378_v37 = vadd.f32 1e-05, %v346_v47  ;;  %v513_v38 = vadd.f32 %v2295_v50, %v475_v52  ;;  %v438_v32 = vmul.f32 %v1909_v27, %v2309_v41 }
 0x1dd   :  { %v315_v28 = vpop.xlane.xlu1 %314  ;;  %v558_v9 = vrot.slane %v553_v63, %v2273_v6 }
 0x1de   :  { %1916 = vrsqrt.f32 %v378_v37  ;;  %v347_v22 = vmul.f32 0.0078125, %v315_v28  ;;  %v532_v23 = vpack.c.bf16 %v513_v38, %v512_v0  ;;  %v476_v42 = vmul.f32 %v2285_v29, %v438_v32 }
 0x1df   :  { %v1911_v49 = vpop.eup %1910 }
 0x1e0   :  { %v379_v34 = vadd.f32 1e-05, %v347_v22  ;;  %806 = vmatmul.mubr.bf16.gmra.mxu0 %v532_v23  ;;  %v439_v43 = vmul.f32 %v1911_v49, %v2318_v21  ;;  %v514_v60 = vadd.f32 %v2295_v50, %v476_v42 }
 0x1e1   :  { %815 = vmatprep.mubr.bf16.mxu0 %v2721_v24 }
 0x1e2   :  { %1918 = vrsqrt.f32 %v379_v34  ;;  %v477_v57 = vmul.f32 %v2285_v29, %v439_v43 }
 0x1e3   :  { %v1913_v30 = vpop.eup %1912 }
 0x1e4   :  { %v515_v41 = vadd.f32 %v2295_v50, %v477_v57  ;;  %v440_v46 = vmul.f32 %v1913_v30, %v2326_v20 }
 0x1e6   :  { %v533_v26 = vpack.c.bf16 %v515_v41, %v514_v60  ;;  %v478_v21 = vmul.f32 %v2285_v29, %v440_v46 }
 0x1e7   :  { %v1915_v25 = vpop.eup %1914 }
 0x1e8   :  { %816 = vmatmul.mubr.bf16.gmra.mxu0 %v533_v26  ;;  %v441_v54 = vmul.f32 %v1915_v25, %v2335_v35  ;;  %v516_v12 = vadd.f32 %v2295_v50, %v478_v21 }
 0x1e9   :  { %825 = vmatprep.mubr.bf16.mxu0 %v2721_v24 }
 0x1ea   :  { %v479_v62 = vmul.f32 %v2285_v29, %v441_v54 }
 0x1eb   :  { %v1917_v19 = vpop.eup %1916 }
 0x1ec   :  { %v517_v31 = vadd.f32 %v2295_v50, %v479_v62  ;;  %v442_v51 = vmul.f32 %v1917_v19, %v2343_v48 }
 0x1ee   :  { %v534_v39 = vpack.c.bf16 %v517_v31, %v516_v12  ;;  %v480_v35 = vmul.f32 %v2285_v29, %v442_v51 }
 0x1ef   :  { %v1919_v20 = vpop.eup %1918 }
 0x1f0   :  { %826 = vmatmul.mubr.bf16.gmra.mxu0 %v534_v39  ;;  %v443_v61 = vmul.f32 %v1919_v20, %v2352_v44  ;;  %v518_v59 = vadd.f32 %v2295_v50, %v480_v35  ;;  %v562_v44 = vrot.slane %v553_v63, %v561_v45 }
 0x1f1   :  { %835 = vmatprep.mubr.bf16.mxu0 %v2721_v24 }
 0x1f2   :  { %v481_v56 = vmul.f32 %v2285_v29, %v443_v61  ;;  %v2496_v24 = vrot.slane %v562_v44, %v2273_v6  ;;  %v2499_v29 = vrot.slane %v558_v9, %v2273_v6 }
 0x1f4   :  { %v519_v55 = vadd.f32 %v2295_v50, %v481_v56 }
 0x1f6   :  { %v535_v48 = vpack.c.bf16 %v519_v55, %v518_v59 }
 0x1f8   :  { %836 = vmatmul.mubr.bf16.gmra.mxu0 %v535_v48 }
 0x1fd   :  { %v687_v47 = vpop.f32.mrf.mxu0 }
 0x1fe   :  { %v688_v40 = vadd.f32 %v687_v47, %v2499_v29 }
 0x1ff   :  { %v689_v50 = vpop.f32.mrf.mxu0 }
 0x200   :  { %v690_v27 = vadd.f32 %v689_v50, %v2496_v24  ;;  %v846_v49 = vmax.f32 %v688_v40, 0.0 }
 0x201   :  { %v691_v52 = vpop.f32.mrf.mxu0 }
 0x202   :  { %v692_v37 = vadd.f32 %v691_v52, %v2499_v29  ;;  %v847_v22 = vmax.f32 %v690_v27, 0.0 }
 0x203   :  { %v693_v0 = vpop.f32.mrf.mxu0 }
 0x204   :  { %v694_v38 = vadd.f32 %v693_v0, %v2496_v24  ;;  %v848_v32 = vmax.f32 %v692_v37, 0.0 }
 0x205   :  { %v697_v28 = vpop.f32.mrf.mxu0 }
 0x206   :  { %v849_v23 = vmax.f32 %v694_v38, 0.0  ;;  %v910_v42 = vpack.c.bf16 %v848_v32, %v846_v49  ;;  %v698_v41 = vadd.f32 %v697_v28, %v2499_v29 }
 0x207   :  { %v699_v34 = vpop.f32.mrf.mxu0 }
 0x208   :  { %v911_v43 = vpack.c.bf16 %v849_v23, %v847_v22  ;;  %v700_v30 = vadd.f32 %v699_v34, %v2496_v24  ;;  %v850_v19 = vmax.f32 %v698_v41, 0.0 }
 0x209   :  { %v701_v57 = vpop.f32.mrf.mxu0 }
 0x20a   :  { %v702_v60 = vadd.f32 %v701_v57, %v2499_v29  ;;  %1108 = vmatprep.mubr.bf16.mxu1 %v911_v43  ;;  %v851_v21 = vmax.f32 %v700_v30, 0.0 }
 0x20b   :  { %v703_v46 = vpop.f32.mrf.mxu0  ;;  %1109 = vmatmul.mubr.bf16.vlgmr.msra.gmra.mxu1 %v910_v42 }
 0x20c   :  { %v704_v26 = vadd.f32 %v703_v46, %v2496_v24  ;;  %v852_v25 = vmax.f32 %v702_v60, 0.0 }
 0x20d   :  { %v707_v54 = vpop.f32.mrf.mxu0 }
 0x20e   :  { %v853_v62 = vmax.f32 %v704_v26, 0.0  ;;  %v912_v51 = vpack.c.bf16 %v852_v25, %v850_v19  ;;  %v708_v35 = vadd.f32 %v707_v54, %v2499_v29 }
 0x20f   :  { %v709_v12 = vpop.f32.mrf.mxu0 }
 0x210   :  { %v913_v31 = vpack.c.bf16 %v853_v62, %v851_v21  ;;  %v710_v20 = vadd.f32 %v709_v12, %v2496_v24  ;;  %v854_v63 = vmax.f32 %v708_v35, 0.0 }
 0x211   :  { %v711_v39 = vpop.f32.mrf.mxu0 }
 0x212   :  { %v712_v61 = vadd.f32 %v711_v39, %v2499_v29  ;;  %1116 = vmatprep.mubr.bf16.mxu1 %v913_v31  ;;  %v855_v48 = vmax.f32 %v710_v20, 0.0 }
 0x213   :  { %v713_v56 = vpop.f32.mrf.mxu0  ;;  %1117 = vmatmul.mubr.bf16.gmra.mxu1 %v912_v51 }
 0x214   :  { %v714_v59 = vadd.f32 %v713_v56, %v2496_v24  ;;  %v856_v55 = vmax.f32 %v712_v61, 0.0 }
 0x215   :  { %v717_v15 = vpop.f32.mrf.mxu0 }
 0x216   :  { %v857_v45 = vmax.f32 %v714_v59, 0.0  ;;  %v914_v47 = vpack.c.bf16 %v856_v55, %v854_v63  ;;  %v718_v37 = vadd.f32 %v717_v15, %v2499_v29 }
 0x217   :  { %v719_v44 = vpop.f32.mrf.mxu0 }
 0x218   :  { %v915_v9 = vpack.c.bf16 %v857_v45, %v855_v48  ;;  %v720_v52 = vadd.f32 %v719_v44, %v2496_v24  ;;  %v858_v23 = vmax.f32 %v718_v37, 0.0 }
 0x219   :  { %v721_v50 = vpop.f32.mrf.mxu0 }
 0x21a   :  { %v722_v27 = vadd.f32 %v721_v50, %v2499_v29  ;;  %1124 = vmatprep.mubr.bf16.mxu1 %v915_v9  ;;  %v859_v28 = vmax.f32 %v720_v52, 0.0 }
 0x21b   :  { %v723_v40 = vpop.f32.mrf.mxu0  ;;  %1125 = vmatmul.mubr.bf16.gmra.mxu1 %v914_v47 }
 0x21c   :  { %v724_v0 = vadd.f32 %v723_v40, %v2496_v24  ;;  %v860_v38 = vmax.f32 %v722_v27, 0.0 }
 0x21d   :  { %v727_v32 = vpop.f32.mrf.mxu0 }
 0x21e   :  { %v861_v22 = vmax.f32 %v724_v0, 0.0  ;;  %v916_v43 = vpack.c.bf16 %v860_v38, %v858_v23  ;;  %v728_v60 = vadd.f32 %v727_v32, %v2499_v29 }
 0x21f   :  { %v729_v49 = vpop.f32.mrf.mxu0 }
 0x220   :  { %v917_v34 = vpack.c.bf16 %v861_v22, %v859_v28  ;;  %v730_v57 = vadd.f32 %v729_v49, %v2496_v24  ;;  %v862_v62 = vmax.f32 %v728_v60, 0.0 }
 0x221   :  { %v731_v42 = vpop.f32.mrf.mxu0 }
 0x222   :  { %v732_v30 = vadd.f32 %v731_v42, %v2499_v29  ;;  %1132 = vmatprep.mubr.bf16.mxu1 %v917_v34  ;;  %v863_v54 = vmax.f32 %v730_v57, 0.0 }
 0x223   :  { %v733_v41 = vpop.f32.mrf.mxu0  ;;  %1133 = vmatmul.mubr.bf16.gmra.mxu1 %v916_v43 }
 0x224   :  { %v734_v46 = vadd.f32 %v733_v41, %v2496_v24  ;;  %v864_v26 = vmax.f32 %v732_v30, 0.0 }
 0x225   :  { %v737_v25 = vpop.f32.mrf.mxu0 }
 0x226   :  { %v865_v21 = vmax.f32 %v734_v46, 0.0  ;;  %v918_v31 = vpack.c.bf16 %v864_v26, %v862_v62  ;;  %v738_v61 = vadd.f32 %v737_v25, %v2499_v29 }
 0x227   :  { %v739_v19 = vpop.f32.mrf.mxu0 }
 0x228   :  { %v919_v12 = vpack.c.bf16 %v865_v21, %v863_v54  ;;  %v740_v39 = vadd.f32 %v739_v19, %v2496_v24  ;;  %v866_v45 = vmax.f32 %v738_v61, 0.0 }
 0x229   :  { %v741_v51 = vpop.f32.mrf.mxu0 }
 0x22a   :  { %v742_v20 = vadd.f32 %v741_v51, %v2499_v29  ;;  %1140 = vmatprep.mubr.bf16.mxu1 %v919_v12  ;;  %v867_v15 = vmax.f32 %v740_v39, 0.0 }
 0x22b   :  { %v743_v35 = vpop.f32.mrf.mxu0  ;;  %1141 = vmatmul.mubr.bf16.gmra.mxu1 %v918_v31 }
 0x22c   :  { %v744_v56 = vadd.f32 %v743_v35, %v2496_v24  ;;  %v868_v59 = vmax.f32 %v742_v20, 0.0 }
 0x22d   :  { %v747_v55 = vpop.f32.mrf.mxu0 }
 0x22e   :  { %v869_v48 = vmax.f32 %v744_v56, 0.0  ;;  %v920_v9 = vpack.c.bf16 %v868_v59, %v866_v45  ;;  %v748_v27 = vadd.f32 %v747_v55, %v2499_v29 }
 0x22f   :  { %v749_v63 = vpop.f32.mrf.mxu0 }
 0x230   :  { %v921_v44 = vpack.c.bf16 %v869_v48, %v867_v15  ;;  %v750_v50 = vadd.f32 %v749_v63, %v2496_v24  ;;  %v870_v22 = vmax.f32 %v748_v27, 0.0 }
 0x231   :  { %v751_v47 = vpop.f32.mrf.mxu0 }
 0x232   :  { %v752_v52 = vadd.f32 %v751_v47, %v2499_v29  ;;  %1148 = vmatprep.mubr.bf16.mxu1 %v921_v44  ;;  %v871_v32 = vmax.f32 %v750_v50, 0.0 }
 0x233   :  { %v753_v37 = vpop.f32.mrf.mxu0  ;;  %1149 = vmatmul.mubr.bf16.gmra.mxu1 %v920_v9 }
 0x234   :  { %v754_v40 = vadd.f32 %v753_v37, %v2496_v24  ;;  %v872_v0 = vmax.f32 %v752_v52, 0.0 }
 0x235   :  { %v757_v38 = vpop.f32.mrf.mxu0 }
 0x236   :  { %v873_v28 = vmax.f32 %v754_v40, 0.0  ;;  %v922_v34 = vpack.c.bf16 %v872_v0, %v870_v22  ;;  %v758_v30 = vadd.f32 %v757_v38, %v2499_v29 }
 0x237   :  { %v759_v23 = vpop.f32.mrf.mxu0 }
 0x238   :  { %v923_v49 = vpack.c.bf16 %v873_v28, %v871_v32  ;;  %v760_v42 = vadd.f32 %v759_v23, %v2496_v24  ;;  %v874_v21 = vmax.f32 %v758_v30, 0.0 }
 0x239   :  { %v761_v43 = vpop.f32.mrf.mxu0 }
 0x23a   :  { %v762_v57 = vadd.f32 %v761_v43, %v2499_v29  ;;  %1156 = vmatprep.mubr.bf16.mxu1 %v923_v49  ;;  %v875_v25 = vmax.f32 %v760_v42, 0.0 }
 0x23b   :  { %v763_v60 = vpop.f32.mrf.mxu0  ;;  %1157 = vmatmul.mubr.bf16.gmra.mxu1 %v922_v34 }
 0x23c   :  { %v764_v41 = vadd.f32 %v763_v60, %v2496_v24  ;;  %v876_v46 = vmax.f32 %v762_v57, 0.0 }
 0x23d   :  { %v767_v26 = vpop.f32.mrf.mxu0 }
 0x23e   :  { %v877_v54 = vmax.f32 %v764_v41, 0.0  ;;  %v924_v12 = vpack.c.bf16 %v876_v46, %v874_v21  ;;  %v768_v20 = vadd.f32 %v767_v26, %v2499_v29 }
 0x23f   :  { %v769_v62 = vpop.f32.mrf.mxu0 }
 0x240   :  { %v925_v19 = vpack.c.bf16 %v877_v54, %v875_v25  ;;  %v770_v51 = vadd.f32 %v769_v62, %v2496_v24  ;;  %v878_v48 = vmax.f32 %v768_v20, 0.0 }
 0x241   :  { %v771_v31 = vpop.f32.mrf.mxu0 }
 0x242   :  { %v772_v39 = vadd.f32 %v771_v31, %v2499_v29  ;;  %1164 = vmatprep.mubr.bf16.mxu1 %v925_v19  ;;  %v879_v55 = vmax.f32 %v770_v51, 0.0 }
 0x243   :  { %v773_v61 = vpop.f32.mrf.mxu0  ;;  %1165 = vmatmul.mubr.bf16.gmra.mxu1 %v924_v12 }
 0x244   :  { %v774_v35 = vadd.f32 %v773_v61, %v2496_v24  ;;  %v880_v56 = vmax.f32 %v772_v39, 0.0 }
 0x245   :  { %v777_v59 = vpop.f32.mrf.mxu0 }
 0x246   :  { %v881_v15 = vmax.f32 %v774_v35, 0.0  ;;  %v926_v44 = vpack.c.bf16 %v880_v56, %v878_v48  ;;  %v778_v52 = vadd.f32 %v777_v59, %v2499_v29 }
 0x247   :  { %v779_v45 = vpop.f32.mrf.mxu0 }
 0x248   :  { %v927_v63 = vpack.c.bf16 %v881_v15, %v879_v55  ;;  %v780_v47 = vadd.f32 %v779_v45, %v2496_v24  ;;  %v882_v32 = vmax.f32 %v778_v52, 0.0 }
 0x249   :  { %v781_v9 = vpop.f32.mrf.mxu0 }
 0x24a   :  { %v782_v50 = vadd.f32 %v781_v9, %v2499_v29  ;;  %1172 = vmatprep.mubr.bf16.mxu1 %v927_v63  ;;  %v883_v0 = vmax.f32 %v780_v47, 0.0 }
 0x24b   :  { %v783_v27 = vpop.f32.mrf.mxu0  ;;  %1173 = vmatmul.mubr.bf16.gmra.mxu1 %v926_v44 }
 0x24c   :  { %v784_v37 = vadd.f32 %v783_v27, %v2496_v24  ;;  %v884_v40 = vmax.f32 %v782_v50, 0.0 }
 0x24e   :  { %v885_v38 = vmax.f32 %v784_v37, 0.0  ;;  %v928_v22 = vpack.c.bf16 %v884_v40, %v882_v32 }
 0x250   :  { %v929_v28 = vpack.c.bf16 %v885_v38, %v883_v0 }
 0x252   :  { %1180 = vmatprep.mubr.bf16.mxu1 %v929_v28 }
 0x253   :  { %1181 = vmatmul.mubr.bf16.gmra.mxu1 %v928_v22 }
 0x290   :  { %v787_v23 = vpop.f32.mrf.mxu0 }
 0x291   :  { %v788_v57 = vadd.f32 %v787_v23, %v2499_v29 }
 0x292   :  { %v789_v49 = vpop.f32.mrf.mxu0 }
 0x293   :  { %v790_v43 = vadd.f32 %v789_v49, %v2496_v24  ;;  %v886_v54 = vmax.f32 %v788_v57, 0.0 }
 0x294   :  { %v791_v34 = vpop.f32.mrf.mxu0 }
 0x295   :  { %v792_v42 = vadd.f32 %v791_v34, %v2499_v29  ;;  %v887_v26 = vmax.f32 %v790_v43, 0.0 }
 0x296   :  { %v793_v30 = vpop.f32.mrf.mxu0 }
 0x297   :  { %v794_v60 = vadd.f32 %v793_v30, %v2496_v24  ;;  %v888_v41 = vmax.f32 %v792_v42, 0.0 }
 0x298   :  { %v797_v46 = vpop.f32.mrf.mxu0 }
 0x299   :  { %v889_v25 = vmax.f32 %v794_v60, 0.0  ;;  %v930_v19 = vpack.c.bf16 %v888_v41, %v886_v54  ;;  %v798_v39 = vadd.f32 %v797_v46, %v2499_v29 }
 0x29a   :  { %v799_v21 = vpop.f32.mrf.mxu0 }
 0x29b   :  { %v931_v62 = vpack.c.bf16 %v889_v25, %v887_v26  ;;  %v800_v31 = vadd.f32 %v799_v21, %v2496_v24  ;;  %v890_v15 = vmax.f32 %v798_v39, 0.0 }
 0x29c   :  { %v801_v12 = vpop.f32.mrf.mxu0 }
 0x29d   :  { %v802_v51 = vadd.f32 %v801_v12, %v2499_v29  ;;  %1188 = vmatprep.mubr.bf16.mxu1 %v931_v62  ;;  %v891_v59 = vmax.f32 %v800_v31, 0.0 }
 0x29e   :  { %v803_v20 = vpop.f32.mrf.mxu0  ;;  %1189 = vmatmul.mubr.bf16.gmra.mxu1 %v930_v19 }
 0x29f   :  { %v804_v61 = vadd.f32 %v803_v20, %v2496_v24  ;;  %v892_v35 = vmax.f32 %v802_v51, 0.0 }
 0x2a0   :  { %v807_v56 = vpop.f32.mrf.mxu0 }
 0x2a1   :  { %v893_v55 = vmax.f32 %v804_v61, 0.0  ;;  %v932_v63 = vpack.c.bf16 %v892_v35, %v890_v15  ;;  %v808_v50 = vadd.f32 %v807_v56, %v2499_v29 }
 0x2a2   :  { %v809_v48 = vpop.f32.mrf.mxu0 }
 0x2a3   :  { %v933_v45 = vpack.c.bf16 %v893_v55, %v891_v59  ;;  %v810_v9 = vadd.f32 %v809_v48, %v2496_v24  ;;  %v894_v32 = vmax.f32 %v808_v50, 0.0 }
 0x2a4   :  { %v811_v44 = vpop.f32.mrf.mxu0 }
 0x2a5   :  { %v812_v47 = vadd.f32 %v811_v44, %v2499_v29  ;;  %1196 = vmatprep.mubr.bf16.mxu1 %v933_v45  ;;  %v895_v0 = vmax.f32 %v810_v9, 0.0 }
 0x2a6   :  { %v813_v52 = vpop.f32.mrf.mxu0  ;;  %1197 = vmatmul.mubr.bf16.gmra.mxu1 %v932_v63 }
 0x2a7   :  { %v814_v27 = vadd.f32 %v813_v52, %v2496_v24  ;;  %v896_v37 = vmax.f32 %v812_v47, 0.0 }
 0x2a8   :  { %v817_v40 = vpop.f32.mrf.mxu0 }
 0x2a9   :  { %v897_v38 = vmax.f32 %v814_v27, 0.0  ;;  %v934_v23 = vpack.c.bf16 %v896_v37, %v894_v32  ;;  %v818_v42 = vadd.f32 %v817_v40, %v2499_v29 }
 0x2aa   :  { %v819_v28 = vpop.f32.mrf.mxu0 }
 0x2ab   :  { %v935_v22 = vpack.c.bf16 %v897_v38, %v895_v0  ;;  %v820_v34 = vadd.f32 %v819_v28, %v2496_v24  ;;  %v898_v25 = vmax.f32 %v818_v42, 0.0  ;;  %v974_v28 = vld [vmem:[%s2689_s6] sm:$0x1] }
 0x2ac   :  { %v821_v49 = vpop.f32.mrf.mxu0 }
 0x2ad   :  { %v822_v43 = vadd.f32 %v821_v49, %v2499_v29  ;;  %1204 = vmatprep.mubr.bf16.mxu1 %v935_v22  ;;  %v899_v46 = vmax.f32 %v820_v34, 0.0  ;;  %v975_v22 = vunpack.c.l.bf16 %v974_v28 }
 0x2ae   :  { %v823_v57 = vpop.f32.mrf.mxu0  ;;  %1205 = vmatmul.mubr.bf16.gmra.mxu1 %v934_v23 }
 0x2af   :  { %v824_v30 = vadd.f32 %v823_v57, %v2496_v24  ;;  %v900_v60 = vmax.f32 %v822_v43, 0.0 }
 0x2b0   :  { %v827_v41 = vpop.f32.mrf.mxu0 }
 0x2b1   :  { %v901_v26 = vmax.f32 %v824_v30, 0.0  ;;  %v936_v62 = vpack.c.bf16 %v900_v60, %v898_v25  ;;  %v828_v51 = vadd.f32 %v827_v41, %v2499_v29 }
 0x2b2   :  { %v829_v54 = vpop.f32.mrf.mxu0 }
 0x2b3   :  { %v937_v21 = vpack.c.bf16 %v901_v26, %v899_v46  ;;  %v830_v12 = vadd.f32 %v829_v54, %v2496_v24  ;;  %v902_v55 = vmax.f32 %v828_v51, 0.0 }
 0x2b4   :  { %v831_v19 = vpop.f32.mrf.mxu0 }
 0x2b5   :  { %v832_v31 = vadd.f32 %v831_v19, %v2499_v29  ;;  %1212 = vmatprep.mubr.bf16.mxu1 %v937_v21  ;;  %v903_v56 = vmax.f32 %v830_v12, 0.0 }
 0x2b6   :  { %v833_v39 = vpop.f32.mrf.mxu0  ;;  %1213 = vmatmul.mubr.bf16.gmra.mxu1 %v936_v62 }
 0x2b7   :  { %v834_v20 = vadd.f32 %v833_v39, %v2496_v24  ;;  %v904_v61 = vmax.f32 %v832_v31, 0.0 }
 0x2b8   :  { %v837_v35 = vpop.f32.mrf.mxu0 }
 0x2b9   :  { %v905_v59 = vmax.f32 %v834_v20, 0.0  ;;  %v938_v45 = vpack.c.bf16 %v904_v61, %v902_v55  ;;  %v838_v47 = vadd.f32 %v837_v35, %v2499_v29 }
 0x2ba   :  { %v839_v15 = vpop.f32.mrf.mxu0 }
 0x2bb   :  { %v939_v48 = vpack.c.bf16 %v905_v59, %v903_v56  ;;  %v840_v44 = vadd.f32 %v839_v15, %v2496_v24  ;;  %v906_v0 = vmax.f32 %v838_v47, 0.0 }
 0x2bc   :  { %v841_v63 = vpop.f32.mrf.mxu0 }
 0x2bd   :  { %v842_v9 = vadd.f32 %v841_v63, %v2499_v29  ;;  %1220 = vmatprep.mubr.bf16.mxu1 %v939_v48  ;;  %v907_v37 = vmax.f32 %v840_v44, 0.0  ;;  %v2569_v29 = vrot.slane %v975_v22, %v2273_v6 }
 0x2be   :  { %v843_v50 = vpop.f32.mrf.mxu0  ;;  %1221 = vmatmul.mubr.bf16.gmra.mxu1 %v938_v45 }
 0x2bf   :  { %v844_v52 = vadd.f32 %v843_v50, %v2496_v24  ;;  %v908_v27 = vmax.f32 %v842_v9, 0.0 }
 0x2c1   :  { %v909_v40 = vmax.f32 %v844_v52, 0.0  ;;  %v940_v32 = vpack.c.bf16 %v908_v27, %v906_v0 }
 0x2c3   :  { %v941_v38 = vpack.c.bf16 %v909_v40, %v907_v37 }
 0x2c5   :  { %1228 = vmatprep.mubr.bf16.mxu1 %v941_v38 }
 0x2c6   :  { %1229 = vmatmul.mubr.bf16.gmra.mxu1 %v940_v32 }
 0x2cb   :  { %v1719_v23 = vpop.f32.mrf.mxu1 }
 0x2cd   :  { %v1720_v49 = vpop.f32.mrf.mxu1 }
 0x2ce   :  { %v1721_v34 = vadd.f32 %v1720_v49, %v1719_v23 }
 0x2cf   :  { %v1722_v24 = vpop.f32.mrf.mxu1 }
 0x2d0   :  { %v1111_v42 = vadd.f32 %v1721_v34, %v2569_v29 }
 0x2d1   :  { %v1723_v43 = vpop.f32.mrf.mxu1 }
 0x2d2   :  { %v1724_v57 = vadd.f32 %v1723_v43, %v1722_v24  ;;  %v1237_v46 = vadd.f32 %v1967_v2, %v1111_v42 }
 0x2d3   :  { %v1725_v30 = vpop.f32.mrf.mxu1 }
 0x2d4   :  { %v1114_v60 = vadd.f32 %v1724_v57, %v2569_v29 }
 0x2d5   :  { %v1726_v41 = vpop.f32.mrf.mxu1 }
 0x2d6   :  { %v1238_v26 = vadd.f32 %v1972_v4, %v1114_v60  ;;  %v1727_v25 = vadd.f32 %v1726_v41, %v1725_v30 }
 0x2d7   :  { %v1728_v54 = vpop.f32.mrf.mxu1 }
 0x2d8   :  { %v1596_v21 = vpack.c.bf16 %v1238_v26, %v1237_v46  ;;  %v1119_v6 = vadd.f32 %v1727_v25, %v2569_v29 }
 0x2d9   :  { %v1729_v62 = vpop.f32.mrf.mxu1 }
 0x2da   :  { %1597 = vst [vmem:[%s2690_s7] sm:$0xff] %v1596_v21   ;;  %v1730_v19 = vadd.f32 %v1729_v62, %v1728_v54  ;;  %v1239_v39 = vadd.f32 %v1969_v3, %v1119_v6 }
 0x2db   :  { %v1731_v12 = vpop.f32.mrf.mxu1 }
 0x2dc   :  { %v1122_v31 = vadd.f32 %v1730_v19, %v2569_v29 }
 0x2dd   :  { %v1732_v51 = vpop.f32.mrf.mxu1 }
 0x2de   :  { %v1240_v2 = vadd.f32 %v1975_v5, %v1122_v31  ;;  %v1733_v4 = vadd.f32 %v1732_v51, %v1731_v12 }
 0x2df   :  { %v1734_v20 = vpop.f32.mrf.mxu1 }
 0x2e0   :  { %v1601_v61 = vpack.c.bf16 %v1240_v2, %v1239_v39  ;;  %v1127_v56 = vadd.f32 %v1733_v4, %v2569_v29  ;;  %v2722_v39 = vld [vmem:[#allocation2_spill] sm:$0xff] }
 0x2e1   :  { %v1735_v35 = vpop.f32.mrf.mxu1 }
 0x2e2   :  { %1688 = vst [vmem:[%s2690_s7 + $0x8] sm:$0xff] %v1601_v61   ;;  %v1736_v59 = vadd.f32 %v1735_v35, %v1734_v20  ;;  %v1241_v45 = vadd.f32 %v1982_v7, %v1127_v56 }
 0x2e3   :  { %v1737_v55 = vpop.f32.mrf.mxu1 }
 0x2e4   :  { %v1130_v15 = vadd.f32 %v1736_v59, %v2569_v29 }
 0x2e5   :  { %v1738_v48 = vpop.f32.mrf.mxu1 }
 0x2e6   :  { %v1242_v3 = vadd.f32 %v1984_v8, %v1130_v15  ;;  %v1739_v5 = vadd.f32 %v1738_v48, %v1737_v55 }
 0x2e7   :  { %v1740_v63 = vpop.f32.mrf.mxu1 }
 0x2e8   :  { %v1606_v44 = vpack.c.bf16 %v1242_v3, %v1241_v45  ;;  %v1135_v47 = vadd.f32 %v1739_v5, %v2569_v29  ;;  %v2724_v45 = vld [vmem:[#allocation4_spill] sm:$0xff]  ;;  %v2725_v5 = vld [vmem:[#allocation5_spill] sm:$0xff] }
 0x2e9   :  { %v1741_v9 = vpop.f32.mrf.mxu1 }
 0x2ea   :  { %1689 = vst [vmem:[%s2690_s7 + $0x10] sm:$0xff] %v1606_v44   ;;  %v1742_v50 = vadd.f32 %v1741_v9, %v1740_v63  ;;  %v1243_v40 = vadd.f32 %v1991_v10, %v1135_v47 }
 0x2eb   :  { %v1743_v52 = vpop.f32.mrf.mxu1 }
 0x2ec   :  { %v1138_v27 = vadd.f32 %v1742_v50, %v2569_v29 }
 0x2ed   :  { %v1744_v37 = vpop.f32.mrf.mxu1 }
 0x2ee   :  { %v1244_v7 = vadd.f32 %v1993_v11, %v1138_v27  ;;  %v1745_v8 = vadd.f32 %v1744_v37, %v1743_v52 }
 0x2ef   :  { %v1746_v0 = vpop.f32.mrf.mxu1 }
 0x2f0   :  { %v1611_v38 = vpack.c.bf16 %v1244_v7, %v1243_v40  ;;  %v1143_v28 = vadd.f32 %v1745_v8, %v2569_v29  ;;  %v2726_v8 = vld [vmem:[#allocation6_spill] sm:$0xff] }
 0x2f1   :  { %v1747_v32 = vpop.f32.mrf.mxu1 }
 0x2f2   :  { %1690 = vst [vmem:[%s2690_s7 + $0x18] sm:$0xff] %v1611_v38   ;;  %v1748_v22 = vadd.f32 %v1747_v32, %v1746_v0  ;;  %v1245_v24 = vadd.f32 %v2000_v13, %v1143_v28  ;;  %v2727_v38 = vld [vmem:[#allocation7_spill] sm:$0xff] }
 0x2f3   :  { %v1749_v23 = vpop.f32.mrf.mxu1 }
 0x2f4   :  { %v1146_v49 = vadd.f32 %v1748_v22, %v2569_v29 }
 0x2f5   :  { %v1750_v34 = vpop.f32.mrf.mxu1 }
 0x2f6   :  { %v1246_v10 = vadd.f32 %v2002_v14, %v1146_v49  ;;  %v1751_v11 = vadd.f32 %v1750_v34, %v1749_v23 }
 0x2f7   :  { %v1752_v43 = vpop.f32.mrf.mxu1 }
 0x2f8   :  { %v1616_v42 = vpack.c.bf16 %v1246_v10, %v1245_v24  ;;  %v1151_v30 = vadd.f32 %v1751_v11, %v2569_v29  ;;  %v2728_v11 = vld [vmem:[#allocation8_spill] sm:$0xff] }
 0x2f9   :  { %v1753_v57 = vpop.f32.mrf.mxu1 }
 0x2fa   :  { %1691 = vst [vmem:[%s2690_s7 + $0x20] sm:$0xff] %v1616_v42   ;;  %v1754_v60 = vadd.f32 %v1753_v57, %v1752_v43  ;;  %v1247_v25 = vadd.f32 %v2009_v16, %v1151_v30  ;;  %v2723_v16 = vld [vmem:[#allocation3_spill] sm:$0xff]  ;;  %v2729_v42 = vld [vmem:[#allocation9_spill] sm:$0xff] }
 0x2fb   :  { %v1755_v41 = vpop.f32.mrf.mxu1 }
 0x2fc   :  { %v1154_v46 = vadd.f32 %v1754_v60, %v2569_v29 }
 0x2fd   :  { %v1756_v26 = vpop.f32.mrf.mxu1 }
 0x2fe   :  { %v1248_v13 = vadd.f32 %v2011_v17, %v1154_v46  ;;  %v1757_v14 = vadd.f32 %v1756_v26, %v1755_v41 }
 0x2ff   :  { %v1758_v54 = vpop.f32.mrf.mxu1 }
 0x300   :  { %v1621_v21 = vpack.c.bf16 %v1248_v13, %v1247_v25  ;;  %v1159_v6 = vadd.f32 %v1757_v14, %v2569_v29 }
 0x301   :  { %v1759_v62 = vpop.f32.mrf.mxu1 }
 0x302   :  { %1692 = vst [vmem:[%s2690_s7 + $0x28] sm:$0xff] %v1621_v21   ;;  %v1760_v19 = vadd.f32 %v1759_v62, %v1758_v54  ;;  %v1249_v2 = vadd.f32 %v2722_v39, %v1159_v6  ;;  %v2730_v6 = vld [vmem:[#allocation10_spill] sm:$0xff] }
 0x303   :  { %v1761_v12 = vpop.f32.mrf.mxu1 }
 0x304   :  { %v1162_v31 = vadd.f32 %v1760_v19, %v2569_v29 }
 0x305   :  { %v1762_v51 = vpop.f32.mrf.mxu1 }
 0x306   :  { %v1250_v4 = vadd.f32 %v2723_v16, %v1162_v31  ;;  %v1763_v17 = vadd.f32 %v1762_v51, %v1761_v12  ;;  %v2731_v12 = vld [vmem:[#allocation11_spill] sm:$0xff] }
 0x307   :  { %v1764_v20 = vpop.f32.mrf.mxu1 }
 0x308   :  { %v1626_v61 = vpack.c.bf16 %v1250_v4, %v1249_v2  ;;  %v1167_v56 = vadd.f32 %v1763_v17, %v2569_v29 }
 0x309   :  { %v1765_v35 = vpop.f32.mrf.mxu1 }
 0x30a   :  { %1693 = vst [vmem:[%s2690_s7 + $0x30] sm:$0xff] %v1626_v61   ;;  %v1766_v59 = vadd.f32 %v1765_v35, %v1764_v20  ;;  %v1251_v3 = vadd.f32 %v2724_v45, %v1167_v56  ;;  %v2732_v56 = vld [vmem:[#allocation12_spill] sm:$0xff] }
 0x30b   :  { %v1767_v55 = vpop.f32.mrf.mxu1 }
 0x30c   :  { %v1170_v15 = vadd.f32 %v1766_v59, %v2569_v29 }
 0x30d   :  { %v1768_v48 = vpop.f32.mrf.mxu1 }
 0x30e   :  { %v1252_v63 = vadd.f32 %v2725_v5, %v1170_v15  ;;  %v1769_v44 = vadd.f32 %v1768_v48, %v1767_v55  ;;  %v2733_v55 = vld [vmem:[#allocation13_spill] sm:$0xff] }
 0x30f   :  { %v1770_v9 = vpop.f32.mrf.mxu1 }
 0x310   :  { %v1631_v47 = vpack.c.bf16 %v1252_v63, %v1251_v3  ;;  %v1175_v52 = vadd.f32 %v1769_v44, %v2569_v29 }
 0x311   :  { %v1771_v50 = vpop.f32.mrf.mxu1 }
 0x312   :  { %1694 = vst [vmem:[%s2690_s7 + $0x38] sm:$0xff] %v1631_v47   ;;  %v1772_v27 = vadd.f32 %v1771_v50, %v1770_v9  ;;  %v1253_v0 = vadd.f32 %v2726_v8, %v1175_v52  ;;  %v2734_v52 = vld [vmem:[#allocation14_spill] sm:$0xff] }
 0x313   :  { %v1773_v37 = vpop.f32.mrf.mxu1 }
 0x314   :  { %v1178_v40 = vadd.f32 %v1772_v27, %v2569_v29 }
 0x315   :  { %v1774_v7 = vpop.f32.mrf.mxu1 }
 0x316   :  { %v1254_v32 = vadd.f32 %v2727_v38, %v1178_v40  ;;  %v1775_v28 = vadd.f32 %v1774_v7, %v1773_v37 }
 0x317   :  { %v1776_v22 = vpop.f32.mrf.mxu1 }
 0x318   :  { %v1636_v23 = vpack.c.bf16 %v1254_v32, %v1253_v0  ;;  %v1183_v34 = vadd.f32 %v1775_v28, %v2569_v29 }
 0x319   :  { %v1777_v49 = vpop.f32.mrf.mxu1 }
 0x31a   :  { %1695 = vst [vmem:[%s2690_s7 + $0x40] sm:$0xff] %v1636_v23   ;;  %v1778_v24 = vadd.f32 %v1777_v49, %v1776_v22  ;;  %v1255_v43 = vadd.f32 %v2728_v11, %v1183_v34  ;;  %v2735_v49 = vld [vmem:[#allocation15_spill] sm:$0xff] }
 0x31c   :  { %v1186_v10 = vadd.f32 %v1778_v24, %v2569_v29 }
 0x31e   :  { %v1256_v57 = vadd.f32 %v2729_v42, %v1186_v10 }
 0x320   :  { %v1641_v30 = vpack.c.bf16 %v1256_v57, %v1255_v43 }
 0x322   :  { %1696 = vst [vmem:[%s2690_s7 + $0x48] sm:$0xff] %v1641_v30  }
 0x35e   :  { %v1779_v60 = vpop.f32.mrf.mxu1 }
 0x360   :  { %v1780_v41 = vpop.f32.mrf.mxu1 }
 0x361   :  { %v1781_v46 = vadd.f32 %v1780_v41, %v1779_v60 }
 0x362   :  { %v1782_v26 = vpop.f32.mrf.mxu1 }
 0x363   :  { %v1191_v13 = vadd.f32 %v1781_v46, %v2569_v29 }
 0x364   :  { %v1783_v25 = vpop.f32.mrf.mxu1 }
 0x365   :  { %v1784_v14 = vadd.f32 %v1783_v25, %v1782_v26  ;;  %v1257_v19 = vadd.f32 %v2730_v6, %v1191_v13 }
 0x366   :  { %v1785_v54 = vpop.f32.mrf.mxu1 }
 0x367   :  { %v1194_v21 = vadd.f32 %v1784_v14, %v2569_v29 }
 0x368   :  { %v1786_v62 = vpop.f32.mrf.mxu1 }
 0x369   :  { %v1258_v31 = vadd.f32 %v2731_v12, %v1194_v21  ;;  %v1787_v51 = vadd.f32 %v1786_v62, %v1785_v54 }
 0x36a   :  { %v1788_v39 = vpop.f32.mrf.mxu1 }
 0x36b   :  { %v1646_v2 = vpack.c.bf16 %v1258_v31, %v1257_v19  ;;  %v1199_v4 = vadd.f32 %v1787_v51, %v2569_v29 }
 0x36c   :  { %v1789_v16 = vpop.f32.mrf.mxu1 }
 0x36d   :  { %1697 = vst [vmem:[%s2690_s7 + $0x50] sm:$0xff] %v1646_v2   ;;  %v1790_v17 = vadd.f32 %v1789_v16, %v1788_v39  ;;  %v1259_v59 = vadd.f32 %v2732_v56, %v1199_v4 }
 0x36e   :  { %v1791_v20 = vpop.f32.mrf.mxu1 }
 0x36f   :  { %v1202_v61 = vadd.f32 %v1790_v17, %v2569_v29 }
 0x370   :  { %v1792_v35 = vpop.f32.mrf.mxu1 }
 0x371   :  { %v1260_v15 = vadd.f32 %v2733_v55, %v1202_v61  ;;  %v1793_v48 = vadd.f32 %v1792_v35, %v1791_v20 }
 0x372   :  { %v1794_v45 = vpop.f32.mrf.mxu1 }
 0x373   :  { %v1651_v3 = vpack.c.bf16 %v1260_v15, %v1259_v59  ;;  %v1207_v63 = vadd.f32 %v1793_v48, %v2569_v29 }
 0x374   :  { %v1795_v5 = vpop.f32.mrf.mxu1 }
 0x375   :  { %1698 = vst [vmem:[%s2690_s7 + $0x58] sm:$0xff] %v1651_v3   ;;  %v1796_v44 = vadd.f32 %v1795_v5, %v1794_v45  ;;  %v1261_v27 = vadd.f32 %v2734_v52, %v1207_v63 }
 0x376   :  { %v1797_v9 = vpop.f32.mrf.mxu1 }
 0x377   :  { %v1210_v47 = vadd.f32 %v1796_v44, %v2569_v29 }
 0x378   :  { %v1798_v50 = vpop.f32.mrf.mxu1 }
 0x379   :  { %v1262_v37 = vadd.f32 %v2135_v33, %v1210_v47  ;;  %v1799_v40 = vadd.f32 %v1798_v50, %v1797_v9 }
 0x37a   :  { %v1800_v7 = vpop.f32.mrf.mxu1 }
 0x37b   :  { %v1656_v8 = vpack.c.bf16 %v1262_v37, %v1261_v27  ;;  %v1215_v38 = vadd.f32 %v1799_v40, %v2569_v29 }
 0x37c   :  { %v1801_v0 = vpop.f32.mrf.mxu1 }
 0x37d   :  { %1699 = vst [vmem:[%s2690_s7 + $0x60] sm:$0xff] %v1656_v8   ;;  %v1802_v32 = vadd.f32 %v1801_v0, %v1800_v7  ;;  %v1263_v34 = vadd.f32 %v2735_v49, %v1215_v38 }
 0x37e   :  { %v1803_v28 = vpop.f32.mrf.mxu1 }
 0x37f   :  { %v1218_v22 = vadd.f32 %v1802_v32, %v2569_v29 }
 0x380   :  { %v1804_v23 = vpop.f32.mrf.mxu1 }
 0x381   :  { %v1264_v24 = vadd.f32 %v2166_v58, %v1218_v22  ;;  %v1805_v33 = vadd.f32 %v1804_v23, %v1803_v28 }
 0x382   :  { %v1806_v10 = vpop.f32.mrf.mxu1 }
 0x383   :  { %v1661_v11 = vpack.c.bf16 %v1264_v24, %v1263_v34  ;;  %v1223_v42 = vadd.f32 %v1805_v33, %v2569_v29 }
 0x384   :  { %v1807_v43 = vpop.f32.mrf.mxu1 }
 0x385   :  { %1700 = vst [vmem:[%s2690_s7 + $0x68] sm:$0xff] %v1661_v11   ;;  %v1808_v57 = vadd.f32 %v1807_v43, %v1806_v10  ;;  %v1265_v46 = vadd.f32 %v2185_v18, %v1223_v42 }
 0x386   :  { %v1809_v30 = vpop.f32.mrf.mxu1 }
 0x387   :  { %v1226_v60 = vadd.f32 %v1808_v57, %v2569_v29 }
 0x388   :  { %v1810_v41 = vpop.f32.mrf.mxu1 }
 0x389   :  { %v1266_v26 = vadd.f32 %v2197_v36, %v1226_v60  ;;  %v1811_v58 = vadd.f32 %v1810_v41, %v1809_v30 }
 0x38a   :  { %v1812_v25 = vpop.f32.mrf.mxu1 }
 0x38b   :  { %v1666_v13 = vpack.c.bf16 %v1266_v26, %v1265_v46  ;;  %v1231_v54 = vadd.f32 %v1811_v58, %v2569_v29 }
 0x38c   :  { %v1813_v14 = vpop.f32.mrf.mxu1 }
 0x38d   :  { %1701 = vst [vmem:[%s2690_s7 + $0x70] sm:$0xff] %v1666_v13   ;;  %v1814_v21 = vadd.f32 %v1813_v14, %v1812_v25  ;;  %v1267_v6 = vadd.f32 %v2211_v53, %v1231_v54 }
 0x38f   :  { %v1234_v62 = vadd.f32 %v1814_v21, %v2569_v29 }
 0x391   :  { %v1268_v19 = vadd.f32 %v2220_v1, %v1234_v62 }
 0x393   :  { %v1671_v18 = vpack.c.bf16 %v1268_v19, %v1267_v6 }
 0x395   :  { %1702 = vst [vmem:[%s2690_s7 + $0x78] sm:$0xff] %v1671_v18  }

// kernel: rosettafold_forward.33
= control target key start
LH: loop header
LB: loop body
LE: loop exit
PB: predicated region body
PF: predicated region fallthrough
CT: control target
= control target key end

     0   :  { %v610_v1 = vmov 0   ;;  %v66_v33 = vlaneseq  ;;  %s1006_s1 = inlined_call_operand.vmem [shape: bf16[128,256], index: 1, kind: input, shape index: {}]   ;;  %s1007_s0 = inlined_call_operand.vmem [shape: bf16[256,128], index: 0, kind: input, shape index: {}]   ;;  %s1008_s2 = inlined_call_operand.vmem [shape: bf16[1,256], index: 2, kind: input, shape index: {}]   ;;  %s1009_s3 = inlined_call_operand.vmem [shape: f32[256,256], index: 3, kind: output, shape index: {}]  }
   0x1   :  { %v570_v0 = vld [vmem:[%s1006_s1 + $0x74] ss:$8 sps:$4 sm:$0xff]   ;;  %292 = vmatprep.mubr.bf16.mxu0 %v610_v1  ;;  %372 = vmatprep.mubr.bf16.mxu1 %v610_v1  ;;  %v572_v2 = vld [vmem:[%s1006_s1 + $0x70] ss:$8 sps:$4 sm:$0xff]   ;;  %v573_v3 = vld [vmem:[%s1006_s1 + $0x64] ss:$8 sps:$4 sm:$0xff]  }
   0x2   :  { %260 = vmatprep.subr.bf16.mxu0 %v570_v0  ;;  %553 = vmatprep.subr.bf16.mxu1 %v570_v0  ;;  %v575_v4 = vld [vmem:[%s1006_s1 + $0x60] ss:$8 sps:$4 sm:$0xff]   ;;  %v576_v5 = vld [vmem:[%s1006_s1 + $0x54] ss:$8 sps:$4 sm:$0xff]   ;;  %v578_v6 = vld [vmem:[%s1006_s1 + $0x50] ss:$8 sps:$4 sm:$0xff]  }
   0x3   :  { %261 = vmatpush1.bf16.msra.mxu0 %v572_v2  ;;  %561 = vmatpush1.bf16.msra.mxu1 %v572_v2  ;;  %v579_v7 = vld [vmem:[%s1006_s1 + $0x44] ss:$8 sps:$4 sm:$0xff]   ;;  %v581_v8 = vld [vmem:[%s1006_s1 + $0x40] ss:$8 sps:$4 sm:$0xff]   ;;  %v582_v9 = vld [vmem:[%s1006_s1 + $0x34] ss:$8 sps:$4 sm:$0xff]  }
   0x4   :  { %262 = vmatprep.subr.bf16.mxu0 %v573_v3  ;;  %554 = vmatprep.subr.bf16.mxu1 %v573_v3  ;;  %v584_v10 = vld [vmem:[%s1006_s1 + $0x30] ss:$8 sps:$4 sm:$0xff]   ;;  %v585_v11 = vld [vmem:[%s1006_s1 + $0x24] ss:$8 sps:$4 sm:$0xff]   ;;  %v587_v12 = vld [vmem:[%s1006_s1 + $0x20] ss:$8 sps:$4 sm:$0xff]  }
   0x5   :  { %v588_v13 = vld [vmem:[%s1006_s1 + $0x14] ss:$8 sps:$4 sm:$0xff]   ;;  %v590_v14 = vld [vmem:[%s1006_s1 + $0x10] ss:$8 sps:$4 sm:$0xff]   ;;  %v591_v15 = vld [vmem:[%s1006_s1 + $0x4] ss:$8 sps:$4 sm:$0xff]  }
   0x6   :  { %v593_v16 = vld [vmem:[%s1006_s1] ss:$8 sps:$4 sm:$0xff]   ;;  %v598_v21 = vld [vmem:[%s1007_s0 + $0x10] sm:$0xff]   ;;  %v600_v23 = vld [vmem:[%s1007_s0 + $0x18] sm:$0xff]   ;;  %v67_v34 = vshrl.u32 %v66_v33, 7 }
   0x7   :  { %263 = vmatpush1.bf16.msra.mxu0 %v575_v4  ;;  %562 = vmatpush1.bf16.msra.mxu1 %v575_v4  ;;  %v594_v17 = vld [vmem:[%s1007_s0] sm:$0xff]   ;;  %v596_v19 = vld [vmem:[%s1007_s0 + $0x8] sm:$0xff]   ;;  %v599_v22 = vld [vmem:[%s1007_s0 + $0x50] sm:$0xff]  }
   0x8   :  { %264 = vmatprep.subr.bf16.mxu0 %v576_v5  ;;  %555 = vmatprep.subr.bf16.mxu1 %v576_v5  ;;  %v595_v18 = vld [vmem:[%s1007_s0 + $0x40] sm:$0xff]   ;;  %v597_v20 = vld [vmem:[%s1007_s0 + $0x48] sm:$0xff]   ;;  %v601_v24 = vld [vmem:[%s1007_s0 + $0x58] sm:$0xff]   ;;  %v68_v37 = vsub.s32 0, %v67_v34  ;;  %v72_v38 = vsub.s32 2, %v67_v34 }
   0x9   :  { %v602_v25 = vld [vmem:[%s1007_s0 + $0x20] sm:$0xff]   ;;  %v604_v27 = vld [vmem:[%s1007_s0 + $0x28] sm:$0xff]   ;;  %v606_v29 = vld [vmem:[%s1007_s0 + $0x30] sm:$0xff]  }
   0xa   :  { %v603_v26 = vld [vmem:[%s1007_s0 + $0x60] sm:$0xff]   ;;  %v605_v28 = vld [vmem:[%s1007_s0 + $0x68] sm:$0xff]   ;;  %v607_v30 = vld [vmem:[%s1007_s0 + $0x70] sm:$0xff]  }
   0xb   :  { %265 = vmatpush1.bf16.msra.mxu0 %v578_v6  ;;  %563 = vmatpush1.bf16.msra.mxu1 %v578_v6  ;;  %v608_v31 = vld [vmem:[%s1007_s0 + $0x38] sm:$0xff]   ;;  %v63_v35 = vld [vmem:[%s1008_s2] sm:$0x3] }
   0xc   :  { %266 = vmatprep.subr.bf16.mxu0 %v579_v7  ;;  %556 = vmatprep.subr.bf16.mxu1 %v579_v7  ;;  %v609_v32 = vld [vmem:[%s1007_s0 + $0x78] sm:$0xff]   ;;  %v64_v36 = vunpack.c.l.bf16 %v63_v35 }
   0xe   :  { %v69_v39 = vrot.slane %v64_v36, %v68_v37  ;;  %v73_v40 = vrot.slane %v64_v36, %v72_v38 }
   0xf   :  { %267 = vmatpush1.bf16.msra.mxu0 %v581_v8  ;;  %564 = vmatpush1.bf16.msra.mxu1 %v581_v8 }
  0x10   :  { %268 = vmatprep.subr.bf16.mxu0 %v582_v9  ;;  %557 = vmatprep.subr.bf16.mxu1 %v582_v9  ;;  %v746_v41 = vrot.slane %v69_v39, %v68_v37  ;;  %v748_v42 = vrot.slane %v73_v40, %v68_v37 }
  0x13   :  { %269 = vmatpush1.bf16.msra.mxu0 %v584_v10  ;;  %565 = vmatpush1.bf16.msra.mxu1 %v584_v10 }
  0x14   :  { %270 = vmatprep.subr.bf16.mxu0 %v585_v11  ;;  %558 = vmatprep.subr.bf16.mxu1 %v585_v11 }
  0x17   :  { %271 = vmatpush1.bf16.msra.mxu0 %v587_v12  ;;  %566 = vmatpush1.bf16.msra.mxu1 %v587_v12 }
  0x18   :  { %272 = vmatprep.subr.bf16.mxu0 %v588_v13  ;;  %559 = vmatprep.subr.bf16.mxu1 %v588_v13 }
  0x1b   :  { %273 = vmatpush1.bf16.msra.mxu0 %v590_v14  ;;  %567 = vmatpush1.bf16.msra.mxu1 %v590_v14 }
  0x1c   :  { %274 = vmatprep.subr.bf16.mxu0 %v591_v15  ;;  %560 = vmatprep.subr.bf16.mxu1 %v591_v15 }
  0x1f   :  { %275 = vmatpush1.bf16.msra.mxu0 %v593_v16  ;;  %568 = vmatpush1.bf16.msra.mxu1 %v593_v16 }
  0x22   :  { %293 = vmatmul.mubr.bf16.vlgmr.msra.gmra.mxu0 %v594_v17  ;;  %373 = vmatmul.mubr.bf16.vlgmr.msra.gmra.mxu1 %v595_v18 }
  0x23   :  { %302 = vmatprep.mubr.bf16.mxu0 %v610_v1  ;;  %382 = vmatprep.mubr.bf16.mxu1 %v610_v1 }
  0x2a   :  { %303 = vmatmul.mubr.bf16.gmra.mxu0 %v596_v19  ;;  %383 = vmatmul.mubr.bf16.gmra.mxu1 %v597_v20 }
  0x2b   :  { %312 = vmatprep.mubr.bf16.mxu0 %v610_v1  ;;  %392 = vmatprep.mubr.bf16.mxu1 %v610_v1 }
  0x32   :  { %313 = vmatmul.mubr.bf16.gmra.mxu0 %v598_v21  ;;  %393 = vmatmul.mubr.bf16.gmra.mxu1 %v599_v22 }
  0x33   :  { %322 = vmatprep.mubr.bf16.mxu0 %v610_v1  ;;  %402 = vmatprep.mubr.bf16.mxu1 %v610_v1 }
  0x3a   :  { %323 = vmatmul.mubr.bf16.gmra.mxu0 %v600_v23  ;;  %403 = vmatmul.mubr.bf16.gmra.mxu1 %v601_v24 }
  0x3b   :  { %332 = vmatprep.mubr.bf16.mxu0 %v610_v1  ;;  %412 = vmatprep.mubr.bf16.mxu1 %v610_v1 }
  0x42   :  { %333 = vmatmul.mubr.bf16.gmra.mxu0 %v602_v25  ;;  %413 = vmatmul.mubr.bf16.gmra.mxu1 %v603_v26 }
  0x43   :  { %342 = vmatprep.mubr.bf16.mxu0 %v610_v1  ;;  %422 = vmatprep.mubr.bf16.mxu1 %v610_v1 }
  0x4a   :  { %343 = vmatmul.mubr.bf16.gmra.mxu0 %v604_v27  ;;  %423 = vmatmul.mubr.bf16.gmra.mxu1 %v605_v28 }
  0x4b   :  { %352 = vmatprep.mubr.bf16.mxu0 %v610_v1  ;;  %432 = vmatprep.mubr.bf16.mxu1 %v610_v1 }
  0x52   :  { %353 = vmatmul.mubr.bf16.gmra.mxu0 %v606_v29  ;;  %433 = vmatmul.mubr.bf16.gmra.mxu1 %v607_v30 }
  0x53   :  { %362 = vmatprep.mubr.bf16.mxu0 %v610_v1  ;;  %442 = vmatprep.mubr.bf16.mxu1 %v610_v1 }
  0x5a   :  { %363 = vmatmul.mubr.bf16.gmra.mxu0 %v608_v31  ;;  %443 = vmatmul.mubr.bf16.gmra.mxu1 %v609_v32 }
  0xe2   :  { %v294_v43 = vpop.f32.mrf.mxu0  ;;  %v374_v44 = vpop.f32.mrf.mxu1 }
  0xe3   :  { %v295_v45 = vadd.f32 %v294_v43, %v746_v41  ;;  %v375_v46 = vadd.f32 %v374_v44, %v746_v41 }
  0xe4   :  { %v296_v47 = vpop.f32.mrf.mxu0  ;;  %v376_v48 = vpop.f32.mrf.mxu1 }
  0xe5   :  { %453 = vst [vmem:[%s1009_s3] sm:$0xff] %v295_v45  ;;  %485 = vst [vmem:[%s1009_s3 + $0x100] sm:$0xff] %v375_v46  ;;  %v297_v49 = vadd.f32 %v296_v47, %v748_v42  ;;  %v377_v50 = vadd.f32 %v376_v48, %v748_v42 }
  0xe6   :  { %v298_v51 = vpop.f32.mrf.mxu0  ;;  %v378_v52 = vpop.f32.mrf.mxu1 }
  0xe7   :  { %454 = vst [vmem:[%s1009_s3 + $0x8] sm:$0xff] %v297_v49  ;;  %486 = vst [vmem:[%s1009_s3 + $0x108] sm:$0xff] %v377_v50  ;;  %v299_v53 = vadd.f32 %v298_v51, %v746_v41  ;;  %v379_v54 = vadd.f32 %v378_v52, %v746_v41 }
  0xe8   :  { %v300_v55 = vpop.f32.mrf.mxu0  ;;  %v380_v56 = vpop.f32.mrf.mxu1 }
  0xe9   :  { %455 = vst [vmem:[%s1009_s3 + $0x10] sm:$0xff] %v299_v53  ;;  %487 = vst [vmem:[%s1009_s3 + $0x110] sm:$0xff] %v379_v54  ;;  %v301_v57 = vadd.f32 %v300_v55, %v748_v42  ;;  %v381_v58 = vadd.f32 %v380_v56, %v748_v42 }
  0xea   :  { %v304_v59 = vpop.f32.mrf.mxu0  ;;  %v384_v60 = vpop.f32.mrf.mxu1 }
  0xeb   :  { %456 = vst [vmem:[%s1009_s3 + $0x18] sm:$0xff] %v301_v57  ;;  %488 = vst [vmem:[%s1009_s3 + $0x118] sm:$0xff] %v381_v58  ;;  %v305_v61 = vadd.f32 %v304_v59, %v746_v41  ;;  %v385_v62 = vadd.f32 %v384_v60, %v746_v41 }
  0xec   :  { %v306_v63 = vpop.f32.mrf.mxu0  ;;  %v386_v0 = vpop.f32.mrf.mxu1 }
  0xed   :  { %457 = vst [vmem:[%s1009_s3 + $0x20] sm:$0xff] %v305_v61  ;;  %489 = vst [vmem:[%s1009_s3 + $0x120] sm:$0xff] %v385_v62  ;;  %v307_v1 = vadd.f32 %v306_v63, %v748_v42  ;;  %v387_v2 = vadd.f32 %v386_v0, %v748_v42 }
  0xee   :  { %v308_v3 = vpop.f32.mrf.mxu0  ;;  %v388_v4 = vpop.f32.mrf.mxu1 }
  0xef   :  { %458 = vst [vmem:[%s1009_s3 + $0x28] sm:$0xff] %v307_v1  ;;  %490 = vst [vmem:[%s1009_s3 + $0x128] sm:$0xff] %v387_v2  ;;  %v309_v5 = vadd.f32 %v308_v3, %v746_v41  ;;  %v389_v6 = vadd.f32 %v388_v4, %v746_v41 }
  0xf0   :  { %v310_v7 = vpop.f32.mrf.mxu0  ;;  %v390_v8 = vpop.f32.mrf.mxu1 }
  0xf1   :  { %459 = vst [vmem:[%s1009_s3 + $0x30] sm:$0xff] %v309_v5  ;;  %491 = vst [vmem:[%s1009_s3 + $0x130] sm:$0xff] %v389_v6  ;;  %v311_v9 = vadd.f32 %v310_v7, %v748_v42  ;;  %v391_v10 = vadd.f32 %v390_v8, %v748_v42 }
  0xf2   :  { %v314_v11 = vpop.f32.mrf.mxu0  ;;  %v394_v12 = vpop.f32.mrf.mxu1 }
  0xf3   :  { %460 = vst [vmem:[%s1009_s3 + $0x38] sm:$0xff] %v311_v9  ;;  %492 = vst [vmem:[%s1009_s3 + $0x138] sm:$0xff] %v391_v10  ;;  %v315_v13 = vadd.f32 %v314_v11, %v746_v41  ;;  %v395_v14 = vadd.f32 %v394_v12, %v746_v41 }
  0xf4   :  { %v316_v15 = vpop.f32.mrf.mxu0  ;;  %v396_v16 = vpop.f32.mrf.mxu1 }
  0xf5   :  { %461 = vst [vmem:[%s1009_s3 + $0x40] sm:$0xff] %v315_v13  ;;  %493 = vst [vmem:[%s1009_s3 + $0x140] sm:$0xff] %v395_v14  ;;  %v317_v17 = vadd.f32 %v316_v15, %v748_v42  ;;  %v397_v18 = vadd.f32 %v396_v16, %v748_v42 }
  0xf6   :  { %v318_v19 = vpop.f32.mrf.mxu0  ;;  %v398_v20 = vpop.f32.mrf.mxu1 }
  0xf7   :  { %462 = vst [vmem:[%s1009_s3 + $0x48] sm:$0xff] %v317_v17  ;;  %494 = vst [vmem:[%s1009_s3 + $0x148] sm:$0xff] %v397_v18  ;;  %v319_v21 = vadd.f32 %v318_v19, %v746_v41  ;;  %v399_v22 = vadd.f32 %v398_v20, %v746_v41 }
  0xf8   :  { %v320_v23 = vpop.f32.mrf.mxu0  ;;  %v400_v24 = vpop.f32.mrf.mxu1 }
  0xf9   :  { %463 = vst [vmem:[%s1009_s3 + $0x50] sm:$0xff] %v319_v21  ;;  %495 = vst [vmem:[%s1009_s3 + $0x150] sm:$0xff] %v399_v22  ;;  %v321_v25 = vadd.f32 %v320_v23, %v748_v42  ;;  %v401_v26 = vadd.f32 %v400_v24, %v748_v42 }
  0xfa   :  { %v324_v27 = vpop.f32.mrf.mxu0  ;;  %v404_v28 = vpop.f32.mrf.mxu1 }
  0xfb   :  { %464 = vst [vmem:[%s1009_s3 + $0x58] sm:$0xff] %v321_v25  ;;  %496 = vst [vmem:[%s1009_s3 + $0x158] sm:$0xff] %v401_v26  ;;  %v325_v29 = vadd.f32 %v324_v27, %v746_v41  ;;  %v405_v30 = vadd.f32 %v404_v28, %v746_v41 }
  0xfc   :  { %v326_v31 = vpop.f32.mrf.mxu0  ;;  %v406_v32 = vpop.f32.mrf.mxu1 }
  0xfd   :  { %465 = vst [vmem:[%s1009_s3 + $0x60] sm:$0xff] %v325_v29  ;;  %497 = vst [vmem:[%s1009_s3 + $0x160] sm:$0xff] %v405_v30  ;;  %v327_v33 = vadd.f32 %v326_v31, %v748_v42  ;;  %v407_v34 = vadd.f32 %v406_v32, %v748_v42 }
  0xfe   :  { %v328_v35 = vpop.f32.mrf.mxu0  ;;  %v408_v36 = vpop.f32.mrf.mxu1 }
  0xff   :  { %466 = vst [vmem:[%s1009_s3 + $0x68] sm:$0xff] %v327_v33  ;;  %498 = vst [vmem:[%s1009_s3 + $0x168] sm:$0xff] %v407_v34  ;;  %v329_v37 = vadd.f32 %v328_v35, %v746_v41  ;;  %v409_v38 = vadd.f32 %v408_v36, %v746_v41 }
 0x100   :  { %v330_v39 = vpop.f32.mrf.mxu0  ;;  %v410_v40 = vpop.f32.mrf.mxu1 }
 0x101   :  { %467 = vst [vmem:[%s1009_s3 + $0x70] sm:$0xff] %v329_v37  ;;  %499 = vst [vmem:[%s1009_s3 + $0x170] sm:$0xff] %v409_v38  ;;  %v331_v43 = vadd.f32 %v330_v39, %v748_v42  ;;  %v411_v44 = vadd.f32 %v410_v40, %v748_v42 }
 0x102   :  { %v334_v45 = vpop.f32.mrf.mxu0  ;;  %v414_v46 = vpop.f32.mrf.mxu1 }
 0x103   :  { %468 = vst [vmem:[%s1009_s3 + $0x78] sm:$0xff] %v331_v43  ;;  %500 = vst [vmem:[%s1009_s3 + $0x178] sm:$0xff] %v411_v44  ;;  %v335_v47 = vadd.f32 %v334_v45, %v746_v41  ;;  %v415_v48 = vadd.f32 %v414_v46, %v746_v41 }
 0x104   :  { %v336_v49 = vpop.f32.mrf.mxu0  ;;  %v416_v50 = vpop.f32.mrf.mxu1 }
 0x105   :  { %469 = vst [vmem:[%s1009_s3 + $0x80] sm:$0xff] %v335_v47  ;;  %501 = vst [vmem:[%s1009_s3 + $0x180] sm:$0xff] %v415_v48  ;;  %v337_v51 = vadd.f32 %v336_v49, %v748_v42  ;;  %v417_v52 = vadd.f32 %v416_v50, %v748_v42 }
 0x106   :  { %v338_v53 = vpop.f32.mrf.mxu0  ;;  %v418_v54 = vpop.f32.mrf.mxu1 }
 0x107   :  { %470 = vst [vmem:[%s1009_s3 + $0x88] sm:$0xff] %v337_v51  ;;  %502 = vst [vmem:[%s1009_s3 + $0x188] sm:$0xff] %v417_v52  ;;  %v339_v55 = vadd.f32 %v338_v53, %v746_v41  ;;  %v419_v56 = vadd.f32 %v418_v54, %v746_v41 }
 0x108   :  { %v340_v57 = vpop.f32.mrf.mxu0  ;;  %v420_v58 = vpop.f32.mrf.mxu1 }
 0x109   :  { %471 = vst [vmem:[%s1009_s3 + $0x90] sm:$0xff] %v339_v55  ;;  %503 = vst [vmem:[%s1009_s3 + $0x190] sm:$0xff] %v419_v56  ;;  %v341_v59 = vadd.f32 %v340_v57, %v748_v42  ;;  %v421_v60 = vadd.f32 %v420_v58, %v748_v42 }
 0x10a   :  { %v344_v61 = vpop.f32.mrf.mxu0  ;;  %v424_v62 = vpop.f32.mrf.mxu1 }
 0x10b   :  { %472 = vst [vmem:[%s1009_s3 + $0x98] sm:$0xff] %v341_v59  ;;  %504 = vst [vmem:[%s1009_s3 + $0x198] sm:$0xff] %v421_v60  ;;  %v345_v63 = vadd.f32 %v344_v61, %v746_v41  ;;  %v425_v0 = vadd.f32 %v424_v62, %v746_v41 }
 0x10c   :  { %v346_v1 = vpop.f32.mrf.mxu0  ;;  %v426_v2 = vpop.f32.mrf.mxu1 }
 0x10d   :  { %473 = vst [vmem:[%s1009_s3 + $0xa0] sm:$0xff] %v345_v63  ;;  %505 = vst [vmem:[%s1009_s3 + $0x1a0] sm:$0xff] %v425_v0  ;;  %v347_v3 = vadd.f32 %v346_v1, %v748_v42  ;;  %v427_v4 = vadd.f32 %v426_v2, %v748_v42 }
 0x10e   :  { %v348_v5 = vpop.f32.mrf.mxu0  ;;  %v428_v6 = vpop.f32.mrf.mxu1 }
 0x10f   :  { %474 = vst [vmem:[%s1009_s3 + $0xa8] sm:$0xff] %v347_v3  ;;  %506 = vst [vmem:[%s1009_s3 + $0x1a8] sm:$0xff] %v427_v4  ;;  %v349_v7 = vadd.f32 %v348_v5, %v746_v41  ;;  %v429_v8 = vadd.f32 %v428_v6, %v746_v41 }
 0x110   :  { %v350_v9 = vpop.f32.mrf.mxu0  ;;  %v430_v10 = vpop.f32.mrf.mxu1 }
 0x111   :  { %475 = vst [vmem:[%s1009_s3 + $0xb0] sm:$0xff] %v349_v7  ;;  %507 = vst [vmem:[%s1009_s3 + $0x1b0] sm:$0xff] %v429_v8  ;;  %v351_v11 = vadd.f32 %v350_v9, %v748_v42  ;;  %v431_v12 = vadd.f32 %v430_v10, %v748_v42 }
 0x112   :  { %v354_v13 = vpop.f32.mrf.mxu0  ;;  %v434_v14 = vpop.f32.mrf.mxu1 }
 0x113   :  { %476 = vst [vmem:[%s1009_s3 + $0xb8] sm:$0xff] %v351_v11  ;;  %508 = vst [vmem:[%s1009_s3 + $0x1b8] sm:$0xff] %v431_v12  ;;  %v355_v15 = vadd.f32 %v354_v13, %v746_v41  ;;  %v435_v16 = vadd.f32 %v434_v14, %v746_v41 }
 0x114   :  { %v356_v17 = vpop.f32.mrf.mxu0  ;;  %v436_v18 = vpop.f32.mrf.mxu1 }
 0x115   :  { %477 = vst [vmem:[%s1009_s3 + $0xc0] sm:$0xff] %v355_v15  ;;  %509 = vst [vmem:[%s1009_s3 + $0x1c0] sm:$0xff] %v435_v16  ;;  %v357_v19 = vadd.f32 %v356_v17, %v748_v42  ;;  %v437_v20 = vadd.f32 %v436_v18, %v748_v42 }
 0x116   :  { %v358_v21 = vpop.f32.mrf.mxu0  ;;  %v438_v22 = vpop.f32.mrf.mxu1 }
 0x117   :  { %478 = vst [vmem:[%s1009_s3 + $0xc8] sm:$0xff] %v357_v19  ;;  %510 = vst [vmem:[%s1009_s3 + $0x1c8] sm:$0xff] %v437_v20  ;;  %v359_v23 = vadd.f32 %v358_v21, %v746_v41  ;;  %v439_v24 = vadd.f32 %v438_v22, %v746_v41 }
 0x118   :  { %v360_v25 = vpop.f32.mrf.mxu0  ;;  %v440_v26 = vpop.f32.mrf.mxu1 }
 0x119   :  { %479 = vst [vmem:[%s1009_s3 + $0xd0] sm:$0xff] %v359_v23  ;;  %511 = vst [vmem:[%s1009_s3 + $0x1d0] sm:$0xff] %v439_v24  ;;  %v361_v27 = vadd.f32 %v360_v25, %v748_v42  ;;  %v441_v28 = vadd.f32 %v440_v26, %v748_v42 }
 0x11a   :  { %v364_v29 = vpop.f32.mrf.mxu0  ;;  %v444_v30 = vpop.f32.mrf.mxu1 }
 0x11b   :  { %480 = vst [vmem:[%s1009_s3 + $0xd8] sm:$0xff] %v361_v27  ;;  %512 = vst [vmem:[%s1009_s3 + $0x1d8] sm:$0xff] %v441_v28  ;;  %v365_v31 = vadd.f32 %v364_v29, %v746_v41  ;;  %v445_v32 = vadd.f32 %v444_v30, %v746_v41 }
 0x11c   :  { %v366_v33 = vpop.f32.mrf.mxu0  ;;  %v446_v34 = vpop.f32.mrf.mxu1 }
 0x11d   :  { %481 = vst [vmem:[%s1009_s3 + $0xe0] sm:$0xff] %v365_v31  ;;  %513 = vst [vmem:[%s1009_s3 + $0x1e0] sm:$0xff] %v445_v32  ;;  %v367_v35 = vadd.f32 %v366_v33, %v748_v42  ;;  %v447_v36 = vadd.f32 %v446_v34, %v748_v42 }
 0x11e   :  { %v368_v37 = vpop.f32.mrf.mxu0  ;;  %v448_v38 = vpop.f32.mrf.mxu1 }
 0x11f   :  { %482 = vst [vmem:[%s1009_s3 + $0xe8] sm:$0xff] %v367_v35  ;;  %514 = vst [vmem:[%s1009_s3 + $0x1e8] sm:$0xff] %v447_v36  ;;  %v369_v39 = vadd.f32 %v368_v37, %v746_v41  ;;  %v449_v40 = vadd.f32 %v448_v38, %v746_v41 }
 0x120   :  { %v370_v43 = vpop.f32.mrf.mxu0  ;;  %v450_v44 = vpop.f32.mrf.mxu1 }
 0x121   :  { %483 = vst [vmem:[%s1009_s3 + $0xf0] sm:$0xff] %v369_v39  ;;  %515 = vst [vmem:[%s1009_s3 + $0x1f0] sm:$0xff] %v449_v40  ;;  %v371_v45 = vadd.f32 %v370_v43, %v748_v42  ;;  %v451_v46 = vadd.f32 %v450_v44, %v748_v42 }
 0x123   :  { %484 = vst [vmem:[%s1009_s3 + $0xf8] sm:$0xff] %v371_v45  ;;  %516 = vst [vmem:[%s1009_s3 + $0x1f8] sm:$0xff] %v451_v46 }

// kernel: rosettafold_forward.24
= control target key start
LH: loop header
LB: loop body
LE: loop exit
PB: predicated region body
PF: predicated region fallthrough
CT: control target
= control target key end

     0   :  { %s2836_s13 = smov 0   ;;  %s2838_s14 = smov 0   ;;  %s3242_s0 = inlined_call_operand.vmem [shape: bf16[16,16,128], index: 0, kind: input, shape index: {}, may-alias: {0,1}]   ;;  %s3243_s1 = inlined_call_operand.vmem [shape: bf16[16,16,128], index: 1, kind: input, shape index: {}, may-alias: {0,1}]   ;;  %s3244_s2 = inlined_call_operand.vmem [shape: bf16[1,128], index: 2, kind: input, shape index: {}]   ;;  %s3245_s3 = inlined_call_operand.vmem [shape: bf16[1,128], index: 3, kind: input, shape index: {}]   ;;  %s3246_s4 = inlined_call_operand.vmem [shape: bf16[128,128], index: 4, kind: input, shape index: {}]   ;;  %s3247_s5 = inlined_call_operand.vmem [shape: bf16[1,128], index: 5, kind: input, shape index: {}]   ;;  %s3248_s6 = inlined_call_operand.vmem [shape: bf16[128,256], index: 6, kind: input, shape index: {}]   ;;  %s3249_s7 = inlined_call_operand.vmem [shape: bf16[1,256], index: 7, kind: input, shape index: {}]   ;;  %s3250_s8 = inlined_call_operand.vmem [shape: bf16[128,128], index: 8, kind: input, shape index: {}]   ;;  %s3251_s9 = inlined_call_operand.vmem [shape: bf16[1,128], index: 9, kind: input, shape index: {}]   ;;  %s3252_s10 = inlined_call_operand.vmem [shape: bf16[16,16,128], index: 10, kind: output, shape index: {}]  }
   0x1   :  { %s2840_s15 = smov 0  }
   0x2 LB: > { %s32_s16 = sadd.s32 1, %s2765_s14  ;;  %p2295_p0 = scmp.ge.s32.totalorder %s2769_s15, 1  ;;  %s2769_s15 = sphi %s2840_s15, %s20_s15   ;;  %s2765_s14 = sphi %s2838_s14, %s3254_s14   ;;  %s2761_s13 = sphi %s2836_s13, %s3253_s13  }
   0x3   : > { %p34_p1 = scmp.ge.s32.totalorder %s32_s16, 16  ;;  %p343_p2 = scmp.lt.s32.totalorder %s2769_s15, 17 }
   0x5   : > { %s3256_s16 = smov (%p34_p1, %s32_s16), 0  ;;  %p344_p3 = pnand %p2295_p0, %p343_p2 }
   0x6   : > { %p394_p4 = scmp.lt.s32.totalorder (!%p344_p3), %s2761_s13, 15  ;;  %s2774_s12 = smov (!%p344_p3), 112  }
   0x7   : > { %347 = sbr.rel (%p344_p3) target bundleno = 5084 (0x13dc), region = 60  ;;  %s2775_s19 = smov (!%p344_p3), 96  }
   0x8   : > { %s2776_s22 = smov (!%p344_p3), 80   ;;  %s2777_s27 = smov (!%p344_p3), 64  }
   0x9   : > { %s2778_s30 = smov (!%p344_p3), 48  }
   0xc   : > { %s3258_s13 = smov (!%p394_p4, %s2761_s13), 15  ;;  %v2635_v6 = vld [vmem:[%s3248_s6 + $0x74] ss:$8 sps:$4 sm:$0xff]   ;;  %v2637_v7 = vld [vmem:[%s3248_s6 + $0x70] ss:$8 sps:$4 sm:$0xff]   ;;  %v2771_v27 = vmov 0.0   ;;  %v455_v57 = vlaneseq }
   0xd   : > { %s2854_s17 = sshll.u32 %s3258_s13, 3  ;;  %724 = vmatprep.subr.bf16.mxu1 %v2635_v6  ;;  %v2638_v24 = vld [vmem:[%s3248_s6 + $0x64] ss:$8 sps:$4 sm:$0xff]   ;;  %v2640_v25 = vld [vmem:[%s3246_s4 + $0x38] sm:$0xff]   ;;  %v2641_v26 = vld [vmem:[%s3248_s6 + $0x60] ss:$8 sps:$4 sm:$0xff]   ;;  %2437 = vmatprep.subr.bf16.mxu0 %v2771_v27 }
   0xe   : > { %s398_s20 = scalar_lea.vmem %s3242_s0, %s2854_s17  ;;  %s407_s23 = scalar_lea.vmem %s3243_s1, %s2854_s17  ;;  %725 = vmatpush1.bf16.msra.mxu1 %v2637_v7  ;;  %2438 = vmatpush3.bf16.msra.mxu0 %v2640_v25  ;;  %v2642_v28 = vld [vmem:[%s3248_s6 + $0x54] ss:$8 sps:$4 sm:$0xff]   ;;  %v2645_v30 = vld [vmem:[%s3248_s6 + $0x50] ss:$8 sps:$4 sm:$0xff]   ;;  %v2646_v31 = vld [vmem:[%s3248_s6 + $0x44] ss:$8 sps:$4 sm:$0xff]  }
   0xf   : > { %v2372_v0 = vld [vmem:[%s398_s20] sm:$0xff]   ;;  %726 = vmatprep.subr.bf16.mxu1 %v2638_v24  ;;  %2439 = vmatprep.subr.bf16.mxu0 %v2771_v27  ;;  %v2644_v29 = vld [vmem:[%s3246_s4 + $0x30] sm:$0xff]   ;;  %v2648_v32 = vld [vmem:[%s3246_s4 + $0x28] sm:$0xff]   ;;  %v2772_v38 = vmov 0   ;;  %vm2773_vm0 = vmmov 0   ;;  %v456_v61 = vshrl.u32 %v455_v57, 7 }
  0x10   : > { %v2368_v1 = vld [vmem:[%s407_s23] sm:$0xff]   ;;  %v2373_v2 = vunpack.c.l.bf16 %v2372_v0  ;;  %v2374_v4 = vunpack.c.h.bf16 %v2372_v0  ;;  %v2650_v34 = vld [vmem:[%s3248_s6 + $0x34] ss:$8 sps:$4 sm:$0xff]   ;;  %v2653_v36 = vld [vmem:[%s3248_s6 + $0x30] ss:$8 sps:$4 sm:$0xff]   ;;  %756 = vmatprep.mubr.bf16.mxu1 %v2772_v38  ;;  %2453 = vmatprep.mubr.msk.bf16.mxu0 %vm2773_vm0, %v2771_v27  ;;  %vm777_vm1 = vcmask 130048  }
  0x11   : > { %v2864_v3 = vunpack.c.l.bf16 %v2368_v1  ;;  %v2867_v5 = vunpack.c.h.bf16 %v2368_v1  ;;  %v2649_v33 = vld [vmem:[%s3248_s6 + $0x40] ss:$8 sps:$4 sm:$0xff]   ;;  %v2654_v37 = vld [vmem:[%s3248_s6 + $0x24] ss:$8 sps:$4 sm:$0xff]   ;;  %v2656_v39 = vld [vmem:[%s3246_s4 + $0x18] sm:$0xff]   ;;  %v2975_v0 = vsub.s32 0, %v456_v61 }
  0x12   : > { %432 = vadd.xlane.f32.xlu0 %v2373_v2  ;;  %727 = vmatpush1.bf16.msra.mxu1 %v2641_v26  ;;  %v2652_v35 = vld [vmem:[%s3246_s4 + $0x20] sm:$0xff]   ;;  %v2658_v41 = vld [vmem:[%s3248_s6 + $0x14] ss:$8 sps:$4 sm:$0xff]   ;;  %v2661_v43 = vld [vmem:[%s3248_s6 + $0x10] ss:$8 sps:$4 sm:$0xff]   ;;  %s2779_s13 = smov 32  }
  0x13   : > { %468 = vadd.xlane.f32.xlu1 %v2864_v3  ;;  %728 = vmatprep.subr.bf16.mxu1 %v2642_v28  ;;  %v2657_v40 = vld [vmem:[%s3248_s6 + $0x20] ss:$8 sps:$4 sm:$0xff]   ;;  %v2660_v42 = vld [vmem:[%s3246_s4 + $0x10] sm:$0xff]   ;;  %v2662_v44 = vld [vmem:[%s3248_s6 + $0x4] ss:$8 sps:$4 sm:$0xff]   ;;  %s2780_s20 = smov 16  }
  0x14   : > { %2440 = vmatpush3.bf16.msra.mxu0 %v2644_v29  ;;  %v2664_v45 = vld [vmem:[%s3246_s4 + $0x8] sm:$0xff]   ;;  %v2666_v47 = vld [vmem:[%s3246_s4] sm:$0xff]  }
  0x15   : > { %2441 = vmatprep.subr.bf16.mxu0 %v2771_v27  ;;  %v2665_v46 = vld [vmem:[%s3248_s6] ss:$8 sps:$4 sm:$0xff]  }
  0x16   : > { %434 = vadd.xlane.f32.xlu0 %v2374_v4  ;;  %729 = vmatpush1.bf16.msra.mxu1 %v2645_v30  ;;  %v420_v62 = vld [vmem:[%s3244_s2] sm:$0x1] }
  0x17   : > { %470 = vadd.xlane.f32.xlu1 %v2867_v5  ;;  %730 = vmatprep.subr.bf16.mxu1 %v2646_v31  ;;  %v421_v63 = vunpack.c.l.bf16 %v420_v62  ;;  %v422_v1 = vld [vmem:[%s3245_s3] sm:$0x1] }
  0x18   : > { %2442 = vmatpush3.bf16.msra.mxu0 %v2648_v32 }
  0x19   : > { %2443 = vmatprep.subr.bf16.mxu0 %v2771_v27  ;;  %v458_v7 = vrot.slane %v421_v63, %v2975_v0 }
  0x1a   : > { %731 = vmatpush1.bf16.msra.mxu1 %v2649_v33 }
  0x1b   : > { %732 = vmatprep.subr.bf16.mxu1 %v2650_v34  ;;  %v511_v34 = vld [vmem:[%s3247_s5] sm:$0x1] }
  0x1c   : > { %2444 = vmatpush3.bf16.msra.mxu0 %v2652_v35 }
  0x1d   : > { %2445 = vmatprep.subr.bf16.mxu0 %v2771_v27 }
  0x1e   : > { %733 = vmatpush1.bf16.msra.mxu1 %v2653_v36 }
  0x1f   : > { %734 = vmatprep.subr.bf16.mxu1 %v2654_v37 }
  0x20   : > { %2446 = vmatpush3.bf16.msra.mxu0 %v2656_v39  ;;  %v512_v39 = vunpack.c.l.bf16 %v511_v34 }
  0x21   : > { %2447 = vmatprep.subr.bf16.mxu0 %v2771_v27 }
  0x22   : > { %735 = vmatpush1.bf16.msra.mxu1 %v2657_v40 }
  0x23   : > { %736 = vmatprep.subr.bf16.mxu1 %v2658_v41 }
  0x24   : > { %2448 = vmatpush3.bf16.msra.mxu0 %v2660_v42 }
  0x25   : > { %2449 = vmatprep.subr.bf16.mxu0 %v2771_v27 }
  0x26   : > { %737 = vmatpush1.bf16.msra.mxu1 %v2661_v43 }
  0x27   : > { %738 = vmatprep.subr.bf16.mxu1 %v2662_v44 }
  0x28   : > { %2450 = vmatpush3.bf16.msra.mxu0 %v2664_v45 }
  0x29   : > { %2451 = vmatprep.subr.bf16.mxu0 %v2771_v27 }
  0x2a   : > { %739 = vmatpush1.bf16.msra.mxu1 %v2665_v46 }
  0x2b   : > { %2463 = vmatprep.subr.bf16.mxu1 %v2771_v27 }
  0x2c   : > { %2452 = vmatpush3.bf16.msra.mxu0 %v2666_v47  ;;  %v516_v47 = vrot.slane %v512_v39, %v2975_v0 }
  0x2d   : > { %2457 = vmatprep.subr.bf16.mxu0 %v2771_v27 }
  0x9b   : > { %v433_v8 = vpop.xlane.xlu0 %432 }
  0x9c   : > { %v469_v9 = vpop.xlane.xlu1 %468  ;;  %v437_v10 = vmul.f32 0.0078125, %v433_v8 }
  0x9d   : > { %v472_v11 = vmul.f32 0.0078125, %v469_v9 }
  0x9e   : > { %v2876_v12 = vsub.f32 %v2373_v2, %v437_v10 }
  0x9f   : > { %v2879_v13 = vsub.f32 %v2864_v3, %v472_v11  ;;  %v435_v14 = vpop.xlane.xlu0 %434 }
  0xa0   : > { %v471_v15 = vpop.xlane.xlu1 %470  ;;  %v438_v16 = vmul.f32 0.0078125, %v435_v14  ;;  %v441_v17 = vmul.f32 %v2876_v12, %v2876_v12 }
  0xa1   : > { %v473_v18 = vmul.f32 0.0078125, %v471_v15  ;;  %v476_v21 = vmul.f32 %v2879_v13, %v2879_v13 }
  0xa2   : > { %v2883_v19 = vsub.f32 %v2374_v4, %v438_v16  ;;  %443 = vadd.xlane.f32.xlu0 %v441_v17  ;;  %v423_v4 = vunpack.c.l.bf16 %v422_v1 }
  0xa3   : > { %v2886_v20 = vsub.f32 %v2867_v5, %v473_v18 }
  0xa4   : > { %v442_v22 = vmul.f32 %v2883_v19, %v2883_v19  ;;  %v464_v14 = vrot.slane %v423_v4, %v2975_v0 }
  0xa5   : > { %v477_v23 = vmul.f32 %v2886_v20, %v2886_v20 }
  0xa6   : > { %478 = vadd.xlane.f32.xlu0 %v476_v21  ;;  %445 = vadd.xlane.f32.xlu1 %v442_v22 }
  0xaa   : > { %480 = vadd.xlane.f32.xlu1 %v477_v23 }
 0x12b   : > { %v444_v48 = vpop.xlane.xlu0 %443 }
 0x12c   : > { %v447_v49 = vmul.f32 0.0078125, %v444_v48 }
 0x12e   : > { %v449_v50 = vadd.f32 1e-05, %v447_v49 }
 0x12f   : > { %v446_v51 = vpop.xlane.xlu1 %445  ;;  %v479_v52 = vpop.xlane.xlu0 %478 }
 0x130   : > { %2675 = vrsqrt.f32 %v449_v50  ;;  %v448_v53 = vmul.f32 0.0078125, %v446_v51  ;;  %v482_v54 = vmul.f32 0.0078125, %v479_v52 }
 0x132   : > { %v450_v55 = vadd.f32 1e-05, %v448_v53  ;;  %v484_v56 = vadd.f32 1e-05, %v482_v54 }
 0x133   : > { %v481_v58 = vpop.xlane.xlu1 %480 }
 0x134   : > { %2677 = vrsqrt.f32 %v450_v55  ;;  %v483_v59 = vmul.f32 0.0078125, %v481_v58 }
 0x135   : > { %2679 = vrsqrt.f32 %v484_v56 }
 0x136   : > { %v485_v60 = vadd.f32 1e-05, %v483_v59 }
 0x138   : > { %2681 = vrsqrt.f32 %v485_v60 }
 0x13d   : > { %v2676_v2 = vpop.eup %2675 }
 0x13e   : > { %v453_v6 = vmul.f32 %v2676_v2, %v2876_v12 }
 0x140   : > { %v459_v11 = vmul.f32 %v458_v7, %v453_v6 }
 0x141   : > { %v2678_v8 = vpop.eup %2677 }
 0x142   : > { %v2680_v9 = vpop.eup %2679  ;;  %v454_v10 = vmul.f32 %v2678_v8, %v2883_v19  ;;  %v465_v18 = vadd.f32 %v464_v14, %v459_v11 }
 0x143   : > { %v488_v15 = vmul.f32 %v2680_v9, %v2879_v13  ;;  %v623_v13 = vld [vmem:[%s3249_s7] sm:$0x3] }
 0x144   : > { %v460_v16 = vmul.f32 %v458_v7, %v454_v10  ;;  %v624_v28 = vunpack.c.l.bf16 %v623_v13 }
 0x145   : > { %v2682_v17 = vpop.eup %2681  ;;  %v490_v23 = vmul.f32 %v488_v15, %v458_v7 }
 0x146   : > { %v466_v21 = vadd.f32 %v464_v14, %v460_v16  ;;  %v489_v22 = vmul.f32 %v2682_v17, %v2886_v20  ;;  %v632_v20 = vsub.s32 2, %v456_v61  ;;  %v629_v29 = vrot.slane %v624_v28, %v2975_v0 }
 0x147   : > { %v492_v25 = vadd.f32 %v490_v23, %v464_v14  ;;  %v2667_v23 = vld [vmem:[%s3250_s8] sm:$0xff]  }
 0x148   : > { %v467_v24 = vpack.c.bf16 %v466_v21, %v465_v18  ;;  %v491_v12 = vmul.f32 %v489_v22, %v458_v7  ;;  %v633_v30 = vrot.slane %v624_v28, %v632_v20  ;;  %v639_v32 = vrot.slane %v629_v29, %v2975_v0 }
 0x14a   : > { %757 = vmatmul.mubr.bf16.vlgmr.msra.gmra.mxu1 %v467_v24  ;;  %v493_v26 = vadd.f32 %v491_v12, %v464_v14  ;;  %v643_v35 = vrot.slane %v633_v30, %v2975_v0 }
 0x14b   : > { %2465 = vmatprep.mubr.msk.bf16.mxu1 %vm2773_vm0, %v2771_v27 }
 0x14c   : > { %v494_v19 = vpack.c.bf16 %v493_v26, %v492_v25 }
 0x14e   : > { %2454 = vmatmul.mubr.bf16.vlgmr.msra.gmra.mxu0 %v494_v19 }
 0x14f   : > { %2459 = vmatprep.mubr.msk.bf16.mxu0 %vm2773_vm0, %v2771_v27 }
 0x20a   : > { %v758_v31 = vpop.f32.mrf.mxu1 }
 0x20b   : > { %v759_v38 = vadd.f32 %v758_v31, %v639_v32 }
 0x20c   : > { %v760_v33 = vpop.f32.mrf.mxu1 }
 0x20d   : > { %v761_v43 = vadd.f32 %v760_v33, %v643_v35 }
 0x20e   : > { %v599_v36 = vpop.f32.mrf.mxu0  ;;  %v762_v37 = vpop.f32.mrf.mxu1 }
 0x20f   : > { %v763_v40 = vadd.f32 %v762_v37, %v639_v32  ;;  %v600_v52 = vadd.f32 %v599_v36, %v516_v47 }
 0x210   : > { %v2455_v41 = vpop.f32.mrf.mxu0  ;;  %v764_v42 = vpop.f32.mrf.mxu1 }
 0x211   : > { %v2999_v44 = vpack.c.bf16 %v763_v40, %v759_v38  ;;  %v765_v45 = vadd.f32 %v764_v42, %v643_v35 }
 0x212   : > { %v602_v46 = vpop.f32.mrf.mxu0 }
 0x213   : > { %v3002_v48 = vpack.c.bf16 %v765_v45, %v761_v43  ;;  %v782_v49 = vsel %vm777_vm1, %v2999_v44, 0  ;;  %v603_v51 = vadd.f32 %v602_v46, %v516_v47 }
 0x214   : > { %v2456_v50 = vpop.f32.mrf.mxu0  ;;  %2458 = vmatpush3.bf16.xpose.msra.mxu0 %v782_v49 }
 0x215   : > { %2464 = vmatpush3.bf16.msra.mxu1 %v3002_v48  ;;  %2469 = vmatprep.subr.bf16.mxu0 %v2771_v27  ;;  %v3009_v53 = vpack.c.bf16 %v603_v51, %v600_v52 }
 0x216   : > { %2475 = vmatprep.subr.bf16.mxu1 %v2771_v27 }
 0x21b   : > { %2460 = vmatmul.mubr.msk.bf16.vlgmr.msra.gmra.mxu0 %vm777_vm1, %v3009_v53 }
 0x21c   : > { %2471 = vmatprep.mubr.msk.bf16.mxu0 %vm2773_vm0, %v2771_v27  ;;  %2470 = vmatpush3.bf16.msra.mxu0 %v2667_v23 }
 0x21d   : > { %2481 = vmatprep.subr.bf16.mxu0 %v2771_v27 }
 0x2db   : > { %v818_v54 = vpop.f32.mrf.mxu0 }
 0x2dc   : > { %v825_v55 = vsel %vm777_vm1, %v818_v54, -inf }
 0x2dd   : > { %826 = vmax.xlane.f32.xlu0 %v825_v55  ;;  %v2461_v56 = vpop.f32.mrf.mxu0 }
 0x2df   : > { %v821_v57 = vpop.f32.mrf.mxu0 }
 0x2e0   : > { %v828_v58 = vsel %vm777_vm1, %v821_v57, -inf }
 0x2e1   : > { %829 = vmax.xlane.f32.xlu1 %v828_v58  ;;  %v2462_v59 = vpop.f32.mrf.mxu0 }
 0x366   : > { %v827_v60 = vpop.xlane.xlu0 %826 }
 0x367   : > { %v831_v61 = vsub.f32 %v818_v54, %v827_v60  ;;  %v2668_v60 = vld [vmem:[%s3250_s8 + $0x8] sm:$0xff]  }
 0x369   : > { %v833_v62 = vmul.f32 1.442695, %v831_v61 }
 0x36a   : > { %v830_v63 = vpop.xlane.xlu1 %829 }
 0x36b   : > { %2683 = vpow2.f32 %v833_v62  ;;  %v832_v1 = vsub.f32 %v821_v57, %v830_v63 }
 0x36d   : > { %v835_v2 = vmul.f32 1.442695, %v832_v1 }
 0x36f   : > { %2685 = vpow2.f32 %v835_v2 }
 0x378   : > { %v2684_v4 = vpop.eup %2683 }
 0x379   : > { %v837_v6 = vsel %vm777_vm1, %v2684_v4, 0.0 }
 0x37a   : > { %838 = vadd.xlane.f32.xlu0 %v837_v6 }
 0x37c   : > { %v2686_v7 = vpop.eup %2685 }
 0x37d   : > { %v840_v8 = vsel %vm777_vm1, %v2686_v7, 0.0 }
 0x37e   : > { %841 = vadd.xlane.f32.xlu1 %v840_v8 }
 0x38f   : > { %948 = vrot.lane.b32.xlu1 %v3009_v53, %s2774_s12 }
 0x390   : > { %951 = vrot.lane.b32.xlu0 %v2999_v44, %s2774_s12 }
 0x403   : > { %v839_v9 = vpop.xlane.xlu0 %838 }
 0x404   : > { %2687 = vrcp.f32 %v839_v9 }
 0x407   : > { %v842_v10 = vpop.xlane.xlu1 %841  ;;  %v952_v17 = vpop.permute.xlu0 %951 }
 0x408   : > { %2689 = vrcp.f32 %v842_v10  ;;  %v957_v21 = vsel %vm777_vm1, %v952_v17, 0 }
 0x40b   : > { %v949_v22 = vpop.permute.xlu1 %948 }
 0x411   : > { %v2688_v11 = vpop.eup %2687 }
 0x412   : > { %v845_v15 = vmul.f32 %v2688_v11, %v2684_v4 }
 0x415   : > { %v2690_v14 = vpop.eup %2689 }
 0x416   : > { %v846_v16 = vmul.f32 %v2690_v14, %v2686_v7 }
 0x418   : > { %v847_v18 = vpack.c.bf16 %v846_v16, %v845_v15 }
 0x41a   : > { %2466 = vmatmul.mubr.msk.bf16.vlgmr.msra.gmra.mxu1 %vm777_vm1, %v847_v18 }
 0x41b   : > { %2476 = vmatpush3.bf16.xpose.msra.mxu1 %v957_v21  ;;  %2477 = vmatprep.mubr.msk.bf16.mxu1 %vm2773_vm0, %v2771_v27 }
 0x41c   : > { %2487 = vmatprep.subr.bf16.mxu1 %v2771_v27 }
 0x422   : > { %2478 = vmatmul.mubr.msk.bf16.vlgmr.msra.gmra.mxu1 %vm777_vm1, %v949_v22 }
 0x423   : > { %2489 = vmatprep.mubr.msk.bf16.mxu1 %vm2773_vm0, %v2771_v27  ;;  %2488 = vmatpush3.bf16.msra.mxu1 %v2668_v60 }
 0x424   : > { %2499 = vmatprep.subr.bf16.mxu1 %v2771_v27 }
 0x4da   : > { %v885_v24 = vpop.f32.mrf.mxu1 }
 0x4dc   : > { %v2467_v12 = vpop.f32.mrf.mxu1 }
 0x4de   : > { %v888_v25 = vpop.f32.mrf.mxu1 }
 0x4df   : > { %v892_v26 = vpack.c.bf16 %v888_v25, %v885_v24  ;;  %v769_v25 = vld [vmem:[%s3251_s9] sm:$0x1] }
 0x4e0   : > { %v2468_v19 = vpop.f32.mrf.mxu1 }
 0x4e1   : > { %2472 = vmatmul.mubr.msk.bf16.vlgmr.msra.gmra.mxu0 %vm777_vm1, %v892_v26  ;;  %v770_v26 = vunpack.c.l.bf16 %v769_v25 }
 0x4e2   : > { %v993_v13 = vpop.f32.mrf.mxu1  ;;  %2483 = vmatprep.mubr.msk.bf16.mxu0 %vm2773_vm0, %v2771_v27 }
 0x4e3   : > { %v1000_v28 = vsel %vm777_vm1, %v993_v13, -inf  ;;  %v774_v19 = vrot.slane %v770_v26, %v2975_v0 }
 0x4e4   : > { %1001 = vmax.xlane.f32.xlu1 %v1000_v28  ;;  %v2479_v20 = vpop.f32.mrf.mxu1 }
 0x4e5   : > { %v776_v20 = vadd.f32 %v2867_v5, %v774_v19 }
 0x4e6   : > { %v996_v29 = vpop.f32.mrf.mxu1 }
 0x4e7   : > { %v1003_v30 = vsel %vm777_vm1, %v996_v29, -inf }
 0x4e8   : > { %1004 = vmax.xlane.f32.xlu0 %v1003_v30  ;;  %v2480_v31 = vpop.f32.mrf.mxu1 }
 0x56d   : > { %v1002_v32 = vpop.xlane.xlu1 %1001 }
 0x56e   : > { %v1006_v33 = vsub.f32 %v993_v13, %v1002_v32  ;;  %v775_v13 = vadd.f32 %v2864_v3, %v774_v19  ;;  %v2670_v19 = vld [vmem:[%s3250_s8 + $0x18] sm:$0xff]  }
 0x570   : > { %v1008_v34 = vmul.f32 1.442695, %v1006_v33 }
 0x571   : > { %v1005_v35 = vpop.xlane.xlu0 %1004 }
 0x572   : > { %2691 = vpow2.f32 %v1008_v34  ;;  %v1007_v36 = vsub.f32 %v996_v29, %v1005_v35 }
 0x574   : > { %v1010_v37 = vmul.f32 1.442695, %v1007_v36 }
 0x576   : > { %2693 = vpow2.f32 %v1010_v37 }
 0x57f   : > { %v2692_v38 = vpop.eup %2691 }
 0x580   : > { %v1012_v39 = vsel %vm777_vm1, %v2692_v38, 0.0 }
 0x581   : > { %1013 = vadd.xlane.f32.xlu0 %v1012_v39 }
 0x583   : > { %v2694_v40 = vpop.eup %2693 }
 0x584   : > { %v1015_v41 = vsel %vm777_vm1, %v2694_v40, 0.0 }
 0x585   : > { %1016 = vadd.xlane.f32.xlu1 %v1015_v41 }
 0x596   : > { %1128 = vrot.lane.b32.xlu1 %v2999_v44, %s2775_s19 }
 0x597   : > { %1024 = vrot.lane.b32.xlu0 %v3002_v48, %s2774_s12 }
 0x59a   : > { %1126 = vrot.lane.b32.xlu1 %v3009_v53, %s2775_s19 }
 0x5a1   : > { %v3048_v42 = vpop.f32.mrf.mxu0 }
 0x5a2   : > { %v945_v28 = vadd.f32 %v3048_v42, %v775_v13 }
 0x5a3   : > { %v2473_v43 = vpop.f32.mrf.mxu0 }
 0x5a4   : > { %v2669_v43 = vld [vmem:[%s3250_s8 + $0x10] sm:$0xff]  }
 0x5a5   : > { %v3050_v45 = vpop.f32.mrf.mxu0 }
 0x5a6   : > { %v946_v32 = vadd.f32 %v3050_v45, %v776_v20 }
 0x5a7   : > { %v2474_v46 = vpop.f32.mrf.mxu0 }
 0x60a   : > { %v1014_v47 = vpop.xlane.xlu0 %1013 }
 0x60b   : > { %2695 = vrcp.f32 %v1014_v47 }
 0x60e   : > { %v1017_v49 = vpop.xlane.xlu1 %1016  ;;  %v1025_v50 = vpop.permute.xlu0 %1024 }
 0x60f   : > { %2697 = vrcp.f32 %v1017_v49  ;;  %2482 = vmatpush3.bf16.msra.mxu0 %v1025_v50 }
 0x610   : > { %2493 = vmatprep.subr.bf16.mxu0 %v2771_v27 }
 0x612   : > { %v1129_v56 = vpop.permute.xlu1 %1128 }
 0x613   : > { %v1134_v58 = vsel %vm777_vm1, %v1129_v56, 0 }
 0x616   : > { %v1127_v59 = vpop.permute.xlu1 %1126 }
 0x618   : > { %v2696_v51 = vpop.eup %2695 }
 0x619   : > { %v1020_v54 = vmul.f32 %v2696_v51, %v2692_v38 }
 0x61c   : > { %v2698_v52 = vpop.eup %2697 }
 0x61d   : > { %v1021_v55 = vmul.f32 %v2698_v52, %v2694_v40 }
 0x61f   : > { %v1022_v57 = vpack.c.bf16 %v1021_v55, %v1020_v54 }
 0x621   : > { %2484 = vmatmul.mubr.msk.bf16.vlgmr.msra.gmra.mxu0 %vm777_vm1, %v1022_v57 }
 0x622   : > { %2494 = vmatpush3.bf16.xpose.msra.mxu0 %v1134_v58  ;;  %2495 = vmatprep.mubr.msk.bf16.mxu0 %vm2773_vm0, %v2771_v27 }
 0x623   : > { %2505 = vmatprep.subr.bf16.mxu0 %v2771_v27 }
 0x629   : > { %2496 = vmatmul.mubr.msk.bf16.vlgmr.msra.gmra.mxu0 %vm777_vm1, %v1127_v59 }
 0x62a   : > { %2507 = vmatprep.mubr.msk.bf16.mxu0 %vm2773_vm0, %v2771_v27  ;;  %2506 = vmatpush3.bf16.msra.mxu0 %v2669_v43 }
 0x62b   : > { %2517 = vmatprep.subr.bf16.mxu0 %v2771_v27 }
 0x6e1   : > { %v1064_v61 = vpop.f32.mrf.mxu0 }
 0x6e3   : > { %v2485_v62 = vpop.f32.mrf.mxu0 }
 0x6e5   : > { %v1067_v63 = vpop.f32.mrf.mxu0 }
 0x6e6   : > { %v1071_v1 = vpack.c.bf16 %v1067_v63, %v1064_v61 }
 0x6e7   : > { %v2486_v2 = vpop.f32.mrf.mxu0 }
 0x6e8   : > { %2490 = vmatmul.mubr.msk.bf16.vlgmr.msra.gmra.mxu1 %vm777_vm1, %v1071_v1 }
 0x6e9   : > { %v1170_v4 = vpop.f32.mrf.mxu0  ;;  %2501 = vmatprep.mubr.msk.bf16.mxu1 %vm2773_vm0, %v2771_v27 }
 0x6ea   : > { %v1177_v6 = vsel %vm777_vm1, %v1170_v4, -inf }
 0x6eb   : > { %1178 = vmax.xlane.f32.xlu1 %v1177_v6  ;;  %v2497_v7 = vpop.f32.mrf.mxu0 }
 0x6ed   : > { %v1173_v8 = vpop.f32.mrf.mxu0 }
 0x6ee   : > { %v1180_v9 = vsel %vm777_vm1, %v1173_v8, -inf }
 0x6ef   : > { %1181 = vmax.xlane.f32.xlu0 %v1180_v9  ;;  %v2498_v10 = vpop.f32.mrf.mxu0 }
 0x6fc   : > { %1200 = vrot.lane.b32.xlu1 %v3002_v48, %s2775_s19 }
 0x700   : > { %1302 = vrot.lane.b32.xlu1 %v3009_v53, %s2776_s22 }
 0x774   : > { %v1179_v11 = vpop.xlane.xlu1 %1178 }
 0x775   : > { %v1183_v14 = vsub.f32 %v1170_v4, %v1179_v11 }
 0x777   : > { %v1185_v15 = vmul.f32 1.442695, %v1183_v14 }
 0x778   : > { %v1201_v16 = vpop.permute.xlu1 %1200  ;;  %v1182_v17 = vpop.xlane.xlu0 %1181 }
 0x779   : > { %2699 = vpow2.f32 %v1185_v15  ;;  %v1184_v18 = vsub.f32 %v1173_v8, %v1182_v17  ;;  %2500 = vmatpush3.bf16.msra.mxu1 %v1201_v16 }
 0x77a   : > { %2511 = vmatprep.subr.bf16.mxu1 %v2771_v27 }
 0x77b   : > { %v1187_v21 = vmul.f32 1.442695, %v1184_v18 }
 0x77c   : > { %v1303_v42 = vpop.permute.xlu1 %1302 }
 0x77d   : > { %2701 = vpow2.f32 %v1187_v21 }
 0x786   : > { %v2700_v22 = vpop.eup %2699 }
 0x787   : > { %v1189_v23 = vsel %vm777_vm1, %v2700_v22, 0.0 }
 0x788   : > { %1190 = vadd.xlane.f32.xlu0 %v1189_v23 }
 0x78a   : > { %v2702_v24 = vpop.eup %2701 }
 0x78b   : > { %v1192_v12 = vsel %vm777_vm1, %v2702_v24, 0.0 }
 0x78c   : > { %1193 = vadd.xlane.f32.xlu0 %v1192_v12 }
 0x7a2   : > { %1304 = vrot.lane.b32.xlu0 %v2999_v44, %s2776_s22 }
 0x7a8   : > { %v1117_v29 = vpop.f32.mrf.mxu1 }
 0x7a9   : > { %v1124_v30 = vadd.f32 %v1117_v29, %v945_v28 }
 0x7aa   : > { %v2491_v31 = vpop.f32.mrf.mxu1 }
 0x7ac   : > { %v1120_v33 = vpop.f32.mrf.mxu1 }
 0x7ad   : > { %v1125_v34 = vadd.f32 %v1120_v33, %v946_v32 }
 0x7ae   : > { %v2492_v35 = vpop.f32.mrf.mxu1 }
 0x811   : > { %v1191_v36 = vpop.xlane.xlu0 %1190 }
 0x812   : > { %2703 = vrcp.f32 %v1191_v36 }
 0x815   : > { %v1194_v0 = vpop.xlane.xlu0 %1193 }
 0x816   : > { %2705 = vrcp.f32 %v1194_v0 }
 0x819   : > { %v1305_v40 = vpop.permute.xlu0 %1304 }
 0x81a   : > { %v1310_v5 = vsel %vm777_vm1, %v1305_v40, 0 }
 0x81f   : > { %v2704_v37 = vpop.eup %2703 }
 0x820   : > { %v1197_v39 = vmul.f32 %v2704_v37, %v2700_v22 }
 0x823   : > { %v2706_v38 = vpop.eup %2705 }
 0x824   : > { %v1198_v3 = vmul.f32 %v2706_v38, %v2702_v24 }
 0x826   : > { %v1199_v41 = vpack.c.bf16 %v1198_v3, %v1197_v39 }
 0x828   : > { %2502 = vmatmul.mubr.msk.bf16.vlgmr.msra.gmra.mxu1 %vm777_vm1, %v1199_v41 }
 0x829   : > { %2512 = vmatpush3.bf16.xpose.msra.mxu1 %v1310_v5  ;;  %2513 = vmatprep.mubr.msk.bf16.mxu1 %vm2773_vm0, %v2771_v27 }
 0x82a   : > { %2523 = vmatprep.subr.bf16.mxu1 %v2771_v27 }
 0x830   : > { %2514 = vmatmul.mubr.msk.bf16.vlgmr.msra.gmra.mxu1 %vm777_vm1, %v1303_v42 }
 0x831   : > { %2525 = vmatprep.mubr.msk.bf16.mxu1 %vm2773_vm0, %v2771_v27  ;;  %2524 = vmatpush3.bf16.msra.mxu1 %v2670_v19 }
 0x832   : > { %2535 = vmatprep.subr.bf16.mxu1 %v2771_v27 }
 0x8e8   : > { %v1240_v45 = vpop.f32.mrf.mxu1 }
 0x8ea   : > { %v2503_v46 = vpop.f32.mrf.mxu1 }
 0x8ec   : > { %v1243_v47 = vpop.f32.mrf.mxu1 }
 0x8ed   : > { %v1247_v49 = vpack.c.bf16 %v1243_v47, %v1240_v45 }
 0x8ee   : > { %v2504_v50 = vpop.f32.mrf.mxu1 }
 0x8ef   : > { %2508 = vmatmul.mubr.msk.bf16.vlgmr.msra.gmra.mxu0 %vm777_vm1, %v1247_v49 }
 0x8f0   : > { %v1346_v51 = vpop.f32.mrf.mxu1  ;;  %2519 = vmatprep.mubr.msk.bf16.mxu0 %vm2773_vm0, %v2771_v27 }
 0x8f1   : > { %v1353_v52 = vsel %vm777_vm1, %v1346_v51, -inf }
 0x8f2   : > { %1354 = vmax.xlane.f32.xlu1 %v1353_v52  ;;  %v2515_v54 = vpop.f32.mrf.mxu1 }
 0x8f4   : > { %v1349_v55 = vpop.f32.mrf.mxu1 }
 0x8f5   : > { %v1356_v56 = vsel %vm777_vm1, %v1349_v55, -inf }
 0x8f6   : > { %1357 = vmax.xlane.f32.xlu0 %v1356_v56  ;;  %v2516_v57 = vpop.f32.mrf.mxu1 }
 0x97b   : > { %v1355_v58 = vpop.xlane.xlu1 %1354 }
 0x97c   : > { %v1359_v59 = vsub.f32 %v1346_v51, %v1355_v58 }
 0x97e   : > { %v1361_v60 = vmul.f32 1.442695, %v1359_v59 }
 0x97f   : > { %v1358_v61 = vpop.xlane.xlu0 %1357 }
 0x980   : > { %2707 = vpow2.f32 %v1361_v60  ;;  %v1360_v62 = vsub.f32 %v1349_v55, %v1358_v61 }
 0x982   : > { %v1363_v63 = vmul.f32 1.442695, %v1360_v62 }
 0x984   : > { %2709 = vpow2.f32 %v1363_v63 }
 0x98d   : > { %v2708_v1 = vpop.eup %2707 }
 0x98e   : > { %v1365_v2 = vsel %vm777_vm1, %v2708_v1, 0.0 }
 0x98f   : > { %1366 = vadd.xlane.f32.xlu0 %v1365_v2 }
 0x991   : > { %v2710_v4 = vpop.eup %2709 }
 0x992   : > { %v1368_v6 = vsel %vm777_vm1, %v2710_v4, 0.0 }
 0x993   : > { %1369 = vadd.xlane.f32.xlu1 %v1368_v6 }
 0x9a4   : > { %1480 = vrot.lane.b32.xlu1 %v2999_v44, %s2777_s27 }
 0x9a5   : > { %1376 = vrot.lane.b32.xlu0 %v3002_v48, %s2776_s22 }
 0x9a8   : > { %1478 = vrot.lane.b32.xlu1 %v3009_v53, %s2777_s27 }
 0x9af   : > { %v1293_v7 = vpop.f32.mrf.mxu0 }
 0x9b0   : > { %v3112_v8 = vadd.f32 %v1293_v7, %v1124_v30 }
 0x9b1   : > { %v2509_v9 = vpop.f32.mrf.mxu0 }
 0x9b3   : > { %v1296_v10 = vpop.f32.mrf.mxu0 }
 0x9b4   : > { %v3114_v11 = vadd.f32 %v1296_v10, %v1125_v34 }
 0x9b5   : > { %v2510_v14 = vpop.f32.mrf.mxu0 }
 0xa18   : > { %v1367_v15 = vpop.xlane.xlu0 %1366 }
 0xa19   : > { %2711 = vrcp.f32 %v1367_v15 }
 0xa1c   : > { %v1370_v16 = vpop.xlane.xlu1 %1369  ;;  %v1377_v17 = vpop.permute.xlu0 %1376 }
 0xa1d   : > { %2713 = vrcp.f32 %v1370_v16  ;;  %2518 = vmatpush3.bf16.msra.mxu0 %v1377_v17 }
 0xa1e   : > { %2529 = vmatprep.subr.bf16.mxu0 %v2771_v27 }
 0xa20   : > { %v1481_v24 = vpop.permute.xlu1 %1480 }
 0xa21   : > { %v1486_v25 = vsel %vm777_vm1, %v1481_v24, 0 }
 0xa24   : > { %v1479_v26 = vpop.permute.xlu1 %1478 }
 0xa26   : > { %v2712_v18 = vpop.eup %2711 }
 0xa27   : > { %v1373_v22 = vmul.f32 %v2712_v18, %v2708_v1  ;;  %v2671_v1 = vld [vmem:[%s3250_s8 + $0x20] sm:$0xff]  }
 0xa2a   : > { %v2714_v21 = vpop.eup %2713 }
 0xa2b   : > { %v1374_v23 = vmul.f32 %v2714_v21, %v2710_v4 }
 0xa2d   : > { %v1375_v12 = vpack.c.bf16 %v1374_v23, %v1373_v22 }
 0xa2f   : > { %2520 = vmatmul.mubr.msk.bf16.vlgmr.msra.gmra.mxu0 %vm777_vm1, %v1375_v12 }
 0xa30   : > { %2530 = vmatpush3.bf16.xpose.msra.mxu0 %v1486_v25  ;;  %2531 = vmatprep.mubr.msk.bf16.mxu0 %vm2773_vm0, %v2771_v27 }
 0xa31   : > { %2541 = vmatprep.subr.bf16.mxu0 %v2771_v27 }
 0xa37   : > { %2532 = vmatmul.mubr.msk.bf16.vlgmr.msra.gmra.mxu0 %vm777_vm1, %v1479_v26 }
 0xa38   : > { %2543 = vmatprep.mubr.msk.bf16.mxu0 %vm2773_vm0, %v2771_v27  ;;  %2542 = vmatpush3.bf16.msra.mxu0 %v2671_v1 }
 0xa39   : > { %2553 = vmatprep.subr.bf16.mxu0 %v2771_v27 }
 0xaef   : > { %v1416_v13 = vpop.f32.mrf.mxu0 }
 0xaf1   : > { %v2521_v28 = vpop.f32.mrf.mxu0 }
 0xaf3   : > { %v1419_v20 = vpop.f32.mrf.mxu0 }
 0xaf4   : > { %v1423_v29 = vpack.c.bf16 %v1419_v20, %v1416_v13 }
 0xaf5   : > { %v2522_v30 = vpop.f32.mrf.mxu0 }
 0xaf6   : > { %2526 = vmatmul.mubr.msk.bf16.vlgmr.msra.gmra.mxu1 %vm777_vm1, %v1423_v29 }
 0xaf7   : > { %v1522_v31 = vpop.f32.mrf.mxu0  ;;  %2537 = vmatprep.mubr.msk.bf16.mxu1 %vm2773_vm0, %v2771_v27 }
 0xaf8   : > { %v1529_v32 = vsel %vm777_vm1, %v1522_v31, -inf }
 0xaf9   : > { %1530 = vmax.xlane.f32.xlu1 %v1529_v32  ;;  %v2533_v33 = vpop.f32.mrf.mxu0 }
 0xafb   : > { %v1525_v34 = vpop.f32.mrf.mxu0 }
 0xafc   : > { %v1532_v35 = vsel %vm777_vm1, %v1525_v34, -inf }
 0xafd   : > { %1533 = vmax.xlane.f32.xlu0 %v1532_v35  ;;  %v2534_v36 = vpop.f32.mrf.mxu0 }
 0xb0a   : > { %1552 = vrot.lane.b32.xlu1 %v3002_v48, %s2777_s27  ;;  %s417_s27 = scalar_lea.vmem %s3252_s10, %s2854_s17 }
 0xb0e   : > { %1654 = vrot.lane.b32.xlu1 %v3009_v53, %s2778_s30 }
 0xb82   : > { %v1531_v0 = vpop.xlane.xlu1 %1530 }
 0xb83   : > { %v1535_v37 = vsub.f32 %v1522_v31, %v1531_v0 }
 0xb85   : > { %v1537_v38 = vmul.f32 1.442695, %v1535_v37 }
 0xb86   : > { %v1553_v39 = vpop.permute.xlu1 %1552  ;;  %v1534_v3 = vpop.xlane.xlu0 %1533 }
 0xb87   : > { %2715 = vpow2.f32 %v1537_v38  ;;  %v1536_v40 = vsub.f32 %v1525_v34, %v1534_v3  ;;  %2536 = vmatpush3.bf16.msra.mxu1 %v1553_v39 }
 0xb88   : > { %2547 = vmatprep.subr.bf16.mxu1 %v2771_v27 }
 0xb89   : > { %v1539_v41 = vmul.f32 1.442695, %v1536_v40 }
 0xb8a   : > { %v1655_v63 = vpop.permute.xlu1 %1654 }
 0xb8b   : > { %2717 = vpow2.f32 %v1539_v41  ;;  %v2672_v41 = vld [vmem:[%s3250_s8 + $0x28] sm:$0xff]  }
 0xb94   : > { %v2716_v5 = vpop.eup %2715 }
 0xb95   : > { %v1541_v42 = vsel %vm777_vm1, %v2716_v5, 0.0 }
 0xb96   : > { %1542 = vadd.xlane.f32.xlu0 %v1541_v42 }
 0xb98   : > { %v2718_v43 = vpop.eup %2717 }
 0xb99   : > { %v1544_v45 = vsel %vm777_vm1, %v2718_v43, 0.0 }
 0xb9a   : > { %1545 = vadd.xlane.f32.xlu0 %v1544_v45 }
 0xbb0   : > { %1656 = vrot.lane.b32.xlu0 %v2999_v44, %s2778_s30 }
 0xbb6   : > { %v1469_v46 = vpop.f32.mrf.mxu1 }
 0xbb7   : > { %v1476_v47 = vadd.f32 %v1469_v46, %v3112_v8 }
 0xbb8   : > { %v2527_v49 = vpop.f32.mrf.mxu1 }
 0xbba   : > { %v1472_v50 = vpop.f32.mrf.mxu1 }
 0xbbb   : > { %v1477_v51 = vadd.f32 %v1472_v50, %v3114_v11 }
 0xbbc   : > { %v2528_v52 = vpop.f32.mrf.mxu1 }
 0xc1f   : > { %v1543_v54 = vpop.xlane.xlu0 %1542 }
 0xc20   : > { %2719 = vrcp.f32 %v1543_v54 }
 0xc23   : > { %v1546_v55 = vpop.xlane.xlu0 %1545 }
 0xc24   : > { %2721 = vrcp.f32 %v1546_v55 }
 0xc27   : > { %v1657_v60 = vpop.permute.xlu0 %1656 }
 0xc28   : > { %v1662_v62 = vsel %vm777_vm1, %v1657_v60, 0 }
 0xc2d   : > { %v2720_v56 = vpop.eup %2719 }
 0xc2e   : > { %v1549_v58 = vmul.f32 %v2720_v56, %v2716_v5 }
 0xc31   : > { %v2722_v57 = vpop.eup %2721 }
 0xc32   : > { %v1550_v59 = vmul.f32 %v2722_v57, %v2718_v43 }
 0xc34   : > { %v1551_v61 = vpack.c.bf16 %v1550_v59, %v1549_v58 }
 0xc36   : > { %2538 = vmatmul.mubr.msk.bf16.vlgmr.msra.gmra.mxu1 %vm777_vm1, %v1551_v61 }
 0xc37   : > { %2548 = vmatpush3.bf16.xpose.msra.mxu1 %v1662_v62  ;;  %2549 = vmatprep.mubr.msk.bf16.mxu1 %vm2773_vm0, %v2771_v27 }
 0xc38   : > { %2559 = vmatprep.subr.bf16.mxu1 %v2771_v27 }
 0xc3e   : > { %2550 = vmatmul.mubr.msk.bf16.vlgmr.msra.gmra.mxu1 %vm777_vm1, %v1655_v63 }
 0xc3f   : > { %2561 = vmatprep.mubr.msk.bf16.mxu1 %vm2773_vm0, %v2771_v27  ;;  %2560 = vmatpush3.bf16.msra.mxu1 %v2672_v41 }
 0xc40   : > { %2571 = vmatprep.subr.bf16.mxu1 %v2771_v27 }
 0xcf6   : > { %v1592_v2 = vpop.f32.mrf.mxu1 }
 0xcf8   : > { %v2539_v4 = vpop.f32.mrf.mxu1 }
 0xcfa   : > { %v1595_v6 = vpop.f32.mrf.mxu1 }
 0xcfb   : > { %v1599_v7 = vpack.c.bf16 %v1595_v6, %v1592_v2 }
 0xcfc   : > { %v2540_v8 = vpop.f32.mrf.mxu1 }
 0xcfd   : > { %2544 = vmatmul.mubr.msk.bf16.vlgmr.msra.gmra.mxu0 %vm777_vm1, %v1599_v7 }
 0xcfe   : > { %v1698_v9 = vpop.f32.mrf.mxu1  ;;  %2555 = vmatprep.mubr.msk.bf16.mxu0 %vm2773_vm0, %v2771_v27 }
 0xcff   : > { %v1705_v10 = vsel %vm777_vm1, %v1698_v9, -inf }
 0xd00   : > { %1706 = vmax.xlane.f32.xlu1 %v1705_v10  ;;  %v2551_v11 = vpop.f32.mrf.mxu1 }
 0xd02   : > { %v1701_v14 = vpop.f32.mrf.mxu1 }
 0xd03   : > { %v1708_v15 = vsel %vm777_vm1, %v1701_v14, -inf }
 0xd04   : > { %1709 = vmax.xlane.f32.xlu0 %v1708_v15  ;;  %v2552_v16 = vpop.f32.mrf.mxu1 }
 0xd89   : > { %v1707_v17 = vpop.xlane.xlu1 %1706 }
 0xd8a   : > { %v1711_v18 = vsub.f32 %v1698_v9, %v1707_v17 }
 0xd8c   : > { %v1713_v21 = vmul.f32 1.442695, %v1711_v18 }
 0xd8d   : > { %v1710_v22 = vpop.xlane.xlu0 %1709 }
 0xd8e   : > { %2723 = vpow2.f32 %v1713_v21  ;;  %v1712_v23 = vsub.f32 %v1701_v14, %v1710_v22 }
 0xd90   : > { %v1715_v24 = vmul.f32 1.442695, %v1712_v23  ;;  %v2673_v23 = vld [vmem:[%s3250_s8 + $0x30] sm:$0xff]  }
 0xd92   : > { %2725 = vpow2.f32 %v1715_v24 }
 0xd9b   : > { %v2724_v12 = vpop.eup %2723 }
 0xd9c   : > { %v1717_v25 = vsel %vm777_vm1, %v2724_v12, 0.0 }
 0xd9d   : > { %1718 = vadd.xlane.f32.xlu0 %v1717_v25 }
 0xd9f   : > { %v2726_v26 = vpop.eup %2725 }
 0xda0   : > { %v1720_v19 = vsel %vm777_vm1, %v2726_v26, 0.0 }
 0xda1   : > { %1721 = vadd.xlane.f32.xlu1 %v1720_v19 }
 0xdb2   : > { %1832 = vrot.lane.b32.xlu1 %v2999_v44, %s2779_s13 }
 0xdb3   : > { %1728 = vrot.lane.b32.xlu0 %v3002_v48, %s2778_s30 }
 0xdb6   : > { %1830 = vrot.lane.b32.xlu1 %v3009_v53, %s2779_s13 }
 0xdbd   : > { %v1645_v13 = vpop.f32.mrf.mxu0 }
 0xdbe   : > { %v3170_v28 = vadd.f32 %v1645_v13, %v1476_v47 }
 0xdbf   : > { %v2545_v20 = vpop.f32.mrf.mxu0 }
 0xdc1   : > { %v1648_v29 = vpop.f32.mrf.mxu0 }
 0xdc2   : > { %v3172_v30 = vadd.f32 %v1648_v29, %v1477_v51 }
 0xdc3   : > { %v2546_v31 = vpop.f32.mrf.mxu0 }
 0xe26   : > { %v1719_v32 = vpop.xlane.xlu0 %1718 }
 0xe27   : > { %2727 = vrcp.f32 %v1719_v32 }
 0xe2a   : > { %v1722_v33 = vpop.xlane.xlu1 %1721  ;;  %v1729_v34 = vpop.permute.xlu0 %1728 }
 0xe2b   : > { %2729 = vrcp.f32 %v1722_v33  ;;  %2554 = vmatpush3.bf16.msra.mxu0 %v1729_v34 }
 0xe2c   : > { %2565 = vmatprep.subr.bf16.mxu0 %v2771_v27 }
 0xe2e   : > { %v1833_v38 = vpop.permute.xlu1 %1832 }
 0xe2f   : > { %v1838_v3 = vsel %vm777_vm1, %v1833_v38, 0 }
 0xe32   : > { %v1831_v40 = vpop.permute.xlu1 %1830 }
 0xe34   : > { %v2728_v35 = vpop.eup %2727 }
 0xe35   : > { %v1725_v0 = vmul.f32 %v2728_v35, %v2724_v12 }
 0xe38   : > { %v2730_v36 = vpop.eup %2729 }
 0xe39   : > { %v1726_v37 = vmul.f32 %v2730_v36, %v2726_v26 }
 0xe3b   : > { %v1727_v39 = vpack.c.bf16 %v1726_v37, %v1725_v0 }
 0xe3d   : > { %2556 = vmatmul.mubr.msk.bf16.vlgmr.msra.gmra.mxu0 %vm777_vm1, %v1727_v39 }
 0xe3e   : > { %2566 = vmatpush3.bf16.xpose.msra.mxu0 %v1838_v3  ;;  %2567 = vmatprep.mubr.msk.bf16.mxu0 %vm2773_vm0, %v2771_v27 }
 0xe3f   : > { %2577 = vmatprep.subr.bf16.mxu0 %v2771_v27 }
 0xe45   : > { %2568 = vmatmul.mubr.msk.bf16.vlgmr.msra.gmra.mxu0 %vm777_vm1, %v1831_v40 }
 0xe46   : > { %2579 = vmatprep.mubr.msk.bf16.mxu0 %vm2773_vm0, %v2771_v27  ;;  %2578 = vmatpush3.bf16.msra.mxu0 %v2673_v23 }
 0xe47   : > { %2589 = vmatprep.subr.bf16.mxu0 %v2771_v27 }
 0xefd   : > { %v1768_v5 = vpop.f32.mrf.mxu0 }
 0xeff   : > { %v2557_v42 = vpop.f32.mrf.mxu0 }
 0xf01   : > { %v1771_v43 = vpop.f32.mrf.mxu0 }
 0xf02   : > { %v1775_v45 = vpack.c.bf16 %v1771_v43, %v1768_v5 }
 0xf03   : > { %v2558_v46 = vpop.f32.mrf.mxu0 }
 0xf04   : > { %2562 = vmatmul.mubr.msk.bf16.vlgmr.msra.gmra.mxu1 %vm777_vm1, %v1775_v45 }
 0xf05   : > { %v1874_v47 = vpop.f32.mrf.mxu0  ;;  %2573 = vmatprep.mubr.msk.bf16.mxu1 %vm2773_vm0, %v2771_v27 }
 0xf06   : > { %v1881_v49 = vsel %vm777_vm1, %v1874_v47, -inf }
 0xf07   : > { %1882 = vmax.xlane.f32.xlu1 %v1881_v49  ;;  %v2569_v50 = vpop.f32.mrf.mxu0 }
 0xf09   : > { %v1877_v51 = vpop.f32.mrf.mxu0 }
 0xf0a   : > { %v1884_v52 = vsel %vm777_vm1, %v1877_v51, -inf }
 0xf0b   : > { %1885 = vmax.xlane.f32.xlu0 %v1884_v52  ;;  %v2570_v54 = vpop.f32.mrf.mxu0 }
 0xf18   : > { %1904 = vrot.lane.b32.xlu1 %v3002_v48, %s2779_s13 }
 0xf1c   : > { %2006 = vrot.lane.b32.xlu1 %v3009_v53, %s2780_s20 }
 0xf90   : > { %v1883_v55 = vpop.xlane.xlu1 %1882 }
 0xf91   : > { %v1887_v56 = vsub.f32 %v1874_v47, %v1883_v55 }
 0xf93   : > { %v1889_v57 = vmul.f32 1.442695, %v1887_v56 }
 0xf94   : > { %v1905_v58 = vpop.permute.xlu1 %1904  ;;  %v1886_v59 = vpop.xlane.xlu0 %1885 }
 0xf95   : > { %2731 = vpow2.f32 %v1889_v57  ;;  %v1888_v60 = vsub.f32 %v1877_v51, %v1886_v59  ;;  %2572 = vmatpush3.bf16.msra.mxu1 %v1905_v58 }
 0xf96   : > { %2583 = vmatprep.subr.bf16.mxu1 %v2771_v27 }
 0xf97   : > { %v1891_v61 = vmul.f32 1.442695, %v1888_v60 }
 0xf98   : > { %v2007_v22 = vpop.permute.xlu1 %2006 }
 0xf99   : > { %2733 = vpow2.f32 %v1891_v61 }
 0xfa2   : > { %v2732_v62 = vpop.eup %2731 }
 0xfa3   : > { %v1893_v63 = vsel %vm777_vm1, %v2732_v62, 0.0 }
 0xfa4   : > { %1894 = vadd.xlane.f32.xlu0 %v1893_v63 }
 0xfa6   : > { %v2734_v1 = vpop.eup %2733 }
 0xfa7   : > { %v1896_v2 = vsel %vm777_vm1, %v2734_v1, 0.0 }
 0xfa8   : > { %1897 = vadd.xlane.f32.xlu0 %v1896_v2 }
 0xfbe   : > { %2008 = vrot.lane.b32.xlu0 %v2999_v44, %s2780_s20 }
 0xfc4   : > { %v1821_v53 = vpop.f32.mrf.mxu1 }
 0xfc5   : > { %v1828_v4 = vadd.f32 %v1821_v53, %v3170_v28 }
 0xfc6   : > { %v2563_v6 = vpop.f32.mrf.mxu1 }
 0xfc8   : > { %v1824_v7 = vpop.f32.mrf.mxu1 }
 0xfc9   : > { %v1829_v8 = vadd.f32 %v1824_v7, %v3172_v30 }
 0xfca   : > { %v2564_v9 = vpop.f32.mrf.mxu1 }
0x102d   : > { %v1895_v10 = vpop.xlane.xlu0 %1894 }
0x102e   : > { %2735 = vrcp.f32 %v1895_v10 }
0x1031   : > { %v1898_v11 = vpop.xlane.xlu0 %1897 }
0x1032   : > { %2737 = vrcp.f32 %v1898_v11 }
0x1035   : > { %v2009_v18 = vpop.permute.xlu0 %2008 }
0x1036   : > { %v2014_v44 = vsel %vm777_vm1, %v2009_v18, 0 }
0x103b   : > { %v2736_v14 = vpop.eup %2735 }
0x103c   : > { %v1901_v16 = vmul.f32 %v2736_v14, %v2732_v62 }
0x103f   : > { %v2738_v15 = vpop.eup %2737 }
0x1040   : > { %v1902_v17 = vmul.f32 %v2738_v15, %v2734_v1 }
0x1042   : > { %v1903_v21 = vpack.c.bf16 %v1902_v17, %v1901_v16 }
0x1044   : > { %2574 = vmatmul.mubr.msk.bf16.vlgmr.msra.gmra.mxu1 %vm777_vm1, %v1903_v21 }
0x1045   : > { %2584 = vmatpush3.bf16.xpose.msra.mxu1 %v2014_v44  ;;  %2585 = vmatprep.mubr.msk.bf16.mxu1 %vm2773_vm0, %v2771_v27 }
0x1046   : > { %2595 = vmatprep.subr.bf16.mxu1 %v2771_v27 }
0x104c   : > { %2586 = vmatmul.mubr.msk.bf16.vlgmr.msra.gmra.mxu1 %vm777_vm1, %v2007_v22 }
0x104d   : > { %2597 = vmatprep.mubr.msk.bf16.mxu1 %vm2773_vm0, %v2771_v27 }
0x1104   : > { %v1944_v24 = vpop.f32.mrf.mxu1 }
0x1106   : > { %v2575_v12 = vpop.f32.mrf.mxu1 }
0x1108   : > { %v1947_v25 = vpop.f32.mrf.mxu1 }
0x1109   : > { %v1951_v26 = vpack.c.bf16 %v1947_v25, %v1944_v24 }
0x110a   : > { %v2576_v19 = vpop.f32.mrf.mxu1 }
0x110b   : > { %2580 = vmatmul.mubr.msk.bf16.vlgmr.msra.gmra.mxu0 %vm777_vm1, %v1951_v26 }
0x110c   : > { %v2050_v13 = vpop.f32.mrf.mxu1  ;;  %2591 = vmatprep.mubr.msk.bf16.mxu0 %vm2773_vm0, %v2771_v27 }
0x110d   : > { %v2057_v28 = vsel %vm777_vm1, %v2050_v13, -inf }
0x110e   : > { %2058 = vmax.xlane.f32.xlu1 %v2057_v28  ;;  %v2587_v20 = vpop.f32.mrf.mxu1 }
0x1110   : > { %v2053_v29 = vpop.f32.mrf.mxu1 }
0x1111   : > { %v2060_v30 = vsel %vm777_vm1, %v2053_v29, -inf }
0x1112   : > { %2061 = vmax.xlane.f32.xlu0 %v2060_v30  ;;  %v2588_v31 = vpop.f32.mrf.mxu1 }
0x1197   : > { %v2059_v32 = vpop.xlane.xlu1 %2058 }
0x1198   : > { %v2063_v33 = vsub.f32 %v2050_v13, %v2059_v32 }
0x119a   : > { %v2065_v34 = vmul.f32 1.442695, %v2063_v33 }
0x119b   : > { %v2062_v35 = vpop.xlane.xlu0 %2061 }
0x119c   : > { %2739 = vpow2.f32 %v2065_v34  ;;  %v2064_v36 = vsub.f32 %v2053_v29, %v2062_v35 }
0x119e   : > { %v2067_v0 = vmul.f32 1.442695, %v2064_v36 }
0x11a0   : > { %2741 = vpow2.f32 %v2067_v0 }
0x11a9   : > { %v2740_v37 = vpop.eup %2739 }
0x11aa   : > { %v2069_v27 = vsel %vm777_vm1, %v2740_v37, 0.0 }
0x11ab   : > { %2070 = vadd.xlane.f32.xlu0 %v2069_v27 }
0x11ad   : > { %v2742_v38 = vpop.eup %2741 }
0x11ae   : > { %v2072_v39 = vsel %vm777_vm1, %v2742_v38, 0.0 }
0x11af   : > { %2073 = vadd.xlane.f32.xlu1 %v2072_v39 }
0x11c1   : > { %2080 = vrot.lane.b32.xlu0 %v3002_v48, %s2780_s20  ;;  %v2674_v48 = vld [vmem:[%s3250_s8 + $0x38] sm:$0xff]  }
0x11c2   : > { %2596 = vmatpush3.bf16.msra.mxu1 %v2674_v48 }
0x11cb   : > { %v1997_v3 = vpop.f32.mrf.mxu0 }
0x11cc   : > { %v2004_v40 = vadd.f32 %v1997_v3, %v1828_v4 }
0x11cd   : > { %v2581_v41 = vpop.f32.mrf.mxu0 }
0x11cf   : > { %v2000_v5 = vpop.f32.mrf.mxu0 }
0x11d0   : > { %v2005_v42 = vadd.f32 %v2000_v5, %v1829_v8 }
0x11d1   : > { %v2582_v43 = vpop.f32.mrf.mxu0 }
0x1234   : > { %v2071_v45 = vpop.xlane.xlu0 %2070 }
0x1235   : > { %2743 = vrcp.f32 %v2071_v45 }
0x1238   : > { %v2074_v46 = vpop.xlane.xlu1 %2073  ;;  %v2081_v47 = vpop.permute.xlu0 %2080 }
0x1239   : > { %2745 = vrcp.f32 %v2074_v46  ;;  %2590 = vmatpush3.bf16.msra.mxu0 %v2081_v47 }
0x1242   : > { %v2744_v49 = vpop.eup %2743 }
0x1243   : > { %v2077_v52 = vmul.f32 %v2744_v49, %v2740_v37 }
0x1246   : > { %v2746_v50 = vpop.eup %2745 }
0x1247   : > { %v2078_v51 = vmul.f32 %v2746_v50, %v2742_v38 }
0x1249   : > { %v2079_v54 = vpack.c.bf16 %v2078_v51, %v2077_v52 }
0x124b   : > { %2592 = vmatmul.mubr.msk.bf16.vlgmr.msra.gmra.mxu0 %vm777_vm1, %v2079_v54 }
0x130b   : > { %v2120_v55 = vpop.f32.mrf.mxu0 }
0x130d   : > { %v2593_v56 = vpop.f32.mrf.mxu0 }
0x130f   : > { %v2123_v57 = vpop.f32.mrf.mxu0 }
0x1310   : > { %v2127_v58 = vpack.c.bf16 %v2123_v57, %v2120_v55 }
0x1311   : > { %v2594_v59 = vpop.f32.mrf.mxu0 }
0x1312   : > { %2598 = vmatmul.mubr.msk.bf16.vlgmr.msra.gmra.mxu1 %vm777_vm1, %v2127_v58 }
0x13d2   : > { %v2173_v60 = vpop.f32.mrf.mxu1 }
0x13d3   : > { %v2180_v63 = vadd.f32 %v2173_v60, %v2004_v40 }
0x13d4   : > { %v2599_v61 = vpop.f32.mrf.mxu1 }
0x13d6   : > { %v2176_v62 = vpop.f32.mrf.mxu1 }
0x13d7   : > { %v2181_v1 = vadd.f32 %v2176_v62, %v2005_v42 }
0x13d8   : > { %v2600_v2 = vpop.f32.mrf.mxu1 }
0x13d9   : > { %v2378_v53 = vpack.c.bf16 %v2181_v1, %v2180_v63 }
0x13db   : > { %2379 = vst [vmem:[%s417_s27] sm:$0xff] %v2378_v53  }
0x13dc PF: > { %s20_s15 = sadd.s32 1, %s2769_s15   ;;  %s3253_s13 = smov %s2765_s14 }
0x13dd   : > { %p17_p5 = scmp.ge.s32.totalorder %s20_s15, 18   ;;  %s3254_s14 = smov %s3256_s16 }
0x13df   :  { %19 = sbr.rel (!%p17_p5) target bundleno = 2 (0x2), region = 93 }

// kernel: rosettafold_forward.32
= control target key start
LH: loop header
LB: loop body
LE: loop exit
PB: predicated region body
PF: predicated region fallthrough
CT: control target
= control target key end

     0   :  { %vm76_vm0 = vcmask 1041408   ;;  %vm77_vm1 = vcmask 1042432   ;;  %v171_v0 = vmov 0.0   ;;  %v172_v2 = vmov 65535   ;;  %s224_s1 = inlined_call_operand.vmem [shape: bf16[85,128], index: 1, kind: input, shape index: {}]   ;;  %s225_s0 = inlined_call_operand.vmem [shape: bf16[16,85], index: 0, kind: input, shape index: {}]   ;;  %s226_s2 = inlined_call_operand.vmem [shape: bf16[1,128], index: 2, kind: input, shape index: {}]   ;;  %s227_s3 = inlined_call_operand.vmem [shape: f32[16,128], index: 3, kind: output, shape index: {}]  }
   0x1   :  { %145 = vmatprep.subr.bf16.mxu0 %v171_v0  ;;  %v164_v1 = vld [vmem:[%s224_s1 + $0x28] ss:$0 sps:$4 sm:$0x77]   ;;  %v78_v3 = vsel %vm76_vm0, 4294967295, %v172_v2  ;;  %vm173_vm2 = vmmov 0   ;;  %v165_v6 = vld [vmem:[%s224_s1 + $0x20] sm:$0xff]   ;;  %v30_v12 = vlaneseq }
   0x2   :  { %v79_v4 = vsel %vm77_vm1, %v78_v3, 0  ;;  %157 = vmatprep.mubr.msk.bf16.mxu0 %vm173_vm2, %v171_v0  ;;  %v166_v7 = vld [vmem:[%s224_s1 + $0x18] sm:$0xff]   ;;  %v167_v8 = vld [vmem:[%s224_s1 + $0x10] sm:$0xff]   ;;  %v168_v9 = vld [vmem:[%s224_s1 + $0x8] sm:$0xff]   ;;  %vm72_vm3 = vcmask 695296  }
   0x3   :  { %v81_v5 = vand.u32 %v164_v1, %v79_v4  ;;  %v169_v10 = vld [vmem:[%s224_s1] sm:$0xff]   ;;  %v31_v13 = vshrl.u32 %v30_v12, 7 }
   0x4   :  { %v170_v11 = vld [vmem:[%s225_s0] sm:$0xff]  }
   0x5   :  { %146 = vmatpush3.bf16.msra.mxu0 %v81_v5  ;;  %v28_v14 = vld [vmem:[%s226_s2] sm:$0x1]  ;;  %v32_v16 = vsub.s32 0, %v31_v13 }
   0x6   :  { %147 = vmatprep.subr.bf16.mxu0 %v171_v0  ;;  %v29_v15 = vunpack.c.l.bf16 %v28_v14 }
   0x8   :  { %v33_v17 = vrot.slane %v29_v15, %v32_v16 }
   0x9   :  { %148 = vmatpush3.bf16.msra.mxu0 %v165_v6 }
   0xa   :  { %149 = vmatprep.subr.bf16.mxu0 %v171_v0 }
   0xd   :  { %150 = vmatpush3.bf16.msra.mxu0 %v166_v7 }
   0xe   :  { %151 = vmatprep.subr.bf16.mxu0 %v171_v0 }
  0x11   :  { %152 = vmatpush3.bf16.msra.mxu0 %v167_v8 }
  0x12   :  { %153 = vmatprep.subr.bf16.mxu0 %v171_v0 }
  0x15   :  { %154 = vmatpush3.bf16.msra.mxu0 %v168_v9 }
  0x16   :  { %155 = vmatprep.subr.bf16.mxu0 %v171_v0 }
  0x19   :  { %156 = vmatpush3.bf16.msra.mxu0 %v169_v10 }
  0x1c   :  { %158 = vmatmul.mubr.msk.bf16.vlgmr.msra.gmra.mxu0 %vm72_vm3, %v170_v11 }
  0xdc   :  { %v117_v18 = vpop.f32.mrf.mxu0 }
  0xdd   :  { %v118_v19 = vadd.f32 %v117_v18, %v33_v17 }
  0xde   :  { %v159_v20 = vpop.f32.mrf.mxu0 }
  0xdf   :  { %124 = vst [vmem:[%s227_s3] sm:$0xff] %v118_v19 }
  0xe0   :  { %v120_v21 = vpop.f32.mrf.mxu0 }
  0xe1   :  { %v121_v22 = vadd.f32 %v120_v21, %v33_v17 }
  0xe2   :  { %v160_v23 = vpop.f32.mrf.mxu0 }
  0xe3   :  { %125 = vst [vmem:[%s227_s3 + $0x8] sm:$0xff] %v121_v22 }

// kernel: rosettafold_forward.23
= control target key start
LH: loop header
LB: loop body
LE: loop exit
PB: predicated region body
PF: predicated region fallthrough
CT: control target
= control target key end

     0   :  { %vm43_vm0 = vcmask 523264   ;;  %vm483_vm1 = vcmask 519168   ;;  %s873_s0 = inlined_call_operand.vmem [shape: bf16[64,64], index: 0, kind: input, shape index: {}]   ;;  %s874_s3 = inlined_call_operand.vmem [shape: bf16[64,128], index: 3, kind: input, shape index: {}]   ;;  %s875_s5 = inlined_call_operand.vmem [shape: bf16[128,64], index: 5, kind: input, shape index: {}]   ;;  %s876_s1 = inlined_call_operand.vmem [shape: bf16[1,64], index: 1, kind: input, shape index: {}]   ;;  %s877_s2 = inlined_call_operand.vmem [shape: bf16[1,64], index: 2, kind: input, shape index: {}]   ;;  %s878_s4 = inlined_call_operand.vmem [shape: bf16[1,128], index: 4, kind: input, shape index: {}]   ;;  %s879_s6 = inlined_call_operand.vmem [shape: bf16[1,64], index: 6, kind: input, shape index: {}]   ;;  %s880_s7 = inlined_call_operand.vmem [shape: bf16[64,64], index: 7, kind: output, shape index: {}]  }
   0x1   :  { %v529_v0 = vld [vmem:[%s873_s0] sm:$0xff]   ;;  %v544_v1 = vld [vmem:[%s873_s0 + $0x8] sm:$0xff]   ;;  %v545_v6 = vld [vmem:[%s873_s0 + $0x10] sm:$0xff]  }
   0x2   :  { %v681_v2 = vunpack.c.l.bf16 %v529_v0  ;;  %v683_v3 = vunpack.c.l.bf16 %v544_v1  ;;  %v685_v4 = vunpack.c.h.bf16 %v529_v0  ;;  %v687_v5 = vunpack.c.h.bf16 %v544_v1  ;;  %v546_v13 = vld [vmem:[%s873_s0 + $0x18] sm:$0xff]   ;;  %v608_v61 = vld [vmem:[%s874_s3 + $0x10] sm:$0xff]   ;;  %v609_v62 = vld [vmem:[%s874_s3 + $0x8] sm:$0xff]  }
   0x3   :  { %v700_v11 = vunpack.c.l.bf16 %v545_v6  ;;  %v702_v12 = vunpack.c.h.bf16 %v545_v6  ;;  %v711_v16 = vunpack.c.l.bf16 %v546_v13  ;;  %v713_v17 = vunpack.c.h.bf16 %v546_v13  ;;  %v607_v60 = vld [vmem:[%s874_s3 + $0x18] sm:$0xff]   ;;  %v610_v63 = vld [vmem:[%s874_s3] sm:$0xff]   ;;  %v612_v1 = vld [vmem:[%s875_s5 + $0x30] sm:$0xff]  }
   0x4   :  { %v44_v7 = vsel %vm43_vm0, %v681_v2, 0.0  ;;  %v50_v8 = vsel %vm43_vm0, %v683_v3, 0.0  ;;  %v47_v9 = vsel %vm43_vm0, %v685_v4, 0.0  ;;  %v53_v10 = vsel %vm43_vm0, %v687_v5, 0.0  ;;  %567 = vmatprep.subr.bf16.mxu0 %v607_v60  ;;  %v611_v0 = vld [vmem:[%s875_s5 + $0x38] sm:$0xff]   ;;  %v613_v6 = vld [vmem:[%s875_s5 + $0x28] sm:$0xff]  }
   0x5   :  { %45 = vadd.xlane.f32.xlu0 %v44_v7  ;;  %51 = vadd.xlane.f32.xlu1 %v50_v8  ;;  %v56_v14 = vsel %vm43_vm0, %v700_v11, 0.0  ;;  %v59_v15 = vsel %vm43_vm0, %v702_v12, 0.0  ;;  %v62_v18 = vsel %vm43_vm0, %v711_v16, 0.0  ;;  %v65_v19 = vsel %vm43_vm0, %v713_v17, 0.0  ;;  %v614_v7 = vld [vmem:[%s875_s5 + $0x20] sm:$0xff]   ;;  %v615_v8 = vld [vmem:[%s875_s5 + $0x18] sm:$0xff]  }
   0x6   :  { %568 = vmatpush3.bf16.msra.mxu0 %v607_v60  ;;  %583 = vmatprep.subr.bf16.mxu1 %v611_v0 }
   0x7   :  { %569 = vmatprep.subr.bf16.mxu0 %v608_v61  ;;  %584 = vmatpush3.bf16.msra.mxu1 %v611_v0 }
   0x8   :  { %585 = vmatprep.subr.bf16.mxu1 %v612_v1 }
   0x9   :  { %48 = vadd.xlane.f32.xlu0 %v47_v9  ;;  %54 = vadd.xlane.f32.xlu1 %v53_v10 }
   0xa   :  { %570 = vmatpush3.bf16.msra.mxu0 %v608_v61 }
   0xb   :  { %571 = vmatprep.subr.bf16.mxu0 %v609_v62  ;;  %586 = vmatpush3.bf16.msra.mxu1 %v612_v1 }
   0xc   :  { %587 = vmatprep.subr.bf16.mxu1 %v613_v6 }
   0xd   :  { %57 = vadd.xlane.f32.xlu0 %v56_v14  ;;  %60 = vadd.xlane.f32.xlu1 %v59_v15 }
   0xe   :  { %572 = vmatpush3.bf16.msra.mxu0 %v609_v62 }
   0xf   :  { %573 = vmatprep.subr.bf16.mxu0 %v610_v63  ;;  %588 = vmatpush3.bf16.msra.mxu1 %v613_v6 }
  0x10   :  { %589 = vmatprep.subr.bf16.mxu1 %v614_v7 }
  0x11   :  { %63 = vadd.xlane.f32.xlu0 %v62_v18  ;;  %66 = vadd.xlane.f32.xlu1 %v65_v19 }
  0x12   :  { %574 = vmatpush3.bf16.msra.mxu0 %v610_v63 }
  0x13   :  { %590 = vmatpush3.bf16.msra.mxu1 %v614_v7 }
  0x14   :  { %591 = vmatprep.subr.bf16.mxu1 %v615_v8 }
  0x17   :  { %592 = vmatpush3.bf16.msra.mxu1 %v615_v8 }
  0x8e   :  { %v46_v20 = vpop.xlane.xlu0 %45  ;;  %v52_v21 = vpop.xlane.xlu1 %51 }
  0x8f   :  { %v69_v22 = vmul.f32 0.015625, %v46_v20  ;;  %v71_v23 = vmul.f32 0.015625, %v52_v21 }
  0x91   :  { %v720_v24 = vsub.f32 %v681_v2, %v69_v22  ;;  %v723_v25 = vsub.f32 %v683_v3, %v71_v23  ;;  %v151_v22 = vlaneseq }
  0x92   :  { %v49_v26 = vpop.xlane.xlu0 %48  ;;  %v55_v27 = vpop.xlane.xlu1 %54 }
  0x93   :  { %v70_v28 = vmul.f32 0.015625, %v49_v26  ;;  %v72_v29 = vmul.f32 0.015625, %v55_v27  ;;  %v85_v30 = vmul.f32 %v720_v24, %v720_v24  ;;  %v87_v31 = vmul.f32 %v723_v25, %v723_v25 }
  0x95   :  { %v730_v32 = vsub.f32 %v685_v4, %v70_v28  ;;  %v733_v33 = vsub.f32 %v687_v5, %v72_v29  ;;  %v93_v34 = vsel %vm43_vm0, %v85_v30, 0.0  ;;  %v99_v37 = vsel %vm43_vm0, %v87_v31, 0.0 }
  0x96   :  { %94 = vadd.xlane.f32.xlu0 %v93_v34  ;;  %v58_v35 = vpop.xlane.xlu0 %57  ;;  %v61_v36 = vpop.xlane.xlu1 %60  ;;  %v152_v31 = vshrl.u32 %v151_v22, 7 }
  0x97   :  { %v73_v38 = vmul.f32 0.015625, %v58_v35  ;;  %v74_v39 = vmul.f32 0.015625, %v61_v36  ;;  %v86_v40 = vmul.f32 %v730_v32, %v730_v32  ;;  %v88_v41 = vmul.f32 %v733_v33, %v733_v33  ;;  %v149_v36 = vld [vmem:[%s876_s1] sm:$0x1] }
  0x99   :  { %v742_v42 = vsub.f32 %v700_v11, %v73_v38  ;;  %v745_v43 = vsub.f32 %v702_v12, %v74_v39  ;;  %v96_v44 = vsel %vm43_vm0, %v86_v40, 0.0  ;;  %v102_v47 = vsel %vm43_vm0, %v88_v41, 0.0 }
  0x9a   :  { %100 = vadd.xlane.f32.xlu0 %v99_v37  ;;  %97 = vadd.xlane.f32.xlu1 %v96_v44  ;;  %v64_v45 = vpop.xlane.xlu0 %63  ;;  %v67_v46 = vpop.xlane.xlu1 %66  ;;  %v150_v41 = vunpack.c.l.bf16 %v149_v36  ;;  %v797_v44 = vsub.s32 0, %v152_v31  ;;  %v189_v31 = vld [vmem:[%s878_s4] sm:$0x1] }
  0x9b   :  { %v75_v48 = vmul.f32 0.015625, %v64_v45  ;;  %v76_v49 = vmul.f32 0.015625, %v67_v46  ;;  %v89_v50 = vmul.f32 %v742_v42, %v742_v42  ;;  %v90_v51 = vmul.f32 %v745_v43, %v745_v43  ;;  %v163_v46 = vld [vmem:[%s877_s2] sm:$0x1] }
  0x9d   :  { %v754_v52 = vsub.f32 %v711_v16, %v75_v48  ;;  %v757_v53 = vsub.f32 %v713_v17, %v76_v49  ;;  %v105_v54 = vsel %vm43_vm0, %v89_v50, 0.0  ;;  %v108_v55 = vsel %vm43_vm0, %v90_v51, 0.0 }
  0x9e   :  { %103 = vadd.xlane.f32.xlu1 %v102_v47  ;;  %106 = vadd.xlane.f32.xlu0 %v105_v54  ;;  %v154_v51 = vrot.slane %v150_v41, %v797_v44  ;;  %v164_v54 = vunpack.c.l.bf16 %v163_v46 }
  0x9f   :  { %v91_v56 = vmul.f32 %v754_v52, %v754_v52  ;;  %v92_v57 = vmul.f32 %v757_v53, %v757_v53 }
  0xa1   :  { %v111_v58 = vsel %vm43_vm0, %v91_v56, 0.0  ;;  %v114_v59 = vsel %vm43_vm0, %v92_v57, 0.0 }
  0xa2   :  { %109 = vadd.xlane.f32.xlu1 %v108_v55  ;;  %112 = vadd.xlane.f32.xlu0 %v111_v58 }
  0xa6   :  { %115 = vadd.xlane.f32.xlu1 %v114_v59  ;;  %v168_v59 = vrot.slane %v164_v54, %v797_v44 }
 0x11f   :  { %v95_v9 = vpop.xlane.xlu0 %94 }
 0x120   :  { %v117_v10 = vmul.f32 0.015625, %v95_v9 }
 0x122   :  { %v125_v13 = vadd.f32 1e-05, %v117_v10 }
 0x123   :  { %v98_v14 = vpop.xlane.xlu1 %97  ;;  %v101_v15 = vpop.xlane.xlu0 %100 }
 0x124   :  { %619 = vrsqrt.f32 %v125_v13  ;;  %v118_v18 = vmul.f32 0.015625, %v98_v14  ;;  %v119_v19 = vmul.f32 0.015625, %v101_v15 }
 0x126   :  { %v126_v20 = vadd.f32 1e-05, %v118_v18  ;;  %v127_v21 = vadd.f32 1e-05, %v119_v19 }
 0x127   :  { %v104_v23 = vpop.xlane.xlu1 %103  ;;  %v107_v26 = vpop.xlane.xlu0 %106 }
 0x128   :  { %621 = vrsqrt.f32 %v126_v20  ;;  %v120_v27 = vmul.f32 0.015625, %v104_v23  ;;  %v121_v28 = vmul.f32 0.015625, %v107_v26 }
 0x129   :  { %623 = vrsqrt.f32 %v127_v21 }
 0x12a   :  { %v128_v29 = vadd.f32 1e-05, %v120_v27  ;;  %v129_v30 = vadd.f32 1e-05, %v121_v28 }
 0x12b   :  { %v110_v34 = vpop.xlane.xlu1 %109  ;;  %v113_v35 = vpop.xlane.xlu0 %112 }
 0x12c   :  { %625 = vrsqrt.f32 %v128_v29  ;;  %v122_v37 = vmul.f32 0.015625, %v110_v34  ;;  %v123_v38 = vmul.f32 0.015625, %v113_v35  ;;  %v190_v34 = vunpack.c.l.bf16 %v189_v31 }
 0x12d   :  { %627 = vrsqrt.f32 %v129_v30  ;;  %v618_v30 = vld [vmem:[%s875_s5] sm:$0xff]  }
 0x12e   :  { %v130_v39 = vadd.f32 1e-05, %v122_v37  ;;  %v131_v40 = vadd.f32 1e-05, %v123_v38  ;;  %v194_v36 = vrot.slane %v190_v34, %v797_v44 }
 0x12f   :  { %v116_v45 = vpop.xlane.xlu1 %115 }
 0x130   :  { %629 = vrsqrt.f32 %v130_v39  ;;  %v124_v47 = vmul.f32 0.015625, %v116_v45 }
 0x131   :  { %v620_v48 = vpop.eup %619  ;;  %631 = vrsqrt.f32 %v131_v40 }
 0x132   :  { %v132_v49 = vadd.f32 1e-05, %v124_v47  ;;  %v141_v50 = vmul.f32 %v620_v48, %v720_v24 }
 0x134   :  { %633 = vrsqrt.f32 %v132_v49  ;;  %v155_v58 = vmul.f32 %v154_v51, %v141_v50 }
 0x135   :  { %v622_v55 = vpop.eup %621 }
 0x136   :  { %v624_v56 = vpop.eup %623  ;;  %v142_v57 = vmul.f32 %v622_v55, %v730_v32  ;;  %v169_v0 = vadd.f32 %v168_v59, %v155_v58 }
 0x137   :  { %v143_v60 = vmul.f32 %v624_v56, %v723_v25 }
 0x138   :  { %v156_v61 = vmul.f32 %v154_v51, %v142_v57 }
 0x139   :  { %v626_v62 = vpop.eup %625  ;;  %v157_v6 = vmul.f32 %v154_v51, %v143_v60 }
 0x13a   :  { %v628_v63 = vpop.eup %627  ;;  %v170_v1 = vadd.f32 %v168_v59, %v156_v61  ;;  %v144_v24 = vmul.f32 %v626_v62, %v733_v33 }
 0x13b   :  { %v145_v7 = vmul.f32 %v628_v63, %v742_v42  ;;  %v171_v32 = vadd.f32 %v168_v59, %v157_v6 }
 0x13c   :  { %v177_v8 = vpack.c.bf16 %v170_v1, %v169_v0  ;;  %v158_v9 = vmul.f32 %v154_v51, %v144_v24 }
 0x13d   :  { %v630_v10 = vpop.eup %629  ;;  %v159_v15 = vmul.f32 %v154_v51, %v145_v7 }
 0x13e   :  { %v632_v13 = vpop.eup %631  ;;  %575 = vmatprep.mubr.msk.bf16.mxu0 %vm43_vm0, %v177_v8  ;;  %v172_v14 = vadd.f32 %v168_v59, %v158_v9  ;;  %v146_v25 = vmul.f32 %v630_v10, %v745_v43  ;;  %v324_v8 = vld [vmem:[%s879_s6] sm:$0x1] }
 0x13f   :  { %v147_v18 = vmul.f32 %v632_v13, %v754_v52  ;;  %v173_v33 = vadd.f32 %v168_v59, %v159_v15  ;;  %v616_v52 = vld [vmem:[%s875_s5 + $0x10] sm:$0xff]   ;;  %v325_v9 = vunpack.c.l.bf16 %v324_v8 }
 0x140   :  { %v178_v19 = vpack.c.bf16 %v172_v14, %v171_v32  ;;  %v160_v20 = vmul.f32 %v154_v51, %v146_v25  ;;  %593 = vmatprep.subr.bf16.mxu1 %v616_v52 }
 0x141   :  { %v634_v21 = vpop.eup %633  ;;  %v161_v23 = vmul.f32 %v154_v51, %v147_v18  ;;  %594 = vmatpush3.bf16.msra.mxu1 %v616_v52  ;;  %v329_v10 = vrot.slane %v325_v9, %v797_v44 }
 0x142   :  { %576 = vmatmul.mubr.msk.bf16.vlgmr.msra.gmra.mxu0 %vm43_vm0, %v178_v19  ;;  %v174_v42 = vadd.f32 %v168_v59, %v160_v20  ;;  %v148_v22 = vmul.f32 %v634_v21, %v757_v53  ;;  %v617_v53 = vld [vmem:[%s875_s5 + $0x8] sm:$0xff]  }
 0x143   :  { %v175_v28 = vadd.f32 %v168_v59, %v161_v23  ;;  %595 = vmatprep.subr.bf16.mxu1 %v617_v53 }
 0x144   :  { %v179_v26 = vpack.c.bf16 %v174_v42, %v173_v33  ;;  %v162_v27 = vmul.f32 %v154_v51, %v148_v22 }
 0x145   :  { %596 = vmatpush3.bf16.msra.mxu1 %v617_v53 }
 0x146   :  { %579 = vmatprep.mubr.msk.bf16.mxu0 %vm43_vm0, %v179_v26  ;;  %v176_v29 = vadd.f32 %v168_v59, %v162_v27  ;;  %597 = vmatprep.subr.bf16.mxu1 %v618_v30 }
 0x148   :  { %v180_v43 = vpack.c.bf16 %v176_v29, %v175_v28 }
 0x149   :  { %598 = vmatpush3.bf16.msra.mxu1 %v618_v30 }
 0x14a   :  { %580 = vmatmul.mubr.msk.bf16.gmra.mxu0 %vm43_vm0, %v180_v43 }
 0x202   :  { %v577_v35 = vpop.f32.mrf.mxu0 }
 0x203   :  { %v274_v41 = vadd.f32 %v577_v35, %v194_v36 }
 0x204   :  { %v265_v37 = vpop.f32.mrf.mxu0 }
 0x205   :  { %v266_v39 = vadd.f32 %v265_v37, %v194_v36  ;;  %v298_v51 = vmax.f32 %v274_v41, 0.0 }
 0x206   :  { %v578_v38 = vpop.f32.mrf.mxu0 }
 0x207   :  { %v277_v40 = vadd.f32 %v578_v38, %v194_v36  ;;  %v296_v49 = vmax.f32 %v266_v39, 0.0 }
 0x208   :  { %v268_v45 = vpop.f32.mrf.mxu0 }
 0x209   :  { %v269_v46 = vadd.f32 %v268_v45, %v194_v36  ;;  %v299_v47 = vmax.f32 %v277_v40, 0.0 }
 0x20a   :  { %v581_v48 = vpop.f32.mrf.mxu0 }
 0x20b   :  { %v297_v50 = vmax.f32 %v269_v46, 0.0  ;;  %v305_v56 = vpack.c.bf16 %v299_v47, %v298_v51  ;;  %v290_v60 = vadd.f32 %v581_v48, %v194_v36 }
 0x20c   :  { %v281_v54 = vpop.f32.mrf.mxu0 }
 0x20d   :  { %v304_v55 = vpack.c.bf16 %v297_v50, %v296_v49  ;;  %v282_v58 = vadd.f32 %v281_v54, %v194_v36  ;;  %v302_v24 = vmax.f32 %v290_v60, 0.0 }
 0x20e   :  { %v582_v57 = vpop.f32.mrf.mxu0 }
 0x20f   :  { %v293_v59 = vadd.f32 %v582_v57, %v194_v36  ;;  %599 = vmatprep.mubr.bf16.mxu1 %v304_v55  ;;  %v300_v0 = vmax.f32 %v282_v58, 0.0 }
 0x210   :  { %v284_v61 = vpop.f32.mrf.mxu0  ;;  %600 = vmatmul.mubr.bf16.vlgmr.msra.gmra.mxu1 %v305_v56 }
 0x211   :  { %v285_v62 = vadd.f32 %v284_v61, %v194_v36  ;;  %v303_v63 = vmax.f32 %v293_v59, 0.0 }
 0x213   :  { %v301_v1 = vmax.f32 %v285_v62, 0.0  ;;  %v307_v7 = vpack.c.bf16 %v303_v63, %v302_v24 }
 0x215   :  { %v306_v6 = vpack.c.bf16 %v301_v1, %v300_v0 }
 0x217   :  { %603 = vmatprep.mubr.bf16.mxu1 %v306_v6 }
 0x218   :  { %604 = vmatmul.mubr.bf16.gmra.mxu1 %v307_v7 }
 0x2d0   :  { %v601_v13 = vpop.f32.mrf.mxu1 }
 0x2d1   :  { %v421_v32 = vadd.f32 %v601_v13, %v329_v10 }
 0x2d2   :  { %v412_v14 = vpop.f32.mrf.mxu1 }
 0x2d3   :  { %v445_v25 = vadd.f32 %v683_v3, %v421_v32  ;;  %v413_v15 = vadd.f32 %v412_v14, %v329_v10 }
 0x2d4   :  { %v602_v18 = vpop.f32.mrf.mxu1 }
 0x2d5   :  { %v522_v19 = vpack.c.bf16 %v445_v25, %v445_v25  ;;  %v443_v20 = vadd.f32 %v681_v2, %v413_v15  ;;  %v424_v21 = vadd.f32 %v602_v18, %v329_v10 }
 0x2d6   :  { %v415_v33 = vpop.f32.mrf.mxu1 }
 0x2d7   :  { %486 = vst.msk [vmem:[%s880_s7 + $0x8] sm:$0xf] %vm483_vm1, %v522_v19  ;;  %v520_v42 = vpack.c.bf16 %v443_v20, %v443_v20  ;;  %v446_v44 = vadd.f32 %v687_v5, %v424_v21  ;;  %v416_v22 = vadd.f32 %v415_v33, %v329_v10 }
 0x2d8   :  { %v605_v23 = vpop.f32.mrf.mxu1 }
 0x2d9   :  { %484 = vst.msk [vmem:[%s880_s7] sm:$0xf] %vm483_vm1, %v520_v42  ;;  %v523_v3 = vpack.c.bf16 %v446_v44, %v446_v44  ;;  %v444_v2 = vadd.f32 %v685_v4, %v416_v22  ;;  %v437_v26 = vadd.f32 %v605_v23, %v329_v10 }
 0x2da   :  { %v428_v27 = vpop.f32.mrf.mxu1 }
 0x2db   :  { %487 = vst.msk [vmem:[%s880_s7 + $0xc] sm:$0xf] %vm483_vm1, %v523_v3  ;;  %v521_v28 = vpack.c.bf16 %v444_v2, %v444_v2  ;;  %v449_v5 = vadd.f32 %v711_v16, %v437_v26  ;;  %v429_v29 = vadd.f32 %v428_v27, %v329_v10 }
 0x2dc   :  { %v606_v43 = vpop.f32.mrf.mxu1 }
 0x2dd   :  { %485 = vst.msk [vmem:[%s880_s7 + $0x4] sm:$0xf] %vm483_vm1, %v521_v28  ;;  %v526_v52 = vpack.c.bf16 %v449_v5, %v449_v5  ;;  %v447_v4 = vadd.f32 %v700_v11, %v429_v29  ;;  %v440_v53 = vadd.f32 %v606_v43, %v329_v10 }
 0x2de   :  { %v431_v30 = vpop.f32.mrf.mxu1 }
 0x2df   :  { %490 = vst.msk [vmem:[%s880_s7 + $0x18] sm:$0xf] %vm483_vm1, %v526_v52  ;;  %v524_v31 = vpack.c.bf16 %v447_v4, %v447_v4  ;;  %v450_v16 = vadd.f32 %v713_v17, %v440_v53  ;;  %v432_v34 = vadd.f32 %v431_v30, %v329_v10 }
 0x2e1   :  { %488 = vst.msk [vmem:[%s880_s7 + $0x10] sm:$0xf] %vm483_vm1, %v524_v31  ;;  %v527_v35 = vpack.c.bf16 %v450_v16, %v450_v16  ;;  %v448_v36 = vadd.f32 %v702_v12, %v432_v34 }
 0x2e3   :  { %491 = vst.msk [vmem:[%s880_s7 + $0x1c] sm:$0xf] %vm483_vm1, %v527_v35  ;;  %v525_v11 = vpack.c.bf16 %v448_v36, %v448_v36 }
 0x2e5   :  { %489 = vst.msk [vmem:[%s880_s7 + $0x14] sm:$0xf] %vm483_vm1, %v525_v11 }

// kernel: rosettafold_forward.22
= control target key start
LH: loop header
LB: loop body
LE: loop exit
PB: predicated region body
PF: predicated region fallthrough
CT: control target
= control target key end

     0   :  { %s1848_s13 = smov 0   ;;  %s1850_s14 = smov 0   ;;  %s2095_s0 = inlined_call_operand.vmem [shape: bf16[4,16,64], index: 0, kind: input, shape index: {}, may-alias: {0,1}]   ;;  %s2096_s1 = inlined_call_operand.vmem [shape: bf16[4,16,64], index: 1, kind: input, shape index: {}, may-alias: {0,1}]   ;;  %s2097_s2 = inlined_call_operand.vmem [shape: bf16[1,64], index: 2, kind: input, shape index: {}]   ;;  %s2098_s3 = inlined_call_operand.vmem [shape: bf16[1,64], index: 3, kind: input, shape index: {}]   ;;  %s2099_s4 = inlined_call_operand.vmem [shape: bf16[64,64], index: 4, kind: input, shape index: {}]   ;;  %s2100_s5 = inlined_call_operand.vmem [shape: bf16[1,64], index: 5, kind: input, shape index: {}]   ;;  %s2101_s6 = inlined_call_operand.vmem [shape: bf16[64,128], index: 6, kind: input, shape index: {}]   ;;  %s2102_s7 = inlined_call_operand.vmem [shape: bf16[1,128], index: 7, kind: input, shape index: {}]   ;;  %s2103_s8 = inlined_call_operand.vmem [shape: bf16[64,64], index: 8, kind: input, shape index: {}]   ;;  %s2104_s9 = inlined_call_operand.vmem [shape: bf16[1,64], index: 9, kind: input, shape index: {}]   ;;  %s2105_s10 = inlined_call_operand.vmem [shape: bf16[4,16,64], index: 10, kind: output, shape index: {}]  }
   0x1   :  { %s1852_s15 = smov 0  }
   0x2 LB: > { %s32_s16 = sadd.s32 1, %s1778_s14  ;;  %p1495_p0 = scmp.ge.s32.totalorder %s1782_s15, 1  ;;  %s1782_s15 = sphi %s1852_s15, %s20_s15   ;;  %s1778_s14 = sphi %s1850_s14, %s2107_s14   ;;  %s1774_s13 = sphi %s1848_s13, %s2106_s13  }
   0x3   : > { %p34_p1 = scmp.ge.s32.totalorder %s32_s16, 4  ;;  %p343_p2 = scmp.lt.s32.totalorder %s1782_s15, 5 }
   0x5   : > { %s2109_s16 = smov (%p34_p1, %s32_s16), 0  ;;  %p344_p3 = pnand %p1495_p0, %p343_p2 }
   0x6   : > { %p394_p4 = scmp.lt.s32.totalorder (!%p344_p3), %s1774_s13, 3  ;;  %s1786_s12 = smov (!%p344_p3), 112  }
   0x7   : > { %347 = sbr.rel (%p344_p3) target bundleno = 3010 (0xbc2), region = 60  ;;  %s1789_s21 = smov (!%p344_p3), 96  }
   0x8   : > { %s1790_s26 = smov (!%p344_p3), 80   ;;  %s1791_s27 = smov (!%p344_p3), 32  }
   0x9   : > { %s1792_s30 = smov (!%p344_p3), 16  }
   0xc   : > { %s2111_s13 = smov (!%p394_p4, %s1774_s13), 3  ;;  %vm432_vm0 = vcmask 523264   ;;  %v1708_v30 = vld [vmem:[%s2101_s6 + $0x18] sm:$0xff]   ;;  %v1784_v32 = vmov 0.0   ;;  %v1710_v33 = vld [vmem:[%s2101_s6 + $0x10] sm:$0xff]   ;;  %vm1785_vm1 = vmmov 0   ;;  %v460_v48 = vlaneseq }
   0xd   : > { %s1866_s17 = sshll.u32 %s2111_s13, 3  ;;  %v1709_v31 = vld [vmem:[%s2099_s4 + $0x18] sm:$0xff]   ;;  %1591 = vmatprep.subr.bf16.mxu1 %v1784_v32  ;;  %1579 = vmatprep.subr.bf16.mxu0 %v1784_v32  ;;  %v1711_v34 = vld [vmem:[%s2099_s4 + $0x10] sm:$0xff]   ;;  %v1712_v35 = vld [vmem:[%s2101_s6 + $0x8] sm:$0xff]   ;;  %vm678_vm2 = vcmask 130048   ;;  %s1787_s13 = smov 64  }
   0xe   : > { %s398_s20 = scalar_lea.vmem %s2095_s0, %s1866_s17  ;;  %s407_s23 = scalar_lea.vmem %s2096_s1, %s1866_s17  ;;  %1592 = vmatpush3.bf16.msra.mxu1 %v1708_v30  ;;  %1580 = vmatpush3.bf16.msra.mxu0 %v1709_v31  ;;  %v1713_v36 = vld [vmem:[%s2099_s4 + $0x8] sm:$0xff]   ;;  %v1714_v37 = vld [vmem:[%s2101_s6] sm:$0xff]   ;;  %v461_v52 = vshrl.u32 %v460_v48, 7  ;;  %vm1389_vm3 = vcmask 519168  }
   0xf   : > { %v1542_v0 = vld [vmem:[%s398_s20] sm:$0xff]   ;;  %1593 = vmatprep.subr.bf16.mxu1 %v1784_v32  ;;  %1581 = vmatprep.subr.bf16.mxu0 %v1784_v32  ;;  %s1788_s20 = smov 48   ;;  %s417_s19 = scalar_lea.vmem %s2105_s10, %s1866_s17 }
  0x10   : > { %v1543_v1 = vunpack.c.l.bf16 %v1542_v0  ;;  %v1538_v2 = vld [vmem:[%s407_s23] sm:$0xff]   ;;  %v1544_v3 = vunpack.c.h.bf16 %v1542_v0  ;;  %1599 = vmatprep.mubr.msk.bf16.mxu1 %vm1785_vm1, %v1784_v32  ;;  %1587 = vmatprep.mubr.msk.bf16.mxu0 %vm1785_vm1, %v1784_v32  ;;  %v1949_v55 = vsub.s32 0, %v461_v52 }
  0x11   : > { %v1876_v4 = vunpack.c.l.bf16 %v1538_v2  ;;  %v1878_v5 = vunpack.c.h.bf16 %v1538_v2  ;;  %v1715_v38 = vld [vmem:[%s2099_s4] sm:$0xff]  }
  0x12   : > { %v433_v6 = vsel %vm432_vm0, %v1543_v1, 0.0  ;;  %v436_v8 = vsel %vm432_vm0, %v1544_v3, 0.0  ;;  %1594 = vmatpush3.bf16.msra.mxu1 %v1710_v33  ;;  %1582 = vmatpush3.bf16.msra.mxu0 %v1711_v34  ;;  %v420_v53 = vld [vmem:[%s2097_s2] sm:$0x1] }
  0x13   : > { %434 = vadd.xlane.f32.xlu0 %v433_v6  ;;  %v473_v7 = vsel %vm432_vm0, %v1876_v4, 0.0  ;;  %v476_v9 = vsel %vm432_vm0, %v1878_v5, 0.0  ;;  %1595 = vmatprep.subr.bf16.mxu1 %v1784_v32  ;;  %v421_v54 = vunpack.c.l.bf16 %v420_v53  ;;  %v422_v56 = vld [vmem:[%s2098_s3] sm:$0x1] }
  0x14   : > { %474 = vadd.xlane.f32.xlu1 %v473_v7  ;;  %1583 = vmatprep.subr.bf16.mxu0 %v1784_v32  ;;  %v423_v58 = vunpack.c.l.bf16 %v422_v56 }
  0x15   : > { %v463_v60 = vrot.slane %v421_v54, %v1949_v55 }
  0x16   : > { %1596 = vmatpush3.bf16.msra.mxu1 %v1712_v35  ;;  %1584 = vmatpush3.bf16.msra.mxu0 %v1713_v36 }
  0x17   : > { %437 = vadd.xlane.f32.xlu0 %v436_v8  ;;  %1597 = vmatprep.subr.bf16.mxu1 %v1784_v32 }
  0x18   : > { %477 = vadd.xlane.f32.xlu1 %v476_v9  ;;  %1585 = vmatprep.subr.bf16.mxu0 %v1784_v32 }
  0x1a   : > { %1598 = vmatpush3.bf16.msra.mxu1 %v1714_v37  ;;  %1586 = vmatpush3.bf16.msra.mxu0 %v1715_v38 }
  0x1b   : > { %1609 = vmatprep.subr.bf16.mxu1 %v1784_v32  ;;  %1603 = vmatprep.subr.bf16.mxu0 %v1784_v32 }
  0x9c   : > { %v435_v10 = vpop.xlane.xlu0 %434 }
  0x9d   : > { %v440_v11 = vmul.f32 0.015625, %v435_v10  ;;  %v475_v12 = vpop.xlane.xlu1 %474 }
  0x9e   : > { %v479_v13 = vmul.f32 0.015625, %v475_v12 }
  0x9f   : > { %v1886_v14 = vsub.f32 %v1543_v1, %v440_v11  ;;  %v469_v1 = vrot.slane %v423_v58, %v1949_v55 }
  0xa0   : > { %v1889_v15 = vsub.f32 %v1876_v4, %v479_v13  ;;  %v438_v16 = vpop.xlane.xlu0 %437 }
  0xa1   : > { %v441_v17 = vmul.f32 0.015625, %v438_v16  ;;  %v478_v18 = vpop.xlane.xlu1 %477  ;;  %v444_v19 = vmul.f32 %v1886_v14, %v1886_v14 }
  0xa2   : > { %v480_v20 = vmul.f32 0.015625, %v478_v18  ;;  %v483_v21 = vmul.f32 %v1889_v15, %v1889_v15 }
  0xa3   : > { %v1895_v22 = vsub.f32 %v1544_v3, %v441_v17  ;;  %v446_v23 = vsel %vm432_vm0, %v444_v19, 0.0 }
  0xa4   : > { %v1899_v24 = vsub.f32 %v1878_v5, %v480_v20  ;;  %447 = vadd.xlane.f32.xlu0 %v446_v23  ;;  %v485_v25 = vsel %vm432_vm0, %v483_v21, 0.0  ;;  %v512_v21 = vld [vmem:[%s2100_s5] sm:$0x1] }
  0xa5   : > { %v445_v26 = vmul.f32 %v1895_v22, %v1895_v22 }
  0xa6   : > { %v484_v27 = vmul.f32 %v1899_v24, %v1899_v24 }
  0xa7   : > { %v449_v28 = vsel %vm432_vm0, %v445_v26, 0.0 }
  0xa8   : > { %486 = vadd.xlane.f32.xlu0 %v485_v25  ;;  %450 = vadd.xlane.f32.xlu1 %v449_v28  ;;  %v488_v29 = vsel %vm432_vm0, %v484_v27, 0.0  ;;  %v513_v25 = vunpack.c.l.bf16 %v512_v21 }
  0xaa   : > { %v517_v31 = vrot.slane %v513_v25, %v1949_v55 }
  0xac   : > { %489 = vadd.xlane.f32.xlu1 %v488_v29 }
 0x12d   : > { %v448_v39 = vpop.xlane.xlu0 %447 }
 0x12e   : > { %v452_v40 = vmul.f32 0.015625, %v448_v39 }
 0x130   : > { %v454_v41 = vadd.f32 1e-05, %v452_v40 }
 0x131   : > { %v451_v42 = vpop.xlane.xlu1 %450  ;;  %v487_v43 = vpop.xlane.xlu0 %486 }
 0x132   : > { %1720 = vrsqrt.f32 %v454_v41  ;;  %v453_v44 = vmul.f32 0.015625, %v451_v42  ;;  %v491_v45 = vmul.f32 0.015625, %v487_v43 }
 0x134   : > { %v455_v46 = vadd.f32 1e-05, %v453_v44  ;;  %v493_v47 = vadd.f32 1e-05, %v491_v45 }
 0x135   : > { %v490_v49 = vpop.xlane.xlu1 %489 }
 0x136   : > { %1722 = vrsqrt.f32 %v455_v46  ;;  %v492_v50 = vmul.f32 0.015625, %v490_v49 }
 0x137   : > { %1724 = vrsqrt.f32 %v493_v47 }
 0x138   : > { %v494_v51 = vadd.f32 1e-05, %v492_v50 }
 0x13a   : > { %1726 = vrsqrt.f32 %v494_v51 }
 0x13f   : > { %v1721_v57 = vpop.eup %1720 }
 0x140   : > { %v458_v59 = vmul.f32 %v1721_v57, %v1886_v14 }
 0x142   : > { %v464_v0 = vmul.f32 %v463_v60, %v458_v59 }
 0x143   : > { %v1723_v61 = vpop.eup %1722 }
 0x144   : > { %v1725_v62 = vpop.eup %1724  ;;  %v459_v63 = vmul.f32 %v1723_v61, %v1895_v22  ;;  %v470_v7 = vadd.f32 %v469_v1, %v464_v0 }
 0x145   : > { %v497_v2 = vmul.f32 %v1725_v62, %v1889_v15  ;;  %v595_v15 = vld [vmem:[%s2102_s7] sm:$0x1] }
 0x146   : > { %v465_v3 = vmul.f32 %v463_v60, %v459_v63  ;;  %v596_v17 = vunpack.c.l.bf16 %v595_v15 }
 0x147   : > { %v1727_v6 = vpop.eup %1726  ;;  %v499_v10 = vmul.f32 %v497_v2, %v463_v60  ;;  %v1716_v2 = vld [vmem:[%s2103_s8] sm:$0xff]  }
 0x148   : > { %v471_v8 = vadd.f32 %v469_v1, %v465_v3  ;;  %v498_v9 = vmul.f32 %v1727_v6, %v1899_v24  ;;  %v600_v19 = vrot.slane %v596_v17, %v1949_v55 }
 0x149   : > { %v501_v13 = vadd.f32 %v499_v10, %v469_v1 }
 0x14a   : > { %v472_v11 = vpack.c.bf16 %v471_v8, %v470_v7  ;;  %v500_v12 = vmul.f32 %v498_v9, %v463_v60 }
 0x14c   : > { %1600 = vmatmul.mubr.msk.bf16.vlgmr.msra.gmra.mxu1 %vm432_vm0, %v472_v11  ;;  %v502_v14 = vadd.f32 %v500_v12, %v469_v1 }
 0x14d   : > { %1611 = vmatprep.mubr.msk.bf16.mxu1 %vm1785_vm1, %v1784_v32 }
 0x14e   : > { %v503_v16 = vpack.c.bf16 %v502_v14, %v501_v13 }
 0x150   : > { %1588 = vmatmul.mubr.msk.bf16.vlgmr.msra.gmra.mxu0 %vm432_vm0, %v503_v16 }
 0x151   : > { %1605 = vmatprep.mubr.msk.bf16.mxu0 %vm1785_vm1, %v1784_v32 }
 0x20c   : > { %v662_v18 = vpop.f32.mrf.mxu1 }
 0x20d   : > { %v663_v24 = vadd.f32 %v662_v18, %v600_v19 }
 0x20e   : > { %v1601_v20 = vpop.f32.mrf.mxu1 }
 0x210   : > { %v579_v22 = vpop.f32.mrf.mxu0  ;;  %v665_v23 = vpop.f32.mrf.mxu1 }
 0x211   : > { %v666_v26 = vadd.f32 %v665_v23, %v600_v19  ;;  %v580_v36 = vadd.f32 %v579_v22, %v517_v31 }
 0x212   : > { %v1589_v27 = vpop.f32.mrf.mxu0  ;;  %v1602_v28 = vpop.f32.mrf.mxu1 }
 0x213   : > { %v1973_v29 = vpack.c.bf16 %v666_v26, %v663_v24 }
 0x214   : > { %v582_v30 = vpop.f32.mrf.mxu0 }
 0x215   : > { %v683_v33 = vsel %vm678_vm2, %v1973_v29, 0  ;;  %v583_v35 = vadd.f32 %v582_v30, %v517_v31 }
 0x216   : > { %v1590_v34 = vpop.f32.mrf.mxu0  ;;  %1604 = vmatpush3.bf16.xpose.msra.mxu0 %v683_v33 }
 0x217   : > { %1615 = vmatprep.subr.bf16.mxu0 %v1784_v32  ;;  %v1979_v37 = vpack.c.bf16 %v583_v35, %v580_v36 }
 0x21d   : > { %1606 = vmatmul.mubr.msk.bf16.vlgmr.msra.gmra.mxu0 %vm678_vm2, %v1979_v37 }
 0x21e   : > { %1617 = vmatprep.mubr.msk.bf16.mxu0 %vm1785_vm1, %v1784_v32  ;;  %1616 = vmatpush3.bf16.msra.mxu0 %v1716_v2 }
 0x21f   : > { %1627 = vmatprep.subr.bf16.mxu0 %v1784_v32 }
 0x2dd   : > { %v719_v38 = vpop.f32.mrf.mxu0 }
 0x2de   : > { %v726_v39 = vsel %vm678_vm2, %v719_v38, -inf }
 0x2df   : > { %727 = vmax.xlane.f32.xlu0 %v726_v39  ;;  %v1607_v40 = vpop.f32.mrf.mxu0 }
 0x2e1   : > { %v722_v41 = vpop.f32.mrf.mxu0 }
 0x2e2   : > { %v729_v42 = vsel %vm678_vm2, %v722_v41, -inf }
 0x2e3   : > { %730 = vmax.xlane.f32.xlu1 %v729_v42  ;;  %v1608_v43 = vpop.f32.mrf.mxu0 }
 0x368   : > { %v728_v44 = vpop.xlane.xlu0 %727 }
 0x369   : > { %v732_v45 = vsub.f32 %v719_v38, %v728_v44  ;;  %v1717_v44 = vld [vmem:[%s2103_s8 + $0x8] sm:$0xff]  }
 0x36b   : > { %v734_v46 = vmul.f32 1.442695, %v732_v45 }
 0x36c   : > { %v731_v47 = vpop.xlane.xlu1 %730 }
 0x36d   : > { %1728 = vpow2.f32 %v734_v46  ;;  %v733_v48 = vsub.f32 %v722_v41, %v731_v47 }
 0x36f   : > { %v736_v49 = vmul.f32 1.442695, %v733_v48 }
 0x371   : > { %1730 = vpow2.f32 %v736_v49 }
 0x37a   : > { %v1729_v50 = vpop.eup %1728 }
 0x37b   : > { %v738_v51 = vsel %vm678_vm2, %v1729_v50, 0.0 }
 0x37c   : > { %739 = vadd.xlane.f32.xlu0 %v738_v51 }
 0x37e   : > { %v1731_v52 = vpop.eup %1730 }
 0x37f   : > { %v741_v53 = vsel %vm678_vm2, %v1731_v52, 0.0 }
 0x380   : > { %742 = vadd.xlane.f32.xlu1 %v741_v53 }
 0x391   : > { %855 = vrot.lane.b32.xlu1 %v1973_v29, %s1786_s12 }
 0x392   : > { %750 = vrot.lane.b32.xlu0 %v1973_v29, %s1787_s13 }
 0x395   : > { %853 = vrot.lane.b32.xlu1 %v1979_v37, %s1786_s12 }
 0x405   : > { %v740_v54 = vpop.xlane.xlu0 %739 }
 0x406   : > { %1732 = vrcp.f32 %v740_v54 }
 0x409   : > { %v751_v56 = vpop.permute.xlu0 %750  ;;  %v743_v57 = vpop.xlane.xlu1 %742 }
 0x40a   : > { %1734 = vrcp.f32 %v743_v57  ;;  %1610 = vmatpush3.bf16.msra.mxu1 %v751_v56 }
 0x40b   : > { %1621 = vmatprep.subr.bf16.mxu1 %v1784_v32 }
 0x40d   : > { %v856_v62 = vpop.permute.xlu1 %855 }
 0x40e   : > { %v861_v0 = vsel %vm678_vm2, %v856_v62, 0 }
 0x411   : > { %v854_v1 = vpop.permute.xlu1 %853 }
 0x413   : > { %v1733_v58 = vpop.eup %1732 }
 0x414   : > { %v746_v60 = vmul.f32 %v1733_v58, %v1729_v50 }
 0x417   : > { %v1735_v59 = vpop.eup %1734 }
 0x418   : > { %v747_v61 = vmul.f32 %v1735_v59, %v1731_v52 }
 0x41a   : > { %v748_v63 = vpack.c.bf16 %v747_v61, %v746_v60 }
 0x41c   : > { %1612 = vmatmul.mubr.msk.bf16.vlgmr.msra.gmra.mxu1 %vm678_vm2, %v748_v63 }
 0x41d   : > { %1622 = vmatpush3.bf16.xpose.msra.mxu1 %v861_v0  ;;  %1623 = vmatprep.mubr.msk.bf16.mxu1 %vm1785_vm1, %v1784_v32 }
 0x41e   : > { %1633 = vmatprep.subr.bf16.mxu1 %v1784_v32 }
 0x424   : > { %1624 = vmatmul.mubr.msk.bf16.vlgmr.msra.gmra.mxu1 %vm678_vm2, %v854_v1 }
 0x425   : > { %1635 = vmatprep.mubr.msk.bf16.mxu1 %vm1785_vm1, %v1784_v32  ;;  %1634 = vmatpush3.bf16.msra.mxu1 %v1717_v44 }
 0x426   : > { %1645 = vmatprep.subr.bf16.mxu1 %v1784_v32 }
 0x4dc   : > { %v790_v3 = vpop.f32.mrf.mxu1 }
 0x4de   : > { %v1613_v6 = vpop.f32.mrf.mxu1 }
 0x4e0   : > { %v793_v7 = vpop.f32.mrf.mxu1 }
 0x4e1   : > { %v797_v8 = vpack.c.bf16 %v793_v7, %v790_v3  ;;  %v670_v3 = vld [vmem:[%s2104_s9] sm:$0x1] }
 0x4e2   : > { %v1614_v9 = vpop.f32.mrf.mxu1  ;;  %v671_v6 = vunpack.c.l.bf16 %v670_v3 }
 0x4e3   : > { %1618 = vmatmul.mubr.msk.bf16.vlgmr.msra.gmra.mxu0 %vm678_vm2, %v797_v8 }
 0x4e4   : > { %v897_v10 = vpop.f32.mrf.mxu1  ;;  %1629 = vmatprep.mubr.msk.bf16.mxu0 %vm1785_vm1, %v1784_v32  ;;  %v675_v7 = vrot.slane %v671_v6, %v1949_v55 }
 0x4e5   : > { %v904_v11 = vsel %vm678_vm2, %v897_v10, -inf }
 0x4e6   : > { %905 = vmax.xlane.f32.xlu1 %v904_v11  ;;  %v1625_v12 = vpop.f32.mrf.mxu1  ;;  %v676_v8 = vadd.f32 %v1876_v4, %v675_v7 }
 0x4e8   : > { %v900_v13 = vpop.f32.mrf.mxu1 }
 0x4e9   : > { %v907_v14 = vsel %vm678_vm2, %v900_v13, -inf }
 0x4ea   : > { %908 = vmax.xlane.f32.xlu0 %v907_v14  ;;  %v1626_v16 = vpop.f32.mrf.mxu1 }
 0x4f7   : > { %927 = vrot.lane.b32.xlu1 %v1973_v29, %s1788_s20 }
 0x4fb   : > { %1029 = vrot.lane.b32.xlu1 %v1979_v37, %s1789_s21 }
 0x56f   : > { %v906_v15 = vpop.xlane.xlu1 %905 }
 0x570   : > { %v910_v17 = vsub.f32 %v897_v10, %v906_v15  ;;  %v677_v10 = vadd.f32 %v1878_v5, %v675_v7 }
 0x572   : > { %v912_v18 = vmul.f32 1.442695, %v910_v17 }
 0x573   : > { %v928_v19 = vpop.permute.xlu1 %927  ;;  %v909_v20 = vpop.xlane.xlu0 %908 }
 0x574   : > { %1736 = vpow2.f32 %v912_v18  ;;  %v911_v21 = vsub.f32 %v900_v13, %v909_v20  ;;  %1628 = vmatpush3.bf16.msra.mxu0 %v928_v19 }
 0x575   : > { %1639 = vmatprep.subr.bf16.mxu0 %v1784_v32 }
 0x576   : > { %v914_v22 = vmul.f32 1.442695, %v911_v21 }
 0x577   : > { %v1030_v43 = vpop.permute.xlu1 %1029 }
 0x578   : > { %1738 = vpow2.f32 %v914_v22 }
 0x581   : > { %v1737_v23 = vpop.eup %1736 }
 0x582   : > { %v916_v24 = vsel %vm678_vm2, %v1737_v23, 0.0 }
 0x583   : > { %917 = vadd.xlane.f32.xlu0 %v916_v24 }
 0x585   : > { %v1739_v25 = vpop.eup %1738 }
 0x586   : > { %v919_v26 = vsel %vm678_vm2, %v1739_v25, 0.0 }
 0x587   : > { %920 = vadd.xlane.f32.xlu0 %v919_v26 }
 0x59d   : > { %1031 = vrot.lane.b32.xlu0 %v1973_v29, %s1789_s21 }
 0x5a3   : > { %v2016_v27 = vpop.f32.mrf.mxu0 }
 0x5a4   : > { %v850_v9 = vadd.f32 %v2016_v27, %v676_v8 }
 0x5a5   : > { %v1619_v28 = vpop.f32.mrf.mxu0 }
 0x5a7   : > { %v2018_v30 = vpop.f32.mrf.mxu0 }
 0x5a8   : > { %v851_v14 = vadd.f32 %v2018_v30, %v677_v10 }
 0x5a9   : > { %v1620_v31 = vpop.f32.mrf.mxu0 }
 0x60c   : > { %v918_v33 = vpop.xlane.xlu0 %917 }
 0x60d   : > { %1740 = vrcp.f32 %v918_v33 }
 0x610   : > { %v921_v34 = vpop.xlane.xlu0 %920 }
 0x611   : > { %1742 = vrcp.f32 %v921_v34 }
 0x614   : > { %v1032_v40 = vpop.permute.xlu0 %1031 }
 0x615   : > { %v1037_v42 = vsel %vm678_vm2, %v1032_v40, 0 }
 0x61a   : > { %v1741_v35 = vpop.eup %1740 }
 0x61b   : > { %v924_v38 = vmul.f32 %v1741_v35, %v1737_v23 }
 0x61e   : > { %v1743_v36 = vpop.eup %1742 }
 0x61f   : > { %v925_v39 = vmul.f32 %v1743_v36, %v1739_v25  ;;  %v1718_v25 = vld [vmem:[%s2103_s8 + $0x10] sm:$0xff]  }
 0x621   : > { %v926_v41 = vpack.c.bf16 %v925_v39, %v924_v38 }
 0x623   : > { %1630 = vmatmul.mubr.msk.bf16.vlgmr.msra.gmra.mxu0 %vm678_vm2, %v926_v41 }
 0x624   : > { %1640 = vmatpush3.bf16.xpose.msra.mxu0 %v1037_v42  ;;  %1641 = vmatprep.mubr.msk.bf16.mxu0 %vm1785_vm1, %v1784_v32 }
 0x625   : > { %1651 = vmatprep.subr.bf16.mxu0 %v1784_v32 }
 0x62b   : > { %1642 = vmatmul.mubr.msk.bf16.vlgmr.msra.gmra.mxu0 %vm678_vm2, %v1030_v43 }
 0x62c   : > { %1653 = vmatprep.mubr.msk.bf16.mxu0 %vm1785_vm1, %v1784_v32  ;;  %1652 = vmatpush3.bf16.msra.mxu0 %v1718_v25 }
 0x62d   : > { %1663 = vmatprep.subr.bf16.mxu0 %v1784_v32 }
 0x6e3   : > { %v967_v45 = vpop.f32.mrf.mxu0 }
 0x6e5   : > { %v1631_v46 = vpop.f32.mrf.mxu0 }
 0x6e7   : > { %v970_v47 = vpop.f32.mrf.mxu0 }
 0x6e8   : > { %v974_v48 = vpack.c.bf16 %v970_v47, %v967_v45 }
 0x6e9   : > { %v1632_v49 = vpop.f32.mrf.mxu0 }
 0x6ea   : > { %1636 = vmatmul.mubr.msk.bf16.vlgmr.msra.gmra.mxu1 %vm678_vm2, %v974_v48 }
 0x6eb   : > { %v1073_v50 = vpop.f32.mrf.mxu0  ;;  %1647 = vmatprep.mubr.msk.bf16.mxu1 %vm1785_vm1, %v1784_v32 }
 0x6ec   : > { %v1080_v51 = vsel %vm678_vm2, %v1073_v50, -inf }
 0x6ed   : > { %1081 = vmax.xlane.f32.xlu1 %v1080_v51  ;;  %v1643_v52 = vpop.f32.mrf.mxu0 }
 0x6ef   : > { %v1076_v53 = vpop.f32.mrf.mxu0 }
 0x6f0   : > { %v1083_v54 = vsel %vm678_vm2, %v1076_v53, -inf }
 0x6f1   : > { %1084 = vmax.xlane.f32.xlu0 %v1083_v54  ;;  %v1644_v56 = vpop.f32.mrf.mxu0 }
 0x776   : > { %v1082_v57 = vpop.xlane.xlu1 %1081 }
 0x777   : > { %v1086_v58 = vsub.f32 %v1073_v50, %v1082_v57 }
 0x779   : > { %v1088_v59 = vmul.f32 1.442695, %v1086_v58 }
 0x77a   : > { %v1085_v60 = vpop.xlane.xlu0 %1084 }
 0x77b   : > { %1744 = vpow2.f32 %v1088_v59  ;;  %v1087_v61 = vsub.f32 %v1076_v53, %v1085_v60 }
 0x77d   : > { %v1090_v62 = vmul.f32 1.442695, %v1087_v61 }
 0x77f   : > { %1746 = vpow2.f32 %v1090_v62 }
 0x788   : > { %v1745_v63 = vpop.eup %1744 }
 0x789   : > { %v1092_v0 = vsel %vm678_vm2, %v1745_v63, 0.0 }
 0x78a   : > { %1093 = vadd.xlane.f32.xlu0 %v1092_v0 }
 0x78c   : > { %v1747_v1 = vpop.eup %1746 }
 0x78d   : > { %v1095_v2 = vsel %vm678_vm2, %v1747_v1, 0.0 }
 0x78e   : > { %1096 = vadd.xlane.f32.xlu1 %v1095_v2 }
 0x79f   : > { %1207 = vrot.lane.b32.xlu1 %v1973_v29, %s1790_s26 }
 0x7a0   : > { %1103 = vrot.lane.b32.xlu0 %v1973_v29, %s1791_s27 }
 0x7a3   : > { %1205 = vrot.lane.b32.xlu1 %v1979_v37, %s1790_s26 }
 0x7aa   : > { %v1020_v11 = vpop.f32.mrf.mxu1 }
 0x7ab   : > { %v2049_v12 = vadd.f32 %v1020_v11, %v850_v9 }
 0x7ac   : > { %v1637_v13 = vpop.f32.mrf.mxu1 }
 0x7ae   : > { %v1023_v16 = vpop.f32.mrf.mxu1 }
 0x7af   : > { %v2052_v15 = vadd.f32 %v1023_v16, %v851_v14 }
 0x7b0   : > { %v1638_v17 = vpop.f32.mrf.mxu1 }
 0x813   : > { %v1094_v18 = vpop.xlane.xlu0 %1093 }
 0x814   : > { %1748 = vrcp.f32 %v1094_v18 }
 0x817   : > { %v1097_v55 = vpop.xlane.xlu1 %1096  ;;  %v1104_v37 = vpop.permute.xlu0 %1103 }
 0x818   : > { %1750 = vrcp.f32 %v1097_v55  ;;  %1646 = vmatpush3.bf16.msra.mxu1 %v1104_v37 }
 0x819   : > { %1657 = vmatprep.subr.bf16.mxu1 %v1784_v32 }
 0x81b   : > { %v1208_v21 = vpop.permute.xlu1 %1207 }
 0x81c   : > { %v1213_v23 = vsel %vm678_vm2, %v1208_v21, 0 }
 0x81f   : > { %v1206_v24 = vpop.permute.xlu1 %1205 }
 0x821   : > { %v1749_v4 = vpop.eup %1748 }
 0x822   : > { %v1100_v19 = vmul.f32 %v1749_v4, %v1745_v63  ;;  %v1719_v63 = vld [vmem:[%s2103_s8 + $0x18] sm:$0xff]  }
 0x825   : > { %v1751_v5 = vpop.eup %1750 }
 0x826   : > { %v1101_v20 = vmul.f32 %v1751_v5, %v1747_v1 }
 0x828   : > { %v1102_v22 = vpack.c.bf16 %v1101_v20, %v1100_v19 }
 0x82a   : > { %1648 = vmatmul.mubr.msk.bf16.vlgmr.msra.gmra.mxu1 %vm678_vm2, %v1102_v22 }
 0x82b   : > { %1658 = vmatpush3.bf16.xpose.msra.mxu1 %v1213_v23  ;;  %1659 = vmatprep.mubr.msk.bf16.mxu1 %vm1785_vm1, %v1784_v32 }
 0x82c   : > { %1669 = vmatprep.subr.bf16.mxu1 %v1784_v32 }
 0x832   : > { %1660 = vmatmul.mubr.msk.bf16.vlgmr.msra.gmra.mxu1 %vm678_vm2, %v1206_v24 }
 0x833   : > { %1671 = vmatprep.mubr.msk.bf16.mxu1 %vm1785_vm1, %v1784_v32  ;;  %1670 = vmatpush3.bf16.msra.mxu1 %v1719_v63 }
 0x8ea   : > { %v1143_v26 = vpop.f32.mrf.mxu1 }
 0x8ec   : > { %v1649_v27 = vpop.f32.mrf.mxu1 }
 0x8ee   : > { %v1146_v28 = vpop.f32.mrf.mxu1 }
 0x8ef   : > { %v1150_v30 = vpack.c.bf16 %v1146_v28, %v1143_v26 }
 0x8f0   : > { %v1650_v31 = vpop.f32.mrf.mxu1 }
 0x8f1   : > { %1654 = vmatmul.mubr.msk.bf16.vlgmr.msra.gmra.mxu0 %vm678_vm2, %v1150_v30 }
 0x8f2   : > { %v1249_v33 = vpop.f32.mrf.mxu1  ;;  %1665 = vmatprep.mubr.msk.bf16.mxu0 %vm1785_vm1, %v1784_v32 }
 0x8f3   : > { %v1256_v34 = vsel %vm678_vm2, %v1249_v33, -inf }
 0x8f4   : > { %1257 = vmax.xlane.f32.xlu1 %v1256_v34  ;;  %v1661_v35 = vpop.f32.mrf.mxu1 }
 0x8f6   : > { %v1252_v36 = vpop.f32.mrf.mxu1 }
 0x8f7   : > { %v1259_v38 = vsel %vm678_vm2, %v1252_v36, -inf }
 0x8f8   : > { %1260 = vmax.xlane.f32.xlu0 %v1259_v38  ;;  %v1662_v39 = vpop.f32.mrf.mxu1 }
 0x905   : > { %1279 = vrot.lane.b32.xlu1 %v1973_v29, %s1792_s30 }
 0x97d   : > { %v1258_v40 = vpop.xlane.xlu1 %1257 }
 0x97e   : > { %v1262_v41 = vsub.f32 %v1249_v33, %v1258_v40 }
 0x980   : > { %v1264_v42 = vmul.f32 1.442695, %v1262_v41 }
 0x981   : > { %v1280_v43 = vpop.permute.xlu1 %1279  ;;  %v1261_v44 = vpop.xlane.xlu0 %1260 }
 0x982   : > { %1752 = vpow2.f32 %v1264_v42  ;;  %v1263_v45 = vsub.f32 %v1252_v36, %v1261_v44  ;;  %1664 = vmatpush3.bf16.msra.mxu0 %v1280_v43 }
 0x984   : > { %v1266_v32 = vmul.f32 1.442695, %v1263_v45 }
 0x986   : > { %1754 = vpow2.f32 %v1266_v32 }
 0x98f   : > { %v1753_v46 = vpop.eup %1752 }
 0x990   : > { %v1268_v47 = vsel %vm678_vm2, %v1753_v46, 0.0 }
 0x991   : > { %1269 = vadd.xlane.f32.xlu0 %v1268_v47 }
 0x993   : > { %v1755_v48 = vpop.eup %1754 }
 0x994   : > { %v1271_v49 = vsel %vm678_vm2, %v1755_v48, 0.0 }
 0x995   : > { %1272 = vadd.xlane.f32.xlu0 %v1271_v49 }
 0x9b1   : > { %v1196_v50 = vpop.f32.mrf.mxu0 }
 0x9b2   : > { %v1203_v29 = vadd.f32 %v1196_v50, %v2049_v12 }
 0x9b3   : > { %v1655_v51 = vpop.f32.mrf.mxu0 }
 0x9b5   : > { %v1199_v52 = vpop.f32.mrf.mxu0 }
 0x9b6   : > { %v1204_v53 = vadd.f32 %v1199_v52, %v2052_v15 }
 0x9b7   : > { %v1656_v54 = vpop.f32.mrf.mxu0 }
 0xa1a   : > { %v1270_v56 = vpop.xlane.xlu0 %1269 }
 0xa1b   : > { %1756 = vrcp.f32 %v1270_v56 }
 0xa1e   : > { %v1273_v57 = vpop.xlane.xlu0 %1272 }
 0xa1f   : > { %1758 = vrcp.f32 %v1273_v57 }
 0xa28   : > { %v1757_v58 = vpop.eup %1756 }
 0xa29   : > { %v1276_v61 = vmul.f32 %v1757_v58, %v1753_v46 }
 0xa2c   : > { %v1759_v59 = vpop.eup %1758 }
 0xa2d   : > { %v1277_v60 = vmul.f32 %v1759_v59, %v1755_v48 }
 0xa2f   : > { %v1278_v62 = vpack.c.bf16 %v1277_v60, %v1276_v61 }
 0xa31   : > { %1666 = vmatmul.mubr.msk.bf16.vlgmr.msra.gmra.mxu0 %vm678_vm2, %v1278_v62 }
 0xaf1   : > { %v1319_v0 = vpop.f32.mrf.mxu0 }
 0xaf3   : > { %v1667_v1 = vpop.f32.mrf.mxu0 }
 0xaf5   : > { %v1322_v2 = vpop.f32.mrf.mxu0 }
 0xaf6   : > { %v1326_v3 = vpack.c.bf16 %v1322_v2, %v1319_v0 }
 0xaf7   : > { %v1668_v6 = vpop.f32.mrf.mxu0 }
 0xaf8   : > { %1672 = vmatmul.mubr.msk.bf16.vlgmr.msra.gmra.mxu1 %vm678_vm2, %v1326_v3 }
 0xbb8   : > { %v1372_v7 = vpop.f32.mrf.mxu1 }
 0xbb9   : > { %v1379_v8 = vadd.f32 %v1372_v7, %v1203_v29 }
 0xbba   : > { %v1673_v9 = vpop.f32.mrf.mxu1 }
 0xbbb   : > { %v1535_v10 = vpack.c.bf16 %v1379_v8, %v1379_v8 }
 0xbbc   : > { %v1375_v11 = vpop.f32.mrf.mxu1 }
 0xbbd   : > { %1390 = vst.msk [vmem:[%s417_s19] sm:$0xf] %vm1389_vm3, %v1535_v10  ;;  %v1380_v12 = vadd.f32 %v1375_v11, %v1204_v53 }
 0xbbe   : > { %v1674_v13 = vpop.f32.mrf.mxu1 }
 0xbbf   : > { %v1536_v14 = vpack.c.bf16 %v1380_v12, %v1380_v12 }
 0xbc1   : > { %1391 = vst.msk [vmem:[%s417_s19 + $0x4] sm:$0xf] %vm1389_vm3, %v1536_v14 }
 0xbc2 PF: > { %s20_s15 = sadd.s32 1, %s1782_s15   ;;  %s2106_s13 = smov %s1778_s14 }
 0xbc3   : > { %p17_p5 = scmp.ge.s32.totalorder %s20_s15, 6   ;;  %s2107_s14 = smov %s2109_s16 }
 0xbc5   :  { %19 = sbr.rel (!%p17_p5) target bundleno = 2 (0x2), region = 93 }

</bundles_post_ra>
